<compile_context>
chip_gen: v5e
topology: v5e:2x2
jax: 0.10.0
libtpu: 0.0.40
codegen_flags: <defaults>
</compile_context>

<pallas_src>
import functools

import jax
import jax.numpy as jnp
from jax.experimental import pallas as pl
from jax.experimental.pallas import tpu as pltpu


_HALO = 6                                   # 3 pools x radius 2
_FILL = float(jnp.finfo(jnp.float32).min)   # stands in for the pool's -inf pad


def _silu(x):
    return x * jax.nn.sigmoid(x)            # exp/logistic run on the EUP slot


def _pool5_flat(m, col, W):
    """5x5 / stride-1 / pad-2 max pool on the row-flattened (rows*W, C) layout.

    H window: max over slices at offsets 0..4 times W (sublane aligned =>
    view-style reads, no pad-concatenate copies); consumes 2 halo rows at each
    end, so the result has 4*W fewer flat rows.
    W window: pltpu.roll + column mask; the roll's wrap-around only ever lands
    in masked border columns, so it is exactly -inf-padded pooling.
    """
    R = m.shape[0] - 4 * W
    out = m[0:R]
    for d in range(1, 5):
        out = jnp.maximum(out, m[d * W:d * W + R])

    c = col[0:R]
    res = out
    for d in (1, 2):
        right = pltpu.roll(out, shift=R - d, axis=0)   # right[f] = out[f + d]
        res = jnp.maximum(res, jnp.where(c < W - d, right, _FILL))
        left = pltpu.roll(out, shift=d, axis=0)        # left[f]  = out[f - d]
        res = jnp.maximum(res, jnp.where(c >= d, left, _FILL))
    return res


def _sppf_kernel(H, TH, lrow_ref, lcol_ref, xt_ref, xm_ref, xb_ref,
                 w1_ref, b1_ref, w2_ref, b2_ref, o_ref):
    # lrow/lcol : (Hh*W, 1) int32   local row / column index of each flat row
    # xt/xb     : (1, 8, W, Cin)    8-row blocks above / below the tile (clamped)
    # xm        : (1, TH, W, Cin)   the tile's own rows
    # w1 (Cin, Ch), b1 (1, Ch)      cv1 (1x1 conv + folded BN)
    # w2 (4, Ch, Co), b2 (1, Co)    cv2, pre-split per concat branch
    # o         : (1, TH, W, Co)
    W, Cin = xm_ref.shape[2], xm_ref.shape[3]
    Co = o_ref.shape[3]
    Hh = TH + 2 * _HALO

    t = pl.program_id(1)
    row0 = t * TH - _HALO                     # global image row of local row 0

    # Assemble the halo'd input band (one cheap major-dim concat) and flatten
    # rows (W % 8 == 0 keeps the reshape a layout no-op).
    x = jnp.concatenate(
        [xt_ref[0, 8 - _HALO:], xm_ref[0], xb_ref[0, :_HALO]], axis=0)
    x = x.reshape(Hh * W, Cin)

    # cv1: 1x1 conv as one MXU matmul over lanes (+ folded-BN bias + SiLU).
    h = jnp.dot(x.astype(w1_ref.dtype), w1_ref[...],
                preferred_element_type=jnp.float32)
    h = _silu(h + b1_ref[...])                              # (Hh*W, Ch) f32

    # Halo rows outside the image act as the max pool's -inf padding.
    grow = lrow_ref[...] + row0
    in_img = jnp.logical_and(grow >= 0, grow < H)
    h = jnp.where(in_img, h, _FILL)

    col = lcol_ref[...]
    mm_dtype = w2_ref.dtype

    def pdot(a, k):                           # a: (TH*W, Ch)
        return jnp.dot(a.astype(mm_dtype), w2_ref[k],
                       preferred_element_type=jnp.float32)

    # cv2 as four accumulated partial dots; each pooled stage is consumed
    # immediately (no (H, W, 4*Ch) concat is ever materialized).
    acc = pdot(h[_HALO * W:(_HALO + TH) * W], 0)
    y = _pool5_flat(h, col, W)                              # rows: (TH+8)*W
    acc += pdot(y[(_HALO - 2) * W:(_HALO - 2 + TH) * W], 1)
    y = _pool5_flat(y, col, W)                              # rows: (TH+4)*W
    acc += pdot(y[(_HALO - 4) * W:(_HALO - 4 + TH) * W], 2)
    y = _pool5_flat(y, col, W)                              # rows:  TH   *W
    acc += pdot(y, 3)

    out = _silu(acc + b2_ref[...])
    o_ref[0] = out.reshape(TH, W, Co).astype(o_ref.dtype)


def _fold_bn(w_oi, gamma, beta, mean, var, eps, mm_dtype):
    """Fold inference-mode BatchNorm into a bias-free 1x1 conv. w_oi: (Cout, Cin)."""
    scale = gamma / jnp.sqrt(var + eps)                        # (Cout,)
    w_folded = (w_oi.astype(jnp.float32) * scale[:, None]).T   # (Cin, Cout)
    b_folded = (beta - mean * scale)[None, :]                  # (1, Cout)
    return w_folded.astype(mm_dtype), b_folded.astype(jnp.float32)


def _pick_tile_h(H, W, Cin, Ch, Co, itemsize, budget_bytes=8 * 1024 * 1024):
    """Largest tile height (multiple of 8, dividing H) within a VMEM budget
    that is conservative across v5e/v6e/v7x default scoped-VMEM limits."""
    cands = [th for th in range(8, H + 1, 8) if H % th == 0]
    if not cands:
        return H

    def step_bytes(th):
        hh = th + 2 * _HALO
        io = 2 * th * W * (Cin + Co) * itemsize + 4 * 8 * W * Cin * itemsize
        act = 3 * hh * W * Ch * 4                # h + live pooled stages (f32)
        return io + act

    ok = [th for th in cands if step_bytes(th) <= budget_bytes]
    return max(ok) if ok else min(cands)


def sppf_forward(x_nchw, params, *, tile_h=None, eps=1e-5):
    N, Cin, H, W = x_nchw.shape
    # MXU operands in the activation dtype (bf16 models get bf16 weights and
    # bf16 dot inputs); biases, pooling and accumulation stay f32.
    mm_dtype = x_nchw.dtype
    w1, b1 = _fold_bn(params["w1"], params["g1"], params["be1"],
                      params["m1"], params["v1"], eps, mm_dtype)
    w2, b2 = _fold_bn(params["w2"], params["g2"], params["be2"],
                      params["m2"], params["v2"], eps, mm_dtype)
    Ch = w1.shape[1]
    Co = w2.shape[1]
    w2 = w2.reshape(4, Ch, Co)                   # pre-split for the partial dots

    assert H % 8 == 0 and W % 8 == 0, (H, W)     # TODO(synk): pad ragged H/W
    if tile_h is None:
        tile_h = _pick_tile_h(H, W, Cin, Ch, Co, x_nchw.dtype.itemsize)
    assert tile_h % 8 == 0 and H % tile_h == 0, (H, tile_h)
    TH = tile_h
    Hh = TH + 2 * _HALO
    bpr = TH // 8                                # 8-row halo blocks per tile
    H8 = H // 8

    x_nhwc = jnp.transpose(x_nchw, (0, 2, 3, 1))             # glue: NCHW -> NHWC

    # Per-flat-row local row / column indices (grid-invariant VMEM residents);
    # used for the out-of-image halo mask and the W-pool boundary mask.
    lrow = jnp.repeat(jnp.arange(Hh, dtype=jnp.int32), W).reshape(Hh * W, 1)
    lcol = jnp.tile(jnp.arange(W, dtype=jnp.int32), Hh).reshape(Hh * W, 1)

    itemsize = x_nchw.dtype.itemsize
    flops = int(2 * N * H * W * (Cin * Ch + 4 * Ch * Co))
    transcendentals = int(N * H * W * (Ch + Co))             # exp in SiLU
    bytes_accessed = int(itemsize * N * H * W * (Cin + Co)
                         + w1.dtype.itemsize * (w1.size + w2.size)
                         + 4 * (b1.size + b2.size))

    kernel = functools.partial(_sppf_kernel, H, TH)

    out_nhwc = pl.pallas_call(
        kernel,
        grid=(N, H // TH),
        in_specs=[
            pl.BlockSpec((Hh * W, 1), lambda n, t: (0, 0)),
            pl.BlockSpec((Hh * W, 1), lambda n, t: (0, 0)),
            # 8-row block just above the tile (clamped at the top edge)
            pl.BlockSpec((1, 8, W, Cin),
                         lambda n, t: (n, jnp.maximum(t * bpr - 1, 0), 0, 0)),
            # the tile's own rows
            pl.BlockSpec((1, TH, W, Cin), lambda n, t: (n, t, 0, 0)),
            # 8-row block just below the tile (clamped at the bottom edge)
            pl.BlockSpec((1, 8, W, Cin),
                         lambda n, t: (n, jnp.minimum((t + 1) * bpr, H8 - 1), 0, 0)),
            # grid-invariant weights / biases stay resident in VMEM
            pl.BlockSpec((Cin, Ch), lambda n, t: (0, 0)),
            pl.BlockSpec((1, Ch), lambda n, t: (0, 0)),
            pl.BlockSpec((4, Ch, Co), lambda n, t: (0, 0, 0)),
            pl.BlockSpec((1, Co), lambda n, t: (0, 0)),
        ],
        # NOTE: real SPPF channel counts (>=128) give lane-dense unmasked
        # stores here; tiny Co (toy test) falls back to masked partial stores.
        out_specs=pl.BlockSpec((1, TH, W, Co), lambda n, t: (n, t, 0, 0)),
        out_shape=jax.ShapeDtypeStruct((N, H, W, Co), x_nchw.dtype),
        compiler_params=pltpu.CompilerParams(
            dimension_semantics=("parallel", "parallel"),
            vmem_limit_bytes=32 * 1024 * 1024),
        cost_estimate=pl.CostEstimate(flops=flops,
                                      transcendentals=transcendentals,
                                      bytes_accessed=bytes_accessed),
    )(lrow, lcol, x_nhwc, x_nhwc, x_nhwc, w1, b1, w2, b2)

    return jnp.transpose(out_nhwc, (0, 3, 1, 2))             # glue: NHWC -> NCHW


# ------------------------- pure-JAX reference (NCHW) -------------------------
def _ref_conv_bn_silu(x, w, g, b, m, v, eps=1e-5):
    y = jnp.einsum("nchw,oc->nohw", x, w)
    y = ((y - m[None, :, None, None]) / jnp.sqrt(v + eps)[None, :, None, None]
         * g[None, :, None, None] + b[None, :, None, None])
    return y * jax.nn.sigmoid(y)


def _ref_maxpool5(x):
    return jax.lax.reduce_window(
        x, -jnp.inf, jax.lax.max,
        window_dimensions=(1, 1, 5, 5), window_strides=(1, 1, 1, 1),
        padding=((0, 0), (0, 0), (2, 2), (2, 2)))


def sppf_ref(x, p):
    h = _ref_conv_bn_silu(x, p["w1"], p["g1"], p["be1"], p["m1"], p["v1"])
    y1 = _ref_maxpool5(h)
    y2 = _ref_maxpool5(y1)
    y3 = _ref_maxpool5(y2)
    cat = jnp.concatenate([h, y1, y2, y3], axis=1)
    return _ref_conv_bn_silu(cat, p["w2"], p["g2"], p["be2"], p["m2"], p["v2"])


if __name__ == "__main__":
    key = jax.random.PRNGKey(0)
    N, Cin, H, W = 2, 8, 16, 16
    Cout = 8
    Ch = Cin // 2                      # c_ = in_channels // 2

    ks = jax.random.split(key, 11)
    x = jax.random.normal(ks[0], (N, Cin, H, W), dtype=jnp.float32)

    params = dict(
        w1=jax.random.normal(ks[1], (Ch, Cin), jnp.float32) / jnp.sqrt(Cin),
        g1=1.0 + 0.1 * jax.random.normal(ks[2], (Ch,), jnp.float32),
        be1=0.1 * jax.random.normal(ks[3], (Ch,), jnp.float32),
        m1=0.1 * jax.random.normal(ks[4], (Ch,), jnp.float32),
        v1=jnp.abs(jax.random.normal(ks[5], (Ch,), jnp.float32)) + 0.5,
        w2=jax.random.normal(ks[6], (Cout, 4 * Ch), jnp.float32) / jnp.sqrt(4 * Ch),
        g2=1.0 + 0.1 * jax.random.normal(ks[7], (Cout,), jnp.float32),
        be2=0.1 * jax.random.normal(ks[8], (Cout,), jnp.float32),
        m2=0.1 * jax.random.normal(ks[9], (Cout,), jnp.float32),
        v2=jnp.abs(jax.random.normal(ks[10], (Cout,), jnp.float32)) + 0.5,
    )

    ref = sppf_ref(x, params)

    # Tiled path (two 8-row tiles per image; exercises the 6-row halo + masks).
    out_tiled = jax.block_until_ready(sppf_forward(x, params, tile_h=8))
    # Auto tile size (single tile at this toy H; clamped halos on both edges).
    out_auto = jax.block_until_ready(sppf_forward(x, params))

    for out in (out_tiled, out_auto):
        assert out.shape == (N, Cout, H, W), out.shape
        assert out.dtype == x.dtype, out.dtype
        err = float(jnp.max(jnp.abs(out - ref)))
        assert jnp.allclose(out, ref, rtol=1e-4, atol=1e-4), err

    print("KERNEL_OK")
</pallas_src>

<mosaic_0001>
module attributes {stable_mosaic.version = 11 : i64} {
  func.func @_sppf_kernel(%arg0: i32, %arg1: i32, %arg2: memref<320x1xi32, #tpu.memory_space<vmem>>, %arg3: memref<320x1xi32, #tpu.memory_space<vmem>>, %arg4: memref<1x8x16x8xf32, #tpu.memory_space<vmem>>, %arg5: memref<1x8x16x8xf32, #tpu.memory_space<vmem>>, %arg6: memref<1x8x16x8xf32, #tpu.memory_space<vmem>>, %arg7: memref<8x4xf32, #tpu.memory_space<vmem>>, %arg8: memref<1x4xf32, #tpu.memory_space<vmem>>, %arg9: memref<4x4x8xf32, #tpu.memory_space<vmem>>, %arg10: memref<1x8xf32, #tpu.memory_space<vmem>>, %arg11: memref<1x8x16x8xf32, #tpu.memory_space<vmem>>) attributes {dimension_semantics = [#tpu.dimension_semantics<parallel>, #tpu.dimension_semantics<parallel>], iteration_bounds = array<i64: 2, 2>, scalar_prefetch = 0 : i64, scratch_operands = 0 : i64, tpu.core_type = #tpu.core_type<tc>, window_params = [{pipeline_mode = #tpu.pipeline_mode<synchronous>, transform_indices = @transform_0, window_bounds = array<i64: 320, 1>}, {pipeline_mode = #tpu.pipeline_mode<synchronous>, transform_indices = @transform_1, window_bounds = array<i64: 320, 1>}, {transform_indices = @transform_2, window_bounds = array<i64: 1, 8, 16, 8>}, {transform_indices = @transform_3, window_bounds = array<i64: 1, 8, 16, 8>}, {transform_indices = @transform_4, window_bounds = array<i64: 1, 8, 16, 8>}, {pipeline_mode = #tpu.pipeline_mode<synchronous>, transform_indices = @transform_5, window_bounds = array<i64: 8, 4>}, {pipeline_mode = #tpu.pipeline_mode<synchronous>, transform_indices = @transform_6, window_bounds = array<i64: 1, 4>}, {pipeline_mode = #tpu.pipeline_mode<synchronous>, transform_indices = @transform_7, window_bounds = array<i64: 4, 4, 8>}, {pipeline_mode = #tpu.pipeline_mode<synchronous>, transform_indices = @transform_8, window_bounds = array<i64: 1, 8>}, {transform_indices = @transform_9, window_bounds = array<i64: 1, 8, 16, 8>}]} {
    %c8_i32 = arith.constant 8 : i32
    %0 = arith.muli %arg1, %c8_i32 : i32
    %c6_i32 = arith.constant 6 : i32
    %1 = arith.subi %0, %c6_i32 : i32
    %c0 = arith.constant 0 : index
    %c2 = arith.constant 2 : index
    %c0_0 = arith.constant 0 : index
    %c0_1 = arith.constant 0 : index
    %2 = vector.load %arg4[%c0, %c2, %c0_0, %c0_1] : memref<1x8x16x8xf32, #tpu.memory_space<vmem>>, vector<1x6x16x8xf32>
    %3 = vector.shape_cast %2 : vector<1x6x16x8xf32> to vector<6x16x8xf32>
    %c0_2 = arith.constant 0 : index
    %c0_3 = arith.constant 0 : index
    %c0_4 = arith.constant 0 : index
    %c0_5 = arith.constant 0 : index
    %4 = vector.load %arg5[%c0_2, %c0_3, %c0_4, %c0_5] : memref<1x8x16x8xf32, #tpu.memory_space<vmem>>, vector<1x8x16x8xf32>
    %5 = vector.shape_cast %4 : vector<1x8x16x8xf32> to vector<8x16x8xf32>
    %c0_6 = arith.constant 0 : index
    %c0_7 = arith.constant 0 : index
    %c0_8 = arith.constant 0 : index
    %c0_9 = arith.constant 0 : index
    %6 = vector.load %arg6[%c0_6, %c0_7, %c0_8, %c0_9] : memref<1x8x16x8xf32, #tpu.memory_space<vmem>>, vector<1x6x16x8xf32>
    %7 = vector.shape_cast %6 : vector<1x6x16x8xf32> to vector<6x16x8xf32>
    %8 = tpu.concatenate %3, %5, %7 in 0 : vector<6x16x8xf32>, vector<8x16x8xf32>, vector<6x16x8xf32> -> vector<20x16x8xf32>
    %9 = vector.shape_cast %8 : vector<20x16x8xf32> to vector<320x8xf32>
    %c0_10 = arith.constant 0 : index
    %c0_11 = arith.constant 0 : index
    %10 = vector.load %arg7[%c0_10, %c0_11] : memref<8x4xf32, #tpu.memory_space<vmem>>, vector<8x4xf32>
    %cst = arith.constant dense<0.000000e+00> : vector<320x4xf32>
    %11 = tpu.matmul %9, %10, %cst {dimension_numbers = #tpu.dot_dimension_numbers<[1], [0], [0], [1], [0, 0, 1, 1], [], []>} : vector<320x8xf32>, vector<8x4xf32>, vector<320x4xf32> -> vector<320x4xf32>
    %c0_12 = arith.constant 0 : index
    %c0_13 = arith.constant 0 : index
    %12 = vector.load %arg8[%c0_12, %c0_13] : memref<1x4xf32, #tpu.memory_space<vmem>>, vector<1x4xf32>
    %13 = vector.broadcast %12 : vector<1x4xf32> to vector<320x4xf32>
    %14 = arith.addf %11, %13 : vector<320x4xf32>
    %15 = arith.negf %14 : vector<320x4xf32>
    %16 = math.exp %15 : vector<320x4xf32>
    %cst_14 = arith.constant 1.000000e+00 : f32
    %17 = vector.broadcast %cst_14 : f32 to vector<320x4xf32>
    %18 = arith.addf %17, %16 : vector<320x4xf32>
    %19 = arith.divf %17, %18 : vector<320x4xf32>
    %20 = arith.mulf %14, %19 : vector<320x4xf32>
    %c0_15 = arith.constant 0 : index
    %c0_16 = arith.constant 0 : index
    %21 = vector.load %arg2[%c0_15, %c0_16] : memref<320x1xi32, #tpu.memory_space<vmem>>, vector<320x1xi32>
    %22 = vector.broadcast %1 : i32 to vector<320x1xi32>
    %23 = arith.addi %21, %22 : vector<320x1xi32>
    %c0_i32 = arith.constant 0 : i32
    %24 = vector.broadcast %c0_i32 : i32 to vector<320x1xi32>
    %25 = arith.cmpi sge, %23, %24 : vector<320x1xi32>
    %c16_i32 = arith.constant 16 : i32
    %26 = vector.broadcast %c16_i32 : i32 to vector<320x1xi32>
    %27 = arith.cmpi slt, %23, %26 : vector<320x1xi32>
    %28 = arith.andi %25, %27 : vector<320x1xi1>
    %cst_17 = arith.constant -3.40282347E+38 : f32
    %29 = vector.shape_cast %28 : vector<320x1xi1> to vector<320x1xi1>
    %30 = vector.broadcast %29 : vector<320x1xi1> to vector<320x4xi1>
    %31 = vector.broadcast %cst_17 : f32 to vector<320x4xf32>
    %32 = arith.select %30, %20, %31 : vector<320x4xi1>, vector<320x4xf32>
    %c0_18 = arith.constant 0 : index
    %c0_19 = arith.constant 0 : index
    %33 = vector.load %arg3[%c0_18, %c0_19] : memref<320x1xi32, #tpu.memory_space<vmem>>, vector<320x1xi32>
    %34 = vector.extract_strided_slice %32 {offsets = [96, 0], sizes = [128, 4], strides = [1, 1]} : vector<320x4xf32> to vector<128x4xf32>
    %c0_20 = arith.constant 0 : index
    %c0_21 = arith.constant 0 : index
    %c0_22 = arith.constant 0 : index
    %35 = vector.load %arg9[%c0_20, %c0_21, %c0_22] : memref<4x4x8xf32, #tpu.memory_space<vmem>>, vector<1x4x8xf32>
    %36 = vector.shape_cast %35 : vector<1x4x8xf32> to vector<4x8xf32>
    %cst_23 = arith.constant dense<0.000000e+00> : vector<128x8xf32>
    %37 = tpu.matmul %34, %36, %cst_23 {dimension_numbers = #tpu.dot_dimension_numbers<[1], [0], [0], [1], [0, 0, 1, 1], [], []>} : vector<128x4xf32>, vector<4x8xf32>, vector<128x8xf32> -> vector<128x8xf32>
    %38 = vector.extract_strided_slice %32 {offsets = [0, 0], sizes = [256, 4], strides = [1, 1]} : vector<320x4xf32> to vector<256x4xf32>
    %39 = vector.extract_strided_slice %32 {offsets = [16, 0], sizes = [256, 4], strides = [1, 1]} : vector<320x4xf32> to vector<256x4xf32>
    %40 = arith.maximumf %38, %39 : vector<256x4xf32>
    %41 = vector.extract_strided_slice %32 {offsets = [32, 0], sizes = [256, 4], strides = [1, 1]} : vector<320x4xf32> to vector<256x4xf32>
    %42 = arith.maximumf %40, %41 : vector<256x4xf32>
    %43 = vector.extract_strided_slice %32 {offsets = [48, 0], sizes = [256, 4], strides = [1, 1]} : vector<320x4xf32> to vector<256x4xf32>
    %44 = arith.maximumf %42, %43 : vector<256x4xf32>
    %45 = vector.extract_strided_slice %32 {offsets = [64, 0], sizes = [256, 4], strides = [1, 1]} : vector<320x4xf32> to vector<256x4xf32>
    %46 = arith.maximumf %44, %45 : vector<256x4xf32>
    %47 = vector.extract_strided_slice %33 {offsets = [0, 0], sizes = [256, 1], strides = [1, 1]} : vector<320x1xi32> to vector<256x1xi32>
    %c255_i32 = arith.constant 255 : i32
    %48 = tpu.dynamic_rotate %46 by %c255_i32 dim 0 : vector<256x4xf32>, i32 -> vector<256x4xf32>
    %c15_i32 = arith.constant 15 : i32
    %49 = vector.broadcast %c15_i32 : i32 to vector<256x1xi32>
    %50 = arith.cmpi slt, %47, %49 : vector<256x1xi32>
    %cst_24 = arith.constant -3.40282347E+38 : f32
    %51 = vector.shape_cast %50 : vector<256x1xi1> to vector<256x1xi1>
    %52 = vector.broadcast %51 : vector<256x1xi1> to vector<256x4xi1>
    %53 = vector.broadcast %cst_24 : f32 to vector<256x4xf32>
    %54 = arith.select %52, %48, %53 : vector<256x4xi1>, vector<256x4xf32>
    %55 = arith.maximumf %46, %54 : vector<256x4xf32>
    %c1_i32 = arith.constant 1 : i32
    %56 = tpu.dynamic_rotate %46 by %c1_i32 dim 0 : vector<256x4xf32>, i32 -> vector<256x4xf32>
    %c1_i32_25 = arith.constant 1 : i32
    %57 = vector.broadcast %c1_i32_25 : i32 to vector<256x1xi32>
    %58 = arith.cmpi sge, %47, %57 : vector<256x1xi32>
    %cst_26 = arith.constant -3.40282347E+38 : f32
    %59 = vector.shape_cast %58 : vector<256x1xi1> to vector<256x1xi1>
    %60 = vector.broadcast %59 : vector<256x1xi1> to vector<256x4xi1>
    %61 = vector.broadcast %cst_26 : f32 to vector<256x4xf32>
    %62 = arith.select %60, %56, %61 : vector<256x4xi1>, vector<256x4xf32>
    %63 = arith.maximumf %55, %62 : vector<256x4xf32>
    %c254_i32 = arith.constant 254 : i32
    %64 = tpu.dynamic_rotate %46 by %c254_i32 dim 0 : vector<256x4xf32>, i32 -> vector<256x4xf32>
    %c14_i32 = arith.constant 14 : i32
    %65 = vector.broadcast %c14_i32 : i32 to vector<256x1xi32>
    %66 = arith.cmpi slt, %47, %65 : vector<256x1xi32>
    %cst_27 = arith.constant -3.40282347E+38 : f32
    %67 = vector.shape_cast %66 : vector<256x1xi1> to vector<256x1xi1>
    %68 = vector.broadcast %67 : vector<256x1xi1> to vector<256x4xi1>
    %69 = vector.broadcast %cst_27 : f32 to vector<256x4xf32>
    %70 = arith.select %68, %64, %69 : vector<256x4xi1>, vector<256x4xf32>
    %71 = arith.maximumf %63, %70 : vector<256x4xf32>
    %c2_i32 = arith.constant 2 : i32
    %72 = tpu.dynamic_rotate %46 by %c2_i32 dim 0 : vector<256x4xf32>, i32 -> vector<256x4xf32>
    %c2_i32_28 = arith.constant 2 : i32
    %73 = vector.broadcast %c2_i32_28 : i32 to vector<256x1xi32>
    %74 = arith.cmpi sge, %47, %73 : vector<256x1xi32>
    %cst_29 = arith.constant -3.40282347E+38 : f32
    %75 = vector.shape_cast %74 : vector<256x1xi1> to vector<256x1xi1>
    %76 = vector.broadcast %75 : vector<256x1xi1> to vector<256x4xi1>
    %77 = vector.broadcast %cst_29 : f32 to vector<256x4xf32>
    %78 = arith.select %76, %72, %77 : vector<256x4xi1>, vector<256x4xf32>
    %79 = arith.maximumf %71, %78 : vector<256x4xf32>
    %80 = vector.extract_strided_slice %79 {offsets = [64, 0], sizes = [128, 4], strides = [1, 1]} : vector<256x4xf32> to vector<128x4xf32>
    %c1 = arith.constant 1 : index
    %c0_30 = arith.constant 0 : index
    %c0_31 = arith.constant 0 : index
    %81 = vector.load %arg9[%c1, %c0_30, %c0_31] : memref<4x4x8xf32, #tpu.memory_space<vmem>>, vector<1x4x8xf32>
    %82 = vector.shape_cast %81 : vector<1x4x8xf32> to vector<4x8xf32>
    %cst_32 = arith.constant dense<0.000000e+00> : vector<128x8xf32>
    %83 = tpu.matmul %80, %82, %cst_32 {dimension_numbers = #tpu.dot_dimension_numbers<[1], [0], [0], [1], [0, 0, 1, 1], [], []>} : vector<128x4xf32>, vector<4x8xf32>, vector<128x8xf32> -> vector<128x8xf32>
    %84 = arith.addf %37, %83 : vector<128x8xf32>
    %85 = vector.extract_strided_slice %79 {offsets = [0, 0], sizes = [192, 4], strides = [1, 1]} : vector<256x4xf32> to vector<192x4xf32>
    %86 = vector.extract_strided_slice %79 {offsets = [16, 0], sizes = [192, 4], strides = [1, 1]} : vector<256x4xf32> to vector<192x4xf32>
    %87 = arith.maximumf %85, %86 : vector<192x4xf32>
    %88 = vector.extract_strided_slice %79 {offsets = [32, 0], sizes = [192, 4], strides = [1, 1]} : vector<256x4xf32> to vector<192x4xf32>
    %89 = arith.maximumf %87, %88 : vector<192x4xf32>
    %90 = vector.extract_strided_slice %79 {offsets = [48, 0], sizes = [192, 4], strides = [1, 1]} : vector<256x4xf32> to vector<192x4xf32>
    %91 = arith.maximumf %89, %90 : vector<192x4xf32>
    %92 = vector.extract_strided_slice %79 {offsets = [64, 0], sizes = [192, 4], strides = [1, 1]} : vector<256x4xf32> to vector<192x4xf32>
    %93 = arith.maximumf %91, %92 : vector<192x4xf32>
    %94 = vector.extract_strided_slice %33 {offsets = [0, 0], sizes = [192, 1], strides = [1, 1]} : vector<320x1xi32> to vector<192x1xi32>
    %c191_i32 = arith.constant 191 : i32
    %95 = tpu.dynamic_rotate %93 by %c191_i32 dim 0 : vector<192x4xf32>, i32 -> vector<192x4xf32>
    %c15_i32_33 = arith.constant 15 : i32
    %96 = vector.broadcast %c15_i32_33 : i32 to vector<192x1xi32>
    %97 = arith.cmpi slt, %94, %96 : vector<192x1xi32>
    %cst_34 = arith.constant -3.40282347E+38 : f32
    %98 = vector.shape_cast %97 : vector<192x1xi1> to vector<192x1xi1>
    %99 = vector.broadcast %98 : vector<192x1xi1> to vector<192x4xi1>
    %100 = vector.broadcast %cst_34 : f32 to vector<192x4xf32>
    %101 = arith.select %99, %95, %100 : vector<192x4xi1>, vector<192x4xf32>
    %102 = arith.maximumf %93, %101 : vector<192x4xf32>
    %c1_i32_35 = arith.constant 1 : i32
    %103 = tpu.dynamic_rotate %93 by %c1_i32_35 dim 0 : vector<192x4xf32>, i32 -> vector<192x4xf32>
    %c1_i32_36 = arith.constant 1 : i32
    %104 = vector.broadcast %c1_i32_36 : i32 to vector<192x1xi32>
    %105 = arith.cmpi sge, %94, %104 : vector<192x1xi32>
    %cst_37 = arith.constant -3.40282347E+38 : f32
    %106 = vector.shape_cast %105 : vector<192x1xi1> to vector<192x1xi1>
    %107 = vector.broadcast %106 : vector<192x1xi1> to vector<192x4xi1>
    %108 = vector.broadcast %cst_37 : f32 to vector<192x4xf32>
    %109 = arith.select %107, %103, %108 : vector<192x4xi1>, vector<192x4xf32>
    %110 = arith.maximumf %102, %109 : vector<192x4xf32>
    %c190_i32 = arith.constant 190 : i32
    %111 = tpu.dynamic_rotate %93 by %c190_i32 dim 0 : vector<192x4xf32>, i32 -> vector<192x4xf32>
    %c14_i32_38 = arith.constant 14 : i32
    %112 = vector.broadcast %c14_i32_38 : i32 to vector<192x1xi32>
    %113 = arith.cmpi slt, %94, %112 : vector<192x1xi32>
    %cst_39 = arith.constant -3.40282347E+38 : f32
    %114 = vector.shape_cast %113 : vector<192x1xi1> to vector<192x1xi1>
    %115 = vector.broadcast %114 : vector<192x1xi1> to vector<192x4xi1>
    %116 = vector.broadcast %cst_39 : f32 to vector<192x4xf32>
    %117 = arith.select %115, %111, %116 : vector<192x4xi1>, vector<192x4xf32>
    %118 = arith.maximumf %110, %117 : vector<192x4xf32>
    %c2_i32_40 = arith.constant 2 : i32
    %119 = tpu.dynamic_rotate %93 by %c2_i32_40 dim 0 : vector<192x4xf32>, i32 -> vector<192x4xf32>
    %c2_i32_41 = arith.constant 2 : i32
    %120 = vector.broadcast %c2_i32_41 : i32 to vector<192x1xi32>
    %121 = arith.cmpi sge, %94, %120 : vector<192x1xi32>
    %cst_42 = arith.constant -3.40282347E+38 : f32
    %122 = vector.shape_cast %121 : vector<192x1xi1> to vector<192x1xi1>
    %123 = vector.broadcast %122 : vector<192x1xi1> to vector<192x4xi1>
    %124 = vector.broadcast %cst_42 : f32 to vector<192x4xf32>
    %125 = arith.select %123, %119, %124 : vector<192x4xi1>, vector<192x4xf32>
    %126 = arith.maximumf %118, %125 : vector<192x4xf32>
    %127 = vector.extract_strided_slice %126 {offsets = [32, 0], sizes = [128, 4], strides = [1, 1]} : vector<192x4xf32> to vector<128x4xf32>
    %c2_43 = arith.constant 2 : index
    %c0_44 = arith.constant 0 : index
    %c0_45 = arith.constant 0 : index
    %128 = vector.load %arg9[%c2_43, %c0_44, %c0_45] : memref<4x4x8xf32, #tpu.memory_space<vmem>>, vector<1x4x8xf32>
    %129 = vector.shape_cast %128 : vector<1x4x8xf32> to vector<4x8xf32>
    %cst_46 = arith.constant dense<0.000000e+00> : vector<128x8xf32>
    %130 = tpu.matmul %127, %129, %cst_46 {dimension_numbers = #tpu.dot_dimension_numbers<[1], [0], [0], [1], [0, 0, 1, 1], [], []>} : vector<128x4xf32>, vector<4x8xf32>, vector<128x8xf32> -> vector<128x8xf32>
    %131 = arith.addf %84, %130 : vector<128x8xf32>
    %132 = vector.extract_strided_slice %126 {offsets = [0, 0], sizes = [128, 4], strides = [1, 1]} : vector<192x4xf32> to vector<128x4xf32>
    %133 = vector.extract_strided_slice %126 {offsets = [16, 0], sizes = [128, 4], strides = [1, 1]} : vector<192x4xf32> to vector<128x4xf32>
    %134 = arith.maximumf %132, %133 : vector<128x4xf32>
    %135 = vector.extract_strided_slice %126 {offsets = [32, 0], sizes = [128, 4], strides = [1, 1]} : vector<192x4xf32> to vector<128x4xf32>
    %136 = arith.maximumf %134, %135 : vector<128x4xf32>
    %137 = vector.extract_strided_slice %126 {offsets = [48, 0], sizes = [128, 4], strides = [1, 1]} : vector<192x4xf32> to vector<128x4xf32>
    %138 = arith.maximumf %136, %137 : vector<128x4xf32>
    %139 = vector.extract_strided_slice %126 {offsets = [64, 0], sizes = [128, 4], strides = [1, 1]} : vector<192x4xf32> to vector<128x4xf32>
    %140 = arith.maximumf %138, %139 : vector<128x4xf32>
    %141 = vector.extract_strided_slice %33 {offsets = [0, 0], sizes = [128, 1], strides = [1, 1]} : vector<320x1xi32> to vector<128x1xi32>
    %c127_i32 = arith.constant 127 : i32
    %142 = tpu.dynamic_rotate %140 by %c127_i32 dim 0 : vector<128x4xf32>, i32 -> vector<128x4xf32>
    %c15_i32_47 = arith.constant 15 : i32
    %143 = vector.broadcast %c15_i32_47 : i32 to vector<128x1xi32>
    %144 = arith.cmpi slt, %141, %143 : vector<128x1xi32>
    %cst_48 = arith.constant -3.40282347E+38 : f32
    %145 = vector.shape_cast %144 : vector<128x1xi1> to vector<128x1xi1>
    %146 = vector.broadcast %145 : vector<128x1xi1> to vector<128x4xi1>
    %147 = vector.broadcast %cst_48 : f32 to vector<128x4xf32>
    %148 = arith.select %146, %142, %147 : vector<128x4xi1>, vector<128x4xf32>
    %149 = arith.maximumf %140, %148 : vector<128x4xf32>
    %c1_i32_49 = arith.constant 1 : i32
    %150 = tpu.dynamic_rotate %140 by %c1_i32_49 dim 0 : vector<128x4xf32>, i32 -> vector<128x4xf32>
    %c1_i32_50 = arith.constant 1 : i32
    %151 = vector.broadcast %c1_i32_50 : i32 to vector<128x1xi32>
    %152 = arith.cmpi sge, %141, %151 : vector<128x1xi32>
    %cst_51 = arith.constant -3.40282347E+38 : f32
    %153 = vector.shape_cast %152 : vector<128x1xi1> to vector<128x1xi1>
    %154 = vector.broadcast %153 : vector<128x1xi1> to vector<128x4xi1>
    %155 = vector.broadcast %cst_51 : f32 to vector<128x4xf32>
    %156 = arith.select %154, %150, %155 : vector<128x4xi1>, vector<128x4xf32>
    %157 = arith.maximumf %149, %156 : vector<128x4xf32>
    %c126_i32 = arith.constant 126 : i32
    %158 = tpu.dynamic_rotate %140 by %c126_i32 dim 0 : vector<128x4xf32>, i32 -> vector<128x4xf32>
    %c14_i32_52 = arith.constant 14 : i32
    %159 = vector.broadcast %c14_i32_52 : i32 to vector<128x1xi32>
    %160 = arith.cmpi slt, %141, %159 : vector<128x1xi32>
    %cst_53 = arith.constant -3.40282347E+38 : f32
    %161 = vector.shape_cast %160 : vector<128x1xi1> to vector<128x1xi1>
    %162 = vector.broadcast %161 : vector<128x1xi1> to vector<128x4xi1>
    %163 = vector.broadcast %cst_53 : f32 to vector<128x4xf32>
    %164 = arith.select %162, %158, %163 : vector<128x4xi1>, vector<128x4xf32>
    %165 = arith.maximumf %157, %164 : vector<128x4xf32>
    %c2_i32_54 = arith.constant 2 : i32
    %166 = tpu.dynamic_rotate %140 by %c2_i32_54 dim 0 : vector<128x4xf32>, i32 -> vector<128x4xf32>
    %c2_i32_55 = arith.constant 2 : i32
    %167 = vector.broadcast %c2_i32_55 : i32 to vector<128x1xi32>
    %168 = arith.cmpi sge, %141, %167 : vector<128x1xi32>
    %cst_56 = arith.constant -3.40282347E+38 : f32
    %169 = vector.shape_cast %168 : vector<128x1xi1> to vector<128x1xi1>
    %170 = vector.broadcast %169 : vector<128x1xi1> to vector<128x4xi1>
    %171 = vector.broadcast %cst_56 : f32 to vector<128x4xf32>
    %172 = arith.select %170, %166, %171 : vector<128x4xi1>, vector<128x4xf32>
    %173 = arith.maximumf %165, %172 : vector<128x4xf32>
    %c3 = arith.constant 3 : index
    %c0_57 = arith.constant 0 : index
    %c0_58 = arith.constant 0 : index
    %174 = vector.load %arg9[%c3, %c0_57, %c0_58] : memref<4x4x8xf32, #tpu.memory_space<vmem>>, vector<1x4x8xf32>
    %175 = vector.shape_cast %174 : vector<1x4x8xf32> to vector<4x8xf32>
    %cst_59 = arith.constant dense<0.000000e+00> : vector<128x8xf32>
    %176 = tpu.matmul %173, %175, %cst_59 {dimension_numbers = #tpu.dot_dimension_numbers<[1], [0], [0], [1], [0, 0, 1, 1], [], []>} : vector<128x4xf32>, vector<4x8xf32>, vector<128x8xf32> -> vector<128x8xf32>
    %177 = arith.addf %131, %176 : vector<128x8xf32>
    %c0_60 = arith.constant 0 : index
    %c0_61 = arith.constant 0 : index
    %178 = vector.load %arg10[%c0_60, %c0_61] : memref<1x8xf32, #tpu.memory_space<vmem>>, vector<1x8xf32>
    %179 = vector.broadcast %178 : vector<1x8xf32> to vector<128x8xf32>
    %180 = arith.addf %177, %179 : vector<128x8xf32>
    %181 = arith.negf %180 : vector<128x8xf32>
    %182 = math.exp %181 : vector<128x8xf32>
    %cst_62 = arith.constant 1.000000e+00 : f32
    %183 = vector.broadcast %cst_62 : f32 to vector<128x8xf32>
    %184 = arith.addf %183, %182 : vector<128x8xf32>
    %185 = arith.divf %183, %184 : vector<128x8xf32>
    %186 = arith.mulf %180, %185 : vector<128x8xf32>
    %187 = vector.shape_cast %186 : vector<128x8xf32> to vector<8x16x8xf32>
    %c0_63 = arith.constant 0 : index
    %c0_64 = arith.constant 0 : index
    %c0_65 = arith.constant 0 : index
    %c0_66 = arith.constant 0 : index
    %188 = vector.load %arg11[%c0_63, %c0_64, %c0_65, %c0_66] : memref<1x8x16x8xf32, #tpu.memory_space<vmem>>, vector<1x8x16x8xf32>
    %189 = vector.shape_cast %188 : vector<1x8x16x8xf32> to vector<8x16x8xf32>
    %190 = vector.shape_cast %187 : vector<8x16x8xf32> to vector<1x8x16x8xf32>
    tpu.vector_store %arg11[%c0_63, %c0_64, %c0_65, %c0_66], %190 {strides = array<i32>} : memref<1x8x16x8xf32, #tpu.memory_space<vmem>>, vector<1x8x16x8xf32>,
    return
  }
  func.func @transform_0(%arg0: i32, %arg1: i32) -> (i32, i32) {
    %c0_i32 = arith.constant 0 : i32
    %c0_i32_0 = arith.constant 0 : i32
    %c0_i32_1 = arith.constant 0 : i32
    return %c0_i32, %c0_i32_0 : i32, i32
  }
  func.func @transform_1(%arg0: i32, %arg1: i32) -> (i32, i32) {
    %c0_i32 = arith.constant 0 : i32
    %c0_i32_0 = arith.constant 0 : i32
    %c0_i32_1 = arith.constant 0 : i32
    return %c0_i32, %c0_i32_0 : i32, i32
  }
  func.func @transform_2(%arg0: i32, %arg1: i32) -> (i32, i32, i32, i32) {
    %c1_i32 = arith.constant 1 : i32
    %0 = arith.muli %arg1, %c1_i32 : i32
    %c1_i32_0 = arith.constant 1 : i32
    %1 = arith.subi %0, %c1_i32_0 : i32
    %c0_i32 = arith.constant 0 : i32
    %2 = arith.maxsi %1, %c0_i32 : i32
    %c0_i32_1 = arith.constant 0 : i32
    %c0_i32_2 = arith.constant 0 : i32
    %c0_i32_3 = arith.constant 0 : i32
    return %arg0, %2, %c0_i32_1, %c0_i32_2 : i32, i32, i32, i32
  }
  func.func @transform_3(%arg0: i32, %arg1: i32) -> (i32, i32, i32, i32) {
    %c0_i32 = arith.constant 0 : i32
    %c0_i32_0 = arith.constant 0 : i32
    %c0_i32_1 = arith.constant 0 : i32
    return %arg0, %arg1, %c0_i32, %c0_i32_0 : i32, i32, i32, i32
  }
  func.func @transform_4(%arg0: i32, %arg1: i32) -> (i32, i32, i32, i32) {
    %c1_i32 = arith.constant 1 : i32
    %0 = arith.addi %arg1, %c1_i32 : i32
    %c1_i32_0 = arith.constant 1 : i32
    %1 = arith.muli %0, %c1_i32_0 : i32
    %c1_i32_1 = arith.constant 1 : i32
    %2 = arith.minsi %1, %c1_i32_1 : i32
    %c0_i32 = arith.constant 0 : i32
    %c0_i32_2 = arith.constant 0 : i32
    %c0_i32_3 = arith.constant 0 : i32
    return %arg0, %2, %c0_i32, %c0_i32_2 : i32, i32, i32, i32
  }
  func.func @transform_5(%arg0: i32, %arg1: i32) -> (i32, i32) {
    %c0_i32 = arith.constant 0 : i32
    %c0_i32_0 = arith.constant 0 : i32
    %c0_i32_1 = arith.constant 0 : i32
    return %c0_i32, %c0_i32_0 : i32, i32
  }
  func.func @transform_6(%arg0: i32, %arg1: i32) -> (i32, i32) {
    %c0_i32 = arith.constant 0 : i32
    %c0_i32_0 = arith.constant 0 : i32
    %c0_i32_1 = arith.constant 0 : i32
    return %c0_i32, %c0_i32_0 : i32, i32
  }
  func.func @transform_7(%arg0: i32, %arg1: i32) -> (i32, i32, i32) {
    %c0_i32 = arith.constant 0 : i32
    %c0_i32_0 = arith.constant 0 : i32
    %c0_i32_1 = arith.constant 0 : i32
    %c0_i32_2 = arith.constant 0 : i32
    return %c0_i32, %c0_i32_0, %c0_i32_1 : i32, i32, i32
  }
  func.func @transform_8(%arg0: i32, %arg1: i32) -> (i32, i32) {
    %c0_i32 = arith.constant 0 : i32
    %c0_i32_0 = arith.constant 0 : i32
    %c0_i32_1 = arith.constant 0 : i32
    return %c0_i32, %c0_i32_0 : i32, i32
  }
  func.func @transform_9(%arg0: i32, %arg1: i32) -> (i32, i32, i32, i32) {
    %c0_i32 = arith.constant 0 : i32
    %c0_i32_0 = arith.constant 0 : i32
    %c0_i32_1 = arith.constant 0 : i32
    return %arg0, %arg1, %c0_i32, %c0_i32_0 : i32, i32, i32, i32
  }
}

</mosaic_0001>

<bundles_post_ra>
// kernel: tpu_custom_call.1
= control target key start
LH: loop header
LB: loop body
LE: loop exit
PB: predicated region body
PF: predicated region fallthrough
CT: control target
= control target key end

     0   :  { %s5919_s30 = smov 0   ;;  %s5921_s10 = smov 0   ;;  %s12123_s0 = inlined_call_operand.vmem [shape: s32[320,1], index: 0, kind: input, shape index: {}]   ;;  %s12124_s1 = inlined_call_operand.vmem [shape: s32[320,1], index: 1, kind: input, shape index: {}]   ;;  %s12125_s2 = inlined_call_operand.vmem [shape: f32[2,16,16,8], index: 2, kind: input, shape index: {}]   ;;  %s12126_s3 = inlined_call_operand.vmem [shape: f32[2,16,16,8], index: 3, kind: input, shape index: {}]   ;;  %s12127_s4 = inlined_call_operand.vmem [shape: f32[2,16,16,8], index: 4, kind: input, shape index: {}]   ;;  %s12128_s5 = inlined_call_operand.vmem [shape: f32[8,4], index: 5, kind: input, shape index: {}]   ;;  %s12129_s6 = inlined_call_operand.vmem [shape: f32[1,4], index: 6, kind: input, shape index: {}]   ;;  %s12130_s7 = inlined_call_operand.vmem [shape: f32[4,4,8], index: 7, kind: input, shape index: {}]   ;;  %s12131_s8 = inlined_call_operand.vmem [shape: f32[1,8], index: 8, kind: input, shape index: {}]   ;;  %s12132_s9 = inlined_call_operand.vmem [shape: f32[2,16,16,8], index: 9, kind: output, shape index: {}]  }
   0x1   :  { %s5923_s11 = smov 0   ;;  %s5925_s12 = smov 0  }
   0x2   :  { %s5927_s13 = smov 0  }
   0x3 LB: > { %s28_s14 = sadd.s32 1, %s5858_s11  ;;  %s31_s15 = sadd.s32 1, %s5862_s12  ;;  %s5866_s13 = sphi %s5927_s13, %s19_s13   ;;  %s5862_s12 = sphi %s5925_s12, %s13698_s12   ;;  %s5858_s11 = sphi %s5923_s11, %s13697_s11   ;;  %s5854_s10 = sphi %s5921_s10, %s13696_s10   ;;  %s5850_s30 = sphi %s5919_s30, %s13695_s30  }
   0x4   : > { %p29_p0 = scmp.ge.s32.totalorder %s28_s14, 2  ;;  %p5298_p1 = scmp.ge.s32.totalorder %s5866_s13, 1 }
   0x5   : > { %p369_p2 = scmp.lt.s32.totalorder %s5866_s13, 5 }
   0x6   : > { %s13700_s14 = smov (%p29_p0, %s28_s14), 0  ;;  %s13702_s15 = smov (!%p29_p0, %s31_s15), %s5862_s12 }
   0x7   : > { %p370_p3 = pnand %p5298_p1, %p369_p2  ;;  %p33_p4 = scmp.ge.s32.totalorder %s13702_s15, 2 }
   0x9   : > { %s13704_s15 = smov (%p33_p4, %s13702_s15), 0  ;;  %373 = sbr.rel (%p370_p3) target bundleno = 1140 (0x474), region = 56 }
   0xe   : > { %s5304_s16 = sshll.u32 %s5850_s30, 3  ;;  %v1607_v0 = vld [vmem:[%s12123_s0 + $0x20] sm:$0xff]  ;;  %v1605_v1 = vld [vmem:[%s12123_s0 + $0x10] sm:$0xff]  ;;  %p445_p5 = scmp.lt.s32.totalorder %s5854_s10, 1  ;;  %v12133_v3 = vmov 0   ;;  %v1608_v5 = vld [vmem:[%s12123_s0 + $0x28] sm:$0xff] }
   0xf   : > { %v1603_v2 = vld [vmem:[%s12123_s0] sm:$0xff]  ;;  %5545 = vset.pattern.permute.xlu2 %v12133_v3  ;;  %5544 = vset.pattern.permute.xlu1 %v12133_v3  ;;  %s5317_s23 = sadd.s32 4294967290, %s5304_s16  ;;  %p461_p6 = scmp.lt.s32.totalorder %s5304_s16, 15  ;;  %v1606_v6 = vld [vmem:[%s12123_s0 + $0x18] sm:$0xff]  ;;  %v1604_v8 = vld [vmem:[%s12123_s0 + $0x8] sm:$0xff]  ;;  %vm12148_vm8 = vcmask 64512  }
  0x10   : > { %v540_v4 = vld [vmem:[%s12128_s5] sm:$0xff]  ;;  %5543 = vset.pattern.permute.xlu0 %v12133_v3  ;;  %v5976_v7 = vstv %s5317_s23  ;;  %s13706_s10 = smov (!%p445_p5, %s5854_s10), 1  ;;  %s5299_s20 = sadd.s32 4294967295, %s5850_s30  ;;  %v1610_v20 = vld [vmem:[%s12123_s0 + $0x38] sm:$0xff]  ;;  %v1609_v21 = vld [vmem:[%s12123_s0 + $0x30] sm:$0xff] }
  0x11   : > { %5499 = vmatpush.msra.mxu2 %v540_v4  ;;  %v1648_v9 = vadd.s32 %v5976_v7, %v1607_v0  ;;  %v1646_v10 = vadd.s32 %v5976_v7, %v1605_v1  ;;  %v1644_v11 = vadd.s32 %v5976_v7, %v1603_v2  ;;  %s13708_s16 = smov (!%p461_p6, %s5304_s16), 15  ;;  %681 = vmatpush.msra.mxu0 %v540_v4  ;;  %s5985_s19 = sshll.u32 %s13706_s10, 5  ;;  %v1611_v17 = vld [vmem:[%s12123_s0 + $0x40] sm:$0xff]  ;;  %v1614_v29 = vld [vmem:[%s12123_s0 + $0x58] sm:$0xff]  ;;  %v1613_v30 = vld [vmem:[%s12123_s0 + $0x50] sm:$0xff] }
  0x12   : > { %5500 = vmatpush.msra.mxu3 %v540_v4  ;;  %v1649_v12 = vadd.s32 %v5976_v7, %v1608_v5  ;;  %v1647_v13 = vadd.s32 %v5976_v7, %v1606_v6  ;;  %v1645_v14 = vadd.s32 %v5976_v7, %v1604_v8  ;;  %s5305_s21 = sshll.u32 %s13708_s16, 1  ;;  %p5993_p7 = scmp.gt.s32.totalorder %s5299_s20, 0  ;;  %v1652_v22 = vadd.s32 %v5976_v7, %v1611_v17  ;;  %v1612_v31 = vld [vmem:[%s12123_s0 + $0x48] sm:$0xff]  ;;  %v1617_v41 = vld [vmem:[%s12123_s0 + $0x70] sm:$0xff]  ;;  %v1615_v44 = vld [vmem:[%s12123_s0 + $0x60] sm:$0xff] }
  0x13   : > { %vm1688_vm0 = vcmp.ge.s32.totalorder %v1648_v9, 0  ;;  %vm1728_vm1 = vcmp.lt.s32.totalorder %v1648_v9, 16  ;;  %vm1686_vm2 = vcmp.ge.s32.totalorder %v1646_v10, 0  ;;  %vm1726_vm3 = vcmp.lt.s32.totalorder %v1646_v10, 16  ;;  %s5998_s10 = sadd.s32 %s5305_s21, %s5985_s19  ;;  %s469_s23 = sadd.s32 1, %s5850_s30  ;;  %v1616_v42 = vld [vmem:[%s12123_s0 + $0x68] sm:$0xff] }
  0x14   : > { %vm1768_vm4 = vmand %vm1688_vm0, %vm1728_vm1  ;;  %vm1684_vm5 = vcmp.ge.s32.totalorder %v1644_v11, 0  ;;  %vm1724_vm6 = vcmp.lt.s32.totalorder %v1644_v11, 16  ;;  %s5307_s24 = sshll.u32 %s5998_s10, 3  ;;  %vm1689_vm9 = vcmp.ge.s32.totalorder %v1649_v12, 0  ;;  %vm1729_vm10 = vcmp.lt.s32.totalorder %v1649_v12, 16  ;;  %p6003_p8 = scmp.lt.s32.totalorder %s469_s23, 1 }
  0x15   : > { %v1808_v15 = vsel %vm1768_vm4, 1, %v12133_v3  ;;  %vm1766_vm7 = vmand %vm1686_vm2, %vm1726_vm3  ;;  %s6013_s27 = scalar_lea.vmem %s12126_s3, %s5307_s24  ;;  %vm1687_vm12 = vcmp.ge.s32.totalorder %v1647_v13, 0  ;;  %vm1727_vm13 = vcmp.lt.s32.totalorder %v1647_v13, 16  ;;  %s13710_s20 = smov (!%p5993_p7, %s5299_s20), 0  ;;  %vm1685_vm14 = vcmp.ge.s32.totalorder %v1645_v14, 0  ;;  %v1620_v53 = vld [vmem:[%s12123_s0 + $0x88] sm:$0xff] }
  0x16   : > { %1857 = vperm.xlu2 %5545, %v1808_v15   ;;  %v1806_v16 = vsel %vm1766_vm7, 1, %v12133_v3  ;;  %vm1764_vm11 = vmand %vm1684_vm5, %vm1724_vm6  ;;  %v526_v19 = vld [vmem:[%s6013_s27 + $0x70] sm:$0xff]  ;;  %vm1725_vm15 = vcmp.lt.s32.totalorder %v1645_v14, 16  ;;  %s13712_s23 = smov (!%p6003_p8, %s469_s23), 1  ;;  %s5300_s30 = sshll.u32 %s13710_s20, 3  ;;  %v1651_v23 = vadd.s32 %v5976_v7, %v1610_v20  ;;  %v1650_v25 = vadd.s32 %v5976_v7, %v1609_v21  ;;  %v527_v28 = vld [vmem:[%s6013_s27 + $0x78] sm:$0xff] }
  0x17   : > { %1851 = vperm.xlu1 %5544, %v1806_v16   ;;  %v1804_v18 = vsel %vm1764_vm11, 1, %v12133_v3  ;;  %5356 = vmatmul.msk.f32.vlgmr.msra.gmra.mxu2 %vm12148_vm8, %v526_v19  ;;  %vm1769_vm0 = vmand %vm1689_vm9, %vm1729_vm10  ;;  %p447_p9 = scmp.lt.s32.totalorder %s5300_s30, 15  ;;  %s5308_s22 = sshll.u32 %s13712_s23, 3  ;;  %vm1692_vm3 = vcmp.ge.s32.totalorder %v1652_v22, 0  ;;  %vm1732_vm4 = vcmp.lt.s32.totalorder %v1652_v22, 16  ;;  %v1655_v32 = vadd.s32 %v5976_v7, %v1614_v29  ;;  %v1619_v54 = vld [vmem:[%s12123_s0 + $0x80] sm:$0xff] }
  0x18   : > { %1845 = vperm.xlu0 %5543, %v1804_v18   ;;  %vm1767_vm1 = vmand %vm1687_vm12, %vm1727_vm13  ;;  %v1809_v24 = vsel %vm1769_vm0, 1, %v12133_v3  ;;  %p475_p10 = scmp.lt.s32.totalorder %s5308_s22, 15  ;;  %vm1691_vm5 = vcmp.ge.s32.totalorder %v1651_v23, 0  ;;  %vm1731_vm6 = vcmp.lt.s32.totalorder %v1651_v23, 16  ;;  %vm1690_vm7 = vcmp.ge.s32.totalorder %v1650_v25, 0  ;;  %v1618_v56 = vld [vmem:[%s12123_s0 + $0x78] sm:$0xff] }
  0x19   : > { %vm1765_vm2 = vmand %vm1685_vm14, %vm1725_vm15  ;;  %s13714_s30 = smov (!%p447_p9, %s5300_s30), 15  ;;  %v1807_v26 = vsel %vm1767_vm1, 1, %v12133_v3  ;;  %vm1730_vm9 = vcmp.lt.s32.totalorder %v1650_v25, 16  ;;  %v1654_v34 = vadd.s32 %v5976_v7, %v1613_v30  ;;  %v1653_v37 = vadd.s32 %v5976_v7, %v1612_v31  ;;  %v1623_v1 = vld [vmem:[%s12123_s0 + $0xa0] sm:$0xff]  ;;  %v1622_v2 = vld [vmem:[%s12123_s0 + $0x98] sm:$0xff] }
  0x1a   : > { %v1805_v27 = vsel %vm1765_vm2, 1, %v12133_v3  ;;  %s13716_s22 = smov (!%p475_p10, %s5308_s22), 15  ;;  %s5301_s20 = sshll.u32 %s13714_s30, 1  ;;  %vm1772_vm10 = vmand %vm1692_vm3, %vm1732_vm4  ;;  %vm1695_vm13 = vcmp.ge.s32.totalorder %v1655_v32, 0  ;;  %vm1735_vm14 = vcmp.lt.s32.totalorder %v1655_v32, 16  ;;  %v1658_v46 = vadd.s32 %v5976_v7, %v1617_v41  ;;  %v1621_v5 = vld [vmem:[%s12123_s0 + $0x90] sm:$0xff] }
  0x1b   : > { %s451_s26 = sadd.s32 %s5985_s19, %s5301_s20  ;;  %s5309_s28 = sshll.u32 %s13716_s22, 1  ;;  %vm1771_vm11 = vmand %vm1691_vm5, %vm1731_vm6  ;;  %v1812_v36 = vsel %vm1772_vm10, 1, %v12133_v3  ;;  %vm1694_vm15 = vcmp.ge.s32.totalorder %v1654_v34, 0  ;;  %vm1734_vm0 = vcmp.lt.s32.totalorder %v1654_v34, 16  ;;  %vm1693_vm1 = vcmp.ge.s32.totalorder %v1653_v37, 0  ;;  %v1626_v15 = vld [vmem:[%s12123_s0 + $0xb8] sm:$0xff] }
  0x1c   : > { %s5303_s18 = sshll.u32 %s451_s26, 3  ;;  %s479_s21 = sadd.s32 %s5309_s28, %s5985_s19  ;;  %vm1770_vm12 = vmand %vm1690_vm7, %vm1730_vm9  ;;  %v1811_v38 = vsel %vm1771_vm11, 1, %v12133_v3  ;;  %vm1733_vm2 = vcmp.lt.s32.totalorder %v1653_v37, 16  ;;  %v1657_v47 = vadd.s32 %v5976_v7, %v1616_v42  ;;  %v1656_v49 = vadd.s32 %v5976_v7, %v1615_v44  ;;  %v1625_v16 = vld [vmem:[%s12123_s0 + $0xb0] sm:$0xff]  ;;  %v1624_v18 = vld [vmem:[%s12123_s0 + $0xa8] sm:$0xff] }
  0x1d   : > { %s6061_s23 = scalar_lea.vmem %s12125_s2, %s5303_s18  ;;  %s5311_s16 = sshll.u32 %s479_s21, 3  ;;  %v1810_v39 = vsel %vm1770_vm12, 1, %v12133_v3  ;;  %vm1775_vm3 = vmand %vm1695_vm13, %vm1735_vm14  ;;  %vm1698_vm6 = vcmp.ge.s32.totalorder %v1658_v46, 0  ;;  %vm1738_vm7 = vcmp.lt.s32.totalorder %v1658_v46, 16  ;;  %v1661_v58 = vadd.s32 %v5976_v7, %v1620_v53  ;;  %v1627_v29 = vld [vmem:[%s12123_s0 + $0xc0] sm:$0xff]  ;;  %v1632_v37 = vld [vmem:[%s12123_s0 + $0xe8] sm:$0xff] }
  0x1e   : > { %1860 = vperm.xlu2 %5545, %v1809_v24   ;;  %v5318_v33 = vld [vmem:[%s6061_s23 + $0x20] sm:$0xff]  ;;  %s6070_s28 = scalar_lea.vmem %s12127_s4, %s5311_s16  ;;  %v5319_v43 = vld [vmem:[%s6061_s23 + $0x28] sm:$0xff]  ;;  %vm1774_vm4 = vmand %vm1694_vm15, %vm1734_vm0  ;;  %v1815_v48 = vsel %vm1775_vm3, 1, %v12133_v3  ;;  %vm1697_vm9 = vcmp.ge.s32.totalorder %v1657_v47, 0  ;;  %vm1737_vm10 = vcmp.lt.s32.totalorder %v1657_v47, 16  ;;  %vm1696_vm11 = vcmp.ge.s32.totalorder %v1656_v49, 0  ;;  %s11998_s26 = scalar_lea.vmem %s12132_s9, %s5307_s24 }
  0x1f   : > { %1854 = vperm.xlu1 %5544, %v1807_v26   ;;  %5357 = vmatmul.msk.f32.gmra.mxu2 %vm12148_vm8, %v527_v28  ;;  %v536_v35 = vld [vmem:[%s6070_s28 + $0x40] sm:$0xff]  ;;  %v537_v45 = vld [vmem:[%s6070_s28 + $0x48] sm:$0xff]  ;;  %vm1773_vm5 = vmand %vm1693_vm1, %vm1733_vm2  ;;  %v1814_v50 = vsel %vm1774_vm4, 1, %v12133_v3  ;;  %vm1736_vm12 = vcmp.lt.s32.totalorder %v1656_v49, 16  ;;  %v1660_v59 = vadd.s32 %v5976_v7, %v1619_v54  ;;  %v1659_v61 = vadd.s32 %v5976_v7, %v1618_v56 }
  0x20   : > { %1848 = vperm.xlu0 %5543, %v1805_v27   ;;  %5330 = vmatmul.msk.f32.vlgmr.msra.gmra.mxu0 %vm12148_vm8, %v5318_v33  ;;  %v528_v40 = vld [vmem:[%s6070_s28] sm:$0xff]  ;;  %v1813_v51 = vsel %vm1773_vm5, 1, %v12133_v3  ;;  %v529_v52 = vld [vmem:[%s6070_s28 + $0x8] sm:$0xff]  ;;  %v5320_v55 = vld [vmem:[%s6061_s23 + $0x30] sm:$0xff]  ;;  %vm1701_vm0 = vcmp.ge.s32.totalorder %v1661_v58, 0  ;;  %vm1741_vm1 = vcmp.lt.s32.totalorder %v1661_v58, 16  ;;  %v1664_v6 = vadd.s32 %v5976_v7, %v1623_v1 }
  0x21   : > { %5366 = vmatmul.msk.f32.vlgmr.msra.gmra.mxu3 %vm12148_vm8, %v536_v35  ;;  %vm1778_vm13 = vmand %vm1698_vm6, %vm1738_vm7  ;;  %v538_v57 = vld [vmem:[%s6070_s28 + $0x50] sm:$0xff]  ;;  %vm1700_vm2 = vcmp.ge.s32.totalorder %v1660_v59, 0  ;;  %vm1740_vm3 = vcmp.lt.s32.totalorder %v1660_v59, 16  ;;  %vm1699_vm4 = vcmp.ge.s32.totalorder %v1659_v61, 0  ;;  %vm1739_vm5 = vcmp.lt.s32.totalorder %v1659_v61, 16  ;;  %v5321_v4 = vld [vmem:[%s6061_s23 + $0x38] sm:$0xff] }
  0x22   : > { %vm1777_vm14 = vmand %vm1697_vm9, %vm1737_vm10  ;;  %v1818_v60 = vsel %vm1778_vm13, 1, %v12133_v3  ;;  %v530_v0 = vld [vmem:[%s6070_s28 + $0x10] sm:$0xff]  ;;  %v539_v8 = vld [vmem:[%s6070_s28 + $0x58] sm:$0xff]  ;;  %v1663_v9 = vadd.s32 %v5976_v7, %v1622_v2  ;;  %v1662_v11 = vadd.s32 %v5976_v7, %v1621_v5  ;;  %vm1704_vm10 = vcmp.ge.s32.totalorder %v1664_v6, 0 }
  0x23   : > { %vm1776_vm15 = vmand %vm1696_vm11, %vm1736_vm12  ;;  %v1817_v62 = vsel %vm1777_vm14, 1, %v12133_v3  ;;  %v531_v14 = vld [vmem:[%s6070_s28 + $0x18] sm:$0xff]  ;;  %vm1744_vm11 = vcmp.lt.s32.totalorder %v1664_v6, 16  ;;  %v5322_v17 = vld [vmem:[%s6061_s23 + $0x40] sm:$0xff]  ;;  %v1667_v19 = vadd.s32 %v5976_v7, %v1626_v15  ;;  %v1666_v20 = vadd.s32 %v5976_v7, %v1625_v16 }
  0x24   : > { %v1816_v63 = vsel %vm1776_vm15, 1, %v12133_v3  ;;  %vm1781_vm6 = vmand %vm1701_vm0, %vm1741_vm1  ;;  %vm1703_vm12 = vcmp.ge.s32.totalorder %v1663_v9, 0  ;;  %vm1743_vm13 = vcmp.lt.s32.totalorder %v1663_v9, 16  ;;  %vm1702_vm14 = vcmp.ge.s32.totalorder %v1662_v11, 0  ;;  %v532_v25 = vld [vmem:[%s6070_s28 + $0x20] sm:$0xff]  ;;  %v1629_v26 = vld [vmem:[%s12123_s0 + $0xd0] sm:$0xff] }
  0x25   : > { %vm1780_vm7 = vmand %vm1700_vm2, %vm1740_vm3  ;;  %v1821_v10 = vsel %vm1781_vm6, 1, %v12133_v3  ;;  %vm1742_vm15 = vcmp.lt.s32.totalorder %v1662_v11, 16  ;;  %v1665_v22 = vadd.s32 %v5976_v7, %v1624_v18  ;;  %vm1707_vm3 = vcmp.ge.s32.totalorder %v1667_v19, 0  ;;  %v1628_v27 = vld [vmem:[%s12123_s0 + $0xc8] sm:$0xff]  ;;  %v534_v47 = vld [vmem:[%s6070_s28 + $0x30] sm:$0xff] }
  0x26   : > { %1869 = vperm.xlu2 %5545, %v1812_v36   ;;  %vm1779_vm9 = vmand %vm1699_vm4, %vm1739_vm5  ;;  %v1820_v12 = vsel %vm1780_vm7, 1, %v12133_v3  ;;  %vm1747_vm4 = vcmp.lt.s32.totalorder %v1667_v19, 16  ;;  %vm1706_vm5 = vcmp.ge.s32.totalorder %v1666_v20, 0  ;;  %vm1746_vm6 = vcmp.lt.s32.totalorder %v1666_v20, 16  ;;  %v5323_v28 = vld [vmem:[%s6061_s23 + $0x48] sm:$0xff]  ;;  %v1634_v49 = vld [vmem:[%s12123_s0 + $0xf8] sm:$0xff] }
  0x27   : > { %1866 = vperm.xlu1 %5544, %v1811_v38   ;;  %5358 = vmatmul.msk.f32.gmra.mxu2 %vm12148_vm8, %v528_v40  ;;  %v1819_v13 = vsel %vm1779_vm9, 1, %v12133_v3  ;;  %vm1784_vm0 = vmand %vm1704_vm10, %vm1744_vm11  ;;  %vm1705_vm7 = vcmp.ge.s32.totalorder %v1665_v22, 0  ;;  %vm1745_vm9 = vcmp.lt.s32.totalorder %v1665_v22, 16  ;;  %v1670_v30 = vadd.s32 %v5976_v7, %v1629_v26  ;;  %v533_v36 = vld [vmem:[%s6070_s28 + $0x28] sm:$0xff]  ;;  %v1631_v38 = vld [vmem:[%s12123_s0 + $0xe0] sm:$0xff] }
  0x28   : > { %1863 = vperm.xlu0 %5543, %v1810_v39   ;;  %5331 = vmatmul.msk.f32.gmra.mxu0 %vm12148_vm8, %v5319_v43  ;;  %vm1783_vm1 = vmand %vm1703_vm12, %vm1743_vm13  ;;  %v1824_v21 = vsel %vm1784_vm0, 1, %v12133_v3  ;;  %v1669_v31 = vadd.s32 %v5976_v7, %v1628_v27  ;;  %v1668_v33 = vadd.s32 %v5976_v7, %v1627_v29  ;;  %v5324_v39 = vld [vmem:[%s6061_s23 + $0x50] sm:$0xff]  ;;  %v1630_v40 = vld [vmem:[%s12123_s0 + $0xd8] sm:$0xff]  ;;  %v1673_v41 = vadd.s32 %v5976_v7, %v1632_v37 }
  0x29   : > { %5367 = vmatmul.msk.f32.gmra.mxu3 %vm12148_vm8, %v537_v45  ;;  %vm1782_vm2 = vmand %vm1702_vm14, %vm1742_vm15  ;;  %v1823_v23 = vsel %vm1783_vm1, 1, %v12133_v3  ;;  %vm1710_vm13 = vcmp.ge.s32.totalorder %v1670_v30, 0  ;;  %vm1750_vm14 = vcmp.lt.s32.totalorder %v1670_v30, 16  ;;  %v1672_v42 = vadd.s32 %v5976_v7, %v1631_v38  ;;  %v535_v58 = vld [vmem:[%s6070_s28 + $0x38] sm:$0xff]  ;;  %v5326_v61 = vld [vmem:[%s6061_s23 + $0x60] sm:$0xff] }
  0x2a   : > { %v1822_v24 = vsel %vm1782_vm2, 1, %v12133_v3  ;;  %vm1787_vm10 = vmand %vm1707_vm3, %vm1747_vm4  ;;  %vm1709_vm15 = vcmp.ge.s32.totalorder %v1669_v31, 0  ;;  %vm1749_vm0 = vcmp.lt.s32.totalorder %v1669_v31, 16  ;;  %vm1708_vm1 = vcmp.ge.s32.totalorder %v1668_v33, 0  ;;  %v1638_v59 = vld [vmem:[%s12123_s0 + $0x118] sm:$0xff]  ;;  %v1641_v6 = vld [vmem:[%s12123_s0 + $0x130] sm:$0xff] }
  0x2b   : > { %vm1786_vm11 = vmand %vm1706_vm5, %vm1746_vm6  ;;  %v1827_v32 = vsel %vm1787_vm10, 1, %v12133_v3  ;;  %vm1748_vm2 = vcmp.lt.s32.totalorder %v1668_v33, 16  ;;  %v1671_v44 = vadd.s32 %v5976_v7, %v1630_v40  ;;  %vm1713_vm6 = vcmp.ge.s32.totalorder %v1673_v41, 0  ;;  %v5327_v9 = vld [vmem:[%s6061_s23 + $0x68] sm:$0xff]  ;;  %v1642_v18 = vld [vmem:[%s12123_s0 + $0x138] sm:$0xff] }
  0x2c   : > { %vm1785_vm12 = vmand %vm1705_vm7, %vm1745_vm9  ;;  %v1826_v34 = vsel %vm1786_vm11, 1, %v12133_v3  ;;  %vm1753_vm7 = vcmp.lt.s32.totalorder %v1673_v41, 16  ;;  %vm1712_vm9 = vcmp.ge.s32.totalorder %v1672_v42, 0  ;;  %vm1752_vm10 = vcmp.lt.s32.totalorder %v1672_v42, 16  ;;  %v2048_v29 = vld [vmem:[%s12124_s1 + $0x20] sm:$0xff]  ;;  %v2047_v30 = vld [vmem:[%s12124_s1 + $0x18] sm:$0xff] }
  0x2d   : > { %v1825_v35 = vsel %vm1785_vm12, 1, %v12133_v3  ;;  %vm1790_vm3 = vmand %vm1710_vm13, %vm1750_vm14  ;;  %vm1711_vm11 = vcmp.ge.s32.totalorder %v1671_v44, 0  ;;  %vm1751_vm12 = vcmp.lt.s32.totalorder %v1671_v44, 16  ;;  %v1675_v53 = vadd.s32 %v5976_v7, %v1634_v49  ;;  %v2046_v31 = vld [vmem:[%s12124_s1 + $0x10] sm:$0xff]  ;;  %v2051_v37 = vld [vmem:[%s12124_s1 + $0x38] sm:$0xff] }
  0x2e   : > { %1878 = vperm.xlu2 %5545, %v1815_v48   ;;  %vm1789_vm4 = vmand %vm1709_vm15, %vm1749_vm0  ;;  %v1830_v43 = vsel %vm1790_vm3, 1, %v12133_v3  ;;  %v1635_v48 = vld [vmem:[%s12123_s0 + $0x100] sm:$0xff]  ;;  %v1682_v11 = vadd.s32 %v5976_v7, %v1641_v6  ;;  %v1683_v20 = vadd.s32 %v5976_v7, %v1642_v18  ;;  %v2050_v38 = vld [vmem:[%s12124_s1 + $0x30] sm:$0xff] }
  0x2f   : > { %1875 = vperm.xlu1 %5544, %v1814_v50   ;;  %5359 = vmatmul.msk.f32.gmra.mxu2 %vm12148_vm8, %v529_v52  ;;  %vm1788_vm5 = vmand %vm1708_vm1, %vm1748_vm2  ;;  %v1829_v45 = vsel %vm1789_vm4, 1, %v12133_v3  ;;  %v5325_v50 = vld [vmem:[%s6061_s23 + $0x58] sm:$0xff]  ;;  %v1676_v52 = vadd.s32 %v5976_v7, %v1635_v48  ;;  %vm1715_vm2 = vcmp.ge.s32.totalorder %v1675_v53, 0  ;;  %vm1755_vm3 = vcmp.lt.s32.totalorder %v1675_v53, 16  ;;  %v513_v40 = vld [vmem:[%s6013_s27 + $0x8] sm:$0xff] }
  0x30   : > { %1872 = vperm.xlu0 %5543, %v1813_v51   ;;  %5332 = vmatmul.msk.f32.gmra.mxu0 %vm12148_vm8, %v5320_v55  ;;  %v1828_v46 = vsel %vm1788_vm5, 1, %v12133_v3  ;;  %vm1793_vm13 = vmand %vm1713_vm6, %vm1753_vm7  ;;  %v1633_v51 = vld [vmem:[%s12123_s0 + $0xf0] sm:$0xff] }
  0x31   : > { %5368 = vmatmul.msk.f32.gmra.mxu3 %vm12148_vm8, %v538_v57  ;;  %vm1792_vm14 = vmand %vm1712_vm9, %vm1752_vm10  ;;  %v1833_v54 = vsel %vm1793_vm13, 1, %v12133_v3  ;;  %v1674_v55 = vadd.s32 %v5976_v7, %v1633_v51  ;;  %vm1716_vm0 = vcmp.ge.s32.totalorder %v1676_v52, 0  ;;  %vm1756_vm1 = vcmp.lt.s32.totalorder %v1676_v52, 16  ;;  %v514_v48 = vld [vmem:[%s6013_s27 + $0x10] sm:$0xff]  ;;  %v2057_v52 = vld [vmem:[%s12124_s1 + $0x68] sm:$0xff] }
  0x32   : > { %vm1791_vm15 = vmand %vm1711_vm11, %vm1751_vm12  ;;  %v1832_v56 = vsel %vm1792_vm14, 1, %v12133_v3  ;;  %v2062_v18 = vld [vmem:[%s12124_s1 + $0x90] sm:$0xff] }
  0x33   : > { %v1831_v57 = vsel %vm1791_vm15, 1, %v12133_v3  ;;  %vm1714_vm4 = vcmp.ge.s32.totalorder %v1674_v55, 0  ;;  %vm1754_vm5 = vcmp.lt.s32.totalorder %v1674_v55, 16  ;;  %vm1796_vm6 = vmand %vm1716_vm0, %vm1756_vm1  ;;  %v2055_v55 = vld [vmem:[%s12124_s1 + $0x58] sm:$0xff] }
  0x34   : > { %vm1795_vm7 = vmand %vm1715_vm2, %vm1755_vm3  ;;  %v1836_v1 = vsel %vm1796_vm6, 1, %v12133_v3  ;;  %vm1722_vm3 = vcmp.ge.s32.totalorder %v1682_v11, 0 }
  0x35   : > { %vm1794_vm9 = vmand %vm1714_vm4, %vm1754_vm5  ;;  %vm1762_vm4 = vcmp.lt.s32.totalorder %v1682_v11, 16 }
  0x36   : > { %1887 = vperm.xlu2 %5545, %v1818_v60   ;;  %v1637_v60 = vld [vmem:[%s12123_s0 + $0x110] sm:$0xff]  ;;  %v1834_v5 = vsel %vm1794_vm9, 1, %v12133_v3 }
  0x37   : > { %1884 = vperm.xlu1 %5544, %v1817_v62   ;;  %5360 = vmatmul.msk.f32.gmra.mxu2 %vm12148_vm8, %v530_v0  ;;  %v1636_v62 = vld [vmem:[%s12123_s0 + $0x108] sm:$0xff]  ;;  %v1678_v0 = vadd.s32 %v5976_v7, %v1637_v60 }
  0x38   : > { %1881 = vperm.xlu0 %5543, %v1816_v63   ;;  %5333 = vmatmul.msk.f32.gmra.mxu0 %vm12148_vm8, %v5321_v4  ;;  %v1679_v63 = vadd.s32 %v5976_v7, %v1638_v59  ;;  %v1677_v2 = vadd.s32 %v5976_v7, %v1636_v62  ;;  %v1835_v4 = vsel %vm1795_vm7, 1, %v12133_v3 }
  0x39   : > { %5369 = vmatmul.msk.f32.gmra.mxu3 %vm12148_vm8, %v539_v8  ;;  %vm1718_vm12 = vcmp.ge.s32.totalorder %v1678_v0, 0  ;;  %vm1758_vm13 = vcmp.lt.s32.totalorder %v1678_v0, 16  ;;  %v1640_v8 = vld [vmem:[%s12123_s0 + $0x128] sm:$0xff]  ;;  %v2060_v0 = vld [vmem:[%s12124_s1 + $0x80] sm:$0xff] }
  0x3a   : > { %vm1719_vm10 = vcmp.ge.s32.totalorder %v1679_v63, 0  ;;  %vm1759_vm11 = vcmp.lt.s32.totalorder %v1679_v63, 16  ;;  %vm1717_vm14 = vcmp.ge.s32.totalorder %v1677_v2, 0  ;;  %vm1757_vm15 = vcmp.lt.s32.totalorder %v1677_v2, 16  ;;  %vm1798_vm1 = vmand %vm1718_vm12, %vm1758_vm13  ;;  %v2059_v2 = vld [vmem:[%s12124_s1 + $0x78] sm:$0xff] }
  0x3b   : > { %vm1799_vm0 = vmand %vm1719_vm10, %vm1759_vm11  ;;  %v1838_v15 = vsel %vm1798_vm1, 1, %v12133_v3  ;;  %vm1723_vm13 = vcmp.ge.s32.totalorder %v1683_v20, 0 }
  0x3c   : > { %vm1797_vm2 = vmand %vm1717_vm14, %vm1757_vm15  ;;  %vm1763_vm14 = vcmp.lt.s32.totalorder %v1683_v20, 16  ;;  %v2061_v20 = vld [vmem:[%s12124_s1 + $0x88] sm:$0xff] }
  0x3d   : > { %v1837_v16 = vsel %vm1797_vm2, 1, %v12133_v3  ;;  %vm1802_vm10 = vmand %vm1722_vm3, %vm1762_vm4  ;;  %vm2276_vm2 = vcmp.lt.s32.totalorder %v2048_v29, 15  ;;  %vm2275_vm3 = vcmp.lt.s32.totalorder %v2047_v30, 15  ;;  %vm2274_vm4 = vcmp.lt.s32.totalorder %v2046_v31, 15 }
  0x3e   : > { %1896 = vperm.xlu2 %5545, %v1821_v10   ;;  %v1639_v10 = vld [vmem:[%s12123_s0 + $0x120] sm:$0xff]  ;;  %v1842_v19 = vsel %vm1802_vm10, 1, %v12133_v3  ;;  %vm1803_vm1 = vmand %vm1723_vm13, %vm1763_vm14  ;;  %vm2283_vm14 = vcmp.lt.s32.totalorder %v2055_v55, 15 }
  0x3f   : > { %1893 = vperm.xlu1 %5544, %v1820_v12   ;;  %5361 = vmatmul.msk.f32.gmra.mxu2 %vm12148_vm8, %v531_v14  ;;  %v1681_v12 = vadd.s32 %v5976_v7, %v1640_v8  ;;  %v1680_v14 = vadd.s32 %v5976_v7, %v1639_v10  ;;  %v5329_v7 = vld [vmem:[%s6061_s23 + $0x78] sm:$0xff]  ;;  %v2315_v63 = vsel %vm2283_vm14, 1, %v12133_v3 }
  0x40   : > { %1890 = vperm.xlu0 %5543, %v1819_v13   ;;  %5334 = vmatmul.msk.f32.gmra.mxu0 %vm12148_vm8, %v5322_v17  ;;  %v1839_v13 = vsel %vm1799_vm0, 1, %v12133_v3  ;;  %v5328_v17 = vld [vmem:[%s6061_s23 + $0x70] sm:$0xff] }
  0x41   : > { %vm1721_vm5 = vcmp.ge.s32.totalorder %v1681_v12, 0  ;;  %vm1761_vm6 = vcmp.lt.s32.totalorder %v1681_v12, 16  ;;  %vm1720_vm7 = vcmp.ge.s32.totalorder %v1680_v14, 0  ;;  %vm1760_vm9 = vcmp.lt.s32.totalorder %v1680_v14, 16 }
  0x42   : > { %vm1801_vm11 = vmand %vm1721_vm5, %vm1761_vm6  ;;  %vm2279_vm5 = vcmp.lt.s32.totalorder %v2051_v37, 15  ;;  %vm2278_vm6 = vcmp.lt.s32.totalorder %v2050_v38, 15 }
  0x43   : > { %vm1800_vm12 = vmand %vm1720_vm7, %vm1760_vm9  ;;  %v2311_v41 = vsel %vm2279_vm5, 1, %v12133_v3 }
  0x44   : > { %v1840_v22 = vsel %vm1800_vm12, 1, %v12133_v3  ;;  %vm2285_vm12 = vcmp.lt.s32.totalorder %v2057_v52, 15 }
  0x45   : > { %v2317_v60 = vsel %vm2285_vm12, 1, %v12133_v3 }
  0x46   : > { %1905 = vperm.xlu2 %5545, %v1824_v21   ;;  %v1841_v21 = vsel %vm1801_vm11, 1, %v12133_v3 }
  0x47   : > { %1902 = vperm.xlu1 %5544, %v1823_v23   ;;  %5362 = vmatmul.msk.f32.gmra.mxu2 %vm12148_vm8, %v532_v25  ;;  %v2045_v23 = vld [vmem:[%s12124_s1 + $0x8] sm:$0xff] }
  0x48   : > { %1899 = vperm.xlu0 %5543, %v1822_v24   ;;  %5335 = vmatmul.msk.f32.gmra.mxu0 %vm12148_vm8, %v5323_v28  ;;  %v2044_v24 = vld [vmem:[%s12124_s1] sm:$0xff]  ;;  %vm2273_vm15 = vcmp.lt.s32.totalorder %v2045_v23, 15  ;;  %v1843_v28 = vsel %vm1803_vm1, 1, %v12133_v3  ;;  %v517_v23 = vld [vmem:[%s6013_s27 + $0x28] sm:$0xff] }
  0x49   : > { %vm2272_vm0 = vcmp.lt.s32.totalorder %v2044_v24, 15  ;;  %v2305_v26 = vsel %vm2273_vm15, 1, %v12133_v3  ;;  %vm2288_vm15 = vcmp.lt.s32.totalorder %v2060_v0, 15 }
  0x4a   : > { %v2304_v27 = vsel %vm2272_vm0, 1, %v12133_v3  ;;  %vm2287_vm0 = vcmp.lt.s32.totalorder %v2059_v2, 15 }
  0x4b   : > { %v2319_v14 = vsel %vm2287_vm0, 1, %v12133_v3 }
  0x4e   : > { %1914 = vperm.xlu2 %5545, %v1827_v32   ;;  %v512_v32 = vld [vmem:[%s6013_s27] sm:$0xff] }
  0x4f   : > { %1911 = vperm.xlu1 %5544, %v1826_v34   ;;  %5363 = vmatmul.msk.f32.gmra.mxu2 %vm12148_vm8, %v533_v36  ;;  %v2308_v34 = vsel %vm2276_vm2, 1, %v12133_v3  ;;  %v2306_v36 = vsel %vm2274_vm4, 1, %v12133_v3  ;;  %vm2289_vm4 = vcmp.lt.s32.totalorder %v2061_v20, 15 }
  0x50   : > { %1908 = vperm.xlu0 %5543, %v1825_v35   ;;  %5336 = vmatmul.msk.f32.gmra.mxu0 %vm12148_vm8, %v5324_v39  ;;  %v2307_v35 = vsel %vm2275_vm3, 1, %v12133_v3  ;;  %v2049_v39 = vld [vmem:[%s12124_s1 + $0x28] sm:$0xff]  ;;  %vm2290_vm3 = vcmp.lt.s32.totalorder %v2062_v18, 15  ;;  %v2321_v38 = vsel %vm2289_vm4, 1, %v12133_v3 }
  0x51   : > { %vm2277_vm7 = vcmp.lt.s32.totalorder %v2049_v39, 15  ;;  %v2322_v31 = vsel %vm2290_vm3, 1, %v12133_v3  ;;  %v2066_v39 = vld [vmem:[%s12124_s1 + $0xb0] sm:$0xff] }
  0x52   : > { %v2309_v44 = vsel %vm2277_vm7, 1, %v12133_v3  ;;  %vm2294_vm5 = vcmp.lt.s32.totalorder %v2066_v39, 15 }
  0x56   : > { %1923 = vperm.xlu2 %5545, %v1830_v43   ;;  %v2310_v43 = vsel %vm2278_vm6, 1, %v12133_v3 }
  0x57   : > { %1920 = vperm.xlu1 %5544, %v1829_v45   ;;  %5364 = vmatmul.msk.f32.gmra.mxu2 %vm12148_vm8, %v534_v47  ;;  %v2054_v45 = vld [vmem:[%s12124_s1 + $0x50] sm:$0xff]  ;;  %v2052_v47 = vld [vmem:[%s12124_s1 + $0x40] sm:$0xff] }
  0x58   : > { %1917 = vperm.xlu0 %5543, %v1828_v46   ;;  %5337 = vmatmul.msk.f32.gmra.mxu0 %vm12148_vm8, %v5325_v50  ;;  %v2053_v46 = vld [vmem:[%s12124_s1 + $0x48] sm:$0xff]  ;;  %vm2282_vm9 = vcmp.lt.s32.totalorder %v2054_v45, 15  ;;  %vm2280_vm11 = vcmp.lt.s32.totalorder %v2052_v47, 15  ;;  %v2064_v45 = vld [vmem:[%s12124_s1 + $0xa0] sm:$0xff] }
  0x59   : > { %vm2281_vm10 = vcmp.lt.s32.totalorder %v2053_v46, 15  ;;  %v2314_v49 = vsel %vm2282_vm9, 1, %v12133_v3  ;;  %v2312_v51 = vsel %vm2280_vm11, 1, %v12133_v3  ;;  %vm2292_vm7 = vcmp.lt.s32.totalorder %v2064_v45, 15 }
  0x5a   : > { %v2313_v50 = vsel %vm2281_vm10, 1, %v12133_v3 }
  0x5e   : > { %1932 = vperm.xlu2 %5545, %v1833_v54   ;;  %v2056_v54 = vld [vmem:[%s12124_s1 + $0x60] sm:$0xff] }
  0x5f   : > { %1929 = vperm.xlu1 %5544, %v1832_v56   ;;  %5365 = vmatmul.msk.f32.gmra.mxu2 %vm12148_vm8, %v535_v58  ;;  %v515_v56 = vld [vmem:[%s6013_s27 + $0x18] sm:$0xff]  ;;  %vm2284_vm13 = vcmp.lt.s32.totalorder %v2056_v54, 15 }
  0x60   : > { %1926 = vperm.xlu0 %5543, %v1831_v57   ;;  %5338 = vmatmul.msk.f32.gmra.mxu0 %vm12148_vm8, %v5326_v61  ;;  %v6339_v57 = vld [vmem:[%s12129_s6] ss:$0 sm:$0xff]  ;;  %v2316_v62 = vsel %vm2284_vm13, 1, %v12133_v3 }
  0x66   : > { %1941 = vperm.xlu2 %5545, %v1836_v1  }
  0x67   : > { %1938 = vperm.xlu1 %5544, %v1835_v4  }
  0x68   : > { %1935 = vperm.xlu0 %5543, %v1834_v5   ;;  %5339 = vmatmul.msk.f32.gmra.mxu0 %vm12148_vm8, %v5327_v9  ;;  %v2058_v5 = vld [vmem:[%s12124_s1 + $0x70] sm:$0xff]  ;;  %v516_v9 = vld [vmem:[%s6013_s27 + $0x20] sm:$0xff] }
  0x69   : > { %vm2286_vm1 = vcmp.lt.s32.totalorder %v2058_v5, 15  ;;  %v2069_v5 = vld [vmem:[%s12124_s1 + $0xc8] sm:$0xff] }
  0x6a   : > { %vm2297_vm9 = vcmp.lt.s32.totalorder %v2069_v5, 15 }
  0x6e   : > { %1950 = vperm.xlu2 %5545, %v1839_v13   ;;  %v2320_v13 = vsel %vm2288_vm15, 1, %v12133_v3 }
  0x6f   : > { %1947 = vperm.xlu1 %5544, %v1838_v15  }
  0x70   : > { %1944 = vperm.xlu0 %5543, %v1837_v16   ;;  %5340 = vmatmul.msk.f32.gmra.mxu0 %vm12148_vm8, %v5328_v17  ;;  %v6271_v25 = vpop.permute.xlu2 %1857  ;;  %v2318_v16 = vsel %vm2286_vm1, 1, %v12133_v3  ;;  %v2063_v17 = vld [vmem:[%s12124_s1 + $0x98] sm:$0xff] }
  0x71   : > { %vm2291_vm2 = vcmp.lt.s32.totalorder %v2063_v17, 15 }
  0x72   : > { %v2323_v30 = vsel %vm2291_vm2, 1, %v12133_v3 }
  0x76   : > { %1959 = vperm.xlu2 %5545, %v1842_v19  }
  0x77   : > { %1956 = vperm.xlu1 %5544, %v1841_v21  }
  0x78   : > { %1953 = vperm.xlu0 %5543, %v1840_v22   ;;  %5341 = vmatmul.msk.f32.gmra.mxu0 %vm12148_vm8, %v5329_v7  ;;  %v6288_v33 = vpop.permute.xlu2 %1860 }
  0x7e   : > { %2340 = vperm.xlu2 %5545, %v2305_v26  }
  0x7f   : > { %2337 = vperm.xlu1 %5544, %v2304_v27  }
  0x80   : > { %1962 = vperm.xlu0 %5543, %v1843_v28   ;;  %5342 = vmatmul.msk.f32.gmra.mxu0 %vm12148_vm8, %v512_v32  ;;  %v6306_v42 = vpop.permute.xlu2 %1869 }
  0x86   : > { %2349 = vperm.xlu2 %5545, %v2308_v34  }
  0x87   : > { %2346 = vperm.xlu1 %5544, %v2307_v35  }
  0x88   : > { %2343 = vperm.xlu0 %5543, %v2306_v36   ;;  %5343 = vmatmul.msk.f32.gmra.mxu0 %vm12148_vm8, %v513_v40  ;;  %v6327_v53 = vpop.permute.xlu2 %1878  ;;  %v2065_v40 = vld [vmem:[%s12124_s1 + $0xa8] sm:$0xff] }
  0x89   : > { %12598 = vst [vmem:[#allocation2_spill] sm:$0xff] %v6327_v53  ;;  %v6341_v58 = vpop.permute.xlu1 %1851  ;;  %vm2293_vm6 = vcmp.lt.s32.totalorder %v2065_v40, 15 }
  0x8a   : > { %v6353_v1 = vpop.permute.xlu0 %1845  ;;  %v2325_v0 = vsel %vm2293_vm6, 1, %v12133_v3 }
  0x8e   : > { %2358 = vperm.xlu2 %5545, %v2311_v41  }
  0x8f   : > { %2355 = vperm.xlu1 %5544, %v2310_v43  }
  0x90   : > { %2352 = vperm.xlu0 %5543, %v2309_v44   ;;  %5344 = vmatmul.msk.f32.gmra.mxu0 %vm12148_vm8, %v514_v48  ;;  %v6362_v6 = vpop.permute.xlu2 %1887  ;;  %v518_v48 = vld [vmem:[%s6013_s27 + $0x30] sm:$0xff] }
  0x91   : > { %12600 = vst [vmem:[#allocation4_spill] sm:$0xff] %v6362_v6  ;;  %v6372_v15 = vpop.permute.xlu1 %1854 }
  0x92   : > { %v6384_v21 = vpop.permute.xlu0 %1848 }
  0x96   : > { %2367 = vperm.xlu2 %5545, %v2314_v49  }
  0x97   : > { %2364 = vperm.xlu1 %5544, %v2313_v50  }
  0x98   : > { %2361 = vperm.xlu0 %5543, %v2312_v51   ;;  %5345 = vmatmul.msk.f32.gmra.mxu0 %vm12148_vm8, %v515_v56  ;;  %v6390_v26 = vpop.permute.xlu2 %1896  ;;  %v2326_v56 = vsel %vm2294_vm5, 1, %v12133_v3 }
  0x99   : > { %12601 = vst [vmem:[#allocation5_spill] sm:$0xff] %v6390_v26  ;;  %v6417_v41 = vpop.permute.xlu1 %1866  ;;  %v521_v26 = vld [vmem:[%s6013_s27 + $0x48] sm:$0xff] }
  0x9a   : > { %v761_v59 = vpop.f32.mrf.mxu2  ;;  %v6430_v51 = vpop.permute.xlu0 %1863 }
  0x9b   : > { %v6346_v61 = vadd.f32 %v6339_v57, %v761_v59 }
  0x9d   : > { %12599 = vst [vmem:[#allocation3_spill] sm:$0xff] %v6346_v61  ;;  %v5396_v4 = vmul.f32 -1.442695, %v6346_v61  ;;  %v683_v8 = vpop.f32.mrf.mxu0 }
  0x9e   : > { %2376 = vperm.xlu2 %5545, %v2317_v60   ;;  %v6366_v10 = vadd.f32 %v6339_v57, %v683_v8 }
  0x9f   : > { %2373 = vperm.xlu1 %5544, %v2316_v62   ;;  %5548 = vpow2.f32 %v5396_v4  ;;  %v2324_v4 = vsel %vm2292_vm7, 1, %v12133_v3 }
  0xa0   : > { %2370 = vperm.xlu0 %5543, %v2315_v63   ;;  %v5370_v11 = vmul.f32 -1.442695, %v6366_v10  ;;  %5346 = vmatmul.msk.f32.gmra.mxu0 %vm12148_vm8, %v516_v9  ;;  %v6437_v60 = vpop.permute.xlu2 %1905 }
  0xa1   : > { %12604 = vst [vmem:[#allocation8_spill] sm:$0xff] %v6437_v60  ;;  %v6465_v20 = vpop.permute.xlu1 %1875 }
  0xa2   : > { %v764_v12 = vpop.f32.mrf.mxu2  ;;  %5550 = vpow2.f32 %v5370_v11  ;;  %v2068_v11 = vld [vmem:[%s12124_s1 + $0xc0] sm:$0xff]  ;;  %12607 = vst [vmem:[#allocation11_spill] sm:$0xff] %v6465_v20  ;;  %v6483_v40 = vpop.permute.xlu0 %1872 }
  0xa3   : > { %v6401_v35 = vadd.f32 %v6339_v57, %v764_v12  ;;  %vm2296_vm10 = vcmp.lt.s32.totalorder %v2068_v11, 15 }
  0xa4   : > { %v791_v19 = vpop.f32.mrf.mxu3 }
  0xa5   : > { %v686_v22 = vpop.f32.mrf.mxu0  ;;  %v5549_v24 = vpop.eup %5548  ;;  %v6407_v37 = vadd.f32 %v6339_v57, %v791_v19  ;;  %v5397_v46 = vmul.f32 -1.442695, %v6401_v35  ;;  %v519_v19 = vld [vmem:[%s6013_s27 + $0x38] sm:$0xff] }
  0xa6   : > { %2385 = vperm.xlu2 %5545, %v2320_v13   ;;  %v6388_v7 = vadd.f32 %v6339_v57, %v686_v22  ;;  %v6398_v34 = vadd.f32 1.0, %v5549_v24 }
  0xa7   : > { %2382 = vperm.xlu1 %5544, %v2319_v14   ;;  %12603 = vst [vmem:[#allocation7_spill] sm:$0xff] %v6407_v37  ;;  %v5406_v49 = vmul.f32 -1.442695, %v6407_v37 }
  0xa8   : > { %2379 = vperm.xlu0 %5543, %v2318_v16   ;;  %v5551_v27 = vpop.eup %5550  ;;  %v5371_v28 = vmul.f32 -1.442695, %v6388_v7  ;;  %5347 = vmatmul.msk.f32.gmra.mxu0 %vm12148_vm8, %v517_v23  ;;  %12602 = vst [vmem:[#allocation6_spill] sm:$0xff] %v6398_v34 }
  0xa9   : > { %v6396_v32 = vadd.f32 1.0, %v5551_v27 }
  0xaa   : > { %v767_v29 = vpop.f32.mrf.mxu2  ;;  %5552 = vpow2.f32 %v5371_v28 }
  0xab   : > { %v6404_v36 = vadd.f32 %v6339_v57, %v767_v29  ;;  %5554 = vrcp.f32 %v6396_v32  ;;  %vm968_vm11 = vweird.f32 %v6396_v32 }
  0xac   : > { %v794_v43 = vpop.f32.mrf.mxu3  ;;  %5556 = vrcp.f32 %v6398_v34 }
  0xad   : > { %v5398_v44 = vmul.f32 -1.442695, %v6404_v36  ;;  %v689_v47 = vpop.f32.mrf.mxu0  ;;  %v6455_v9 = vadd.f32 %v6339_v57, %v794_v43  ;;  %v1364_v43 = vand.u32 2147483648, %v6398_v34 }
  0xae   : > { %2394 = vperm.xlu2 %5545, %v2323_v30   ;;  %v6428_v50 = vadd.f32 %v6339_v57, %v689_v47 }
  0xaf   : > { %2391 = vperm.xlu1 %5544, %v2322_v31   ;;  %5558 = vpow2.f32 %v5398_v44  ;;  %12606 = vst [vmem:[#allocation10_spill] sm:$0xff] %v6455_v9  ;;  %v5407_v27 = vmul.f32 -1.442695, %v6455_v9  ;;  %v2328_v44 = vsel %vm2296_vm10, 1, %v12133_v3 }
  0xb0   : > { %2388 = vperm.xlu0 %5543, %v2321_v38   ;;  %v5553_v52 = vpop.eup %5552  ;;  %v5372_v54 = vmul.f32 -1.442695, %v6428_v50  ;;  %5348 = vmatmul.msk.f32.gmra.mxu0 %vm12148_vm8, %v518_v48  ;;  %5560 = vpow2.f32 %v5397_v46  ;;  %v2329_v38 = vsel %vm2297_vm9, 1, %v12133_v3  ;;  %v972_v46 = vand.u32 2147483647, %v6396_v32 }
  0xb1   : > { %v6435_v59 = vpop.eup %5554  ;;  %v6439_v62 = vadd.f32 1.0, %v5553_v52  ;;  %5562 = vpow2.f32 %v5406_v49  ;;  %v974_v49 = vand.u32 2147483648, %v6396_v32 }
  0xb2   : > { %v770_v55 = vpop.f32.mrf.mxu2  ;;  %v964_v2 = vmul.f32 %v6435_v59, %v6396_v32  ;;  %v6451_v8 = vpop.eup %5556  ;;  %vm969_vm12 = vweird.f32 %v6435_v59  ;;  %vm6518_vm14 = vcmp.eq.f32.partialorder %v972_v46, 8.507059e+37 }
  0xb3   : > { %v6442_v63 = vadd.f32 %v6339_v57, %v770_v55  ;;  %12605 = vst [vmem:[#allocation9_spill] sm:$0xff] %v6451_v8  ;;  %5564 = vrcp.f32 %v6439_v62  ;;  %v1354_v23 = vmul.f32 %v6451_v8, %v6398_v34  ;;  %vm6503_vm13 = vmor %vm968_vm11, %vm969_vm12  ;;  %vm983_vm15 = vweird.f32 %v6439_v62 }
  0xb4   : > { %v965_v12 = vsub.f32 1.0, %v964_v2  ;;  %5566 = vpow2.f32 %v5372_v54  ;;  %v797_v13 = vpop.f32.mrf.mxu3  ;;  %v6495_v54 = vpop.permute.xlu2 %1914 }
  0xb5   : > { %v5399_v14 = vmul.f32 -1.442695, %v6442_v63  ;;  %v5559_v16 = vpop.eup %5558  ;;  %v6462_v17 = vadd.f32 %v6339_v57, %v797_v13  ;;  %v692_v18 = vpop.f32.mrf.mxu0  ;;  %v1355_v48 = vsub.f32 1.0, %v1354_v23  ;;  %12608 = vst [vmem:[#allocation12_spill] sm:$0xff] %v6495_v54  ;;  %v520_v13 = vld [vmem:[%s6013_s27 + $0x40] sm:$0xff] }
  0xb6   : > { %2403 = vperm.xlu2 %5545, %v2326_v56   ;;  %v6467_v22 = vadd.f32 1.0, %v5559_v16  ;;  %v5561_v24 = vpop.eup %5560  ;;  %v966_v30 = vmul.f32 %v6435_v59, %v965_v12  ;;  %v6476_v31 = vadd.f32 %v6339_v57, %v692_v18  ;;  %v987_v16 = vand.u32 2147483647, %v6439_v62 }
  0xb7   : > { %2400 = vperm.xlu1 %5544, %v2325_v0   ;;  %v5408_v28 = vmul.f32 -1.442695, %v6462_v17  ;;  %5568 = vpow2.f32 %v5399_v14  ;;  %v5563_v29 = vpop.eup %5562  ;;  %v6493_v52 = vadd.f32 1.0, %v5561_v24  ;;  %v1356_v18 = vmul.f32 %v6451_v8, %v1355_v48 }
  0xb8   : > { %2397 = vperm.xlu0 %5543, %v2324_v4   ;;  %5570 = vrcp.f32 %v6467_v22  ;;  %5349 = vmatmul.msk.f32.gmra.mxu0 %vm12148_vm8, %v519_v19  ;;  %v967_v56 = vadd.f32 %v6435_v59, %v966_v30  ;;  %v5373_v0 = vmul.f32 -1.442695, %v6476_v31  ;;  %v6507_v5 = vadd.f32 1.0, %v5563_v29  ;;  %v6529_v30 = vpop.permute.xlu1 %1884 }
  0xb9   : > { %v6480_v39 = vpop.eup %5564  ;;  %5572 = vpow2.f32 %v5408_v28  ;;  %v975_v24 = vor.u32 1.1754944e-38, %v974_v49  ;;  %v989_v29 = vand.u32 2147483648, %v6439_v62  ;;  %12614 = vst [vmem:[#allocation14_spill] sm:$0xff] %v6529_v30  ;;  %vm6542_vm0 = vcmp.eq.f32.partialorder %v987_v16, 8.507059e+37 }
  0xba   : > { %v5567_v45 = vpop.eup %5566  ;;  %v979_v47 = vmul.f32 %v6480_v39, %v6439_v62  ;;  %5574 = vpow2.f32 %v5407_v27  ;;  %v6523_v27 = vor.u32 1.1754944e-38, %v1364_v43  ;;  %v971_v28 = vsel %vm6503_vm13, %v6435_v59, %v967_v56  ;;  %v2067_v59 = vld [vmem:[%s12124_s1 + $0xb8] sm:$0xff] }
  0xbb   : > { %v6497_v55 = vadd.f32 1.0, %v5567_v45  ;;  %v1394_v45 = vand.u32 2147483648, %v6467_v22  ;;  %v6549_v48 = vadd.f32 %v6451_v8, %v1356_v18  ;;  %vm984_vm1 = vweird.f32 %v6480_v39 }
  0xbc   : > { %v980_v11 = vsub.f32 1.0, %v979_v47  ;;  %12613 = vst [vmem:[#allocation13_spill] sm:$0xff] %v6523_v27  ;;  %v990_v18 = vor.u32 1.1754944e-38, %v989_v29  ;;  %vm2295_vm2 = vcmp.lt.s32.totalorder %v2067_v59, 15  ;;  %v6571_v54 = vpop.permute.xlu2 %1923  ;;  %vm6585_vm3 = vmor %vm983_vm15, %vm984_vm1  ;;  %vm1388_vm6 = vweird.f32 %v6467_v22 }
  0xbd   : > { %v5569_v2 = vpop.eup %5568  ;;  %5576 = vrcp.f32 %v6497_v55  ;;  %12617 = vst [vmem:[#allocation15_spill] sm:$0xff] %v6549_v48  ;;  %v695_v49 = vpop.f32.mrf.mxu0  ;;  %v1002_v4 = vand.u32 2147483647, %v6497_v55  ;;  %v6569_v3 = vor.u32 1.1754944e-38, %v1394_v45  ;;  %vm998_vm4 = vweird.f32 %v6497_v55 }
  0xbe   : > { %2412 = vperm.xlu2 %5545, %v2329_v38   ;;  %v6512_v14 = vpop.eup %5570  ;;  %5578 = vpow2.f32 %v5373_v0  ;;  %v6516_v32 = vadd.f32 1.0, %v5569_v2  ;;  %v981_v43 = vmul.f32 %v6480_v39, %v980_v11  ;;  %v976_v0 = vsel %vm6518_vm14, %v975_v24, %v971_v28  ;;  %v6557_v2 = vpop.permute.xlu0 %1881  ;;  %12619 = vst [vmem:[#allocation17_spill] sm:$0xff] %v6571_v54 }
  0xbf   : > { %2409 = vperm.xlu1 %5544, %v2328_v44   ;;  %v5573_v19 = vpop.eup %5572  ;;  %5580 = vrcp.f32 %v6493_v52  ;;  %v1384_v47 = vmul.f32 %v6512_v14, %v6467_v22  ;;  %12618 = vst [vmem:[#allocation16_spill] sm:$0xff] %v6557_v2  ;;  %v1004_v11 = vand.u32 2147483648, %v6497_v55  ;;  %v1392_v28 = vand.u32 2147483647, %v6467_v22 }
  0xc0   : > { %v6531_v38 = vadd.f32 1.0, %v5573_v19  ;;  %5582 = vrcp.f32 %v6516_v32  ;;  %5350 = vmatmul.msk.f32.gmra.mxu0 %vm12148_vm8, %v520_v13  ;;  %v5575_v44 = vpop.eup %5574  ;;  %v773_v13 = vpop.f32.mrf.mxu2  ;;  %v982_v24 = vadd.f32 %v6480_v39, %v981_v43  ;;  %vm6592_vm5 = vcmp.eq.f32.partialorder %v1002_v4, 8.507059e+37 }
  0xc1   : > { %5584 = vrcp.f32 %v6507_v5  ;;  %v6561_v19 = vadd.f32 1.0, %v5575_v44  ;;  %v6579_v44 = vmul.f32 %v976_v0, %v6366_v10  ;;  %v1385_v6 = vsub.f32 1.0, %v1384_v47  ;;  %v6620_v20 = vpop.permute.xlu1 %1893 }
  0xc2   : > { %5586 = vrcp.f32 %v6531_v38  ;;  %v6596_v10 = vor.u32 1.1754944e-38, %v1004_v11  ;;  %v6600_v62 = vadd.f32 %v6339_v57, %v695_v49  ;;  %vm1389_vm7 = vweird.f32 %v6512_v14  ;;  %12624 = vst [vmem:[#allocation18_spill] sm:$0xff] %v6620_v20  ;;  %v522_v20 = vld [vmem:[%s6013_s27 + $0x50] sm:$0xff] }
  0xc3   : > { %v6552_v56 = vpop.eup %5576  ;;  %v1407_v4 = vand.u32 2147483647, %v6516_v32  ;;  %v986_v49 = vsel %vm6585_vm3, %v6480_v39, %v982_v24  ;;  %v1386_v53 = vmul.f32 %v6512_v14, %v1385_v6  ;;  %v1542_v54 = vand.u32 2147483647, %v6531_v38 }
  0xc4   : > { %v5579_v16 = vpop.eup %5578  ;;  %v994_v12 = vmul.f32 %v6552_v56, %v6497_v55  ;;  %vm999_vm9 = vweird.f32 %v6552_v56  ;;  %v5374_v43 = vmul.f32 -1.442695, %v6600_v62  ;;  %v6625_v39 = vadd.f32 %v6339_v57, %v773_v13 }
  0xc5   : > { %v6565_v23 = vpop.eup %5580  ;;  %v6573_v60 = vadd.f32 1.0, %v5579_v16  ;;  %v12625_v24 = vmov 0   ;;  %vm6635_vm10 = vmor %vm998_vm4, %vm999_vm9  ;;  %vm1538_vm11 = vweird.f32 %v6531_v38  ;;  %vm1403_vm12 = vweird.f32 %v6516_v32  ;;  %v698_v59 = vpop.f32.mrf.mxu0 }
  0xc6   : > { %v6576_v29 = vpop.eup %5582  ;;  %v995_v45 = vsub.f32 1.0, %v994_v12  ;;  %v2327_v27 = vsel %vm2295_vm2, 1, %v12625_v24  ;;  %v1544_v46 = vand.u32 2147483648, %v6531_v38  ;;  %vm6647_vm13 = vcmp.eq.f32.partialorder %v1407_v4, 8.507059e+37 }
  0xc7   : > { %v6590_v16 = vpop.eup %5584  ;;  %5588 = vrcp.f32 %v6573_v60  ;;  %v1399_v47 = vmul.f32 %v6576_v29, %v6516_v32  ;;  %2406 = vperm.xlu0 %5543, %v2327_v27   ;;  %vm6656_vm14 = vcmp.eq.f32.partialorder %v1392_v28, 8.507059e+37  ;;  %vm1404_vm15 = vweird.f32 %v6576_v29 }
  0xc8   : > { %v6602_v0 = vpop.eup %5586  ;;  %v996_v12 = vmul.f32 %v6552_v56, %v995_v45  ;;  %5351 = vmatmul.msk.f32.gmra.mxu0 %vm12148_vm8, %v521_v26  ;;  %v1409_v45 = vand.u32 2147483648, %v6516_v32  ;;  %5590 = vpow2.f32 %v5374_v43  ;;  %v6674_v28 = vadd.f32 %v6339_v57, %v698_v59  ;;  %vm6697_vm9 = vmor %vm1403_vm12, %vm1404_vm15  ;;  %v2070_v32 = vld [vmem:[%s12124_s1 + $0xd0] sm:$0xff] }
  0xc9   : > { %v1534_v11 = vmul.f32 %v6602_v0, %v6531_v38  ;;  %v1400_v26 = vsub.f32 1.0, %v1399_v47  ;;  %vm1964_vm1 = vcmp.eq.s32.totalorder %v6353_v1, 1  ;;  %vm1013_vm2 = vweird.f32 %v6573_v60  ;;  %vm6716_vm15 = vmor %vm1388_vm6, %vm1389_vm7  ;;  %v6733_v8 = vpop.permute.xlu1 %1902 }
  0xca   : > { %v997_v2 = vadd.f32 %v6552_v56, %v996_v12  ;;  %v6631_v12 = vsel %vm6542_vm0, %v990_v18, %v986_v49  ;;  %v5400_v18 = vmul.f32 -1.442695, %v6625_v39  ;;  %v776_v49 = vpop.f32.mrf.mxu2  ;;  %v1410_v4 = vor.u32 1.1754944e-38, %v1409_v45  ;;  %12641 = vst [vmem:[#allocation20_spill] sm:$0xff] %v6733_v8 }
  0xcb   : > { %v1535_v61 = vsub.f32 1.0, %v1534_v11  ;;  %v1401_v47 = vmul.f32 %v6576_v29, %v1400_v26  ;;  %v6644_v11 = vpop.permute.xlu0 %1890  ;;  %v6654_v26 = vadd.f32 %v6512_v14, %v1386_v53  ;;  %vm6667_vm0 = vcmp.eq.f32.partialorder %v1542_v54, 8.507059e+37  ;;  %v6671_v53 = vpop.permute.xlu2 %1932  ;;  %v2071_v54 = vld [vmem:[%s12124_s1 + $0xd8] sm:$0xff] }
  0xcc   : > { %12628 = vst [vmem:[#allocation19_spill] sm:$0xff] %v6644_v11  ;;  %v1001_v43 = vsel %vm6635_vm10, %v6552_v56, %v997_v2  ;;  %5592 = vpow2.f32 %v5400_v18  ;;  %v6680_v56 = vadd.f32 %v6339_v57, %v776_v49  ;;  %vm1539_vm4 = vweird.f32 %v6602_v0 }
  0xcd   : > { %v6642_v13 = vpop.eup %5588  ;;  %v1536_v48 = vmul.f32 %v6602_v0, %v1535_v61  ;;  %v1402_v45 = vadd.f32 %v6576_v29, %v1401_v47  ;;  %v2072_v61 = vld [vmem:[%s12124_s1 + $0xe0] sm:$0xff]  ;;  %v1017_v2 = vand.u32 2147483647, %v6573_v60  ;;  %v1019_v6 = vand.u32 2147483648, %v6573_v60  ;;  %vm6725_vm3 = vmor %vm1538_vm11, %vm1539_vm4  ;;  %v701_v55 = vpop.f32.mrf.mxu0 }
  0xce   : > { %v1009_v11 = vmul.f32 %v6642_v13, %v6573_v60  ;;  %v5375_v59 = vmul.f32 -1.442695, %v6674_v28  ;;  %vm1014_vm10 = vweird.f32 %v6642_v13  ;;  %v5401_v18 = vmul.f32 -1.442695, %v6680_v56  ;;  %v5591_v49 = vpop.eup %5590 }
  0xcf   : > { %vm1965_vm12 = vcmp.eq.s32.totalorder %v6384_v21, 1  ;;  %v1406_v22 = vsel %vm6697_vm9, %v6576_v29, %v1402_v45  ;;  %vm6741_vm6 = vmor %vm1013_vm2, %vm1014_vm10  ;;  %vm2298_vm7 = vcmp.lt.s32.totalorder %v2070_v32, 15  ;;  %v1020_v45 = vor.u32 1.1754944e-38, %v1019_v6 }
  0xd0   : > { %v1010_v9 = vsub.f32 1.0, %v1009_v11  ;;  %5352 = vmatmul.msk.f32.gmra.mxu0 %vm12148_vm8, %v522_v20  ;;  %v1006_v20 = vsel %vm6592_vm5, %v6596_v10, %v1001_v43  ;;  %5594 = vpow2.f32 %v5375_v59  ;;  %vm2300_vm5 = vcmp.lt.s32.totalorder %v2072_v61, 15 }
  0xd1   : > { %vm2299_vm8 = vcmp.lt.s32.totalorder %v2071_v54, 15  ;;  %5596 = vpow2.f32 %v5401_v18  ;;  %v1545_v54 = vor.u32 1.1754944e-38, %v1544_v46  ;;  %v2332_v59 = vsel %vm2300_vm5, 1, %v12625_v24 }
  0xd2   : > { %v1011_v11 = vmul.f32 %v6642_v13, %v1010_v9  ;;  %v1537_v9 = vadd.f32 %v6602_v0, %v1536_v48  ;;  %v6735_v48 = vadd.f32 1.0, %v5591_v49  ;;  %v5593_v61 = vpop.eup %5592  ;;  %v2331_v47 = vsel %vm2299_vm8, 1, %v12625_v24  ;;  %2421 = vperm.xlu2 %5545, %v2332_v59  }
  0xd3   : > { %v1565_v29 = vmul.f32 %v1006_v20, %v6428_v50  ;;  %v1391_v46 = vsel %vm6716_vm15, %v6512_v14, %v6654_v26  ;;  %2418 = vperm.xlu1 %5544, %v2331_v47   ;;  %v6758_v18 = vpop.permute.xlu0 %1899  ;;  %v6760_v50 = vadd.f32 1.0, %v5593_v61  ;;  %v2330_v20 = vsel %vm2298_vm7, 1, %v12625_v24 }
  0xd4   : > { %v1012_v43 = vadd.f32 %v6642_v13, %v1011_v11  ;;  %5598 = vrcp.f32 %v6735_v48  ;;  %v1541_v60 = vsel %vm6725_vm3, %v6602_v0, %v1537_v9  ;;  %v1411_v11 = vsel %vm6647_vm13, %v1410_v4, %v1406_v22  ;;  %12644 = vst [vmem:[#allocation21_spill] sm:$0xff] %v6758_v18  ;;  %2415 = vperm.xlu0 %5543, %v2330_v20   ;;  %v779_v4 = vpop.f32.mrf.mxu2  ;;  %v523_v9 = vld [vmem:[%s6013_s27 + $0x58] sm:$0xff]  ;;  %v5772_v18 = vld [vmem:[%s12124_s1 + $0x10] sm:$0xff] }
  0xd5   : > { %v1564_v14 = vmul.f32 %v6631_v12, %v6388_v7  ;;  %5600 = vrcp.f32 %v6561_v19  ;;  %vm6769_vm8 = vcmp.eq.f32.partialorder %v1017_v2, 8.507059e+37  ;;  %v6776_v32 = vsel %vm1964_vm1, %v6579_v44, -3.4028235e+38  ;;  %v6783_v12 = vpop.permute.xlu2 %1941 }
  0xd6   : > { %v1016_v26 = vsel %vm6741_vm6, %v6642_v13, %v1012_v43  ;;  %v5595_v6 = vpop.eup %5594  ;;  %v1396_v7 = vsel %vm6656_vm14, %v6569_v3, %v1391_v46  ;;  %vm1993_vm11 = vcmp.eq.s32.totalorder %v6671_v53, 1  ;;  %5602 = vrcp.f32 %v6760_v50  ;;  %v2074_v46 = vld [vmem:[%s12124_s1 + $0xf0] sm:$0xff] }
  0xd7   : > { %v5597_v13 = vpop.eup %5596  ;;  %vm12647_vm13 = vcmp.eq.s32.totalorder %v6341_v58, 1  ;;  %v1546_v1 = vsel %vm6667_vm0, %v1545_v54, %v1541_v60  ;;  %v1592_v44 = vmul.f32 %v1411_v11, %v6442_v63  ;;  %v6792_v49 = vadd.f32 1.0, %v5595_v6 }
  0xd8   : > { %v6787_v2 = vsel %vm12647_vm13, %v1565_v29, -3.4028235e+38  ;;  %vm1967_vm14 = vcmp.eq.s32.totalorder %v6372_v15, 1  ;;  %v1021_v3 = vsel %vm6769_vm8, %v1020_v45, %v1016_v26  ;;  %v6797_v27 = vadd.f32 1.0, %v5597_v13  ;;  %v6832_v29 = vpop.permute.xlu1 %1911 }
  0xd9   : > { %v6800_v30 = vadd.f32 %v6339_v57, %v701_v55  ;;  %v6803_v58 = vadd.f32 %v6339_v57, %v779_v4  ;;  %v6808_v63 = vsel %vm1965_vm12, %v1564_v14, -3.4028235e+38  ;;  %v1032_v10 = vand.u32 2147483647, %v6735_v48  ;;  %12650 = vst [vmem:[#allocation23_spill] sm:$0xff] %v6832_v29  ;;  %v2073_v14 = vld [vmem:[%s12124_s1 + $0xe8] sm:$0xff] }
  0xda   : > { %v5599_v37 = vpop.eup %5598  ;;  %v1034_v43 = vand.u32 2147483648, %v6735_v48  ;;  %5604 = vrcp.f32 %v6792_v49  ;;  %vm12648_vm0 = vcmask 64512   ;;  %v2077_v22 = vmax.f32 %v6776_v32, %v6787_v2 }
  0xdb   : > { %5353 = vmatmul.msk.f32.gmra.mxu0 %vm12648_vm0, %v523_v9  ;;  %v6817_v61 = vmul.f32 %v1396_v7, %v6404_v36  ;;  %v1024_v54 = vmul.f32 %v5599_v37, %v6735_v48  ;;  %5606 = vrcp.f32 %v6797_v27  ;;  %v6821_v21 = vpop.eup %5600  ;;  %v6824_v38 = vmul.f32 %v1546_v1, %v6462_v17  ;;  %v2075_v36 = vld [vmem:[%s12124_s1 + $0xf8] sm:$0xff]  ;;  %v6855_v0 = vpop.permute.xlu0 %1908  ;;  %vm12657_vm6 = vmmov %vm12648_vm0 }
  0xdc   : > { %v1566_v59 = vmul.f32 %v1021_v3, %v6476_v31  ;;  %v6829_v47 = vsel %vm1993_vm11, %v1592_v44, -3.4028235e+38  ;;  %vm1028_vm1 = vweird.f32 %v6735_v48  ;;  %v6840_v17 = vpop.eup %5602  ;;  %vm1029_vm2 = vweird.f32 %v5599_v37  ;;  %12653 = vst [vmem:[#allocation24_spill] sm:$0xff] %v6855_v0  ;;  %v524_v48 = vld [vmem:[%s6013_s27 + $0x60] sm:$0xff] }
  0xdd   : > { %12649 = vst [vmem:[#allocation22_spill] sm:$0xff] %v6829_v47  ;;  %v1025_v45 = vsub.f32 1.0, %v1024_v54  ;;  %v5376_v31 = vmul.f32 -1.442695, %v6800_v30  ;;  %v5402_v53 = vmul.f32 -1.442695, %v6803_v58  ;;  %v1414_v20 = vmul.f32 %v6840_v17, %v6760_v50  ;;  %vm6860_vm15 = vmor %vm1028_vm1, %vm1029_vm2 }
  0xde   : > { %vm1968_vm3 = vcmp.eq.s32.totalorder %v6271_v25, 1  ;;  %vm6845_vm4 = vcmp.eq.f32.partialorder %v1032_v10, 8.507059e+37  ;;  %v1035_v11 = vor.u32 1.1754944e-38, %v1034_v43  ;;  %vm1418_vm9 = vweird.f32 %v6760_v50  ;;  %v6870_v10 = vpop.permute.xlu2 %1950 }
  0xdf   : > { %v1026_v26 = vmul.f32 %v5599_v37, %v1025_v45  ;;  %5608 = vpow2.f32 %v5376_v31  ;;  %vm2303_vm10 = vcmp.lt.s32.totalorder %v2075_v36, 15  ;;  %vm2302_vm12 = vcmp.lt.s32.totalorder %v2074_v46, 15  ;;  %12656 = vst [vmem:[#allocation25_spill] sm:$0xff] %v6870_v10 }
  0xe0   : > { %v5605_v55 = vpop.eup %5604  ;;  %v1415_v6 = vsub.f32 1.0, %v1414_v20  ;;  %5610 = vpow2.f32 %v5402_v53  ;;  %v2335_v7 = vsel %vm2303_vm10, 1, %v12625_v24  ;;  %v2334_v13 = vsel %vm2302_vm12, 1, %v12625_v24 }
  0xe1   : > { %v6866_v1 = vpop.eup %5606  ;;  %v1027_v44 = vadd.f32 %v5599_v37, %v1026_v26  ;;  %v1039_v3 = vmul.f32 %v5605_v55, %v6792_v49  ;;  %v1047_v9 = vand.u32 2147483647, %v6792_v49  ;;  %2430 = vperm.xlu2 %5545, %v2335_v7   ;;  %2427 = vperm.xlu1 %5544, %v2334_v13   ;;  %vm2301_vm5 = vcmp.lt.s32.totalorder %v2073_v14, 15 }
  0xe2   : > { %v6875_v43 = vsel %vm1967_vm14, %v1566_v59, -3.4028235e+38  ;;  %v1049_v54 = vand.u32 2147483648, %v6792_v49  ;;  %v1429_v36 = vmul.f32 %v6866_v1, %v6797_v27  ;;  %v2333_v46 = vsel %vm2301_vm5, 1, %v12625_v24 }
  0xe3   : > { %5354 = vmatmul.msk.f32.gmra.mxu0 %vm12657_vm6, %v524_v48  ;;  %v1031_v45 = vsel %vm6860_vm15, %v5599_v37, %v1027_v44  ;;  %v1040_v31 = vsub.f32 1.0, %v1039_v3  ;;  %vm1043_vm7 = vweird.f32 %v6792_v49  ;;  %vm1044_vm8 = vweird.f32 %v5605_v55  ;;  %2424 = vperm.xlu0 %5543, %v2333_v46   ;;  %v6938_v32 = vpop.permute.xlu0 %1917 }
  0xe4   : > { %vm1969_vm11 = vcmp.eq.s32.totalorder %v6288_v33, 1  ;;  %v1036_v15 = vsel %vm6845_vm4, %v1035_v11, %v1031_v45  ;;  %v1416_v59 = vmul.f32 %v6840_v17, %v1415_v6  ;;  %v1424_v53 = vand.u32 2147483648, %v6760_v50  ;;  %vm6899_vm1 = vmor %vm1043_vm7, %vm1044_vm8  ;;  %12665 = vst [vmem:[#allocation27_spill] sm:$0xff] %v6938_v32 }
  0xe5   : > { %v1430_v20 = vsub.f32 1.0, %v1429_v36  ;;  %v5609_v14 = vpop.eup %5608  ;;  %v1567_v26 = vmul.f32 %v1036_v15, %v6600_v62  ;;  %v1041_v4 = vmul.f32 %v5605_v55, %v1040_v31  ;;  %vm6891_vm13 = vcmp.eq.f32.partialorder %v1047_v9, 8.507059e+37  ;;  %v6904_v62 = vpop.permute.xlu1 %1920 }
  0xe6   : > { %vm1433_vm14 = vweird.f32 %v6797_v27  ;;  %v5611_v7 = vpop.eup %5610  ;;  %vm1419_vm0 = vweird.f32 %v6840_v17  ;;  %v1050_v11 = vor.u32 1.1754944e-38, %v1049_v54  ;;  %12662 = vst [vmem:[#allocation26_spill] sm:$0xff] %v6904_v62  ;;  %v6906_v13 = vadd.f32 1.0, %v5609_v14 }
  0xe7   : > { %v1431_v6 = vmul.f32 %v6866_v1, %v1430_v20  ;;  %v6910_v44 = vsel %vm1968_vm3, %v1567_v26, -3.4028235e+38  ;;  %v1042_v3 = vadd.f32 %v5605_v55, %v1041_v4  ;;  %vm1434_vm2 = vweird.f32 %v6866_v1  ;;  %vm6929_vm3 = vmor %vm1418_vm9, %vm1419_vm0  ;;  %v6960_v4 = vpop.permute.xlu2 %1959 }
  0xe8   : > { %v6913_v9 = vadd.f32 1.0, %v5611_v7  ;;  %v6921_v48 = vmax.f32 %v2077_v22, %v6910_v44  ;;  %v6924_v54 = vadd.f32 %v6840_v17, %v1416_v59  ;;  %v1439_v25 = vand.u32 2147483648, %v6797_v27  ;;  %vm6948_vm4 = vmor %vm1433_vm14, %vm1434_vm2 }
  0xe9   : > { %v1046_v46 = vsel %vm6899_vm1, %v5605_v55, %v1042_v3  ;;  %v6936_v45 = vadd.f32 %v6866_v1, %v1431_v6  ;;  %5612 = vrcp.f32 %v6906_v13  ;;  %v1369_v22 = vmul.f32 %v6565_v23, %v6493_v52 }
  0xea   : > { %v1422_v31 = vand.u32 2147483647, %v6760_v50  ;;  %v1051_v15 = vsel %vm6891_vm13, %v1050_v11, %v1046_v46  ;;  %v1064_v55 = vand.u32 2147483648, %v6906_v13  ;;  %5614 = vrcp.f32 %v6913_v9  ;;  %v704_v11 = vpop.f32.mrf.mxu0 }
  0xeb   : > { %v2078_v20 = vmax.f32 %v6808_v63, %v6875_v43  ;;  %v6956_v14 = vor.u32 1.1754944e-38, %v1424_v53  ;;  %v1568_v50 = vmul.f32 %v1051_v15, %v6674_v28  ;;  %v1437_v26 = vand.u32 2147483647, %v6797_v27  ;;  %v800_v53 = vpop.f32.mrf.mxu3 }
  0xec   : > { %v6966_v7 = vor.u32 1.1754944e-38, %v1439_v25  ;;  %vm1058_vm9 = vweird.f32 %v6906_v13  ;;  %v1062_v60 = vand.u32 2147483647, %v6906_v13  ;;  %vm1448_vm10 = vweird.f32 %v6913_v9 }
  0xed   : > { %v6972_v63 = vsel %vm1969_vm11, %v1568_v50, -3.4028235e+38  ;;  %v1370_v27 = vsub.f32 1.0, %v1369_v22  ;;  %vm6979_vm12 = vcmp.eq.f32.partialorder %v1422_v31, 8.507059e+37  ;;  %v6988_v25 = vor.u32 1.1754944e-38, %v1064_v55  ;;  %v7003_v3 = vpop.permute.xlu1 %1929 }
  0xee   : > { %v6986_v33 = vmax.f32 %v2078_v20, %v6972_v63  ;;  %v1452_v46 = vand.u32 2147483647, %v6913_v9  ;;  %vm2002_vm15 = vcmp.eq.s32.totalorder %v6960_v4, 1  ;;  %vm6992_vm5 = vcmp.eq.f32.partialorder %v1437_v26, 8.507059e+37 }
  0xef   : > { %v5613_v15 = vpop.eup %5612  ;;  %v1371_v31 = vmul.f32 %v6565_v23, %v1370_v27  ;;  %vm1373_vm6 = vweird.f32 %v6493_v52  ;;  %vm1374_vm7 = vweird.f32 %v6565_v23  ;;  %v1377_v20 = vand.u32 2147483647, %v6493_v52  ;;  %v782_v27 = vpop.f32.mrf.mxu2 }
  0xf0   : > { %v7000_v50 = vpop.eup %5614  ;;  %v1054_v55 = vmul.f32 %v5613_v15, %v6906_v13  ;;  %v1379_v49 = vand.u32 2147483648, %v6493_v52  ;;  %v7007_v26 = vadd.f32 %v6339_v57, %v800_v53  ;;  %v7010_v28 = vadd.f32 %v6339_v57, %v704_v11  ;;  %vm7021_vm13 = vmor %vm1373_vm6, %vm1374_vm7 }
  0xf1   : > { %vm1059_vm8 = vweird.f32 %v5613_v15  ;;  %v1444_v37 = vmul.f32 %v7000_v50, %v6913_v9  ;;  %v1454_v62 = vand.u32 2147483648, %v6913_v9  ;;  %v1372_v32 = vadd.f32 %v6565_v23, %v1371_v31  ;;  %v7029_v31 = vpop.permute.xlu0 %1926 }
  0xf2   : > { %v1055_v29 = vsub.f32 1.0, %v1054_v55  ;;  %vm1449_vm11 = vweird.f32 %v7000_v50  ;;  %v5409_v11 = vmul.f32 -1.442695, %v7007_v26  ;;  %v5377_v0 = vmul.f32 -1.442695, %v7010_v28  ;;  %vm7045_vm6 = vmor %vm1058_vm9, %vm1059_vm8 }
  0xf3   : > { %vm1970_vm14 = vcmp.eq.s32.totalorder %v6430_v51, 1  ;;  %v1445_v8 = vsub.f32 1.0, %v1444_v37  ;;  %vm1992_vm0 = vcmp.eq.s32.totalorder %v7003_v3, 1  ;;  %vm7031_vm1 = vcmp.eq.f32.partialorder %v1377_v20, 8.507059e+37  ;;  %vm7062_vm9 = vmor %vm1448_vm10, %vm1449_vm11 }
  0xf4   : > { %v7036_v52 = vadd.f32 %v6339_v57, %v782_v27  ;;  %vm2595_vm2 = vcmp.ge.s32.totalorder %v5772_v18, 1  ;;  %v1056_v10 = vmul.f32 %v5613_v15, %v1055_v29  ;;  %v1380_v34 = vor.u32 1.1754944e-38, %v1379_v49 }
  0xf5   : > { %5616 = vpow2.f32 %v5409_v11  ;;  %v2627_v37 = vsel %vm2595_vm2, 1, %v12625_v24  ;;  %v1446_v57 = vmul.f32 %v7000_v50, %v1445_v8  ;;  %v1376_v27 = vsel %vm7021_vm13, %v6565_v23, %v1372_v32  ;;  %v5773_v8 = vld [vmem:[%s12124_s1 + $0x8] sm:$0xff]  ;;  %v5774_v23 = vld [vmem:[%s12124_s1] sm:$0xff] }
  0xf6   : > { %5618 = vpow2.f32 %v5377_v0  ;;  %v5403_v18 = vmul.f32 -1.442695, %v7036_v52  ;;  %2664 = vperm.xlu2 %5545, %v2627_v37   ;;  %v1057_v29 = vadd.f32 %v5613_v15, %v1056_v10  ;;  %vm7054_vm7 = vcmp.eq.f32.partialorder %v1062_v60, 8.507059e+37  ;;  %v525_v0 = vld [vmem:[%s6013_s27 + $0x68] sm:$0xff]  ;;  %v707_v60 = vpop.f32.mrf.mxu0 }
  0xf7   : > { %vm2594_vm8 = vcmp.ge.s32.totalorder %v5773_v8, 1  ;;  %vm2593_vm13 = vcmp.ge.s32.totalorder %v5774_v23, 1  ;;  %v1447_v10 = vadd.f32 %v7000_v50, %v1446_v57  ;;  %v1455_v32 = vor.u32 1.1754944e-38, %v1454_v62  ;;  %v785_v59 = vpop.f32.mrf.mxu2 }
  0xf8   : > { %5620 = vpow2.f32 %v5403_v18  ;;  %v2626_v9 = vsel %vm2594_vm8, 1, %v12625_v24  ;;  %vm12682_vm10 = vcmask 64512   ;;  %v1061_v53 = vsel %vm7045_vm6, %v5613_v15, %v1057_v29 }
  0xf9   : > { %5355 = vmatmul.msk.f32.gmra.mxu0 %vm12682_vm10, %v525_v0  ;;  %vm7078_vm11 = vcmp.eq.f32.partialorder %v1452_v46, 8.507059e+37  ;;  %v1381_v37 = vsel %vm7031_vm1, %v1380_v34, %v1376_v27  ;;  %2661 = vperm.xlu1 %5544, %v2626_v9   ;;  %v2625_v57 = vsel %vm2593_vm13, 1, %v12625_v24  ;;  %v12685_v62 = vsel %vm6929_vm3, %v6840_v17, %v6924_v54  ;;  %v1936_v13 = vpop.permute.xlu0 %1935 }
  0xfa   : > { %v1426_v20 = vsel %vm6979_vm12, %v6956_v14, %v12685_v62  ;;  %v1066_v46 = vsel %vm7054_vm7, %v6988_v25, %v1061_v53  ;;  %v1451_v34 = vsel %vm7062_vm9, %v7000_v50, %v1447_v10  ;;  %v7102_v15 = vsel %vm2002_vm15, %v6824_v38, -3.4028235e+38  ;;  %2658 = vperm.xlu0 %5543, %v2625_v57   ;;  %v7117_v38 = vld [vmem:[%s12129_s6] ss:$0 sm:$0xff]  ;;  %v1939_v50 = vpop.permute.xlu1 %1938  ;;  %v5778_v62 = vld [vmem:[%s12124_s1 + $0x18] sm:$0xff] }
  0xfb   : > { %v5617_v36 = vpop.eup %5616  ;;  %v12686_v17 = vsel %vm6948_vm4, %v6866_v1, %v6936_v45  ;;  %v1569_v14 = vmul.f32 %v1066_v46, %v6800_v30  ;;  %vm1991_vm3 = vcmp.eq.s32.totalorder %v7029_v31, 1  ;;  %v7120_v4 = vadd.f32 %v7117_v38, %v707_v60  ;;  %v7173_v60 = vpop.permute.xlu2 %2340 }
  0xfc   : > { %v1441_v54 = vsel %vm6992_vm5, %v6966_v7, %v12686_v17  ;;  %v5619_v6 = vpop.eup %5618  ;;  %vm1996_vm4 = vcmp.eq.s32.totalorder %v6783_v12, 1  ;;  %v1456_v1 = vsel %vm7078_vm11, %v1455_v32, %v1451_v34  ;;  %v1590_v45 = vmul.f32 %v1381_v37, %v6401_v35  ;;  %v5776_v7 = vld [vmem:[%s12124_s1 + $0x28] sm:$0xff]  ;;  %12689 = vst [vmem:[#allocation29_spill] sm:$0xff] %v7173_v60 }
  0xfd   : > { %v7126_v30 = vadd.f32 1.0, %v5617_v36  ;;  %vm2598_vm12 = vcmp.ge.s32.totalorder %v5776_v7, 1  ;;  %v7133_v25 = vsel %vm1970_vm14, %v1569_v14, -3.4028235e+38  ;;  %v7135_v22 = vadd.f32 1.0, %v5619_v6 }
  0xfe   : > { %v5378_v55 = vmul.f32 -1.442695, %v7120_v4  ;;  %v2630_v27 = vsel %vm2598_vm12, 1, %v12625_v24  ;;  %v5621_v18 = vpop.eup %5620  ;;  %v2081_v35 = vmax.f32 %v6910_v44, %v7133_v25  ;;  %v12687_v29 = vmax.f32 %v6787_v2, %v6910_v44  ;;  %v5777_v2 = vld [vmem:[%s12124_s1 + $0x20] sm:$0xff]  ;;  %v710_v12 = vpop.f32.mrf.mxu0 }
  0xff   : > { %v2141_v51 = vmax.f32 %v6921_v48, %v7133_v25  ;;  %v7150_v8 = vadd.f32 %v7117_v38, %v785_v59  ;;  %2673 = vperm.xlu2 %5545, %v2630_v27   ;;  %v1594_v23 = vmul.f32 %v1441_v54, %v6680_v56  ;;  %v7156_v0 = vsel %vm1992_vm0, %v6817_v61, -3.4028235e+38 }
 0x100   : > { %v7145_v49 = vmax.f32 %v12687_v29, %v7133_v25  ;;  %5622 = vrcp.f32 %v7126_v30  ;;  %vm2597_vm15 = vcmp.ge.s32.totalorder %v5777_v2, 1  ;;  %v1593_v10 = vmul.f32 %v1426_v20, %v6625_v39 }
 0x101   : > { %v7165_v32 = vsel %vm1991_vm3, %v1590_v45, -3.4028235e+38  ;;  %5624 = vrcp.f32 %v7135_v22  ;;  %vm1995_vm5 = vcmp.eq.s32.totalorder %v1939_v50, 1  ;;  %v1595_v56 = vmul.f32 %v1456_v1, %v6803_v58 }
 0x102   : > { %12688 = vst [vmem:[#allocation28_spill] sm:$0xff] %v7165_v32  ;;  %v7169_v61 = vadd.f32 1.0, %v5621_v18  ;;  %vm1994_vm14 = vcmp.eq.s32.totalorder %v1936_v13, 1  ;;  %5626 = vpow2.f32 %v5378_v55  ;;  %v1557_v3 = vand.u32 2147483647, %v7126_v30 }
 0x103   : > { %v1559_v9 = vand.u32 2147483648, %v7126_v30  ;;  %v5404_v39 = vmul.f32 -1.442695, %v7150_v8  ;;  %v2629_v31 = vsel %vm2597_vm15, 1, %v12625_v24  ;;  %v1077_v53 = vand.u32 2147483647, %v7135_v22 }
 0x104   : > { %v1079_v11 = vand.u32 2147483648, %v7135_v22  ;;  %5628 = vrcp.f32 %v7169_v61  ;;  %v7180_v58 = vsel %vm1995_vm5, %v1594_v23, -3.4028235e+38  ;;  %2670 = vperm.xlu1 %5544, %v2629_v31   ;;  %v1467_v37 = vand.u32 2147483647, %v7169_v61 }
 0x105   : > { %12690 = vst [vmem:[#allocation30_spill] sm:$0xff] %v7180_v58  ;;  %v7183_v57 = vsel %vm1994_vm14, %v1593_v10, -3.4028235e+38  ;;  %5630 = vpow2.f32 %v5404_v39  ;;  %vm2596_vm0 = vcmp.ge.s32.totalorder %v5778_v62, 1  ;;  %v7192_v46 = vsel %vm1996_vm4, %v1595_v56, -3.4028235e+38 }
 0x106   : > { %v7188_v20 = vpop.eup %5622  ;;  %vm1553_vm1 = vweird.f32 %v7126_v30  ;;  %vm1073_vm2 = vweird.f32 %v7135_v22  ;;  %v2628_v34 = vsel %vm2596_vm0, 1, %v12625_v24  ;;  %vm7199_vm6 = vcmp.eq.f32.partialorder %v1557_v3, 8.507059e+37 }
 0x107   : > { %v5625_v36 = vpop.eup %5624  ;;  %v1549_v17 = vmul.f32 %v7188_v20, %v7126_v30  ;;  %v1560_v14 = vor.u32 1.1754944e-38, %v1559_v9  ;;  %v1469_v59 = vand.u32 2147483648, %v7169_v61  ;;  %2667 = vperm.xlu0 %5543, %v2628_v34   ;;  %vm7205_vm7 = vcmp.eq.f32.partialorder %v1077_v53, 8.507059e+37 }
 0x108   : > { %v5627_v6 = vpop.eup %5626  ;;  %v1069_v1 = vmul.f32 %v5625_v36, %v7135_v22  ;;  %v1080_v7 = vor.u32 1.1754944e-38, %v1079_v11  ;;  %vm1463_vm9 = vweird.f32 %v7169_v61  ;;  %vm1554_vm8 = vweird.f32 %v7188_v20  ;;  %v788_v11 = vpop.f32.mrf.mxu2 }
 0x109   : > { %v1550_v50 = vsub.f32 1.0, %v1549_v17  ;;  %vm7211_vm13 = vcmp.eq.f32.partialorder %v1467_v37, 8.507059e+37  ;;  %v7215_v27 = vadd.f32 1.0, %v5627_v6  ;;  %vm1074_vm10 = vweird.f32 %v5625_v36  ;;  %vm7228_vm3 = vmor %vm1553_vm1, %vm1554_vm8 }
 0x10a   : > { %v5629_v18 = vpop.eup %5628  ;;  %v1070_v29 = vsub.f32 1.0, %v1069_v1  ;;  %v2105_v13 = vmax.f32 %v7156_v0, %v7183_v57  ;;  %v7220_v23 = vadd.f32 %v7117_v38, %v710_v12  ;;  %vm1971_vm11 = vcmp.eq.s32.totalorder %v6417_v41, 1  ;;  %vm7241_vm12 = vmor %vm1073_vm2, %vm1074_vm10  ;;  %v1945_v12 = vpop.permute.xlu0 %1944 }
 0x10b   : > { %v5631_v2 = vpop.eup %5630  ;;  %v1551_v10 = vmul.f32 %v7188_v20, %v1550_v50  ;;  %v1459_v56 = vmul.f32 %v5629_v18, %v7169_v61  ;;  %v1470_v3 = vor.u32 1.1754944e-38, %v1469_v59  ;;  %5632 = vrcp.f32 %v7215_v27  ;;  %v7248_v59 = vpop.permute.xlu2 %2349 }
 0x10c   : > { %v1071_v39 = vmul.f32 %v5625_v36, %v1070_v29  ;;  %vm1464_vm4 = vweird.f32 %v5629_v18  ;;  %v7235_v53 = vmax.f32 %v2105_v13, %v7192_v46  ;;  %v1092_v34 = vand.u32 2147483647, %v7215_v27  ;;  %12701 = vst [vmem:[#allocation31_spill] sm:$0xff] %v7248_v59  ;;  %v7251_v50 = vpop.permute.xlu1 %1947  ;;  %v5797_v59 = vld [vmem:[%s12124_s1 + $0xd0] sm:$0xff] }
 0x10d   : > { %v1552_v37 = vadd.f32 %v7188_v20, %v1551_v10  ;;  %v1460_v62 = vsub.f32 1.0, %v1459_v56  ;;  %v7246_v17 = vadd.f32 1.0, %v5631_v2  ;;  %v1094_v1 = vand.u32 2147483648, %v7215_v27  ;;  %vm7268_vm15 = vmor %vm1463_vm9, %vm1464_vm4 }
 0x10e   : > { %v1072_v6 = vadd.f32 %v5625_v36, %v1071_v39  ;;  %v2104_v22 = vmax.f32 %v7165_v32, %v6829_v47  ;;  %v5379_v29 = vmul.f32 -1.442695, %v7220_v23  ;;  %v7261_v2 = vadd.f32 %v7117_v38, %v788_v11 }
 0x10f   : > { %v1556_v13 = vsel %vm7228_vm3, %v7188_v20, %v1552_v37  ;;  %v1461_v10 = vmul.f32 %v5629_v18, %v1460_v62  ;;  %5634 = vrcp.f32 %v7246_v17  ;;  %vm1088_vm5 = vweird.f32 %v7215_v27 }
 0x110   : > { %v1076_v56 = vsel %vm7241_vm12, %v5625_v36, %v1072_v6  ;;  %vm1997_vm14 = vcmp.eq.s32.totalorder %v1945_v12, 1  ;;  %v2106_v20 = vmax.f32 %v6829_v47, %v7180_v58  ;;  %v7276_v9 = vmax.f32 %v2104_v22, %v7180_v58 }
 0x111   : > { %v5633_v11 = vpop.eup %5632  ;;  %v1081_v36 = vsel %vm7205_vm7, %v1080_v7, %v1076_v56  ;;  %v1462_v37 = vadd.f32 %v5629_v18, %v1461_v10  ;;  %vm7280_vm0 = vcmp.eq.f32.partialorder %v1092_v34, 8.507059e+37  ;;  %5636 = vpow2.f32 %v5379_v29  ;;  %v7294_v7 = vld [vmem:[%s12124_s1 + $0x40] sm:$0xff]  ;;  %v7304_v34 = vpop.f32.mrf.mxu0 }
 0x112   : > { %v1561_v30 = vsel %vm7199_vm6, %v1560_v14, %v1556_v13  ;;  %v1570_v62 = vmul.f32 %v1081_v36, %v7010_v28  ;;  %v1084_v6 = vmul.f32 %v5633_v11, %v7215_v27  ;;  %v1095_v31 = vor.u32 1.1754944e-38, %v1094_v1 }
 0x113   : > { %v1466_v22 = vsel %vm7268_vm15, %v5629_v18, %v1462_v37  ;;  %vm1089_vm1 = vweird.f32 %v5633_v11  ;;  %v5405_v45 = vmul.f32 -1.442695, %v7261_v2  ;;  %vm2601_vm2 = vcmp.ge.s32.totalorder %v7294_v7, 1 }
 0x114   : > { %v7299_v54 = vsel %vm1971_vm11, %v1570_v62, -3.4028235e+38  ;;  %v1471_v28 = vsel %vm7211_vm13, %v1470_v3, %v1466_v22  ;;  %v1085_v14 = vsub.f32 1.0, %v1084_v6  ;;  %v2633_v18 = vsel %vm2601_vm2, 1, %v12625_v24  ;;  %vm7323_vm9 = vmor %vm1088_vm5, %vm1089_vm1  ;;  %v5781_v62 = vld [vmem:[%s12124_s1 + $0x30] sm:$0xff]  ;;  %v7335_v6 = vpop.permute.xlu2 %2358 }
 0x115   : > { %v5635_v1 = vpop.eup %5634  ;;  %vm1972_vm6 = vcmp.eq.s32.totalorder %v6306_v42, 1  ;;  %v12706_v41 = vmax.f32 %v6875_v43, %v6972_v63  ;;  %v1596_v3 = vmul.f32 %v1471_v28, %v7036_v52  ;;  %2682 = vperm.xlu2 %5545, %v2633_v18   ;;  %vm1478_vm7 = vweird.f32 %v7246_v17  ;;  %v5780_v52 = vld [vmem:[%s12124_s1 + $0x38] sm:$0xff]  ;;  %12709 = vst [vmem:[#allocation32_spill] sm:$0xff] %v7335_v6  ;;  %v7340_v28 = vpop.permute.xlu1 %1956 }
 0x116   : > { %v1086_v10 = vmul.f32 %v5633_v11, %v1085_v14  ;;  %v1474_v56 = vmul.f32 %v5635_v1, %v7246_v17  ;;  %5638 = vpow2.f32 %v5405_v45  ;;  %v1482_v36 = vand.u32 2147483647, %v7246_v17 }
 0x117   : > { %v7313_v13 = vmax.f32 %v12706_v41, %v7299_v54  ;;  %v5637_v39 = vpop.eup %5636  ;;  %v1484_v37 = vand.u32 2147483648, %v7246_v17  ;;  %vm2600_vm8 = vcmp.ge.s32.totalorder %v5780_v52, 1  ;;  %vm2599_vm13 = vcmp.ge.s32.totalorder %v5781_v62, 1 }
 0x118   : > { %v7338_v27 = vmul.f32 %v1561_v30, %v7007_v26  ;;  %v1087_v22 = vadd.f32 %v5633_v11, %v1086_v10  ;;  %v1475_v45 = vsub.f32 1.0, %v1474_v56  ;;  %vm1479_vm10 = vweird.f32 %v5635_v1 }
 0x119   : > { %v7343_v14 = vsel %vm1997_vm14, %v1596_v3, -3.4028235e+38  ;;  %v7345_v18 = vadd.f32 1.0, %v5637_v39  ;;  %v2632_v41 = vsel %vm2600_vm8, 1, %v12625_v24  ;;  %v2631_v52 = vsel %vm2599_vm13, 1, %v12625_v24  ;;  %vm7358_vm3 = vmor %vm1478_vm7, %vm1479_vm10 }
 0x11a   : > { %12710 = vst [vmem:[#allocation33_spill] sm:$0xff] %v7343_v14  ;;  %v1091_v62 = vsel %vm7323_vm9, %v5633_v11, %v1087_v22  ;;  %v1476_v55 = vmul.f32 %v5635_v1, %v1475_v45  ;;  %vm1998_vm11 = vcmp.eq.s32.totalorder %v7251_v50, 1  ;;  %2679 = vperm.xlu1 %5544, %v2632_v41   ;;  %2676 = vperm.xlu0 %5543, %v2631_v52   ;;  %vm7362_vm4 = vcmp.eq.f32.partialorder %v1482_v36, 8.507059e+37  ;;  %v7375_v36 = vpop.permute.xlu0 %1953  ;;  %v7385_v45 = vpop.f32.mrf.mxu0 }
 0x11b   : > { %v1519_v26 = vmul.f32 %v6821_v21, %v6561_v19  ;;  %v1096_v12 = vsel %vm7280_vm0, %v1095_v31, %v1091_v62  ;;  %v1485_v11 = vor.u32 1.1754944e-38, %v1484_v37  ;;  %5640 = vrcp.f32 %v7345_v18 }
 0x11c   : > { %v5639_v10 = vpop.eup %5638  ;;  %v1571_v56 = vmul.f32 %v1096_v12, %v7120_v4  ;;  %v1477_v39 = vadd.f32 %v5635_v1, %v1476_v55  ;;  %v1107_v17 = vand.u32 2147483647, %v7345_v18  ;;  %v1109_v43 = vand.u32 2147483648, %v7345_v18  ;;  %v7418_v3 = vpop.permute.xlu2 %2367 }
 0x11d   : > { %v1520_v61 = vsub.f32 1.0, %v1519_v26  ;;  %v7372_v22 = vadd.f32 1.0, %v5639_v10  ;;  %vm1523_vm12 = vweird.f32 %v6561_v19  ;;  %vm1524_vm15 = vweird.f32 %v6821_v21  ;;  %12716 = vst [vmem:[#allocation35_spill] sm:$0xff] %v7418_v3 }
 0x11e   : > { %v7379_v37 = vsel %vm1972_vm6, %v1571_v56, -3.4028235e+38  ;;  %v1481_v4 = vsel %vm7358_vm3, %v5635_v1, %v1477_v39  ;;  %v7409_v26 = vmax.f32 %v2106_v20, %v7343_v14  ;;  %v1527_v44 = vand.u32 2147483647, %v6561_v19  ;;  %vm7427_vm14 = vmor %vm1523_vm12, %vm1524_vm15  ;;  %v7432_v56 = vpop.permute.xlu1 %2337 }
 0x11f   : > { %v1521_v55 = vmul.f32 %v6821_v21, %v1520_v61  ;;  %v7393_v52 = vmax.f32 %v2081_v35, %v7379_v37  ;;  %v7401_v1 = vmax.f32 %v2141_v51, %v7379_v37  ;;  %v1486_v62 = vsel %vm7362_vm4, %v1485_v11, %v1481_v4  ;;  %12719 = vst [vmem:[#allocation36_spill] sm:$0xff] %v7432_v56  ;;  %v7537_v61 = vld [vmem:[%s12124_s1 + $0x48] sm:$0xff] }
 0x120   : > { %5642 = vrcp.f32 %v7372_v22  ;;  %v1597_v12 = vmul.f32 %v1486_v62, %v7150_v8  ;;  %v1499_v51 = vand.u32 2147483648, %v7372_v22  ;;  %vm1103_vm5 = vweird.f32 %v7345_v18 }
 0x121   : > { %12715 = vst [vmem:[#allocation34_spill] sm:$0xff] %v7401_v1  ;;  %v5641_v35 = vpop.eup %5640  ;;  %v1522_v30 = vadd.f32 %v6821_v21, %v1521_v55  ;;  %v1497_v20 = vand.u32 2147483647, %v7372_v22  ;;  %v1529_v10 = vand.u32 2147483648, %v6561_v19  ;;  %vm7438_vm0 = vcmp.eq.f32.partialorder %v1107_v17, 8.507059e+37 }
 0x122   : > { %v1099_v11 = vmul.f32 %v5641_v35, %v7345_v18  ;;  %v7436_v39 = vsel %vm1998_vm11, %v1597_v12, -3.4028235e+38  ;;  %v1110_v4 = vor.u32 1.1754944e-38, %v1109_v43  ;;  %vm1493_vm1 = vweird.f32 %v7372_v22 }
 0x123   : > { %vm1104_vm2 = vweird.f32 %v5641_v35  ;;  %v7443_v62 = vor.u32 1.1754944e-38, %v1499_v51  ;;  %vm7445_vm6 = vcmp.eq.f32.partialorder %v1527_v44, 8.507059e+37  ;;  %vm1973_vm7 = vcmp.eq.s32.totalorder %v6483_v40, 1 }
 0x124   : > { %v1100_v55 = vsub.f32 1.0, %v1099_v11  ;;  %v12724_v19 = vmax.f32 %v7183_v57, %v7192_v46  ;;  %v1526_v17 = vsel %vm7427_vm14, %v6821_v21, %v1522_v30  ;;  %v1530_v43 = vor.u32 1.1754944e-38, %v1529_v10  ;;  %vm7473_vm8 = vmor %vm1103_vm5, %vm1104_vm2  ;;  %v12729_v10 = vld [vmem:[#allocation6_spill] sm:$0xff]  ;;  %v12735_v21 = vld [vmem:[#allocation25_spill] sm:$0xff] }
 0x125   : > { %v1504_v12 = vmul.f32 %v6590_v16, %v6507_v5  ;;  %vm7465_vm9 = vcmp.eq.f32.partialorder %v1497_v20, 8.507059e+37  ;;  %v1514_v31 = vand.u32 2147483648, %v6507_v5  ;;  %vm1508_vm13 = vweird.f32 %v6507_v5  ;;  %v7481_v20 = vpop.permute.xlu0 %1962 }
 0x126   : > { %v7454_v50 = vmax.f32 %v12724_v19, %v7436_v39  ;;  %v7461_v44 = vpop.eup %5642  ;;  %v1101_v11 = vmul.f32 %v5641_v35, %v1100_v55  ;;  %v1512_v19 = vand.u32 2147483647, %v6507_v5  ;;  %vm1509_vm10 = vweird.f32 %v6590_v16  ;;  %v12730_v55 = vld [vmem:[#allocation9_spill] sm:$0xff] }
 0x127   : > { %v1489_v30 = vmul.f32 %v7461_v44, %v7372_v22  ;;  %v1505_v8 = vsub.f32 1.0, %v1504_v12  ;;  %vm1358_vm11 = vweird.f32 %v12729_v10  ;;  %vm1359_vm3 = vweird.f32 %v12730_v55  ;;  %v7492_v12 = vpop.f32.mrf.mxu0  ;;  %vm7511_vm5 = vmor %vm1508_vm13, %vm1509_vm10 }
 0x128   : > { %v1102_v48 = vadd.f32 %v5641_v35, %v1101_v11  ;;  %vm1494_vm4 = vweird.f32 %v7461_v44  ;;  %v1531_v18 = vsel %vm7445_vm6, %v1530_v43, %v1526_v17  ;;  %vm7488_vm12 = vcmp.eq.f32.partialorder %v1512_v19, 8.507059e+37  ;;  %v7502_v11 = vld [vmem:[%s12124_s1 + $0x58] sm:$0xff]  ;;  %v7519_v19 = vld [vmem:[%s12124_s1 + $0x50] sm:$0xff] }
 0x129   : > { %v1490_v29 = vsub.f32 1.0, %v1489_v30  ;;  %v1506_v47 = vmul.f32 %v6590_v16, %v1505_v8  ;;  %v7497_v32 = vadd.f32 %v7117_v38, %v7304_v34  ;;  %vm2604_vm15 = vcmp.ge.s32.totalorder %v7502_v11, 1  ;;  %v7529_v30 = vpop.permute.xlu2 %2376  ;;  %vm7547_vm13 = vmor %vm1493_vm1, %vm1494_vm4 }
 0x12a   : > { %v1106_v42 = vsel %vm7473_vm8, %v5641_v35, %v1102_v48  ;;  %v1515_v34 = vor.u32 1.1754944e-38, %v1514_v31  ;;  %v2636_v43 = vsel %vm2604_vm15, 1, %v12625_v24  ;;  %vm2603_vm14 = vcmp.ge.s32.totalorder %v7519_v19, 1  ;;  %12736 = vst [vmem:[#allocation6_spill] sm:$0xff] %v7529_v30 }
 0x12b   : > { %vm1999_vm2 = vcmp.eq.s32.totalorder %v12735_v21, 1  ;;  %v1111_v35 = vsel %vm7438_vm0, %v1110_v4, %v1106_v42  ;;  %v1491_v5 = vmul.f32 %v7461_v44, %v1490_v29  ;;  %vm2001_vm6 = vcmp.eq.s32.totalorder %v7340_v28, 1  ;;  %2691 = vperm.xlu2 %5545, %v2636_v43   ;;  %v7540_v29 = vpop.permute.xlu1 %2346  ;;  %v5786_v28 = vld [vmem:[%s12124_s1 + $0x68] sm:$0xff] }
 0x12c   : > { %v1507_v31 = vadd.f32 %v6590_v16, %v1506_v47  ;;  %v5380_v48 = vmul.f32 -1.442695, %v7497_v32  ;;  %v1572_v8 = vmul.f32 %v1111_v35, %v7220_v23  ;;  %vm2000_vm8 = vcmp.eq.s32.totalorder %v7375_v36, 1  ;;  %12737 = vst [vmem:[#allocation9_spill] sm:$0xff] %v7540_v29  ;;  %v12740_v35 = vld [vmem:[#allocation10_spill] sm:$0xff] }
 0x12d   : > { %v2635_v3 = vsel %vm2603_vm14, 1, %v12625_v24  ;;  %vm2602_vm0 = vcmp.ge.s32.totalorder %v7537_v61, 1  ;;  %v1492_v47 = vadd.f32 %v7461_v44, %v1491_v5  ;;  %v1600_v5 = vmul.f32 %v1531_v18, %v12740_v35  ;;  %v7594_v23 = vpop.permute.xlu0 %2343 }
 0x12e   : > { %v1511_v4 = vsel %vm7511_vm5, %v6590_v16, %v1507_v31  ;;  %5644 = vpow2.f32 %v5380_v48  ;;  %2688 = vperm.xlu1 %5544, %v2635_v3   ;;  %v2634_v42 = vsel %vm2602_vm0, 1, %v12625_v24  ;;  %v7557_v43 = vsel %vm1973_vm7, %v1572_v8, -3.4028235e+38  ;;  %12745 = vst [vmem:[#allocation10_spill] sm:$0xff] %v7594_v23 }
 0x12f   : > { %v1516_v22 = vsel %vm7488_vm12, %v1515_v34, %v1511_v4  ;;  %2685 = vperm.xlu0 %5543, %v2634_v42   ;;  %v2237_v30 = vlaneseq  ;;  %v12741_v16 = vmax.f32 %v6972_v63, %v7299_v54  ;;  %v12742_v18 = vmax.f32 %v6986_v33, %v7299_v54  ;;  %v12744_v34 = vld [vmem:[#allocation7_spill] sm:$0xff]  ;;  %v722_v41 = vpop.f32.mrf.mxu0 }
 0x130   : > { %v1496_v17 = vsel %vm7547_vm13, %v7461_v44, %v1492_v47  ;;  %v1599_v31 = vmul.f32 %v1516_v22, %v12744_v34  ;;  %v12165_v63 = vrot.slane %v7401_v1, 1  ;;  %vm12264_vm1 = vcmp.eq.s32.totalorder %v7432_v56, 1 }
 0x131   : > { %v7568_v3 = vmax.f32 %v12741_v16, %v7557_v43  ;;  %v7576_v51 = vmax.f32 %v12742_v18, %v7557_v43  ;;  %v7582_v48 = vshrl.u32 %v2237_v30, 7  ;;  %v1501_v8 = vsel %vm7465_vm9, %v7443_v62, %v1496_v17  ;;  %vm7605_vm9 = vmor %vm1358_vm11, %vm1359_vm3 }
 0x132   : > { %v7592_v33 = vadd.f32 %v7117_v38, %v7385_v45  ;;  %v1598_v44 = vmul.f32 %v1501_v8, %v7261_v2  ;;  %v2040_v30 = vsel %vm2000_vm8, %v1599_v31, -3.4028235e+38  ;;  %vm2003_vm10 = vcmp.eq.s32.totalorder %v7481_v20, 1  ;;  %v7677_v20 = vld [vmem:[%s12124_s1 + $0x60] sm:$0xff] }
 0x133   : > { %12743 = vst [vmem:[#allocation25_spill] sm:$0xff] %v7576_v51  ;;  %v12164_v4 = vrot.slane %v7576_v51, 1  ;;  %vm2239_vm7 = vcmp.lt.s32.totalorder %v7582_v48, 7  ;;  %v2171_v47 = vmax.f32 %v7454_v50, %v2040_v30  ;;  %v12748_v2 = vmax.f32 %v7235_v53, %v7436_v39  ;;  %v5785_v53 = vld [vmem:[%s12124_s1 + $0x70] sm:$0xff] }
 0x134   : > { %v5645_v62 = vpop.eup %5644  ;;  %v5381_v35 = vmul.f32 -1.442695, %v7592_v33  ;;  %v2039_v22 = vsel %vm1999_vm2, %v1598_v44, -3.4028235e+38  ;;  %vm2607_vm11 = vcmp.ge.s32.totalorder %v5785_v53, 1  ;;  %v12750_v18 = vmax.f32 %v7276_v9, %v7343_v14  ;;  %v7645_v44 = vpop.permute.xlu2 %2385  ;;  %12761 = vst [vmem:[#allocation41_spill] sm:$0xff] %v7677_v20 }
 0x135   : > { %v7613_v36 = vmax.f32 %v12748_v2, %v2040_v30  ;;  %v2270_v42 = vsel %vm2239_vm7, %v12165_v63, %v12164_v4  ;;  %v7624_v16 = vadd.f32 1.0, %v5645_v62  ;;  %v12752_v21 = vmax.f32 %v7180_v58, %v7343_v14  ;;  %12754 = vst [vmem:[#allocation39_spill] sm:$0xff] %v7645_v44  ;;  %v12755_v30 = vld [vmem:[#allocation15_spill] sm:$0xff]  ;;  %v5794_v4 = vld [vmem:[%s12124_s1 + $0xb8] sm:$0xff] }
 0x136   : > { %v7628_v50 = vsel %vm12264_vm1, %v2270_v42, -3.4028235e+38  ;;  %v7636_v17 = vmax.f32 %v12750_v18, %v2039_v22  ;;  %v2170_v31 = vmax.f32 %v7409_v26, %v2039_v22  ;;  %v7643_v8 = vmax.f32 %v2171_v47, %v7102_v15  ;;  %v7656_v42 = vpop.permute.xlu1 %2355  ;;  %v5788_v53 = vld [vmem:[%s12124_s1 + $0x88] sm:$0xff] }
 0x137   : > { %12749 = vst [vmem:[#allocation7_spill] sm:$0xff] %v7628_v50  ;;  %v2140_v34 = vmax.f32 %v12752_v21, %v2039_v22  ;;  %v1361_v62 = vsel %vm7605_vm9, %v12730_v55, %v12755_v30  ;;  %v12756_v9 = vand.u32 2147483647, %v12729_v10  ;;  %v2041_v2 = vsel %vm2001_vm6, %v1600_v5, -3.4028235e+38  ;;  %v12759_v5 = vld [vmem:[#allocation13_spill] sm:$0xff]  ;;  %v7688_v21 = vpop.permute.xlu0 %2352 }
 0x138   : > { %12751 = vst [vmem:[#allocation37_spill] sm:$0xff] %v7636_v17  ;;  %5646 = vrcp.f32 %v7624_v16  ;;  %v7658_v15 = vmax.f32 %v2170_v31, %v2041_v2  ;;  %v2043_v55 = vsel %vm2003_vm10, %v7338_v27, -3.4028235e+38  ;;  %v2639_v10 = vsel %vm2607_vm11, 1, %v12625_v24  ;;  %v12763_v31 = vld [vmem:[#allocation3_spill] sm:$0xff] }
 0x139   : > { %12753 = vst [vmem:[#allocation38_spill] sm:$0xff] %v7643_v8  ;;  %vm1363_vm3 = vcmp.eq.f32.partialorder %v12756_v9, 8.507059e+37  ;;  %v2172_v26 = vmax.f32 %v2140_v34, %v2041_v2  ;;  %5648 = vpow2.f32 %v5381_v35  ;;  %vm2606_vm4 = vcmp.ge.s32.totalorder %v5786_v28, 1  ;;  %2700 = vperm.xlu2 %5545, %v2639_v10   ;;  %v5789_v9 = vld [vmem:[%s12124_s1 + $0x80] sm:$0xff]  ;;  %v5790_v28 = vld [vmem:[%s12124_s1 + $0x78] sm:$0xff] }
 0x13a   : > { %12757 = vst [vmem:[#allocation15_spill] sm:$0xff] %v7656_v42  ;;  %v1366_v45 = vsel %vm1363_vm3, %v12759_v5, %v1361_v62  ;;  %v2638_v18 = vsel %vm2606_vm4, 1, %v12625_v24  ;;  %vm2605_vm12 = vcmp.ge.s32.totalorder %v7677_v20, 1  ;;  %v7683_v35 = vadd.f32 %v7117_v38, %v7492_v12  ;;  %v725_v12 = vpop.f32.mrf.mxu0  ;;  %v12787_v42 = vld [vmem:[#allocation16_spill] sm:$0xff] }
 0x13b   : > { %12758 = vst [vmem:[#allocation40_spill] sm:$0xff] %v7658_v15  ;;  %v7671_v22 = vmax.f32 %v2172_v26, %v2043_v55  ;;  %2697 = vperm.xlu1 %5544, %v2638_v18   ;;  %v2637_v27 = vsel %vm2605_vm12, 1, %v12625_v24  ;;  %vm2610_vm15 = vcmp.ge.s32.totalorder %v5788_v53, 1  ;;  %v1589_v30 = vmul.f32 %v1366_v45, %v12763_v31 }
 0x13c   : > { %2694 = vperm.xlu0 %5543, %v2637_v27   ;;  %12762 = vst [vmem:[#allocation42_spill] sm:$0xff] %v7688_v21  ;;  %v5382_v62 = vmul.f32 -1.442695, %v7683_v35  ;;  %vm2609_vm5 = vcmp.ge.s32.totalorder %v5789_v9, 1  ;;  %v1122_v55 = vand.u32 2147483647, %v7624_v16  ;;  %v7706_v18 = vadd.f32 %v7117_v38, %v722_v41  ;;  %v7710_v9 = vpop.permute.xlu2 %2394 }
 0x13d   : > { %12760 = vst [vmem:[#allocation13_spill] sm:$0xff] %v7671_v22  ;;  %v1124_v10 = vand.u32 2147483648, %v7624_v16  ;;  %vm2608_vm14 = vcmp.ge.s32.totalorder %v5790_v28, 1  ;;  %v2642_v45 = vsel %vm2610_vm15, 1, %v12625_v24  ;;  %vm1118_vm2 = vweird.f32 %v7624_v16 }
 0x13e   : > { %v5647_v34 = vpop.eup %5646  ;;  %5650 = vpow2.f32 %v5382_v62  ;;  %v2641_v31 = vsel %vm2609_vm5, 1, %v12625_v24  ;;  %12764 = vst [vmem:[#allocation3_spill] sm:$0xff] %v7710_v9  ;;  %v7714_v28 = vpop.permute.xlu1 %2364  ;;  %v12766_v62 = vld [vmem:[#allocation17_spill] sm:$0xff]  ;;  %v5383_v41 = vmul.f32 -1.442695, %v7706_v18  ;;  %vm7727_vm10 = vcmp.eq.f32.partialorder %v1122_v55, 8.507059e+37 }
 0x13f   : > { %v5649_v2 = vpop.eup %5648  ;;  %v1114_v26 = vmul.f32 %v5647_v34, %v7624_v16  ;;  %vm1119_vm6 = vweird.f32 %v5647_v34  ;;  %12765 = vst [vmem:[#allocation43_spill] sm:$0xff] %v7714_v28  ;;  %vm1990_vm8 = vcmp.eq.s32.totalorder %v12766_v62, 1  ;;  %v5791_v16 = vld [vmem:[%s12124_s1 + $0xa0] sm:$0xff]  ;;  %v1125_v62 = vor.u32 1.1754944e-38, %v1124_v10 }
 0x140   : > { %v7701_v5 = vadd.f32 1.0, %v5649_v2  ;;  %v2640_v2 = vsel %vm2608_vm14, 1, %v12625_v24  ;;  %vm2613_vm0 = vcmp.ge.s32.totalorder %v5791_v16, 1  ;;  %vm7723_vm13 = vmor %vm1118_vm2, %vm1119_vm6  ;;  %v7744_v55 = vadd.f32 %v7117_v38, %v725_v12  ;;  %v7757_v12 = vpop.permute.xlu0 %2361  ;;  %v12775_v28 = vld [vmem:[#allocation2_spill] sm:$0xff] }
 0x141   : > { %v1115_v27 = vsub.f32 1.0, %v1114_v26  ;;  %2709 = vperm.xlu2 %5545, %v2642_v45   ;;  %v7721_v26 = vsel %vm1990_vm8, %v1589_v30, -3.4028235e+38  ;;  %v7734_v45 = vld [vmem:[%s12124_s1 + $0x98] sm:$0xff]  ;;  %v7740_v30 = vld [vmem:[%s12124_s1 + $0x90] sm:$0xff]  ;;  %vm2616_vm12 = vcmp.ge.s32.totalorder %v5794_v4, 1 }
 0x142   : > { %5652 = vrcp.f32 %v7701_v5  ;;  %12771 = vst [vmem:[#allocation17_spill] sm:$0xff] %v7734_v45  ;;  %vm2612_vm9 = vcmp.ge.s32.totalorder %v7734_v45, 1  ;;  %vm2611_vm11 = vcmp.ge.s32.totalorder %v7740_v30, 1  ;;  %vm1133_vm4 = vweird.f32 %v7701_v5 }
 0x143   : > { %v1116_v53 = vmul.f32 %v5647_v34, %v1115_v27  ;;  %2706 = vperm.xlu1 %5544, %v2641_v31   ;;  %5654 = vpow2.f32 %v5383_v41  ;;  %v12772_v31 = vld [vmem:[#allocation11_spill] sm:$0xff]  ;;  %v1137_v41 = vand.u32 2147483647, %v7701_v5  ;;  %v5384_v6 = vmul.f32 -1.442695, %v7744_v55 }
 0x144   : > { %2703 = vperm.xlu0 %5543, %v2640_v2   ;;  %v5651_v10 = vpop.eup %5650  ;;  %vm1974_vm3 = vcmp.eq.s32.totalorder %v12772_v31, 1  ;;  %v2645_v2 = vsel %vm2613_vm0, 1, %v12625_v24  ;;  %12773 = vst [vmem:[#allocation11_spill] sm:$0xff] %v7757_v12  ;;  %v1139_v14 = vand.u32 2147483648, %v7701_v5  ;;  %v2644_v16 = vsel %vm2612_vm9, 1, %v12625_v24  ;;  %v12797_v12 = vld [vmem:[#allocation14_spill] sm:$0xff] }
 0x145   : > { %v1117_v27 = vadd.f32 %v5647_v34, %v1116_v53  ;;  %v7755_v40 = vadd.f32 1.0, %v5651_v10  ;;  %v2643_v47 = vsel %vm2611_vm11, 1, %v12625_v24  ;;  %vm1975_vm2 = vcmp.eq.s32.totalorder %v12775_v28, 1 }
 0x146   : > { %v12776_v31 = vmax.f32 %v7133_v25, %v7379_v37  ;;  %vm7810_vm6 = vcmp.eq.f32.partialorder %v1137_v41, 8.507059e+37  ;;  %v1140_v25 = vor.u32 1.1754944e-38, %v1139_v14  ;;  %vm12215_vm9 = vcmp.eq.s32.totalorder %v7594_v23, 1 }
 0x147   : > { %v1121_v53 = vsel %vm7723_vm13, %v5647_v34, %v1117_v27  ;;  %v728_v34 = vpop.f32.mrf.mxu0  ;;  %5656 = vrcp.f32 %v7755_v40  ;;  %v1152_v9 = vand.u32 2147483647, %v7755_v40  ;;  %vm1148_vm0 = vweird.f32 %v7755_v40 }
 0x148   : > { %v5653_v56 = vpop.eup %5652  ;;  %v1126_v63 = vsel %vm7727_vm10, %v1125_v62, %v1121_v53  ;;  %5658 = vpow2.f32 %v5384_v6  ;;  %v5795_v62 = vld [vmem:[%s12124_s1 + $0xb0] sm:$0xff]  ;;  %v7786_v6 = vpop.permute.xlu2 %2403  ;;  %v7789_v44 = vadd.f32 %v7117_v38, %v728_v34  ;;  %vm2619_vm10 = vcmp.ge.s32.totalorder %v5797_v59, 1  ;;  %v5799_v59 = vld [vmem:[%s12124_s1 + $0xc0] sm:$0xff] }
 0x149   : > { %v1573_v27 = vmul.f32 %v1126_v63, %v7497_v32  ;;  %v1129_v10 = vmul.f32 %v5653_v56, %v7701_v5  ;;  %vm1134_vm15 = vweird.f32 %v5653_v56  ;;  %vm2615_vm5 = vcmp.ge.s32.totalorder %v5795_v62, 1  ;;  %v5796_v32 = vld [vmem:[%s12124_s1 + $0xa8] sm:$0xff]  ;;  %v5655_v63 = vpop.eup %5654  ;;  %2718 = vperm.xlu2 %5545, %v2645_v2   ;;  %12774 = vst [vmem:[#allocation44_spill] sm:$0xff] %v7786_v6  ;;  %v7808_v6 = vpop.permute.xlu1 %2373 }
 0x14a   : > { %vm2614_vm14 = vcmp.ge.s32.totalorder %v5796_v32, 1  ;;  %v12777_v2 = vmax.f32 %v7145_v49, %v7379_v37  ;;  %12779 = vst [vmem:[#allocation45_spill] sm:$0xff] %v7808_v6  ;;  %vm7819_vm8 = vmor %vm1133_vm4, %vm1134_vm15  ;;  %v1154_v49 = vand.u32 2147483648, %v7755_v40  ;;  %v2647_v41 = vsel %vm2615_vm5, 1, %v12625_v24  ;;  %v7847_v32 = vpop.permute.xlu0 %2370 }
 0x14b   : > { %v7783_v53 = vsel %vm1974_vm3, %v1573_v27, -3.4028235e+38  ;;  %v1130_v58 = vsub.f32 1.0, %v1129_v10  ;;  %2715 = vperm.xlu1 %5544, %v2644_v16   ;;  %v5385_v14 = vmul.f32 -1.442695, %v7789_v44  ;;  %v2646_v5 = vsel %vm2614_vm14, 1, %v12625_v24 }
 0x14c   : > { %v7798_v27 = vmax.f32 %v12776_v31, %v7783_v53  ;;  %v7806_v34 = vmax.f32 %v12777_v2, %v7783_v53  ;;  %v7814_v31 = vadd.f32 1.0, %v5655_v63  ;;  %2712 = vperm.xlu0 %5543, %v2643_v47   ;;  %vm7837_vm13 = vcmp.eq.f32.partialorder %v1152_v9, 8.507059e+37  ;;  %12786 = vst [vmem:[#allocation46_spill] sm:$0xff] %v7847_v32 }
 0x14d   : > { %v1131_v50 = vmul.f32 %v5653_v56, %v1130_v58  ;;  %v2648_v58 = vsel %vm2616_vm12, 1, %v12625_v24  ;;  %v7829_v16 = vpop.eup %5656  ;;  %v1155_v60 = vor.u32 1.1754944e-38, %v1154_v49  ;;  %vm1976_vm4 = vcmp.eq.s32.totalorder %v12787_v42, 1 }
 0x14e   : > { %12778 = vst [vmem:[#allocation2_spill] sm:$0xff] %v7806_v34  ;;  %5660 = vrcp.f32 %v7814_v31  ;;  %v5659_v63 = vpop.eup %5658  ;;  %v1144_v4 = vmul.f32 %v7829_v16, %v7755_v40  ;;  %v1169_v62 = vand.u32 2147483648, %v7814_v31  ;;  %v1167_v6 = vand.u32 2147483647, %v7814_v31  ;;  %v2076_v40 = vld [vmem:[%s12130_s7] sm:$0xf] }
 0x14f   : > { %v1132_v47 = vadd.f32 %v5653_v56, %v1131_v50  ;;  %5662 = vpow2.f32 %v5385_v14  ;;  %v7845_v29 = vadd.f32 1.0, %v5659_v63  ;;  %vm1149_vm3 = vweird.f32 %v7829_v16 }
 0x150   : > { %v1145_v14 = vsub.f32 1.0, %v1144_v4  ;;  %vm1163_vm12 = vweird.f32 %v7814_v31  ;;  %v7865_v49 = vor.u32 1.1754944e-38, %v1169_v62  ;;  %v2651_v63 = vsel %vm2619_vm10, 1, %v12625_v24 }
 0x151   : > { %v1136_v50 = vsel %vm7819_vm8, %v5653_v56, %v1132_v47  ;;  %v5798_v56 = vld [vmem:[%s12124_s1 + $0xc8] sm:$0xff]  ;;  %5664 = vrcp.f32 %v7845_v29  ;;  %2727 = vperm.xlu2 %5545, %v2648_v58   ;;  %vm7875_vm15 = vcmp.eq.f32.partialorder %v1167_v6, 8.507059e+37  ;;  %vm1178_vm5 = vweird.f32 %v7845_v29 }
 0x152   : > { %v1141_v9 = vsel %vm7810_vm6, %v1140_v25, %v1136_v50  ;;  %vm2618_vm11 = vcmp.ge.s32.totalorder %v5798_v56, 1  ;;  %v1146_v25 = vmul.f32 %v7829_v16, %v1145_v14  ;;  %vm2617_vm14 = vcmp.ge.s32.totalorder %v5799_v59, 1 }
 0x153   : > { %v1574_v10 = vmul.f32 %v1141_v9, %v7592_v33  ;;  %2724 = vperm.xlu1 %5544, %v2647_v41   ;;  %v2650_v62 = vsel %vm2618_vm11, 1, %v12625_v24  ;;  %v7885_v41 = vpop.permute.xlu2 %2412  ;;  %v12791_v50 = vmax.f32 %v7299_v54, %v7557_v43  ;;  %v12792_v14 = vmax.f32 %v7313_v13, %v7557_v43  ;;  %v7911_v54 = vpop.permute.xlu1 %2382 }
 0x154   : > { %v7869_v33 = vpop.eup %5660  ;;  %2721 = vperm.xlu0 %5543, %v2646_v5   ;;  %12790 = vst [vmem:[#allocation16_spill] sm:$0xff] %v7885_v41  ;;  %v1147_v6 = vadd.f32 %v7829_v16, %v1146_v25  ;;  %v1182_v13 = vand.u32 2147483647, %v7845_v29  ;;  %v2649_v25 = vsel %vm2617_vm14, 1, %v12625_v24  ;;  %vm3542_vm8 = vcmask 1043456  }
 0x155   : > { %v7873_v4 = vsel %vm1975_vm2, %v1574_v10, -3.4028235e+38  ;;  %v5663_v28 = vpop.eup %5662  ;;  %vm7907_vm2 = vmor %vm1148_vm0, %vm1149_vm3  ;;  %12796 = vst [vmem:[#allocation48_spill] sm:$0xff] %v7911_v54  ;;  %v1159_v5 = vmul.f32 %v7869_v33, %v7814_v31  ;;  %vm1164_vm6 = vweird.f32 %v7869_v33  ;;  %vm1977_vm0 = vcmp.eq.s32.totalorder %v12797_v12, 1  ;;  %5428 = vmatpush.msk.msrb.mxu2 %vm3542_vm8, %v2076_v40  ;;  %v7954_v10 = vpop.permute.xlu0 %2379 }
 0x156   : > { %v7893_v9 = vmax.f32 %v12791_v50, %v7873_v4  ;;  %v7901_v56 = vmax.f32 %v12792_v14, %v7873_v4  ;;  %v731_v50 = vpop.f32.mrf.mxu0  ;;  %v1184_v14 = vand.u32 2147483648, %v7845_v29  ;;  %v7923_v41 = vadd.f32 1.0, %v5663_v28  ;;  %12799 = vst [vmem:[#allocation14_spill] sm:$0xff] %v7954_v10 }
 0x157   : > { %v7927_v54 = vpop.eup %5664  ;;  %v1151_v32 = vsel %vm7907_vm2, %v7829_v16, %v1147_v6  ;;  %v1160_v45 = vsub.f32 1.0, %v1159_v5  ;;  %v7933_v20 = vadd.f32 %v7117_v38, %v731_v50  ;;  %v12798_v28 = vrot.slane %v7806_v34, 1 }
 0x158   : > { %12793 = vst [vmem:[#allocation47_spill] sm:$0xff] %v7901_v56  ;;  %v12190_v47 = vrot.slane %v7901_v56, 1  ;;  %v1156_v8 = vsel %vm7837_vm13, %v1155_v60, %v1151_v32  ;;  %v1174_v16 = vmul.f32 %v7927_v54, %v7845_v29  ;;  %vm3493_vm10 = vcmask 31744   ;;  %vm7962_vm13 = vmor %vm1163_vm12, %vm1164_vm6 }
 0x159   : > { %v1575_v6 = vmul.f32 %v1156_v8, %v7683_v35  ;;  %v1161_v5 = vmul.f32 %v7869_v33, %v1160_v45  ;;  %5666 = vrcp.f32 %v7923_v41  ;;  %2736 = vperm.xlu2 %5545, %v2651_v63   ;;  %vm7966_vm11 = vcmp.eq.f32.partialorder %v1182_v13, 8.507059e+37 }
 0x15a   : > { %v2268_v59 = vsel %vm2239_vm7, %v12798_v28, %v12190_v47  ;;  %v1175_v32 = vsub.f32 1.0, %v1174_v16  ;;  %v1185_v35 = vor.u32 1.1754944e-38, %v1184_v14  ;;  %vm1179_vm3 = vweird.f32 %v7927_v54 }
 0x15b   : > { %v7949_v38 = vsel %vm12215_vm9, %v2268_v59, -3.4028235e+38  ;;  %2733 = vperm.xlu1 %5544, %v2650_v62   ;;  %v7972_v45 = vsel %vm1976_vm4, %v1575_v6, -3.4028235e+38  ;;  %v1162_v63 = vadd.f32 %v7869_v33, %v1161_v5  ;;  %v5386_v31 = vmul.f32 -1.442695, %v7933_v20  ;;  %v2422_v59 = vpop.permute.xlu2 %2421  ;;  %vm8009_vm14 = vmor %vm1178_vm5, %vm1179_vm3  ;;  %v8017_v16 = vpop.permute.xlu1 %2391 }
 0x15c   : > { %v2498_v60 = vmax.f32 %v7806_v34, %v7949_v38  ;;  %2730 = vperm.xlu0 %5543, %v2649_v25   ;;  %v2087_v50 = vmax.f32 %v7783_v53, %v7972_v45  ;;  %v12804_v13 = vmax.f32 %v7379_v37, %v7783_v53  ;;  %v2147_v42 = vmax.f32 %v7798_v27, %v7972_v45  ;;  %v12807_v25 = vld [vmem:[#allocation4_spill] sm:$0xff] }
 0x15d   : > { %v12805_v62 = vmax.f32 %v7393_v52, %v7783_v53  ;;  %5429 = vmatmul.msk.f32.vlgmr.msrb.gmra.mxu2 %vm3493_vm10, %v7972_v45  ;;  %vm1978_vm4 = vcmp.eq.s32.totalorder %v12807_v25, 1  ;;  %v1166_v37 = vsel %vm7962_vm13, %v7869_v33, %v1162_v63  ;;  %v1176_v28 = vmul.f32 %v7927_v54, %v1175_v32  ;;  %v5800_v33 = vld [vmem:[%s12124_s1 + $0xe0] sm:$0xff]  ;;  %12810 = vst [vmem:[#allocation4_spill] sm:$0xff] %v8017_v16 }
 0x15e   : > { %v7983_v14 = vmax.f32 %v12804_v13, %v7972_v45  ;;  %vm1193_vm12 = vweird.f32 %v7923_v41  ;;  %v1197_v27 = vand.u32 2147483647, %v7923_v41  ;;  %v1171_v52 = vsel %vm7875_vm15, %v7865_v49, %v1166_v37  ;;  %v734_v2 = vpop.f32.mrf.mxu0 }
 0x15f   : > { %v7991_v40 = vmax.f32 %v12805_v62, %v7972_v45  ;;  %5668 = vpow2.f32 %v5386_v31  ;;  %vm2922_vm2 = vcmp.lt.s32.totalorder %v7294_v7, 14  ;;  %vm2621_vm6 = vcmp.ge.s32.totalorder %v5800_v33, 1  ;;  %v8019_v58 = vpop.eup %5666  ;;  %v5801_v31 = vld [vmem:[%s12124_s1 + $0xd8] sm:$0xff] }
 0x160   : > { %v1576_v49 = vmul.f32 %v1171_v52, %v7706_v18  ;;  %v1177_v29 = vadd.f32 %v7927_v54, %v1176_v28  ;;  %v2954_v6 = vsel %vm2922_vm2, 1, %v12625_v24  ;;  %v2653_v5 = vsel %vm2621_vm6, 1, %v12625_v24 }
 0x161   : > { %12806 = vst [vmem:[#allocation49_spill] sm:$0xff] %v7991_v40  ;;  %v1189_v32 = vmul.f32 %v8019_v58, %v7923_v41  ;;  %v1199_v63 = vand.u32 2147483648, %v7923_v41  ;;  %vm2620_vm15 = vcmp.ge.s32.totalorder %v5801_v31, 1  ;;  %v12192_v13 = vrot.slane %v7613_v36, 1  ;;  %3003 = vperm.xlu2 %5545, %v2954_v6   ;;  %v8065_v6 = vpop.permute.xlu0 %2388 }
 0x162   : > { %v8034_v18 = vsel %vm1977_vm0, %v1576_v49, -3.4028235e+38  ;;  %v1181_v62 = vsel %vm8009_vm14, %v7927_v54, %v1177_v29  ;;  %v2652_v37 = vsel %vm2620_vm15, 1, %v12625_v24  ;;  %v12191_v28 = vrot.slane %v7658_v15, 1  ;;  %12814 = vst [vmem:[#allocation51_spill] sm:$0xff] %v8065_v6 }
 0x163   : > { %v2088_v52 = vmax.f32 %v7873_v4, %v8034_v18  ;;  %v12811_v33 = vmax.f32 %v7557_v43, %v7873_v4  ;;  %v2148_v12 = vmax.f32 %v7893_v9, %v8034_v18  ;;  %v12812_v54 = vmax.f32 %v7568_v3, %v7873_v4  ;;  %2742 = vperm.xlu1 %5544, %v2653_v5  }
 0x164   : > { %v1186_v49 = vsel %vm7966_vm11, %v1185_v35, %v1181_v62  ;;  %v1190_v29 = vsub.f32 1.0, %v1189_v32  ;;  %2739 = vperm.xlu0 %5543, %v2652_v37   ;;  %v2242_v43 = vsel %vm2239_vm7, %v12192_v13, %v12191_v28  ;;  %vm2460_vm5 = vcmp.eq.s32.totalorder %v2422_v59, 1  ;;  %v8081_v62 = vld [vmem:[%s12129_s6] ss:$0 sm:$0xff] }
 0x165   : > { %v8047_v31 = vmax.f32 %v12811_v33, %v8034_v18  ;;  %v8055_v53 = vmax.f32 %v12812_v54, %v8034_v18  ;;  %v5669_v33 = vpop.eup %5668  ;;  %v1577_v3 = vmul.f32 %v1186_v49, %v7744_v55  ;;  %vm1194_vm0 = vweird.f32 %v8019_v58  ;;  %5430 = vmatmul.msk.f32.gmra.mxu2 %vm3493_vm10, %v8034_v18 }
 0x166   : > { %v1200_v5 = vor.u32 1.1754944e-38, %v1199_v63  ;;  %v8069_v8 = vsel %vm2460_vm5, %v2242_v43, -3.4028235e+38  ;;  %v1191_v35 = vmul.f32 %v8019_v58, %v1190_v29  ;;  %v8074_v32 = vadd.f32 1.0, %v5669_v33  ;;  %v2431_v29 = vpop.permute.xlu2 %2430  ;;  %v737_v47 = vpop.f32.mrf.mxu0 }
 0x167   : > { %12813 = vst [vmem:[#allocation50_spill] sm:$0xff] %v8055_v53  ;;  %v8084_v55 = vadd.f32 %v8081_v62, %v734_v2  ;;  %v8088_v63 = vsel %vm1978_vm4, %v1577_v3, -3.4028235e+38  ;;  %vm3244_vm13 = vcmp.ge.s32.totalorder %v7537_v61, 2  ;;  %vm2923_vm11 = vcmp.lt.s32.totalorder %v7537_v61, 14  ;;  %vm8107_vm4 = vmor %vm1193_vm12, %vm1194_vm0  ;;  %v12821_v3 = vld [vmem:[#allocation19_spill] sm:$0xff] }
 0x168   : > { %12815 = vst [vmem:[#allocation52_spill] sm:$0xff] %v8069_v8  ;;  %vm3243_vm3 = vcmp.ge.s32.totalorder %v7294_v7, 2  ;;  %v8096_v54 = vmax.f32 %v2087_v50, %v8088_v63  ;;  %v8101_v49 = vmax.f32 %v2147_v42, %v8088_v63  ;;  %v12819_v50 = vmax.f32 %v7721_v26, %v7156_v0  ;;  %v8119_v42 = vpop.permute.xlu1 %2400  ;;  %v12849_v8 = vld [vmem:[#allocation21_spill] sm:$0xff] }
 0x169   : > { %v1192_v33 = vadd.f32 %v8019_v58, %v1191_v35  ;;  %vm1198_vm14 = vcmp.eq.f32.partialorder %v1197_v27, 8.507059e+37  ;;  %5670 = vrcp.f32 %v8074_v32  ;;  %12820 = vst [vmem:[#allocation54_spill] sm:$0xff] %v8119_v42  ;;  %vm1979_vm2 = vcmp.eq.s32.totalorder %v12821_v3, 1  ;;  %v12906_v42 = vld [vmem:[#allocation32_spill] sm:$0xff] }
 0x16a   : > { %12816 = vst [vmem:[#allocation53_spill] sm:$0xff] %v8101_v49  ;;  %v8115_v43 = vmax.f32 %v12819_v50, %v7183_v57  ;;  %v5387_v41 = vmul.f32 -1.442695, %v8084_v55  ;;  %v3276_v59 = vsel %vm3244_vm13, 1, %v12625_v24  ;;  %v2955_v50 = vsel %vm2923_vm11, 1, %v12625_v24 }
 0x16b   : > { %v1196_v35 = vsel %vm8107_vm4, %v8019_v58, %v1192_v33  ;;  %3327 = vperm.xlu2 %5545, %v3276_v59   ;;  %3006 = vperm.xlu1 %5544, %v2955_v50   ;;  %v3275_v28 = vsel %vm3243_vm3, 1, %v12625_v24  ;;  %v12193_v13 = vrot.slane %v7671_v22, 1  ;;  %vm1208_vm12 = vweird.f32 %v8074_v32 }
 0x16c   : > { %v2167_v27 = vmax.f32 %v8115_v43, %v7192_v46  ;;  %v1201_v2 = vsel %vm1198_vm14, %v1200_v5, %v1196_v35  ;;  %5672 = vpow2.f32 %v5387_v41  ;;  %3324 = vperm.xlu0 %5543, %v3275_v28   ;;  %vm2463_vm6 = vcmp.eq.s32.totalorder %v2431_v29, 1  ;;  %v8152_v28 = vpop.permute.xlu0 %2397 }
 0x16d   : > { %v1578_v61 = vmul.f32 %v1201_v2, %v7789_v44  ;;  %v1212_v43 = vand.u32 2147483647, %v8074_v32  ;;  %v1214_v58 = vand.u32 2147483648, %v8074_v32  ;;  %v12822_v59 = vrot.slane %v7401_v1, 1  ;;  %5431 = vmatmul.msk.f32.gmra.mxu2 %vm3493_vm10, %v8088_v63  ;;  %12824 = vst [vmem:[#allocation55_spill] sm:$0xff] %v8152_v28 }
 0x16e   : > { %v8155_v44 = vadd.f32 %v8081_v62, %v737_v47  ;;  %vm2925_vm15 = vcmp.lt.s32.totalorder %v7502_v11, 14  ;;  %vm3245_vm5 = vcmp.ge.s32.totalorder %v7519_v19, 2  ;;  %vm2924_vm13 = vcmp.lt.s32.totalorder %v7519_v19, 14  ;;  %v12828_v19 = vld [vmem:[#allocation18_spill] sm:$0xff] }
 0x16f   : > { %v2271_v7 = vsel %vm2239_vm7, %v12193_v13, %v12822_v59  ;;  %v5671_v2 = vpop.eup %5670  ;;  %v8161_v25 = vsel %vm1979_vm2, %v1578_v61, -3.4028235e+38  ;;  %v2957_v33 = vsel %vm2925_vm15, 1, %v12625_v24  ;;  %v3277_v41 = vsel %vm3245_vm5, 1, %v12625_v24  ;;  %v8183_v61 = vpop.permute.xlu2 %2664 }
 0x170   : > { %v8150_v5 = vsel %vm2463_vm6, %v2271_v7, -3.4028235e+38  ;;  %v8173_v50 = vmax.f32 %v2088_v52, %v8161_v25  ;;  %v8181_v35 = vmax.f32 %v2148_v12, %v8161_v25  ;;  %12826 = vst [vmem:[#allocation57_spill] sm:$0xff] %v8183_v61  ;;  %v1204_v59 = vmul.f32 %v5671_v2, %v8074_v32  ;;  %v740_v12 = vpop.f32.mrf.mxu0  ;;  %v8195_v47 = vpop.permute.xlu1 %2409 }
 0x171   : > { %12823 = vst [vmem:[#allocation19_spill] sm:$0xff] %v8150_v5  ;;  %vm1209_vm0 = vweird.f32 %v5671_v2  ;;  %v5388_v7 = vmul.f32 -1.442695, %v8155_v44  ;;  %v2956_v52 = vsel %vm2924_vm13, 1, %v12625_v24  ;;  %vm2560_vm11 = vcmp.lt.s32.totalorder %v7582_v48, 1 }
 0x172   : > { %12825 = vst [vmem:[#allocation56_spill] sm:$0xff] %v8181_v35  ;;  %v5673_v4 = vpop.eup %5672  ;;  %v12195_v29 = vrot.slane %v7576_v51, 7  ;;  %v12194_v9 = vrot.slane %v7806_v34, 7  ;;  %v1205_v13 = vsub.f32 1.0, %v1204_v59  ;;  %vm12208_vm3 = vcmp.eq.s32.totalorder %v8183_v61, 1  ;;  %vm8216_vm14 = vmor %vm1208_vm12, %vm1209_vm0 }
 0x173   : > { %v8192_v3 = vadd.f32 1.0, %v5673_v4  ;;  %5674 = vpow2.f32 %v5388_v7  ;;  %3012 = vperm.xlu2 %5545, %v2957_v33   ;;  %3330 = vperm.xlu1 %5544, %v3277_v41   ;;  %12827 = vst [vmem:[#allocation58_spill] sm:$0xff] %v8195_v47  ;;  %vm1980_vm4 = vcmp.eq.s32.totalorder %v12828_v19, 1  ;;  %v8205_v59 = vadd.f32 %v8081_v62, %v740_v12 }
 0x174   : > { %3009 = vperm.xlu0 %5543, %v2956_v52   ;;  %v2590_v37 = vsel %vm2560_vm11, %v12195_v29, %v12194_v9  ;;  %v8208_v33 = vmax.f32 %v2167_v27, %v7436_v39  ;;  %v1206_v41 = vmul.f32 %v5671_v2, %v1205_v13  ;;  %v1215_v7 = vor.u32 1.1754944e-38, %v1214_v58  ;;  %v8232_v12 = vpop.permute.xlu0 %2406 }
 0x175   : > { %5676 = vrcp.f32 %v8192_v3  ;;  %5432 = vmatmul.msk.f32.gmra.mxu2 %vm3493_vm10, %v8161_v25  ;;  %v1229_v52 = vand.u32 2147483648, %v8192_v3  ;;  %v2787_v39 = vsel %vm12208_vm3, %v2590_v37, -3.4028235e+38  ;;  %v5389_v13 = vmul.f32 -1.442695, %v8205_v59  ;;  %12833 = vst [vmem:[#allocation60_spill] sm:$0xff] %v8232_v12 }
 0x176   : > { %12829 = vst [vmem:[#allocation18_spill] sm:$0xff] %v8208_v33  ;;  %vm3253_vm2 = vcmp.ge.s32.totalorder %v7740_v30, 2  ;;  %vm12205_vm6 = vcmp.eq.s32.totalorder %v7688_v21, 1  ;;  %v1207_v27 = vadd.f32 %v5671_v2, %v1206_v41  ;;  %vm1213_vm15 = vcmp.eq.f32.partialorder %v1212_v43, 8.507059e+37 }
 0x177   : > { %v1227_v58 = vand.u32 2147483647, %v8192_v3  ;;  %v8230_v32 = vmax.f32 %v2498_v60, %v2787_v39  ;;  %5678 = vpow2.f32 %v5389_v13  ;;  %v3285_v37 = vsel %vm3253_vm2, 1, %v12625_v24  ;;  %v8242_v60 = vpop.permute.xlu2 %2673 }
 0x178   : > { %vm3246_vm12 = vcmp.ge.s32.totalorder %v7502_v11, 2  ;;  %vm2932_vm5 = vcmp.lt.s32.totalorder %v7740_v30, 14  ;;  %v1211_v43 = vsel %vm8216_vm14, %v5671_v2, %v1207_v27  ;;  %vm1223_vm0 = vweird.f32 %v8192_v3  ;;  %12834 = vst [vmem:[#allocation61_spill] sm:$0xff] %v8242_v60 }
 0x179   : > { %12832 = vst [vmem:[#allocation59_spill] sm:$0xff] %v8230_v32  ;;  %v5675_v9 = vpop.eup %5674  ;;  %v3278_v41 = vsel %vm3246_vm12, 1, %v12625_v24  ;;  %v2964_v38 = vsel %vm2932_vm5, 1, %v12625_v24  ;;  %v1216_v39 = vsel %vm1213_vm15, %v1215_v7, %v1211_v43  ;;  %v8244_v13 = vor.u32 1.1754944e-38, %v1229_v52 }
 0x17a   : > { %v8246_v29 = vadd.f32 1.0, %v5675_v9  ;;  %v12200_v11 = vrot.slane %v8101_v49, 1  ;;  %v1579_v61 = vmul.f32 %v1216_v39, %v7933_v20  ;;  %vm8250_vm13 = vcmp.eq.f32.partialorder %v1227_v58, 8.507059e+37 }
 0x17b   : > { %v5677_v30 = vpop.eup %5676  ;;  %3354 = vperm.xlu2 %5545, %v3285_v37   ;;  %3333 = vperm.xlu1 %5544, %v3278_v41   ;;  %v12201_v4 = vrot.slane %v8055_v53, 1  ;;  %vm12214_vm14 = vcmp.eq.s32.totalorder %v8242_v60, 1  ;;  %v2232_v20 = vrot.slane %v7636_v17, 1  ;;  %v2419_v41 = vpop.permute.xlu1 %2418  ;;  %v12838_v7 = vmax.f32 %v7983_v14, %v8088_v63 }
 0x17c   : > { %v1219_v9 = vmul.f32 %v5677_v30, %v8192_v3  ;;  %5680 = vrcp.f32 %v8246_v29  ;;  %3033 = vperm.xlu0 %5543, %v2964_v38   ;;  %v8263_v52 = vsel %vm1980_vm4, %v1579_v61, -3.4028235e+38  ;;  %v1242_v58 = vand.u32 2147483647, %v8246_v29 }
 0x17d   : > { %v1244_v37 = vand.u32 2147483648, %v8246_v29  ;;  %v2265_v43 = vsel %vm2239_vm7, %v12201_v4, %v12200_v11  ;;  %v5679_v38 = vpop.eup %5678  ;;  %v12837_v61 = vmax.f32 %v7972_v45, %v8088_v63  ;;  %v8287_v23 = vmax.f32 %v12838_v7, %v8263_v52  ;;  %5433 = vmatmul.msk.f32.gmra.mxu2 %vm3493_vm10, %v8263_v52  ;;  %v12839_v45 = vld [vmem:[#allocation5_spill] sm:$0xff] }
 0x17e   : > { %v1220_v11 = vsub.f32 1.0, %v1219_v9  ;;  %vm1224_vm4 = vweird.f32 %v5677_v30  ;;  %vm1238_vm2 = vweird.f32 %v8246_v29  ;;  %v8292_v4 = vadd.f32 1.0, %v5679_v38 }
 0x17f   : > { %v8279_v19 = vmax.f32 %v12837_v61, %v8263_v52  ;;  %vm1981_vm15 = vcmp.eq.s32.totalorder %v12839_v45, 1  ;;  %v2469_v61 = vsel %vm12205_vm6, %v2265_v43, -3.4028235e+38  ;;  %v12840_v27 = vrot.slane %v8055_v53, 7  ;;  %vm8314_vm6 = vmor %vm1223_vm0, %vm1224_vm4 }
 0x180   : > { %v12841_v14 = vrot.slane %v7991_v40, 7  ;;  %v12842_v39 = vrot.slane %v7613_v36, 1  ;;  %vm2459_vm12 = vcmp.eq.s32.totalorder %v2419_v41, 1  ;;  %v1221_v38 = vmul.f32 %v5677_v30, %v1220_v11  ;;  %v2416_v41 = vpop.permute.xlu0 %2415 }
 0x181   : > { %vm8307_vm5 = vcmp.eq.f32.partialorder %v1242_v58, 8.507059e+37  ;;  %v1245_v21 = vor.u32 1.1754944e-38, %v1244_v37  ;;  %5682 = vrcp.f32 %v8292_v4  ;;  %v743_v37 = vpop.f32.mrf.mxu0  ;;  %vm1253_vm0 = vweird.f32 %v8292_v4 }
 0x182   : > { %v2587_v7 = vsel %vm2560_vm11, %v12841_v14, %v12840_v27  ;;  %v2243_v9 = vsel %vm2239_vm7, %v2232_v20, %v12842_v39  ;;  %v5681_v43 = vpop.eup %5680  ;;  %v1259_v27 = vand.u32 2147483648, %v8292_v4  ;;  %v2501_v39 = vmax.f32 %v8055_v53, %v2469_v61 }
 0x183   : > { %v2790_v11 = vsel %vm12214_vm14, %v2587_v7, -3.4028235e+38  ;;  %v8322_v58 = vsel %vm2459_vm12, %v2243_v9, -3.4028235e+38  ;;  %v1222_v14 = vadd.f32 %v5677_v30, %v1221_v38  ;;  %v1234_v32 = vmul.f32 %v5681_v43, %v8246_v29 }
 0x184   : > { %12847 = vst [vmem:[#allocation5_spill] sm:$0xff] %v8322_v58  ;;  %vm1239_vm3 = vweird.f32 %v5681_v43  ;;  %v1257_v3 = vand.u32 2147483647, %v8292_v4  ;;  %v8327_v10 = vor.u32 1.1754944e-38, %v1259_v27  ;;  %v8329_v28 = vmax.f32 %v2501_v39, %v2790_v11  ;;  %v12850_v11 = vld [vmem:[#allocation38_spill] sm:$0xff] }
 0x185   : > { %v12216_v7 = vrot.slane %v8208_v33, 1  ;;  %v1226_v9 = vsel %vm8314_vm6, %v5677_v30, %v1222_v14  ;;  %v1235_v38 = vsub.f32 1.0, %v1234_v32  ;;  %vm2458_vm4 = vcmp.eq.s32.totalorder %v2416_v41, 1  ;;  %vm8368_vm14 = vmor %vm1238_vm2, %vm1239_vm3  ;;  %v8577_v58 = vld [vmem:[%s12124_s1 + $0x20] sm:$0xff] }
 0x186   : > { %12848 = vst [vmem:[#allocation62_spill] sm:$0xff] %v8329_v28  ;;  %v8337_v60 = vadd.f32 %v8081_v62, %v743_v37  ;;  %vm1982_vm12 = vcmp.eq.s32.totalorder %v12849_v8, 1  ;;  %v1231_v27 = vsel %vm8250_vm13, %v8244_v13, %v1226_v9  ;;  %v12851_v6 = vrot.slane %v7806_v34, 1  ;;  %v12856_v9 = vld [vmem:[#allocation11_spill] sm:$0xff]  ;;  %v12862_v28 = vld [vmem:[#allocation17_spill] sm:$0xff] }
 0x187   : > { %v2244_v39 = vsel %vm2239_vm7, %v12216_v7, %v2232_v20  ;;  %v12852_v32 = vrot.slane %v7576_v51, 1  ;;  %v5683_v41 = vpop.eup %5682  ;;  %v1580_v37 = vmul.f32 %v1231_v27, %v8084_v55  ;;  %v1236_v2 = vmul.f32 %v5681_v43, %v1235_v38  ;;  %v12859_v38 = vld [vmem:[#allocation41_spill] sm:$0xff] }
 0x188   : > { %vm8357_vm6 = vcmp.eq.f32.partialorder %v1257_v3, 8.507059e+37  ;;  %v8361_v14 = vsel %vm2458_vm4, %v2244_v39, -3.4028235e+38  ;;  %v5390_v20 = vmul.f32 -1.442695, %v8337_v60  ;;  %vm12235_vm13 = vcmp.eq.s32.totalorder %v12856_v9, 1 }
 0x189   : > { %v8354_v30 = vsel %vm2239_vm7, %v12852_v32, %v12851_v6  ;;  %12855 = vst [vmem:[#allocation21_spill] sm:$0xff] %v8361_v14  ;;  %v1249_v55 = vmul.f32 %v5683_v41, %v8292_v4  ;;  %vm1254_vm9 = vweird.f32 %v5683_v41  ;;  %vm3247_vm4 = vcmp.ge.s32.totalorder %v12859_v38, 2  ;;  %v12909_v14 = vld [vmem:[#allocation24_spill] sm:$0xff] }
 0x18a   : > { %v8378_v27 = vsel %vm1981_vm15, %v1580_v37, -3.4028235e+38  ;;  %v1237_v39 = vadd.f32 %v5681_v43, %v1236_v2  ;;  %5684 = vpow2.f32 %v5390_v20  ;;  %v3279_v29 = vsel %vm3247_vm4, 1, %v12625_v24 }
 0x18b   : > { %v2092_v32 = vmax.f32 %v8161_v25, %v8378_v27  ;;  %v12860_v7 = vmax.f32 %v8034_v18, %v8161_v25  ;;  %v2152_v3 = vmax.f32 %v8173_v50, %v8378_v27  ;;  %v12861_v45 = vmax.f32 %v8047_v31, %v8161_v25  ;;  %3336 = vperm.xlu2 %5545, %v3279_v29   ;;  %v8401_v18 = vpop.permute.xlu2 %2682 }
 0x18c   : > { %v1241_v2 = vsel %vm8368_vm14, %v5681_v43, %v1237_v39  ;;  %v1250_v20 = vsub.f32 1.0, %v1249_v55  ;;  %vm2933_vm3 = vcmp.lt.s32.totalorder %v12862_v28, 14  ;;  %vm2926_vm2 = vcmp.lt.s32.totalorder %v12859_v38, 14  ;;  %12863 = vst [vmem:[#allocation41_spill] sm:$0xff] %v8401_v18  ;;  %5434 = vmatmul.msk.f32.gmra.mxu2 %vm3493_vm10, %v8378_v27  ;;  %vm8416_vm14 = vmor %vm1253_vm0, %vm1254_vm9 }
 0x18d   : > { %v8387_v61 = vmax.f32 %v12860_v7, %v8378_v27  ;;  %v8395_v37 = vmax.f32 %v12861_v45, %v8378_v27  ;;  %v2428_v7 = vpop.permute.xlu1 %2427  ;;  %v1246_v31 = vsel %vm8307_vm5, %v1245_v21, %v1241_v2  ;;  %v2965_v25 = vsel %vm2933_vm3, 1, %v12625_v24  ;;  %v12871_v21 = vld [vmem:[#allocation20_spill] sm:$0xff] }
 0x18e   : > { %v2958_v50 = vsel %vm2926_vm2, 1, %v12625_v24  ;;  %v12219_v43 = vrot.slane %v8287_v23, 1  ;;  %v1581_v6 = vmul.f32 %v1246_v31, %v8155_v44  ;;  %v1251_v55 = vmul.f32 %v5683_v41, %v1250_v20  ;;  %3036 = vperm.xlu1 %5544, %v2965_v25  }
 0x18f   : > { %3015 = vperm.xlu0 %5543, %v2958_v50   ;;  %v12218_v38 = vrot.slane %v8395_v37, 1  ;;  %v12221_v39 = vrot.slane %v8181_v35, 7  ;;  %v12220_v5 = vrot.slane %v8287_v23, 7  ;;  %vm12234_vm15 = vcmp.eq.s32.totalorder %v8401_v18, 1  ;;  %v2425_v50 = vpop.permute.xlu0 %2424  ;;  %v12881_v18 = vld [vmem:[#allocation31_spill] sm:$0xff] }
 0x190   : > { %v12866_v44 = vrot.slane %v7671_v22, 1  ;;  %v12867_v29 = vrot.slane %v12850_v11, 1  ;;  %vm2462_vm5 = vcmp.eq.s32.totalorder %v2428_v7, 1  ;;  %v5685_v2 = vpop.eup %5684  ;;  %v8430_v4 = vsel %vm1982_vm12, %v1581_v6, -3.4028235e+38 }
 0x191   : > { %v1252_v20 = vadd.f32 %v5683_v41, %v1251_v55  ;;  %v2262_v31 = vsel %vm2239_vm7, %v12219_v43, %v12218_v38  ;;  %v12869_v8 = vmax.f32 %v8088_v63, %v8263_v52  ;;  %v12870_v55 = vmax.f32 %v8096_v54, %v8263_v52 }
 0x192   : > { %v2240_v45 = vsel %vm2239_vm7, %v12867_v29, %v12866_v44  ;;  %v8458_v43 = vadd.f32 1.0, %v5685_v2  ;;  %v2472_v63 = vsel %vm12235_vm13, %v2262_v31, -3.4028235e+38  ;;  %vm1983_vm9 = vcmp.eq.s32.totalorder %v12871_v21, 1  ;;  %v12872_v31 = vld [vmem:[#allocation29_spill] sm:$0xff] }
 0x193   : > { %v8438_v25 = vsel %vm2462_vm5, %v2240_v45, -3.4028235e+38  ;;  %v8446_v7 = vmax.f32 %v12869_v8, %v8430_v4  ;;  %v8454_v29 = vmax.f32 %v12870_v55, %v8430_v4  ;;  %v746_v45 = vpop.f32.mrf.mxu0  ;;  %v1256_v38 = vsel %vm8416_vm14, %v5683_v41, %v1252_v20 }
 0x194   : > { %12868 = vst [vmem:[#allocation17_spill] sm:$0xff] %v8438_v25  ;;  %v2584_v8 = vsel %vm2560_vm11, %v12221_v39, %v12220_v5  ;;  %v1261_v54 = vsel %vm8357_vm6, %v8327_v10, %v1256_v38  ;;  %v2504_v55 = vmax.f32 %v8287_v23, %v2472_v63  ;;  %5686 = vrcp.f32 %v8458_v43  ;;  %5435 = vmatmul.msk.f32.gmra.mxu2 %vm3493_vm10, %v8430_v4  ;;  %v12883_v25 = vld [vmem:[#allocation9_spill] sm:$0xff] }
 0x195   : > { %v1582_v2 = vmul.f32 %v1261_v54, %v8205_v59  ;;  %v2793_v20 = vsel %vm12234_vm15, %v2584_v8, -3.4028235e+38  ;;  %vm12251_vm0 = vcmp.eq.s32.totalorder %v12872_v31, 1  ;;  %v12874_v13 = vrot.slane %v12850_v11, 1 }
 0x196   : > { %v8482_v10 = vmax.f32 %v2504_v55, %v2793_v20  ;;  %v12875_v38 = vrot.slane %v7658_v15, 1  ;;  %vm2461_vm12 = vcmp.eq.s32.totalorder %v2425_v50, 1  ;;  %v1272_v54 = vand.u32 2147483647, %v8458_v43 }
 0x197   : > { %v8490_v59 = vsel %vm1983_vm9, %v1582_v2, -3.4028235e+38  ;;  %v8496_v21 = vadd.f32 %v8081_v62, %v746_v45  ;;  %vm1268_vm6 = vweird.f32 %v8458_v43  ;;  %vm3254_vm2 = vcmp.ge.s32.totalorder %v12862_v28, 2  ;;  %v8535_v39 = vpop.permute.xlu0 %2658 }
 0x198   : > { %12873 = vst [vmem:[#allocation20_spill] sm:$0xff] %v8482_v10  ;;  %v2241_v63 = vsel %vm2239_vm7, %v12875_v38, %v12874_v13  ;;  %v8501_v20 = vmax.f32 %v2092_v32, %v8490_v59  ;;  %v8506_v50 = vmax.f32 %v2152_v3, %v8490_v59  ;;  %v8515_v13 = vld [vmem:[%s12124_s1 + $0x8] sm:$0xff]  ;;  %v1274_v32 = vand.u32 2147483648, %v8458_v43  ;;  %v8523_v3 = vld [vmem:[%s12124_s1] sm:$0xff] }
 0x199   : > { %v8493_v8 = vsel %vm2461_vm12, %v2241_v63, -3.4028235e+38  ;;  %v5391_v45 = vmul.f32 -1.442695, %v8496_v21  ;;  %vm2915_vm4 = vcmp.lt.s32.totalorder %v8515_v13, 14  ;;  %vm2914_vm3 = vcmp.lt.s32.totalorder %v8523_v3, 14  ;;  %v8527_v63 = vpop.permute.xlu1 %2661 }
 0x19a   : > { %12876 = vst [vmem:[#allocation63_spill] sm:$0xff] %v8493_v8  ;;  %v2947_v38 = vsel %vm2915_vm4, 1, %v12625_v24  ;;  %v5687_v2 = vpop.eup %5686  ;;  %vm8529_vm14 = vcmp.eq.f32.partialorder %v1272_v54, 8.507059e+37  ;;  %v2946_v41 = vsel %vm2914_vm3, 1, %v12625_v24  ;;  %v3286_v55 = vsel %vm3254_vm2, 1, %v12625_v24 }
 0x19b   : > { %12877 = vst [vmem:[#allocation64_spill] sm:$0xff] %v8527_v63  ;;  %5688 = vpow2.f32 %v5391_v45  ;;  %2982 = vperm.xlu2 %5545, %v2947_v38   ;;  %v1264_v6 = vmul.f32 %v5687_v2, %v8458_v43  ;;  %vm1269_vm5 = vweird.f32 %v5687_v2  ;;  %2979 = vperm.xlu1 %5544, %v2946_v41   ;;  %v12232_v28 = vrot.slane %v8454_v29, 7  ;;  %v749_v44 = vpop.f32.mrf.mxu0  ;;  %v8603_v43 = vld [vmem:[%s12124_s1 + $0x18] sm:$0xff] }
 0x19c   : > { %12880 = vst [vmem:[#allocation65_spill] sm:$0xff] %v8535_v39  ;;  %3357 = vperm.xlu0 %5543, %v3286_v55   ;;  %v12231_v54 = vrot.slane %v8506_v50, 7  ;;  %vm12259_vm9 = vcmp.eq.s32.totalorder %v12881_v18, 1  ;;  %v2465_v45 = vsel %vm12251_vm0, %v8354_v30, -3.4028235e+38  ;;  %v2528_v38 = vrot.slane %v7401_v1, 7  ;;  %5436 = vmatmul.msk.f32.gmra.mxu2 %vm3493_vm10, %v8490_v59  ;;  %vm8583_vm13 = vmor %vm1268_vm6, %vm1269_vm5 }
 0x19d   : > { %vm12242_vm12 = vcmp.eq.s32.totalorder %v8527_v63, 1  ;;  %v1265_v41 = vsub.f32 1.0, %v1264_v6  ;;  %v2497_v31 = vmax.f32 %v7576_v51, %v2465_v45  ;;  %vm12263_vm4 = vcmp.eq.s32.totalorder %v8535_v39, 1  ;;  %v12882_v30 = vld [vmem:[#allocation8_spill] sm:$0xff] }
 0x19e   : > { %v2581_v55 = vsel %vm2560_vm11, %v12232_v28, %v12231_v54  ;;  %vm1984_vm3 = vcmp.eq.s32.totalorder %v12882_v30, 1  ;;  %vm12250_vm2 = vcmp.eq.s32.totalorder %v12883_v25, 1  ;;  %v1275_v9 = vor.u32 1.1754944e-38, %v1274_v32 }
 0x19f   : > { %v12884_v8 = vrot.slane %v7576_v51, 7  ;;  %v12885_v11 = vrot.slane %v7671_v22, 7  ;;  %v8568_v54 = vadd.f32 %v8081_v62, %v749_v44  ;;  %v1266_v45 = vmul.f32 %v5687_v2, %v1265_v41  ;;  %v8587_v44 = vpop.permute.xlu2 %2691 }
 0x1a0   : > { %vm2918_vm15 = vcmp.lt.s32.totalorder %v8577_v58, 14  ;;  %12888 = vst [vmem:[#allocation8_spill] sm:$0xff] %v8587_v44  ;;  %vm2917_vm6 = vcmp.lt.s32.totalorder %v8603_v43, 14  ;;  %v12901_v30 = vmax.f32 %v8263_v52, %v8430_v4 }
 0x1a1   : > { %v2591_v6 = vsel %vm2560_vm11, %v2528_v38, %v12884_v8  ;;  %v2592_v15 = vsel %vm2560_vm11, %v12885_v11, %v2528_v38  ;;  %v5689_v8 = vpop.eup %5688  ;;  %v5392_v63 = vmul.f32 -1.442695, %v8568_v54  ;;  %v2950_v39 = vsel %vm2918_vm15, 1, %v12625_v24  ;;  %v8626_v11 = vpop.permute.xlu1 %2670 }
 0x1a2   : > { %v2786_v28 = vsel %vm12242_vm12, %v2591_v6, -3.4028235e+38  ;;  %v2785_v32 = vsel %vm12263_vm4, %v2592_v15, -3.4028235e+38  ;;  %v12890_v15 = vld [vmem:[#allocation7_spill] sm:$0xff]  ;;  %v1267_v22 = vadd.f32 %v5687_v2, %v1266_v45  ;;  %v8598_v47 = vadd.f32 1.0, %v5689_v8 }
 0x1a3   : > { %v8589_v38 = vmax.f32 %v2497_v31, %v2786_v28  ;;  %v12891_v41 = vmax.f32 %v7401_v1, %v12890_v15  ;;  %v8609_v31 = vld [vmem:[%s12124_s1 + $0x10] sm:$0xff]  ;;  %5690 = vpow2.f32 %v5392_v63  ;;  %2991 = vperm.xlu2 %5545, %v2950_v39   ;;  %v2949_v28 = vsel %vm2917_vm6, 1, %v12625_v24  ;;  %12895 = vst [vmem:[#allocation68_spill] sm:$0xff] %v8626_v11 }
 0x1a4   : > { %12893 = vst [vmem:[#allocation67_spill] sm:$0xff] %v8609_v31  ;;  %vm2916_vm5 = vcmp.lt.s32.totalorder %v8609_v31, 14  ;;  %v1271_v8 = vsel %vm8583_vm13, %v5687_v2, %v1267_v22  ;;  %5692 = vrcp.f32 %v8598_v47  ;;  %vm12272_vm15 = vcmp.eq.s32.totalorder %v8587_v44, 1  ;;  %2988 = vperm.xlu1 %5544, %v2949_v28  }
 0x1a5   : > { %12889 = vst [vmem:[#allocation66_spill] sm:$0xff] %v8589_v38  ;;  %v8594_v6 = vmax.f32 %v12891_v41, %v2785_v32  ;;  %v2948_v45 = vsel %vm2916_vm5, 1, %v12625_v24  ;;  %v2209_v32 = vrot.slane %v7991_v40, 1  ;;  %v12894_v41 = vld [vmem:[#allocation46_spill] sm:$0xff]  ;;  %v1276_v39 = vsel %vm8529_vm14, %v1275_v9, %v1271_v8  ;;  %v8637_v8 = vpop.permute.xlu0 %2667 }
 0x1a6   : > { %2985 = vperm.xlu0 %5543, %v2948_v45   ;;  %vm12273_vm12 = vcmp.eq.s32.totalorder %v12894_v41, 1  ;;  %vm1283_vm6 = vweird.f32 %v8598_v47  ;;  %v2796_v63 = vsel %vm12272_vm15, %v2581_v55, -3.4028235e+38  ;;  %v12896_v22 = vrot.slane %v8055_v53, 1  ;;  %12897 = vst [vmem:[#allocation69_spill] sm:$0xff] %v8637_v8 }
 0x1a7   : > { %12892 = vst [vmem:[#allocation7_spill] sm:$0xff] %v8594_v6  ;;  %v1583_v28 = vmul.f32 %v1276_v39, %v8337_v60  ;;  %v1287_v45 = vand.u32 2147483647, %v8598_v47  ;;  %v2531_v9 = vrot.slane %v7901_v56, 7  ;;  %v1289_v55 = vand.u32 2147483648, %v8598_v47 }
 0x1a8   : > { %v2266_v2 = vsel %vm2239_vm7, %v2209_v32, %v12896_v22  ;;  %vm12256_vm13 = vcmp.eq.s32.totalorder %v8626_v11, 1  ;;  %v12898_v44 = vrot.slane %v7901_v56, 1  ;;  %v12899_v22 = vrot.slane %v7991_v40, 7 }
 0x1a9   : > { %v2468_v5 = vsel %vm12259_vm9, %v2266_v2, -3.4028235e+38  ;;  %v8648_v39 = vsel %vm1984_vm3, %v1583_v28, -3.4028235e+38  ;;  %v5691_v38 = vpop.eup %5690  ;;  %vm12262_vm14 = vcmp.eq.s32.totalorder %v8637_v8, 1  ;;  %vm8685_vm3 = vcmp.eq.f32.partialorder %v1287_v45, 8.507059e+37  ;;  %v8752_v8 = vpop.permute.xlu2 %2700 }
 0x1aa   : > { %v2500_v15 = vmax.f32 %v7991_v40, %v2468_v5  ;;  %v2267_v60 = vsel %vm2239_vm7, %v12898_v44, %v2209_v32  ;;  %v2588_v2 = vsel %vm2560_vm11, %v2531_v9, %v12899_v22  ;;  %v12900_v5 = vrot.slane %v7806_v34, 7  ;;  %5437 = vmatmul.msk.f32.gmra.mxu2 %vm3493_vm10, %v8648_v39  ;;  %12921 = vst [vmem:[#allocation77_spill] sm:$0xff] %v8752_v8 }
 0x1ab   : > { %v2467_v18 = vsel %vm12250_vm2, %v2267_v60, -3.4028235e+38  ;;  %v8666_v32 = vmax.f32 %v12901_v30, %v8648_v39  ;;  %v12902_v60 = vmax.f32 %v8279_v19, %v8430_v4  ;;  %v8678_v44 = vadd.f32 1.0, %v5691_v38 }
 0x1ac   : > { %v2589_v6 = vsel %vm2560_vm11, %v12900_v5, %v2531_v9  ;;  %v752_v9 = vpop.f32.mrf.mxu0  ;;  %v5693_v5 = vpop.eup %5692  ;;  %v2789_v52 = vsel %vm12256_vm13, %v2588_v2, -3.4028235e+38  ;;  %v2499_v30 = vmax.f32 %v7901_v56, %v2467_v18  ;;  %vm12287_vm5 = vcmp.eq.s32.totalorder %v12906_v42, 1  ;;  %v12907_v2 = vld [vmem:[#allocation15_spill] sm:$0xff] }
 0x1ad   : > { %v8674_v22 = vmax.f32 %v12902_v60, %v8648_v39  ;;  %v1279_v28 = vmul.f32 %v5693_v5, %v8598_v47  ;;  %v8690_v25 = vmax.f32 %v2500_v15, %v2789_v52  ;;  %vm1284_vm2 = vweird.f32 %v5693_v5  ;;  %v8744_v47 = vpop.permute.xlu0 %2676 }
 0x1ae   : > { %5694 = vrcp.f32 %v8678_v44  ;;  %v1302_v38 = vand.u32 2147483647, %v8678_v44  ;;  %v1304_v18 = vand.u32 2147483648, %v8678_v44  ;;  %vm12292_vm0 = vcmp.eq.s32.totalorder %v12907_v2, 1  ;;  %vm8727_vm4 = vmor %vm1283_vm6, %vm1284_vm2  ;;  %12917 = vst [vmem:[#allocation75_spill] sm:$0xff] %v8744_v47 }
 0x1af   : > { %v12265_v60 = vrot.slane %v8674_v22, 1  ;;  %12905 = vst [vmem:[#allocation70_spill] sm:$0xff] %v8690_v25  ;;  %v1280_v11 = vsub.f32 1.0, %v1279_v28  ;;  %v12908_v45 = vrot.slane %v8506_v50, 1  ;;  %v2788_v52 = vsel %vm12262_vm14, %v2589_v6, -3.4028235e+38 }
 0x1b0   : > { %v8706_v25 = vadd.f32 %v8081_v62, %v752_v9  ;;  %vm1985_vm13 = vcmp.eq.s32.totalorder %v12909_v14, 1  ;;  %v1290_v10 = vor.u32 1.1754944e-38, %v1289_v55  ;;  %vm1298_vm9 = vweird.f32 %v8678_v44  ;;  %v8719_v6 = vld [vmem:[%s12124_s1 + $0x68] sm:$0xff]  ;;  %v8722_v55 = vpop.permute.xlu1 %2679 }
 0x1b1   : > { %v2259_v15 = vsel %vm2239_vm7, %v12908_v45, %v12265_v60  ;;  %v8712_v28 = vmax.f32 %v2499_v30, %v2788_v52  ;;  %v1281_v16 = vmul.f32 %v5693_v5, %v1280_v11  ;;  %12911 = vst [vmem:[#allocation71_spill] sm:$0xff] %v8719_v6  ;;  %vm2927_vm14 = vcmp.lt.s32.totalorder %v8719_v6, 14  ;;  %v8735_v30 = vld [vmem:[%s12124_s1 + $0x30] sm:$0xff]  ;;  %v8845_v60 = vld [vmem:[%s12124_s1 + $0x78] sm:$0xff] }
 0x1b2   : > { %v2475_v12 = vsel %vm12273_vm12, %v2259_v15, -3.4028235e+38  ;;  %v5393_v45 = vmul.f32 -1.442695, %v8706_v25  ;;  %12912 = vst [vmem:[#allocation72_spill] sm:$0xff] %v8722_v55  ;;  %v1305_v11 = vor.u32 1.1754944e-38, %v1304_v18 }
 0x1b3   : > { %12910 = vst [vmem:[#allocation24_spill] sm:$0xff] %v8712_v28  ;;  %v2507_v31 = vmax.f32 %v8506_v50, %v2475_v12  ;;  %v2959_v12 = vsel %vm2927_vm14, 1, %v12625_v24  ;;  %vm2920_vm1 = vcmp.lt.s32.totalorder %v8735_v30, 14  ;;  %v8741_v15 = vld [vmem:[%s12124_s1 + $0x28] sm:$0xff]  ;;  %v1282_v52 = vadd.f32 %v5693_v5, %v1281_v16 }
 0x1b4   : > { %12915 = vst [vmem:[#allocation73_spill] sm:$0xff] %v8735_v30  ;;  %vm2919_vm2 = vcmp.lt.s32.totalorder %v8741_v15, 14  ;;  %vm8748_vm6 = vcmp.eq.f32.partialorder %v1302_v38, 8.507059e+37  ;;  %5696 = vpow2.f32 %v5393_v45  ;;  %3018 = vperm.xlu2 %5545, %v2959_v12   ;;  %v2952_v41 = vsel %vm2920_vm1, 1, %v12625_v24  ;;  %v5695_v28 = vpop.eup %5694  ;;  %v755_v38 = vpop.f32.mrf.mxu0 }
 0x1b5   : > { %12916 = vst [vmem:[#allocation74_spill] sm:$0xff] %v8741_v15  ;;  %v8746_v18 = vmax.f32 %v2507_v31, %v2796_v63  ;;  %2997 = vperm.xlu1 %5544, %v2952_v41   ;;  %v2951_v30 = vsel %vm2919_vm2, 1, %v12625_v24  ;;  %v2212_v15 = vrot.slane %v8181_v35, 1  ;;  %v2534_v16 = vrot.slane %v8101_v49, 7 }
 0x1b6   : > { %vm12286_vm14 = vcmp.eq.s32.totalorder %v8722_v55, 1  ;;  %v1286_v31 = vsel %vm8727_vm4, %v5693_v5, %v1282_v52  ;;  %v1294_v63 = vmul.f32 %v5695_v28, %v8678_v44  ;;  %vm1299_vm15 = vweird.f32 %v5695_v28  ;;  %2994 = vperm.xlu0 %5543, %v2951_v30   ;;  %v8891_v55 = vpop.permute.xlu0 %2685 }
 0x1b7   : > { %12918 = vst [vmem:[#allocation76_spill] sm:$0xff] %v8746_v18  ;;  %vm12291_vm12 = vcmp.eq.s32.totalorder %v8744_v47, 1  ;;  %v1291_v41 = vsel %vm8685_vm3, %v1290_v10, %v1286_v31  ;;  %v12922_v45 = vrot.slane %v8287_v23, 1  ;;  %v12923_v8 = vrot.slane %v8181_v35, 7  ;;  %vm1300_vm1 = vmor %vm1298_vm9, %vm1299_vm15 }
 0x1b8   : > { %v12924_v9 = vrot.slane %v8101_v49, 1  ;;  %v1584_v52 = vmul.f32 %v1291_v41, %v8496_v21  ;;  %v1295_v18 = vsub.f32 1.0, %v1294_v63  ;;  %vm2929_vm3 = vcmp.lt.s32.totalorder %v8845_v60, 14  ;;  %v8886_v14 = vpop.permute.xlu1 %2688  ;;  %12941 = vst [vmem:[#allocation83_spill] sm:$0xff] %v8891_v55 }
 0x1b9   : > { %v2263_v12 = vsel %vm2239_vm7, %v2212_v15, %v12922_v45  ;;  %v2585_v5 = vsel %vm2560_vm11, %v2534_v16, %v12923_v8  ;;  %v12925_v8 = vrot.slane %v8055_v53, 7  ;;  %12940 = vst [vmem:[#allocation82_spill] sm:$0xff] %v8886_v14  ;;  %v2537_v2 = vrot.slane %v8395_v37, 7 }
 0x1ba   : > { %v2264_v30 = vsel %vm2239_vm7, %v12924_v9, %v2212_v15  ;;  %v2471_v10 = vsel %vm12287_vm5, %v2263_v12, -3.4028235e+38  ;;  %v2792_v19 = vsel %vm12286_vm14, %v2585_v5, -3.4028235e+38  ;;  %v8790_v15 = vadd.f32 %v8081_v62, %v755_v38  ;;  %v5697_v21 = vpop.eup %5696 }
 0x1bb   : > { %v2503_v31 = vmax.f32 %v8181_v35, %v2471_v10  ;;  %v2470_v45 = vsel %vm12292_vm0, %v2264_v30, -3.4028235e+38  ;;  %v2586_v6 = vsel %vm2560_vm11, %v12925_v8, %v2534_v16  ;;  %v8794_v63 = vsel %vm1985_vm13, %v1584_v52, -3.4028235e+38 }
 0x1bc   : > { %v1296_v41 = vmul.f32 %v5695_v28, %v1295_v18  ;;  %v2502_v12 = vmax.f32 %v8101_v49, %v2470_v45  ;;  %v2791_v5 = vsel %vm12291_vm12, %v2586_v6, -3.4028235e+38  ;;  %v12926_v16 = vmax.f32 %v8378_v27, %v8490_v59  ;;  %5438 = vmatmul.msk.f32.gmra.mxu2 %vm3493_vm10, %v8794_v63 }
 0x1bd   : > { %v12927_v18 = vmax.f32 %v8387_v61, %v8490_v59  ;;  %v8820_v27 = vadd.f32 1.0, %v5697_v21  ;;  %v8822_v52 = vmax.f32 %v2503_v31, %v2792_v19  ;;  %v5394_v45 = vmul.f32 -1.442695, %v8790_v15  ;;  %v8828_v61 = vpop.permute.xlu2 %2709  ;;  %v12932_v21 = vld [vmem:[#allocation35_spill] sm:$0xff] }
 0x1be   : > { %v8805_v38 = vmax.f32 %v12926_v16, %v8794_v63  ;;  %v1297_v6 = vadd.f32 %v5695_v28, %v1296_v41  ;;  %v8824_v10 = vmax.f32 %v2502_v12, %v2791_v5  ;;  %12930 = vst [vmem:[#allocation80_spill] sm:$0xff] %v8828_v61  ;;  %v12931_v41 = vld [vmem:[#allocation23_spill] sm:$0xff]  ;;  %vm12321_vm4 = vcmp.eq.s32.totalorder %v12932_v21, 1 }
 0x1bf   : > { %v8813_v30 = vmax.f32 %v12927_v18, %v8794_v63  ;;  %12928 = vst [vmem:[#allocation78_spill] sm:$0xff] %v8822_v52  ;;  %5698 = vrcp.f32 %v8820_v27  ;;  %v1317_v16 = vand.u32 2147483647, %v8820_v27  ;;  %vm1986_vm9 = vcmp.eq.s32.totalorder %v12931_v41, 1  ;;  %v12933_v31 = vld [vmem:[#allocation43_spill] sm:$0xff] }
 0x1c0   : > { %12929 = vst [vmem:[#allocation79_spill] sm:$0xff] %v8824_v10  ;;  %v1301_v8 = vsel %vm1300_vm1, %v5695_v28, %v1297_v6  ;;  %5700 = vpow2.f32 %v5394_v45  ;;  %vm2441_vm15 = vcmp.eq.s32.totalorder %v12933_v31, 1  ;;  %vm1313_vm13 = vweird.f32 %v8820_v27 }
 0x1c1   : > { %v1306_v44 = vsel %vm8748_vm6, %v1305_v11, %v1301_v8  ;;  %v1319_v28 = vand.u32 2147483648, %v8820_v27  ;;  %12934 = vst [vmem:[#allocation23_spill] sm:$0xff] %v8845_v60  ;;  %v8857_v11 = vld [vmem:[%s12124_s1 + $0xa0] sm:$0xff]  ;;  %v12936_v6 = vmax.f32 %v8430_v4, %v8648_v39  ;;  %vm8876_vm1 = vcmp.eq.f32.partialorder %v1317_v16, 8.507059e+37 }
 0x1c2   : > { %v1585_v19 = vmul.f32 %v1306_v44, %v8568_v54  ;;  %v8851_v54 = vld [vmem:[%s12124_s1 + $0x38] sm:$0xff]  ;;  %vm2934_vm6 = vcmp.lt.s32.totalorder %v8857_v11, 14  ;;  %v12937_v44 = vmax.f32 %v8446_v7, %v8648_v39  ;;  %v2555_v7 = vrot.slane %v7636_v17, 7 }
 0x1c3   : > { %12935 = vst [vmem:[#allocation81_spill] sm:$0xff] %v8851_v54  ;;  %vm2921_vm2 = vcmp.lt.s32.totalorder %v8851_v54, 14  ;;  %v2966_v18 = vsel %vm2934_vm6, 1, %v12625_v24  ;;  %v1320_v9 = vor.u32 1.1754944e-38, %v1319_v28  ;;  %v2215_v12 = vrot.slane %v8454_v29, 1  ;;  %v758_v54 = vpop.f32.mrf.mxu0 }
 0x1c4   : > { %v8840_v5 = vsel %vm1986_vm9, %v1585_v19, -3.4028235e+38  ;;  %vm2881_vm9 = vcmp.lt.s32.totalorder %v7582_v48, 6  ;;  %v2953_v8 = vsel %vm2921_vm2, 1, %v12625_v24  ;;  %3039 = vperm.xlu0 %5543, %v2966_v18   ;;  %v2850_v61 = vrot.slane %v7576_v51, 2 }
 0x1c5   : > { %v8866_v45 = vmax.f32 %v12936_v6, %v8840_v5  ;;  %v8874_v41 = vmax.f32 %v12937_v44, %v8840_v5  ;;  %5439 = vmatmul.msk.f32.gmra.mxu2 %vm3493_vm10, %v8840_v5  ;;  %v5699_v4 = vpop.eup %5698  ;;  %v2961_v6 = vsel %vm2929_vm3, 1, %v12625_v24  ;;  %3000 = vperm.xlu1 %5544, %v2953_v8   ;;  %v12942_v10 = vrot.slane %v8506_v50, 1  ;;  %v8909_v18 = vpop.permute.xlu2 %2718 }
 0x1c6   : > { %v5701_v16 = vpop.eup %5700  ;;  %v1309_v44 = vmul.f32 %v5699_v4, %v8820_v27  ;;  %3024 = vperm.xlu2 %5545, %v2961_v6   ;;  %vm1314_vm3 = vweird.f32 %v5699_v4  ;;  %vm12316_vm2 = vcmp.eq.s32.totalorder %v8886_v14, 1  ;;  %v12943_v8 = vrot.slane %v8395_v37, 1 }
 0x1c7   : > { %v8894_v47 = vadd.f32 1.0, %v5701_v16  ;;  %v2260_v28 = vsel %vm2239_vm7, %v2215_v12, %v12942_v10  ;;  %v12944_v16 = vld [vmem:[#allocation12_spill] sm:$0xff]  ;;  %vm12317_vm14 = vcmp.eq.s32.totalorder %v8891_v55, 1  ;;  %vm3202_vm12 = vcmp.lt.s32.totalorder %v7582_v48, 2  ;;  %vm8925_vm0 = vmor %vm1313_vm13, %vm1314_vm3 }
 0x1c8   : > { %v1310_v52 = vsub.f32 1.0, %v1309_v44  ;;  %v2261_v6 = vsel %vm2239_vm7, %v12943_v8, %v2215_v12  ;;  %vm1987_vm6 = vcmp.eq.s32.totalorder %v12944_v16, 1  ;;  %12945 = vst [vmem:[#allocation12_spill] sm:$0xff] %v8909_v18  ;;  %v2851_v44 = vrot.slane %v7806_v34, 2 }
 0x1c9   : > { %5702 = vrcp.f32 %v8894_v47  ;;  %vm1328_vm5 = vweird.f32 %v8894_v47  ;;  %v2474_v49 = vsel %vm12321_vm4, %v2260_v28, -3.4028235e+38  ;;  %v12946_v12 = vrot.slane %v8454_v29, 7 }
 0x1ca   : > { %v1311_v10 = vmul.f32 %v5699_v4, %v1310_v52  ;;  %v1334_v52 = vand.u32 2147483648, %v8894_v47  ;;  %v2506_v42 = vmax.f32 %v8454_v29, %v2474_v49  ;;  %v1332_v18 = vand.u32 2147483647, %v8894_v47 }
 0x1cb   : > { %v2582_v8 = vsel %vm2560_vm11, %v2537_v2, %v12946_v12  ;;  %v2473_v12 = vsel %vm2441_vm15, %v2261_v6, -3.4028235e+38  ;;  %v12949_v27 = vrot.slane %v8287_v23, 7  ;;  %v12950_v6 = vrot.slane %v7613_v36, 7 }
 0x1cc   : > { %v2795_v28 = vsel %vm12316_vm2, %v2582_v8, -3.4028235e+38  ;;  %v1312_v21 = vadd.f32 %v5699_v4, %v1311_v10  ;;  %v2505_v35 = vmax.f32 %v8395_v37, %v2473_v12  ;;  %v8946_v8 = vadd.f32 %v8081_v62, %v758_v54 }
 0x1cd   : > { %v2583_v60 = vsel %vm2560_vm11, %v12949_v27, %v2537_v2  ;;  %v8941_v17 = vmax.f32 %v2506_v42, %v2795_v28  ;;  %v8952_v10 = vsel %vm2560_vm11, %v2555_v7, %v12950_v6  ;;  %v12951_v42 = vrot.slane %v8208_v33, 7  ;;  %v8996_v6 = vld [vmem:[%s12124_s1 + $0x88] sm:$0xff] }
 0x1ce   : > { %v2794_v49 = vsel %vm12317_vm14, %v2583_v60, -3.4028235e+38  ;;  %v1316_v12 = vsel %vm8925_vm0, %v5699_v4, %v1312_v21  ;;  %v8966_v62 = vsel %vm2881_vm9, %v2850_v61, %v2851_v44  ;;  %v1335_v28 = vor.u32 1.1754944e-38, %v1334_v52 }
 0x1cf   : > { %v8956_v14 = vmax.f32 %v2505_v35, %v2794_v49  ;;  %v8962_v2 = vsel %vm2560_vm11, %v12951_v42, %v2555_v7  ;;  %v5703_v60 = vpop.eup %5702  ;;  %v1321_v54 = vsel %vm8876_vm1, %v1320_v9, %v1316_v12  ;;  %v5395_v34 = vmul.f32 -1.442695, %v8946_v8 }
 0x1d0   : > { %v12952_v35 = vrot.slane %v7401_v1, 2  ;;  %v1586_v4 = vmul.f32 %v1321_v54, %v8706_v25  ;;  %v1324_v7 = vmul.f32 %v5703_v60, %v8894_v47  ;;  %vm1329_vm0 = vweird.f32 %v5703_v60  ;;  %v8990_v25 = vld [vmem:[%s12124_s1 + $0xb8] sm:$0xff] }
 0x1d1   : > { %v2853_v27 = vrot.slane %v7991_v40, 2  ;;  %5704 = vpow2.f32 %v5395_v34  ;;  %v2852_v19 = vrot.slane %v7901_v56, 2  ;;  %v12308_v9 = vrot.slane %v7401_v1, 6 }
 0x1d2   : > { %v8975_v21 = vsel %vm2881_vm9, %v12952_v35, %v2850_v61  ;;  %v12307_v52 = vrot.slane %v7576_v51, 6  ;;  %v8985_v49 = vsel %vm1987_vm6, %v1586_v4, -3.4028235e+38  ;;  %v1325_v61 = vsub.f32 1.0, %v1324_v7  ;;  %v9015_v4 = vpop.permute.xlu2 %2727  ;;  %vm1330_vm6 = vmor %vm1328_vm5, %vm1329_vm0  ;;  %v12961_v51 = vld [vmem:[#allocation6_spill] sm:$0xff] }
 0x1d3   : > { %12953 = vst [vmem:[#allocation84_spill] sm:$0xff] %v8975_v21  ;;  %vm2937_vm13 = vcmp.lt.s32.totalorder %v8990_v25, 14  ;;  %vm2931_vm1 = vcmp.lt.s32.totalorder %v8996_v6, 14  ;;  %v12954_v12 = vmax.f32 %v8490_v59, %v8794_v63  ;;  %v12955_v34 = vmax.f32 %v8501_v20, %v8794_v63  ;;  %5440 = vmatmul.msk.f32.gmra.mxu2 %vm3493_vm10, %v8985_v49 }
 0x1d4   : > { %12956 = vst [vmem:[#allocation85_spill] sm:$0xff] %v9015_v4  ;;  %v1326_v7 = vmul.f32 %v5703_v60, %v1325_v61  ;;  %v2969_v16 = vsel %vm2937_vm13, 1, %v12625_v24  ;;  %v2963_v59 = vsel %vm2931_vm1, 1, %v12625_v24  ;;  %v9033_v61 = vsel %vm2881_vm9, %v2852_v19, %v2853_v27 }
 0x1d5   : > { %v9005_v42 = vmax.f32 %v12954_v12, %v8985_v49  ;;  %v9013_v35 = vmax.f32 %v12955_v34, %v8985_v49  ;;  %v9024_v12 = vld [vmem:[%s12124_s1 + $0x80] sm:$0xff]  ;;  %3048 = vperm.xlu2 %5545, %v2969_v16   ;;  %3030 = vperm.xlu1 %5544, %v2963_v59   ;;  %12957 = vst [vmem:[#allocation86_spill] sm:$0xff] %v9033_v61  ;;  %vm1333_vm5 = vcmp.eq.f32.partialorder %v1332_v18, 8.507059e+37  ;;  %v12309_v54 = vrot.slane %v8055_v53, 2  ;;  %v12962_v18 = vld [vmem:[#allocation45_spill] sm:$0xff]  ;;  %v12972_v53 = vld [vmem:[#allocation48_spill] sm:$0xff] }
 0x1d6   : > { %vm2930_vm3 = vcmp.lt.s32.totalorder %v9024_v12, 14  ;;  %v9037_v34 = vsel %vm2881_vm9, %v2851_v44, %v2852_v19  ;;  %v9045_v47 = vsel %vm3202_vm12, %v12308_v9, %v12307_v52  ;;  %v1327_v16 = vadd.f32 %v5703_v60, %v1326_v7  ;;  %v12960_v19 = vld [vmem:[#allocation27_spill] sm:$0xff]  ;;  %v9064_v52 = vpop.permute.xlu0 %2694 }
 0x1d7   : > { %v2962_v20 = vsel %vm2930_vm3, 1, %v12625_v24  ;;  %12958 = vst [vmem:[#allocation87_spill] sm:$0xff] %v9037_v34  ;;  %v5705_v59 = vpop.eup %5704  ;;  %v9052_v44 = vsel %vm2881_vm9, %v2853_v27, %v12309_v54  ;;  %vm1988_vm0 = vcmp.eq.s32.totalorder %v12960_v19, 1  ;;  %vm12319_vm13 = vcmp.eq.s32.totalorder %v12961_v51, 1 }
 0x1d8   : > { %12959 = vst [vmem:[#allocation88_spill] sm:$0xff] %v9045_v47  ;;  %3027 = vperm.xlu0 %5543, %v2962_v20   ;;  %v1331_v55 = vsel %vm1330_vm6, %v5703_v60, %v1327_v16  ;;  %v948_v31 = vadd.f32 1.0, %v5705_v59  ;;  %vm12320_vm1 = vcmp.eq.s32.totalorder %v12962_v18, 1  ;;  %v9060_v59 = vpop.permute.xlu1 %2697  ;;  %v2218_v27 = vrot.slane %v8813_v30, 1 }
 0x1d9   : > { %v1336_v61 = vsel %vm1333_vm5, %v1335_v28, %v1331_v55  ;;  %12963 = vst [vmem:[#allocation27_spill] sm:$0xff] %v9060_v59  ;;  %v12965_v9 = vmax.f32 %v8648_v39, %v8840_v5  ;;  %v12967_v47 = vrot.slane %v8874_v41, 1  ;;  %v2540_v39 = vrot.slane %v8674_v22, 7 }
 0x1da   : > { %v1587_v7 = vmul.f32 %v1336_v61, %v8790_v15  ;;  %5706 = vrcp.f32 %v948_v31  ;;  %v1347_v60 = vand.u32 2147483647, %v948_v31  ;;  %v1349_v16 = vand.u32 2147483648, %v948_v31  ;;  %12964 = vst [vmem:[#allocation89_spill] sm:$0xff] %v9064_v52  ;;  %v9072_v55 = vpop.permute.xlu2 %2736 }
 0x1db   : > { %vm1343_vm3 = vweird.f32 %v948_v31  ;;  %v2257_v34 = vsel %vm2239_vm7, %v2218_v27, %v12967_v47  ;;  %vm12318_vm5 = vcmp.eq.s32.totalorder %v9060_v59, 1  ;;  %vm12381_vm2 = vcmp.eq.s32.totalorder %v12972_v53, 1 }
 0x1dc   : > { %v2028_v28 = vsel %vm1988_vm0, %v1587_v7, -3.4028235e+38  ;;  %v12966_v7 = vmax.f32 %v8666_v32, %v8840_v5  ;;  %vm9088_vm6 = vcmp.eq.f32.partialorder %v1347_v60, 8.507059e+37  ;;  %v1350_v32 = vor.u32 1.1754944e-38, %v1349_v16 }
 0x1dd   : > { %v2099_v15 = vmax.f32 %v8840_v5, %v2028_v28  ;;  %v2101_v61 = vmax.f32 %v2028_v28, %v7721_v26  ;;  %v2129_v54 = vmax.f32 %v12965_v9, %v2028_v28  ;;  %v2159_v20 = vmax.f32 %v8866_v45, %v2028_v28  ;;  %5441 = vmatmul.msk.f32.gmra.mxu2 %vm3493_vm10, %v2028_v28 }
 0x1de   : > { %v9078_v19 = vmax.f32 %v12966_v7, %v2028_v28  ;;  %v2477_v28 = vsel %vm12319_vm13, %v2257_v34, -3.4028235e+38  ;;  %v12970_v7 = vrot.slane %v8813_v30, 7  ;;  %vm3236_vm13 = vcmp.ge.s32.totalorder %v8515_v13, 2 }
 0x1df   : > { %v2131_v9 = vmax.f32 %v2099_v15, %v7721_v26  ;;  %v2133_v45 = vmax.f32 %v2101_v61, %v7156_v0  ;;  %v2161_v1 = vmax.f32 %v2129_v54, %v7721_v26  ;;  %v12971_v15 = vrot.slane %v8674_v22, 1 }
 0x1e0   : > { %v5707_v5 = vpop.eup %5706  ;;  %v2579_v47 = vsel %vm2560_vm11, %v2540_v39, %v12970_v7  ;;  %v9106_v61 = vmax.f32 %v2159_v20, %v7721_v26  ;;  %v2509_v51 = vmax.f32 %v8813_v30, %v2477_v28  ;;  %vm3235_vm4 = vcmp.ge.s32.totalorder %v8523_v3, 2 }
 0x1e1   : > { %v2258_v54 = vsel %vm2239_vm7, %v12971_v15, %v2218_v27  ;;  %v2163_v60 = vmax.f32 %v2131_v9, %v7156_v0  ;;  %v2165_v16 = vmax.f32 %v2133_v45, %v7183_v57  ;;  %v1339_v34 = vmul.f32 %v5707_v5, %v948_v31  ;;  %v12975_v15 = vld [vmem:[#allocation26_spill] sm:$0xff] }
 0x1e2   : > { %vm1344_vm0 = vweird.f32 %v5707_v5  ;;  %v2798_v7 = vsel %vm12318_vm5, %v2579_v47, -3.4028235e+38  ;;  %v2476_v56 = vsel %vm12320_vm1, %v2258_v54, -3.4028235e+38  ;;  %vm1989_vm14 = vcmp.eq.s32.totalorder %v12975_v15, 1  ;;  %v12993_v15 = vld [vmem:[#allocation4_spill] sm:$0xff] }
 0x1e3   : > { %v9115_v27 = vmax.f32 %v2165_v16, %v7192_v46  ;;  %v1340_v9 = vsub.f32 1.0, %v1339_v34  ;;  %v9118_v45 = vmax.f32 %v2163_v60, %v7183_v57  ;;  %v2508_v20 = vmax.f32 %v8674_v22, %v2476_v56  ;;  %v9130_v46 = vpop.permute.xlu1 %2706  ;;  %v9132_v16 = vpop.permute.xlu0 %2703  ;;  %vm9144_vm1 = vmor %vm1343_vm3, %vm1344_vm0 }
 0x1e4   : > { %v9122_v28 = vmax.f32 %v2509_v51, %v2798_v7  ;;  %v12976_v47 = vrot.slane %v8506_v50, 7  ;;  %vm12322_vm5 = vcmp.eq.s32.totalorder %v9064_v52, 1  ;;  %12977 = vst [vmem:[#allocation26_spill] sm:$0xff] %v9130_v46  ;;  %v9135_v57 = vmax.f32 %v2161_v1, %v7156_v0  ;;  %v9140_v34 = vpop.permute.xlu2 %3003  ;;  %v9155_v0 = vld [vmem:[%s12124_s1 + $0xc8] sm:$0xff]  ;;  %v12991_v51 = vld [vmem:[#allocation28_spill] sm:$0xff] }
 0x1e5   : > { %12973 = vst [vmem:[#allocation90_spill] sm:$0xff] %v9115_v27  ;;  %v1341_v56 = vmul.f32 %v5707_v5, %v1340_v9  ;;  %v3268_v7 = vsel %vm3236_vm13, 1, %v12625_v24  ;;  %v3267_v9 = vsel %vm3235_vm4, 1, %v12625_v24  ;;  %v2543_v3 = vrot.slane %v9013_v35, 7 }
 0x1e6   : > { %12974 = vst [vmem:[#allocation91_spill] sm:$0xff] %v9118_v45  ;;  %v2580_v54 = vsel %vm2560_vm11, %v12976_v47, %v2540_v39  ;;  %3303 = vperm.xlu2 %5545, %v3268_v7   ;;  %3300 = vperm.xlu1 %5544, %v3267_v9   ;;  %v2221_v47 = vrot.slane %v9078_v19, 1  ;;  %vm12336_vm13 = vcmp.eq.s32.totalorder %v9130_v46, 1  ;;  %vm12397_vm3 = vcmp.eq.s32.totalorder %v9132_v16, 1 }
 0x1e7   : > { %12978 = vst [vmem:[#allocation92_spill] sm:$0xff] %v9132_v16  ;;  %v2797_v60 = vsel %vm12322_vm5, %v2580_v54, -3.4028235e+38  ;;  %vm2939_vm5 = vcmp.lt.s32.totalorder %v9155_v0, 14  ;;  %v1342_v1 = vadd.f32 %v5707_v5, %v1341_v56  ;;  %v12324_v54 = vrot.slane %v9078_v19, 7 }
 0x1e8   : > { %12979 = vst [vmem:[#allocation93_spill] sm:$0xff] %v9135_v57  ;;  %v9148_v13 = vmax.f32 %v2508_v20, %v2797_v60  ;;  %v2971_v20 = vsel %vm2939_vm5, 1, %v12625_v24  ;;  %v12323_v60 = vrot.slane %v9013_v35, 1  ;;  %vm3239_vm4 = vcmp.ge.s32.totalorder %v8577_v58, 2 }
 0x1e9   : > { %12980 = vst [vmem:[#allocation94_spill] sm:$0xff] %v9140_v34  ;;  %3054 = vperm.xlu0 %5543, %v2971_v20   ;;  %v1346_v56 = vsel %vm9144_vm1, %v5707_v5, %v1342_v1  ;;  %v2576_v9 = vsel %vm2560_vm11, %v2543_v3, %v12324_v54  ;;  %v12984_v20 = vrot.slane %v8874_v41, 7  ;;  %v3271_v5 = vsel %vm3239_vm4, 1, %v12625_v24  ;;  %v12985_v1 = vld [vmem:[#allocation39_spill] sm:$0xff] }
 0x1ea   : > { %12983 = vst [vmem:[#allocation95_spill] sm:$0xff] %v9148_v13  ;;  %v1351_v7 = vsel %vm9088_vm6, %v1350_v32, %v1346_v56  ;;  %vm12370_vm1 = vcmp.eq.s32.totalorder %v12985_v1, 1  ;;  %v9185_v58 = vsel %vm12336_vm13, %v2576_v9, -3.4028235e+38  ;;  %v2255_v21 = vsel %vm2239_vm7, %v12323_v60, %v2221_v47  ;;  %v12986_v56 = vld [vmem:[#allocation67_spill] sm:$0xff] }
 0x1eb   : > { %v2577_v39 = vsel %vm2560_vm11, %v12984_v20, %v2543_v3  ;;  %v1588_v31 = vmul.f32 %v1351_v7, %v8946_v8  ;;  %v2479_v3 = vsel %vm12381_vm2, %v2255_v21, -3.4028235e+38  ;;  %vm3238_vm6 = vcmp.ge.s32.totalorder %v8603_v43, 2  ;;  %v9198_v7 = vpop.permute.xlu1 %2715  ;;  %v9200_v9 = vpop.permute.xlu0 %2712  ;;  %v12989_v20 = vld [vmem:[#allocation3_spill] sm:$0xff] }
 0x1ec   : > { %v2800_v32 = vsel %vm12397_vm3, %v2577_v39, -3.4028235e+38  ;;  %vm3237_vm5 = vcmp.ge.s32.totalorder %v12986_v56, 2  ;;  %12987 = vst [vmem:[#allocation67_spill] sm:$0xff] %v9198_v7  ;;  %vm12349_vm0 = vcmp.eq.s32.totalorder %v12989_v20, 1  ;;  %v2511_v39 = vmax.f32 %v9013_v35, %v2479_v3  ;;  %v9208_v43 = vpop.permute.xlu2 %3327 }
 0x1ed   : > { %12988 = vst [vmem:[#allocation96_spill] sm:$0xff] %v9200_v9  ;;  %v2029_v60 = vsel %vm1989_vm14, %v1588_v31, -3.4028235e+38  ;;  %v3270_v54 = vsel %vm3238_vm6, 1, %v12625_v24  ;;  %v3269_v21 = vsel %vm3237_vm5, 1, %v12625_v24  ;;  %v12992_v46 = vmax.f32 %v8794_v63, %v8985_v49  ;;  %v12996_v63 = vld [vmem:[#allocation60_spill] sm:$0xff] }
 0x1ee   : > { %12990 = vst [vmem:[#allocation97_spill] sm:$0xff] %v9208_v43  ;;  %v2100_v56 = vmax.f32 %v8985_v49, %v2029_v60  ;;  %v2102_v8 = vmax.f32 %v2029_v60, %v12991_v51  ;;  %v2160_v16 = vmax.f32 %v9005_v42, %v2029_v60  ;;  %5442 = vmatmul.msk.f32.gmra.mxu2 %vm3493_vm10, %v2029_v60  ;;  %vm12355_vm14 = vcmp.eq.s32.totalorder %v12993_v15, 1 }
 0x1ef   : > { %v2130_v53 = vmax.f32 %v12992_v46, %v2029_v60  ;;  %v12994_v31 = vmax.f32 %v8805_v38, %v8985_v49  ;;  %v9223_v59 = vmax.f32 %v2511_v39, %v2800_v32  ;;  %3312 = vperm.xlu2 %5545, %v3271_v5   ;;  %v12338_v52 = vrot.slane %v8395_v37, 2  ;;  %v12997_v46 = vld [vmem:[#allocation22_spill] sm:$0xff]  ;;  %3309 = vperm.xlu1 %5544, %v3270_v54  }
 0x1f0   : > { %vm12337_vm4 = vcmp.eq.s32.totalorder %v9140_v34, 1  ;;  %vm12391_vm6 = vcmp.eq.s32.totalorder %v12996_v63, 1  ;;  %v2132_v42 = vmax.f32 %v2100_v56, %v12991_v51  ;;  %v2134_v18 = vmax.f32 %v2102_v8, %v12997_v46  ;;  %v13000_v32 = vld [vmem:[#allocation30_spill] sm:$0xff]  ;;  %v13001_v56 = vld [vmem:[#allocation20_spill] sm:$0xff] }
 0x1f1   : > { %v9221_v3 = vmax.f32 %v12994_v31, %v2029_v60  ;;  %12995 = vst [vmem:[#allocation28_spill] sm:$0xff] %v9223_v59  ;;  %v2162_v40 = vmax.f32 %v2130_v53, %v12991_v51  ;;  %v9232_v13 = vmax.f32 %v2160_v16, %v12991_v51  ;;  %vm12350_vm5 = vcmp.eq.s32.totalorder %v9015_v4, 1  ;;  %3306 = vperm.xlu0 %5543, %v3269_v21  }
 0x1f2   : > { %vm2779_vm13 = vcmp.eq.s32.totalorder %v9072_v55, 1  ;;  %v12999_v49 = vrot.slane %v8287_v23, 2  ;;  %v12342_v53 = vrot.slane %v9135_v57, 1  ;;  %v2546_v16 = vrot.slane %v9106_v61, 7  ;;  %v13019_v55 = vld [vmem:[#allocation74_spill] sm:$0xff] }
 0x1f3   : > { %12998 = vst [vmem:[#allocation22_spill] sm:$0xff] %v9232_v13  ;;  %v12339_v38 = vrot.slane %v9221_v3, 1  ;;  %v2164_v5 = vmax.f32 %v2132_v42, %v12997_v46  ;;  %v2166_v8 = vmax.f32 %v2134_v18, %v13000_v32  ;;  %v9248_v54 = vmax.f32 %v2162_v40, %v12997_v46  ;;  %v13002_v40 = vld [vmem:[#allocation33_spill] sm:$0xff] }
 0x1f4   : > { %v2904_v60 = vsel %vm2881_vm9, %v12999_v49, %v12338_v52  ;;  %v2224_v49 = vrot.slane %v9232_v13, 1  ;;  %v12343_v42 = vrot.slane %v9232_v13, 7  ;;  %v9271_v52 = vpop.permute.xlu1 %2724  ;;  %v13008_v1 = vrot.slane %v9106_v61, 1 }
 0x1f5   : > { %v9252_v39 = vsel %vm12337_vm4, %v2904_v60, -3.4028235e+38  ;;  %v2254_v21 = vsel %vm2239_vm7, %v2221_v47, %v12339_v38  ;;  %v9263_v18 = vmax.f32 %v2164_v5, %v13000_v32  ;;  %v9266_v46 = vmax.f32 %v2166_v8, %v13002_v40  ;;  %13004 = vst [vmem:[#allocation20_spill] sm:$0xff] %v9271_v52  ;;  %v9273_v47 = vpop.permute.xlu0 %2721 }
 0x1f6   : > { %v2480_v60 = vsel %vm12370_vm1, %v2254_v21, -3.4028235e+38  ;;  %vm12351_vm4 = vcmp.eq.s32.totalorder %v9198_v7, 1  ;;  %13005 = vst [vmem:[#allocation33_spill] sm:$0xff] %v9273_v47  ;;  %v2251_v5 = vsel %vm2239_vm7, %v2224_v49, %v12342_v53  ;;  %v2573_v32 = vsel %vm2560_vm11, %v2546_v16, %v12343_v42  ;;  %v9285_v21 = vpop.permute.xlu2 %3012  ;;  %5443 = vmatmul.msk.f32.gmra.mxu2 %vm3493_vm10, %v7721_v26 }
 0x1f7   : > { %13003 = vst [vmem:[#allocation30_spill] sm:$0xff] %v9266_v46  ;;  %v2512_v38 = vmax.f32 %v9078_v19, %v2480_v60  ;;  %v2228_v40 = vrot.slane %v9263_v18, 1  ;;  %v2483_v34 = vsel %vm12349_vm0, %v2251_v5, -3.4028235e+38  ;;  %v2804_v8 = vsel %vm12351_vm4, %v2573_v32, -3.4028235e+38 }
 0x1f8   : > { %13006 = vst [vmem:[#allocation98_spill] sm:$0xff] %v9285_v21  ;;  %v2515_v42 = vmax.f32 %v9232_v13, %v2483_v34  ;;  %v2252_v31 = vsel %vm2239_vm7, %v13008_v1, %v2224_v49  ;;  %v5410_v5 = vld [vmem:[%s12130_s7 + $0x4] sm:$0xf]  ;;  %v13009_v60 = vrot.slane %v9115_v27, 1  ;;  %v13011_v34 = vrot.slane %v9118_v45, 7 }
 0x1f9   : > { %v9295_v53 = vmax.f32 %v2512_v38, %v9185_v58  ;;  %v13010_v58 = vrot.slane %v9263_v18, 7  ;;  %v13012_v32 = vrot.slane %v8208_v33, 7  ;;  %v13013_v1 = vrot.slane %v9266_v46, 7  ;;  %5411 = vmatpush.msk.msra.mxu1 %vm3542_vm8, %v5410_v5  ;;  %5501 = vmatpush.msk.msrb.mxu3 %vm3542_vm8, %v5410_v5 }
 0x1fa   : > { %v2247_v26 = vsel %vm2239_vm7, %v2228_v40, %v13009_v60  ;;  %v2482_v20 = vsel %vm12355_vm14, %v2252_v31, -3.4028235e+38  ;;  %v9333_v7 = vmax.f32 %v2515_v42, %v2804_v8  ;;  %v12352_v63 = vrot.slane %v9221_v3, 7 }
 0x1fb   : > { %13007 = vst [vmem:[#allocation99_spill] sm:$0xff] %v9295_v53  ;;  %v2569_v38 = vsel %vm2560_vm11, %v13011_v34, %v13010_v58  ;;  %v2566_v49 = vsel %vm2560_vm11, %v13013_v1, %v13012_v32  ;;  %v2487_v60 = vsel %vm12391_vm6, %v2247_v26, -3.4028235e+38  ;;  %v13014_v1 = vld [vmem:[#allocation21_spill] sm:$0xff]  ;;  %v2514_v5 = vmax.f32 %v9106_v61, %v2482_v20  ;;  %v13017_v26 = vld [vmem:[#allocation71_spill] sm:$0xff] }
 0x1fc   : > { %v2808_v58 = vsel %vm12350_vm5, %v2569_v38, -3.4028235e+38  ;;  %v2811_v34 = vsel %vm2779_vm13, %v2566_v49, -3.4028235e+38  ;;  %v2519_v32 = vmax.f32 %v9263_v18, %v2487_v60  ;;  %v13015_v31 = vmax.f32 %v8208_v33, %v13014_v1  ;;  %v13018_v38 = vld [vmem:[#allocation73_spill] sm:$0xff]  ;;  %v9355_v60 = vpop.permute.xlu1 %2733 }
 0x1fd   : > { %vm12354_vm0 = vcmp.eq.s32.totalorder %v9200_v9, 1  ;;  %vm3248_vm5 = vcmp.ge.s32.totalorder %v13017_v26, 2  ;;  %vm3241_vm4 = vcmp.ge.s32.totalorder %v13018_v38, 2  ;;  %vm3240_vm13 = vcmp.ge.s32.totalorder %v13019_v55, 2  ;;  %v13022_v26 = vld [vmem:[#allocation44_spill] sm:$0xff] }
 0x1fe   : > { %v9339_v15 = vmax.f32 %v13015_v31, %v2811_v34  ;;  %v9347_v42 = vmax.f32 %v2519_v32, %v2808_v58  ;;  %v2574_v8 = vsel %vm2560_vm11, %v12352_v63, %v2546_v16  ;;  %v3280_v49 = vsel %vm3248_vm5, 1, %v12625_v24  ;;  %v9357_v34 = vpop.permute.xlu0 %2730  ;;  %v9364_v16 = vpop.permute.xlu2 %3354  ;;  %5444 = vmatmul.msk.f32.gmra.mxu2 %vm3493_vm10, %v12991_v51 }
 0x1ff   : > { %v3273_v20 = vsel %vm3241_vm4, 1, %v12625_v24  ;;  %v2803_v1 = vsel %vm12354_vm0, %v2574_v8, -3.4028235e+38  ;;  %3339 = vperm.xlu2 %5545, %v3280_v49   ;;  %v3272_v58 = vsel %vm3240_vm13, 1, %v12625_v24  ;;  %v12357_v32 = vrot.slane %v8287_v23, 6  ;;  %13021 = vst [vmem:[#allocation73_spill] sm:$0xff] %v9364_v16 }
 0x200   : > { %13016 = vst [vmem:[#allocation21_spill] sm:$0xff] %v9339_v15  ;;  %3318 = vperm.xlu1 %5544, %v3273_v20   ;;  %v12356_v31 = vrot.slane %v8395_v37, 6  ;;  %vm12362_vm5 = vcmp.eq.s32.totalorder %v13022_v26, 1  ;;  %v9367_v38 = vmax.f32 %v2514_v5, %v2803_v1  ;;  %3315 = vperm.xlu0 %5543, %v3272_v58   ;;  %v2227_v55 = vrot.slane %v9118_v45, 1  ;;  %v13023_v8 = vld [vmem:[#allocation16_spill] sm:$0xff]  ;;  %v13024_v49 = vld [vmem:[#allocation54_spill] sm:$0xff] }
 0x201   : > { %13020 = vst [vmem:[#allocation71_spill] sm:$0xff] %v9347_v42  ;;  %v2549_v63 = vrot.slane %v9248_v54, 7  ;;  %vm2457_vm4 = vcmp.eq.s32.totalorder %v13023_v8, 1  ;;  %vm12363_vm13 = vcmp.eq.s32.totalorder %v13024_v49, 1  ;;  %v12361_v20 = vrot.slane %v9248_v54, 1 }
 0x202   : > { %v9381_v5 = vsel %vm3202_vm12, %v12357_v32, %v12356_v31  ;;  %v12364_v1 = vrot.slane %v9135_v57, 7  ;;  %v2248_v58 = vsel %vm2239_vm7, %v2227_v55, %v2228_v40  ;;  %v13025_v51 = vrot.slane %v9118_v45, 7 }
 0x203   : > { %vm12360_vm0 = vcmp.eq.s32.totalorder %v9271_v52, 1  ;;  %vm12369_vm14 = vcmp.eq.s32.totalorder %v9273_v47, 1  ;;  %v2486_v31 = vsel %vm12362_vm5, %v2248_v58, -3.4028235e+38  ;;  %v2249_v40 = vsel %vm2239_vm7, %v12361_v20, %v2227_v55 }
 0x204   : > { %v2570_v4 = vsel %vm2560_vm11, %v2549_v63, %v13025_v51  ;;  %v2571_v51 = vsel %vm2560_vm11, %v12364_v1, %v2549_v63  ;;  %v2518_v9 = vmax.f32 %v9118_v45, %v2486_v31  ;;  %v2485_v15 = vsel %vm12363_vm13, %v2249_v40, -3.4028235e+38  ;;  %v9421_v63 = vld [vmem:[%s12124_s1 + $0xe8] sm:$0xff] }
 0x205   : > { %v2807_v32 = vsel %vm12360_vm0, %v2570_v4, -3.4028235e+38  ;;  %v2806_v58 = vsel %vm12369_vm14, %v2571_v51, -3.4028235e+38  ;;  %v9413_v4 = vld [vmem:[%s12124_s1 + $0x70] sm:$0xff]  ;;  %v2517_v55 = vmax.f32 %v9248_v54, %v2485_v15  ;;  %vm2622_vm5 = vcmp.ge.s32.totalorder %v9421_v63, 1  ;;  %v2743_v15 = vpop.permute.xlu1 %2742 }
 0x206   : > { %vm2928_vm0 = vcmp.lt.s32.totalorder %v9413_v4, 14  ;;  %vm3255_vm13 = vcmp.ge.s32.totalorder %v8857_v11, 2  ;;  %v9425_v31 = vmax.f32 %v2518_v9, %v2807_v32  ;;  %v2654_v40 = vsel %vm2622_vm5, 1, %v12625_v24  ;;  %v2740_v52 = vpop.permute.xlu0 %2739  ;;  %v9435_v9 = vpop.permute.xlu2 %3336  ;;  %v13029_v32 = vld [vmem:[#allocation58_spill] sm:$0xff] }
 0x207   : > { %v2960_v20 = vsel %vm2928_vm0, 1, %v12625_v24  ;;  %v3287_v51 = vsel %vm3255_vm13, 1, %v12625_v24  ;;  %v12372_v1 = vrot.slane %v8506_v50, 2  ;;  %v9430_v26 = vmax.f32 %v2517_v55, %v2806_v58  ;;  %13028 = vst [vmem:[#allocation100_spill] sm:$0xff] %v9435_v9 }
 0x208   : > { %13026 = vst [vmem:[#allocation74_spill] sm:$0xff] %v9425_v31  ;;  %3021 = vperm.xlu2 %5545, %v2960_v20   ;;  %2745 = vperm.xlu1 %5544, %v2654_v40   ;;  %v12371_v49 = vrot.slane %v8674_v22, 2  ;;  %vm12411_vm0 = vcmp.eq.s32.totalorder %v9285_v21, 1  ;;  %v2230_v11 = vrot.slane %v9266_v46, 1  ;;  %vm2456_vm5 = vcmp.eq.s32.totalorder %v13029_v32, 1 }
 0x209   : > { %13027 = vst [vmem:[#allocation16_spill] sm:$0xff] %v9430_v26  ;;  %3360 = vperm.xlu0 %5543, %v3287_v51   ;;  %v2552_v47 = vrot.slane %v9115_v27, 7  ;;  %vm2778_vm13 = vcmp.eq.s32.totalorder %v9355_v60, 1  ;;  %vm2777_vm14 = vcmp.eq.s32.totalorder %v9357_v34, 1  ;;  %v13030_v58 = vrot.slane %v8208_v33, 1  ;;  %v9458_v60 = vld [vmem:[%s12124_s1 + $0xd8] sm:$0xff] }
 0x20a   : > { %v2901_v20 = vsel %vm2881_vm9, %v12372_v1, %v12371_v49  ;;  %v13031_v40 = vrot.slane %v9115_v27, 1  ;;  %vm2941_vm1 = vcmp.lt.s32.totalorder %v9458_v60, 14  ;;  %v13040_v34 = vld [vmem:[#allocation52_spill] sm:$0xff] }
 0x20b   : > { %v2245_v55 = vsel %vm2239_vm7, %v2230_v11, %v13030_v58  ;;  %v9463_v32 = vsel %vm12411_vm0, %v2901_v20, -3.4028235e+38  ;;  %v13032_v58 = vrot.slane %v9266_v46, 7  ;;  %v13034_v20 = vrot.slane %v9263_v18, 7 }
 0x20c   : > { %v2246_v51 = vsel %vm2239_vm7, %v13031_v40, %v2230_v11  ;;  %v2489_v49 = vsel %vm2457_vm4, %v2245_v55, -3.4028235e+38  ;;  %v13033_v40 = vld [vmem:[#allocation76_spill] sm:$0xff]  ;;  %v2973_v55 = vsel %vm2941_vm1, 1, %v12625_v24  ;;  %vm2781_vm1 = vcmp.eq.s32.totalorder %v2743_v15, 1  ;;  %v13043_v15 = vld [vmem:[#allocation37_spill] sm:$0xff] }
 0x20d   : > { %v2567_v1 = vsel %vm2560_vm11, %v2552_v47, %v13032_v58  ;;  %v2488_v11 = vsel %vm2456_vm5, %v2246_v51, -3.4028235e+38  ;;  %v2521_v31 = vmax.f32 %v9266_v46, %v2489_v49  ;;  %v2568_v8 = vsel %vm2560_vm11, %v13034_v20, %v2552_v47  ;;  %v9483_v58 = vld [vmem:[%s12124_s1 + $0xb0] sm:$0xff]  ;;  %v9489_v49 = vld [vmem:[%s12124_s1 + $0xa8] sm:$0xff]  ;;  %v9500_v26 = vpop.permute.xlu1 %3006 }
 0x20e   : > { %v2810_v45 = vsel %vm2778_vm13, %v2567_v1, -3.4028235e+38  ;;  %v2520_v53 = vmax.f32 %v9115_v27, %v2488_v11  ;;  %vm2936_vm4 = vcmp.lt.s32.totalorder %v9483_v58, 14  ;;  %vm2935_vm5 = vcmp.lt.s32.totalorder %v9489_v49, 14  ;;  %13037 = vst [vmem:[#allocation101_spill] sm:$0xff] %v9500_v26  ;;  %v9502_v21 = vpop.permute.xlu0 %3324 }
 0x20f   : > { %v9492_v1 = vmax.f32 %v2521_v31, %v2810_v45  ;;  %v2809_v47 = vsel %vm2777_vm14, %v2568_v8, -3.4028235e+38  ;;  %v2968_v51 = vsel %vm2936_vm4, 1, %v12625_v24  ;;  %v2967_v11 = vsel %vm2935_vm5, 1, %v12625_v24  ;;  %13038 = vst [vmem:[#allocation102_spill] sm:$0xff] %v9502_v21  ;;  %v9505_v45 = vpop.permute.xlu2 %2982 }
 0x210   : > { %v9498_v20 = vmax.f32 %v2520_v53, %v2809_v47  ;;  %3060 = vperm.xlu2 %5545, %v2973_v55   ;;  %3045 = vperm.xlu1 %5544, %v2968_v51   ;;  %v2813_v46 = vsel %vm2781_vm1, %v8952_v10, -3.4028235e+38  ;;  %vm2780_vm13 = vcmp.eq.s32.totalorder %v2740_v52, 1  ;;  %13039 = vst [vmem:[#allocation103_spill] sm:$0xff] %v9505_v45  ;;  %v13041_v31 = vmax.f32 %v7613_v36, %v13040_v34  ;;  %v13044_v47 = vld [vmem:[#allocation5_spill] sm:$0xff]  ;;  %v13047_v55 = vld [vmem:[#allocation23_spill] sm:$0xff] }
 0x211   : > { %13035 = vst [vmem:[#allocation58_spill] sm:$0xff] %v9492_v1  ;;  %3042 = vperm.xlu0 %5543, %v2967_v11   ;;  %v2812_v53 = vsel %vm2780_vm13, %v8962_v2, -3.4028235e+38  ;;  %vm3251_vm14 = vcmp.ge.s32.totalorder %v9024_v12, 2  ;;  %vm3250_vm4 = vcmp.ge.s32.totalorder %v13047_v55, 2  ;;  %v13048_v10 = vld [vmem:[#allocation56_spill] sm:$0xff] }
 0x212   : > { %13036 = vst [vmem:[#allocation76_spill] sm:$0xff] %v9498_v20  ;;  %v9510_v8 = vmax.f32 %v13041_v31, %v2813_v46  ;;  %v13045_v20 = vmax.f32 %v13043_v15, %v13044_v47  ;;  %v12382_v52 = vrot.slane %v13048_v10, 6  ;;  %vm12389_vm5 = vcmp.eq.s32.totalorder %v9208_v43, 1  ;;  %v13049_v51 = vld [vmem:[#allocation81_spill] sm:$0xff] }
 0x213   : > { %vm3242_vm1 = vcmp.ge.s32.totalorder %v13049_v51, 2  ;;  %v3181_v46 = vrot.slane %v8506_v50, 6  ;;  %v12384_v11 = vrot.slane %v8674_v22, 6  ;;  %v2859_v2 = vrot.slane %v8454_v29, 2 }
 0x214   : > { %13042 = vst [vmem:[#allocation52_spill] sm:$0xff] %v9510_v8  ;;  %v9516_v1 = vmax.f32 %v13045_v20, %v2812_v53  ;;  %vm12394_vm13 = vcmp.eq.s32.totalorder %v9500_v26, 1  ;;  %v13050_v20 = vrot.slane %v8287_v23, 6  ;;  %vm12388_vm2 = vcmp.eq.s32.totalorder %v9502_v21, 1  ;;  %v13086_v26 = vld [vmem:[#allocation50_spill] sm:$0xff] }
 0x215   : > { %v3283_v34 = vsel %vm3251_vm14, 1, %v12625_v24  ;;  %v3282_v31 = vsel %vm3250_vm4, 1, %v12625_v24  ;;  %v9540_v53 = vsel %vm3202_vm12, %v3181_v46, %v12384_v11  ;;  %v3274_v55 = vsel %vm3242_vm1, 1, %v12625_v24 }
 0x216   : > { %13046 = vst [vmem:[#allocation37_spill] sm:$0xff] %v9516_v1  ;;  %v3226_v12 = vsel %vm3202_vm12, %v12382_v52, %v13050_v20  ;;  %v13051_v51 = vrot.slane %v8395_v37, 2  ;;  %v13052_v52 = vmax.f32 %v13001_v56, %v9252_v39  ;;  %v3436_v11 = vsel %vm12389_vm5, %v9381_v5, -3.4028235e+38  ;;  %v9562_v1 = vpop.permute.xlu0 %3009 }
 0x217   : > { %v3435_v47 = vsel %vm12388_vm2, %v3226_v12, -3.4028235e+38  ;;  %vm12390_vm14 = vcmp.eq.s32.totalorder %v9505_v45, 1  ;;  %v9560_v12 = vpop.permute.xlu1 %3330  ;;  %13055 = vst [vmem:[#allocation56_spill] sm:$0xff] %v9562_v1  ;;  %vm3260_vm4 = vcmp.ge.s32.totalorder %v9155_v0, 2  ;;  %v3180_v56 = vrot.slane %v8454_v29, 6  ;;  %v9572_v5 = vpop.permute.xlu2 %2991 }
 0x218   : > { %v2903_v20 = vsel %vm2881_vm9, %v13051_v51, %v2859_v2  ;;  %v9552_v8 = vmax.f32 %v13052_v52, %v3435_v47  ;;  %13054 = vst [vmem:[#allocation23_spill] sm:$0xff] %v9560_v12  ;;  %3348 = vperm.xlu2 %5545, %v3283_v34   ;;  %3345 = vperm.xlu1 %5544, %v3282_v31   ;;  %v9569_v39 = vsel %vm12390_vm14, %v8966_v62, -3.4028235e+38  ;;  %v13057_v52 = vld [vmem:[#allocation66_spill] sm:$0xff]  ;;  %vm12407_vm1 = vcmp.eq.s32.totalorder %v9560_v12, 1 }
 0x219   : > { %v3115_v21 = vsel %vm12394_vm13, %v2903_v20, -3.4028235e+38  ;;  %13056 = vst [vmem:[#allocation81_spill] sm:$0xff] %v9572_v5  ;;  %3321 = vperm.xlu0 %5543, %v3274_v55   ;;  %vm3084_vm2 = vcmp.eq.s32.totalorder %v9562_v1, 1  ;;  %vm3258_vm5 = vcmp.ge.s32.totalorder %v8990_v25, 2  ;;  %v13060_v29 = vrot.slane %v8395_v37, 6 }
 0x21a   : > { %13053 = vst [vmem:[#allocation5_spill] sm:$0xff] %v9552_v8  ;;  %v3147_v51 = vmax.f32 %v8956_v14, %v3115_v21  ;;  %5412 = vmatmul.msk.f32.vlgmr.msra.gmra.mxu1 %vm3493_vm10, %v9552_v8  ;;  %v13058_v14 = vrot.slane %v8506_v50, 2  ;;  %v12393_v55 = vrot.slane %v9221_v3, 6  ;;  %vm3252_vm14 = vcmp.ge.s32.totalorder %v8996_v6, 2 }
 0x21b   : > { %v3224_v31 = vsel %vm3202_vm12, %v13060_v29, %v3180_v56  ;;  %vm12392_vm6 = vcmp.eq.s32.totalorder %v9572_v5, 1  ;;  %v3223_v37 = vsel %vm3202_vm12, %v3180_v56, %v3181_v46  ;;  %v3292_v25 = vsel %vm3260_vm4, 1, %v12625_v24 }
 0x21c   : > { %v2902_v21 = vsel %vm2881_vm9, %v2859_v2, %v13058_v14  ;;  %v9584_v62 = vmax.f32 %v3147_v51, %v3436_v11  ;;  %v3188_v2 = vrot.slane %v9106_v61, 6  ;;  %v3437_v11 = vsel %vm12407_vm1, %v3224_v31, -3.4028235e+38  ;;  %v13062_v14 = vld [vmem:[#allocation70_spill] sm:$0xff] }
 0x21d   : > { %v3116_v47 = vsel %vm3084_vm2, %v2902_v21, -3.4028235e+38  ;;  %v3290_v20 = vsel %vm3258_vm5, 1, %v12625_v24  ;;  %v3284_v6 = vsel %vm3252_vm14, 1, %v12625_v24  ;;  %v12395_v46 = vrot.slane %v9106_v61, 2  ;;  %v9662_v21 = vld [vmem:[%s12124_s1 + $0xf8] sm:$0xff] }
 0x21e   : > { %13059 = vst [vmem:[#allocation66_spill] sm:$0xff] %v9584_v62  ;;  %v3148_v50 = vmax.f32 %v8941_v17, %v3116_v47  ;;  %v9611_v17 = vsel %vm12392_vm6, %v9052_v44, -3.4028235e+38  ;;  %v2868_v56 = vrot.slane %v9232_v13, 2  ;;  %v3216_v0 = vsel %vm3202_vm12, %v12393_v55, %v3188_v2  ;;  %v9625_v44 = vpop.permute.xlu0 %3033  ;;  %v9647_v55 = vld [vmem:[%s12124_s1 + $0xc0] sm:$0xff] }
 0x21f   : > { %vm12401_vm5 = vcmp.eq.s32.totalorder %v9364_v16, 1  ;;  %v9623_v29 = vpop.permute.xlu1 %3333  ;;  %13064 = vst [vmem:[#allocation105_spill] sm:$0xff] %v9625_v44  ;;  %vm2943_vm14 = vcmp.lt.s32.totalorder %v9421_v63, 14  ;;  %vm12396_vm6 = vcmp.eq.s32.totalorder %v9625_v44, 1  ;;  %v9634_v47 = vpop.permute.xlu2 %3018  ;;  %vm2938_vm13 = vcmp.lt.s32.totalorder %v9647_v55, 14 }
 0x220   : > { %v9606_v51 = vmax.f32 %v3148_v50, %v3437_v11  ;;  %13063 = vst [vmem:[#allocation70_spill] sm:$0xff] %v9623_v29  ;;  %3375 = vperm.xlu2 %5545, %v3292_v25   ;;  %3369 = vperm.xlu1 %5544, %v3290_v20   ;;  %vm12406_vm4 = vcmp.eq.s32.totalorder %v9623_v29, 1  ;;  %v2894_v31 = vsel %vm2881_vm9, %v12395_v46, %v2868_v56  ;;  %v2862_v25 = vrot.slane %v8813_v30, 2 }
 0x221   : > { %13065 = vst [vmem:[#allocation106_spill] sm:$0xff] %v9634_v47  ;;  %3351 = vperm.xlu0 %5543, %v3284_v6   ;;  %v3438_v50 = vsel %vm12406_vm4, %v3223_v37, -3.4028235e+38  ;;  %v3124_v11 = vsel %vm12396_vm6, %v2894_v31, -3.4028235e+38  ;;  %v12398_v20 = vrot.slane %v8874_v41, 2  ;;  %v13066_v6 = vmax.f32 %v13033_v40, %v9463_v32 }
 0x222   : > { %13061 = vst [vmem:[#allocation104_spill] sm:$0xff] %v9606_v51  ;;  %5413 = vmatmul.msk.f32.gmra.mxu1 %vm3493_vm10, %v9584_v62  ;;  %v3156_v37 = vmax.f32 %v9367_v38, %v3124_v11  ;;  %vm12408_vm6 = vcmp.eq.s32.totalorder %v9634_v47, 1  ;;  %v3445_v31 = vsel %vm12401_vm5, %v3216_v0, -3.4028235e+38  ;;  %vm2624_vm3 = vcmp.ge.s32.totalorder %v9662_v21, 1  ;;  %v13089_v47 = vld [vmem:[#allocation13_spill] sm:$0xff] }
 0x223   : > { %v9653_v46 = vmax.f32 %v13066_v6, %v3438_v50  ;;  %v2899_v32 = vsel %vm2881_vm9, %v2862_v25, %v12398_v20  ;;  %v13068_v40 = vrot.slane %v8674_v22, 2  ;;  %v2975_v11 = vsel %vm2943_vm14, 1, %v12625_v24 }
 0x224   : > { %v9673_v50 = vmax.f32 %v3156_v37, %v3445_v31  ;;  %v9677_v0 = vsel %vm12408_vm6, %v2899_v32, -3.4028235e+38  ;;  %v2970_v6 = vsel %vm2938_vm13, 1, %v12625_v24  ;;  %v12416_v20 = vrot.slane %v9135_v57, 2 }
 0x225   : > { %13067 = vst [vmem:[#allocation107_spill] sm:$0xff] %v9653_v46  ;;  %v2900_v38 = vsel %vm2881_vm9, %v13068_v40, %v2862_v25  ;;  %v2656_v43 = vsel %vm2624_vm3, 1, %v12625_v24  ;;  %v12410_v25 = vrot.slane %v9013_v35, 2  ;;  %v12409_v37 = vrot.slane %v9078_v19, 2 }
 0x226   : > { %13069 = vst [vmem:[#allocation108_spill] sm:$0xff] %v9673_v50  ;;  %5422 = vmatmul.msk.f32.vlgmr.msrb.gmra.mxu3 %vm3493_vm10, %v9673_v50  ;;  %vm12415_vm14 = vcmp.eq.s32.totalorder %v9435_v9, 1  ;;  %vm3257_vm13 = vcmp.ge.s32.totalorder %v9483_v58, 2  ;;  %v2893_v40 = vsel %vm2881_vm9, %v2868_v56, %v12416_v20  ;;  %v9700_v34 = vpop.permute.xlu0 %3015  ;;  %v13073_v5 = vrot.slane %v9232_v13, 6  ;;  %v13082_v58 = vld [vmem:[#allocation49_spill] sm:$0xff] }
 0x227   : > { %v9694_v32 = vpop.permute.xlu1 %3036  ;;  %13071 = vst [vmem:[#allocation110_spill] sm:$0xff] %v9700_v34  ;;  %vm12413_vm5 = vcmp.eq.s32.totalorder %v9700_v34, 1  ;;  %v9704_v31 = vpop.permute.xlu2 %3024  ;;  %v2897_v45 = vsel %vm2881_vm9, %v12410_v25, %v12409_v37  ;;  %vm3256_vm4 = vcmp.ge.s32.totalorder %v9489_v49, 2  ;;  %vm3249_vm6 = vcmp.ge.s32.totalorder %v9413_v4, 2  ;;  %v13074_v25 = vld [vmem:[#allocation95_spill] sm:$0xff] }
 0x228   : > { %13070 = vst [vmem:[#allocation109_spill] sm:$0xff] %v9694_v32  ;;  %3066 = vperm.xlu2 %5545, %v2975_v11   ;;  %3051 = vperm.xlu1 %5544, %v2970_v6   ;;  %vm12412_vm3 = vcmp.eq.s32.totalorder %v9694_v32, 1  ;;  %v3215_v56 = vsel %vm3202_vm12, %v3188_v2, %v13073_v5  ;;  %v3118_v6 = vsel %vm12413_vm5, %v2900_v38, -3.4028235e+38  ;;  %vm12414_vm1 = vcmp.eq.s32.totalorder %v9704_v31, 1  ;;  %v13076_v2 = vld [vmem:[#allocation55_spill] sm:$0xff] }
 0x229   : > { %13072 = vst [vmem:[#allocation111_spill] sm:$0xff] %v9704_v31  ;;  %2751 = vperm.xlu0 %5543, %v2656_v43   ;;  %v3125_v11 = vsel %vm12412_vm3, %v2893_v40, -3.4028235e+38  ;;  %v3150_v5 = vmax.f32 %v13074_v25, %v3118_v6  ;;  %v9729_v43 = vsel %vm12414_vm1, %v2897_v45, -3.4028235e+38  ;;  %vm12475_vm0 = vcmp.eq.s32.totalorder %v13076_v2, 1 }
 0x22a   : > { %5414 = vmatmul.msk.f32.gmra.mxu1 %vm3493_vm10, %v9606_v51  ;;  %v3157_v37 = vmax.f32 %v9333_v7, %v3125_v11  ;;  %13075 = vst [vmem:[#allocation95_spill] sm:$0xff] %v9729_v43  ;;  %v3439_v40 = vsel %vm12415_vm14, %v9540_v53, -3.4028235e+38  ;;  %vm2945_vm3 = vcmp.lt.s32.totalorder %v9662_v21, 14  ;;  %v9739_v38 = vld [vmem:[%s12124_s1 + $0xd0] sm:$0xff]  ;;  %v13077_v45 = vrot.slane %v8874_v41, 7 }
 0x22b   : > { %vm2940_vm5 = vcmp.lt.s32.totalorder %v9739_v38, 14  ;;  %v13078_v25 = vrot.slane %v8813_v30, 7  ;;  %v13079_v53 = vld [vmem:[#allocation12_spill] sm:$0xff]  ;;  %v9753_v6 = vmax.f32 %v3150_v5, %v3439_v40  ;;  %vm3262_vm14 = vcmp.ge.s32.totalorder %v9458_v60, 2  ;;  %v13088_v49 = vld [vmem:[#allocation47_spill] sm:$0xff] }
 0x22c   : > { %vm12472_vm1 = vcmp.eq.s32.totalorder %v13079_v53, 1  ;;  %v3289_v20 = vsel %vm3257_vm13, 1, %v12625_v24  ;;  %v3288_v7 = vsel %vm3256_vm4, 1, %v12625_v24  ;;  %v3281_v32 = vsel %vm3249_vm6, 1, %v12625_v24  ;;  %v9771_v60 = vld [vmem:[%s12124_s1 + $0xf0] sm:$0xff] }
 0x22d   : > { %v9750_v11 = vsel %vm2560_vm11, %v13078_v25, %v13077_v45  ;;  %13080 = vst [vmem:[#allocation112_spill] sm:$0xff] %v9753_v6  ;;  %v13081_v45 = vld [vmem:[#allocation53_spill] sm:$0xff]  ;;  %v2977_v16 = vsel %vm2945_vm3, 1, %v12625_v24  ;;  %v2972_v5 = vsel %vm2940_vm5, 1, %v12625_v24  ;;  %vm2623_vm13 = vcmp.ge.s32.totalorder %v9771_v60, 1  ;;  %v13090_v25 = vld [vmem:[#allocation84_spill] sm:$0xff] }
 0x22e   : > { %v3294_v40 = vsel %vm3262_vm14, 1, %v12625_v24  ;;  %v9778_v4 = vpop.permute.xlu0 %3357  ;;  %vm3264_vm6 = vcmp.ge.s32.totalorder %v9421_v63, 2  ;;  %v13085_v31 = vrot.slane %v13081_v45, 2  ;;  %v13087_v9 = vrot.slane %v13086_v26, 2 }
 0x22f   : > { %v9776_v44 = vpop.permute.xlu1 %2979  ;;  %13084 = vst [vmem:[#allocation49_spill] sm:$0xff] %v9778_v4  ;;  %vm12477_vm4 = vcmp.eq.s32.totalorder %v9778_v4, 1  ;;  %v3173_v12 = vrot.slane %v13088_v49, 6  ;;  %v9818_v34 = vpop.permute.xlu2 %3048  ;;  %vm3259_vm14 = vcmp.ge.s32.totalorder %v9647_v55, 2  ;;  %v13096_v63 = vrot.slane %v9248_v54, 1 }
 0x230   : > { %13083 = vst [vmem:[#allocation53_spill] sm:$0xff] %v9776_v44  ;;  %v9788_v29 = vsel %vm2881_vm9, %v13087_v9, %v13085_v31  ;;  %3366 = vperm.xlu2 %5545, %v3289_v20   ;;  %3363 = vperm.xlu1 %5544, %v3288_v7   ;;  %vm12490_vm5 = vcmp.eq.s32.totalorder %v9776_v44, 1  ;;  %v3446_v9 = vsel %vm12477_vm4, %v3215_v56, -3.4028235e+38  ;;  %v9806_v20 = vsel %vm2623_vm13, 1, %v12625_v24 }
 0x231   : > { %3342 = vperm.xlu0 %5543, %v3281_v32   ;;  %v9799_v1 = vsel %vm12490_vm5, %v13090_v25, -3.4028235e+38  ;;  %v12443_v31 = vrot.slane %v9115_v27, 2  ;;  %v13091_v32 = vld [vmem:[#allocation7_spill] sm:$0xff]  ;;  %v9811_v49 = vmax.f32 %v3157_v37, %v3446_v9  ;;  %v9816_v25 = vsel %vm3264_vm6, 1, %v12625_v24  ;;  %13093 = vst [vmem:[#allocation47_spill] sm:$0xff] %v9818_v34 }
 0x232   : > { %5415 = vmatmul.msk.f32.gmra.mxu1 %vm3493_vm10, %v9653_v46  ;;  %v13094_v56 = vrot.slane %v13082_v58, 6  ;;  %v13095_v37 = vrot.slane %v9263_v18, 2  ;;  %vm12506_vm3 = vcmp.eq.s32.totalorder %v9818_v34, 1  ;;  %v13097_v7 = vrot.slane %v9135_v57, 1 }
 0x233   : > { %13092 = vst [vmem:[#allocation50_spill] sm:$0xff] %v9811_v49  ;;  %v13099_v50 = vrot.slane %v9232_v13, 7  ;;  %5423 = vmatmul.msk.f32.gmra.mxu3 %vm3493_vm10, %v9811_v49  ;;  %v13103_v43 = vrot.slane %v13089_v47, 6  ;;  %v12459_v34 = vrot.slane %v9248_v54, 2  ;;  %v2877_v53 = vrot.slane %v7613_v36, 2  ;;  %v13105_v49 = vld [vmem:[#allocation40_spill] sm:$0xff] }
 0x234   : > { %v9824_v4 = vsel %vm3202_vm12, %v3173_v12, %v13094_v56  ;;  %v2889_v9 = vsel %vm2881_vm9, %v13095_v37, %v12443_v31  ;;  %v2250_v44 = vsel %vm2239_vm7, %v13097_v7, %v13096_v63  ;;  %v13098_v56 = vrot.slane %v9135_v57, 7  ;;  %v13101_v63 = vld [vmem:[#allocation34_spill] sm:$0xff]  ;;  %v13114_v13 = vld [vmem:[#allocation25_spill] sm:$0xff] }
 0x235   : > { %v9850_v37 = vsel %vm12506_vm3, %v2889_v9, -3.4028235e+38  ;;  %v2484_v31 = vsel %vm12475_vm0, %v2250_v44, -3.4028235e+38  ;;  %v13102_v8 = vrot.slane %v13101_v63, 6  ;;  %v2876_v44 = vrot.slane %v13043_v15, 2 }
 0x236   : > { %v2572_v51 = vsel %vm2560_vm11, %v13099_v50, %v13098_v56  ;;  %13100 = vst [vmem:[#allocation84_spill] sm:$0xff] %v9850_v37  ;;  %v2516_v9 = vmax.f32 %v9135_v57, %v2484_v31  ;;  %v2557_v59 = vrot.slane %v13105_v49, 7  ;;  %v2878_v62 = vrot.slane %v13105_v49, 2  ;;  %v13109_v37 = vld [vmem:[#allocation38_spill] sm:$0xff] }
 0x237   : > { %v2805_v7 = vsel %vm12472_vm1, %v2572_v51, -3.4028235e+38  ;;  %v9862_v50 = vsel %vm3202_vm12, %v13103_v43, %v13102_v8  ;;  %v13104_v51 = vld [vmem:[#allocation2_spill] sm:$0xff]  ;;  %v9873_v46 = vpop.permute.xlu1 %2988  ;;  %v9875_v8 = vpop.permute.xlu0 %2985  ;;  %v13108_v31 = vrot.slane %v9135_v57, 2  ;;  %v2880_v42 = vrot.slane %v13089_v47, 2 }
 0x238   : > { %v3172_v2 = vrot.slane %v13104_v51, 6  ;;  %13106 = vst [vmem:[#allocation7_spill] sm:$0xff] %v9873_v46  ;;  %v9877_v43 = vmax.f32 %v2516_v9, %v2805_v7  ;;  %v2879_v51 = vrot.slane %v13109_v37, 2  ;;  %3072 = vperm.xlu2 %5545, %v2977_v16   ;;  %3057 = vperm.xlu1 %5544, %v2972_v5   ;;  %vm12467_vm13 = vcmp.eq.s32.totalorder %v9873_v46, 1  ;;  %v13112_v5 = vld [vmem:[#allocation87_spill] sm:$0xff]  ;;  %v13118_v46 = vld [vmem:[#allocation14_spill] sm:$0xff] }
 0x239   : > { %13107 = vst [vmem:[#allocation34_spill] sm:$0xff] %v9875_v8  ;;  %v9885_v56 = vsel %vm2881_vm9, %v13108_v31, %v12459_v34  ;;  %vm12491_vm6 = vcmp.eq.s32.totalorder %v9875_v8, 1  ;;  %v9893_v7 = vsel %vm2881_vm9, %v2876_v44, %v2877_v53  ;;  %3381 = vperm.xlu0 %5543, %v3294_v40   ;;  %v13111_v31 = vld [vmem:[#allocation86_spill] sm:$0xff]  ;;  %v13115_v57 = vrot.slane %v13114_v13, 6 }
 0x23a   : > { %13110 = vst [vmem:[#allocation2_spill] sm:$0xff] %v9893_v7  ;;  %v9897_v9 = vsel %vm3202_vm12, %v3172_v2, %v3173_v12  ;;  %5416 = vmatmul.msk.f32.gmra.mxu1 %vm3493_vm10, %v9753_v6  ;;  %v9904_v16 = vsel %vm12467_vm13, %v13111_v31, -3.4028235e+38  ;;  %v9909_v34 = vsel %vm12491_vm6, %v13112_v5, -3.4028235e+38  ;;  %v13116_v40 = vrot.slane %v7613_v36, 7 }
 0x23b   : > { %13113 = vst [vmem:[#allocation40_spill] sm:$0xff] %v9909_v34  ;;  %v9915_v12 = vsel %vm3202_vm12, %v13115_v57, %v3172_v2  ;;  %vm12558_vm13 = vcmp.eq.s32.totalorder %v13118_v46, 1  ;;  %v13119_v31 = vld [vmem:[#allocation24_spill] sm:$0xff]  ;;  %v13120_v5 = vld [vmem:[#allocation59_spill] sm:$0xff]  ;;  %v2875_v13 = vrot.slane %v8208_v33, 2  ;;  %v9931_v57 = vsel %vm2881_vm9, %v2878_v62, %v2879_v51 }
 0x23c   : > { %v9921_v6 = vsel %vm2560_vm11, %v13116_v40, %v2557_v59  ;;  %13121 = vst [vmem:[#allocation87_spill] sm:$0xff] %v9931_v57  ;;  %v3175_v2 = vrot.slane %v13086_v26, 6  ;;  %v13122_v7 = vrot.slane %v13101_v63, 2  ;;  %v3200_v27 = vrot.slane %v13109_v37, 6  ;;  %v13157_v46 = vld [vmem:[#allocation51_spill] sm:$0xff] }
 0x23d   : > { %13117 = vst [vmem:[#allocation86_spill] sm:$0xff] %v9921_v6  ;;  %v2558_v6 = vrot.slane %v13109_v37, 7  ;;  %vm3266_vm1 = vcmp.ge.s32.totalorder %v9662_v21, 2  ;;  %v2856_v8 = vrot.slane %v13048_v10, 2  ;;  %v3199_v34 = vrot.slane %v13105_v49, 6 }
 0x23e   : > { %v9938_v40 = vsel %vm2881_vm9, %v2880_v42, %v13122_v7  ;;  %v9947_v57 = vsel %vm2881_vm9, %v2875_v13, %v2876_v44  ;;  %v13125_v26 = vrot.slane %v13082_v58, 6  ;;  %v13126_v21 = vrot.slane %v13089_v47, 7  ;;  %v13129_v58 = vld [vmem:[#allocation77_spill] sm:$0xff] }
 0x23f   : > { %13123 = vst [vmem:[#allocation25_spill] sm:$0xff] %v9938_v40  ;;  %v9957_v7 = vsel %vm2560_vm11, %v2557_v59, %v2558_v6  ;;  %v13127_v37 = vrot.slane %v13089_v47, 6  ;;  %vm2767_vm0 = vcmp.eq.s32.totalorder %v13129_v58, 1  ;;  %v9977_v59 = vsel %vm3202_vm12, %v3199_v34, %v3200_v27 }
 0x240   : > { %13124 = vst [vmem:[#allocation24_spill] sm:$0xff] %v9947_v57  ;;  %v9953_v63 = vsel %vm3202_vm12, %v13125_v26, %v3175_v2  ;;  %v9963_v40 = vsel %vm2560_vm11, %v2558_v6, %v13126_v21  ;;  %v3291_v26 = vsel %vm3259_vm14, 1, %v12625_v24  ;;  %v9981_v6 = vsel %vm2881_vm9, %v2877_v53, %v2878_v62  ;;  %v9987_v57 = vpop.permute.xlu1 %2997  ;;  %2748 = vperm.xlu2 %5545, %v9806_v20  }
 0x241   : > { %v9969_v44 = vsel %vm3202_vm12, %v3200_v27, %v13127_v37  ;;  %13130 = vst [vmem:[#allocation113_spill] sm:$0xff] %v9977_v59  ;;  %v2799_v21 = vsel %vm2767_vm0, %v9750_v11, -3.4028235e+38  ;;  %v3298_v37 = vsel %vm3266_vm1, 1, %v12625_v24  ;;  %v13134_v55 = vrot.slane %v9221_v3, 7  ;;  %3387 = vperm.xlu1 %5544, %v9816_v25   ;;  %3372 = vperm.xlu0 %5543, %v3291_v26  }
 0x242   : > { %13128 = vst [vmem:[#allocation59_spill] sm:$0xff] %v9969_v44  ;;  %v9989_v44 = vpop.permute.xlu0 %2994  ;;  %v13135_v47 = vrot.slane %v9078_v19, 7  ;;  %v10001_v62 = vsel %vm2881_vm9, %v2879_v51, %v2880_v42  ;;  %v13137_v11 = vrot.slane %v13081_v45, 2  ;;  %vm12480_vm1 = vcmp.eq.s32.totalorder %v9987_v57, 1  ;;  %v13138_v51 = vld [vmem:[#allocation79_spill] sm:$0xff] }
 0x243   : > { %13131 = vst [vmem:[#allocation114_spill] sm:$0xff] %v9981_v6  ;;  %vm12483_vm14 = vcmp.eq.s32.totalorder %v9989_v44, 1  ;;  %vm3261_vm4 = vcmp.ge.s32.totalorder %v9739_v38, 2  ;;  %v13140_v26 = vrot.slane %v9013_v35, 1  ;;  %v13142_v25 = vrot.slane %v9013_v35, 2 }
 0x244   : > { %13132 = vst [vmem:[#allocation115_spill] sm:$0xff] %v9987_v57  ;;  %v9997_v27 = vsel %vm2560_vm11, %v13135_v47, %v13134_v55  ;;  %v2906_v53 = vsel %vm2881_vm9, %v13137_v11, %v2856_v8  ;;  %v3197_v47 = vrot.slane %v13043_v15, 6  ;;  %v10020_v20 = vsel %vm12483_vm14, %v9788_v29, -3.4028235e+38  ;;  %v13139_v11 = vld [vmem:[#allocation62_spill] sm:$0xff] }
 0x245   : > { %13133 = vst [vmem:[#allocation116_spill] sm:$0xff] %v9989_v44  ;;  %v10015_v42 = vsel %vm12480_vm1, %v2906_v53, -3.4028235e+38  ;;  %v3198_v57 = vrot.slane %v7613_v36, 6  ;;  %v5827_v29 = vld [vmem:[%s12124_s1 + $0xe0] sm:$0xff]  ;;  %v13143_v15 = vrot.slane %v8874_v41, 2 }
 0x246   : > { %13136 = vst [vmem:[#allocation117_spill] sm:$0xff] %v10001_v62  ;;  %v13141_v62 = vrot.slane %v8874_v41, 1  ;;  %vm2942_vm1 = vcmp.lt.s32.totalorder %v5827_v29, 14  ;;  %v13145_v6 = vrot.slane %v8208_v33, 6  ;;  %vm3265_vm5 = vcmp.ge.s32.totalorder %v9771_v60, 2 }
 0x247   : > { %v10045_v44 = vsel %vm2881_vm9, %v13143_v15, %v13142_v25  ;;  %v10063_v25 = vsel %vm3202_vm12, %v3197_v47, %v3198_v57  ;;  %v2974_v33 = vsel %vm2942_vm1, 1, %v12625_v24  ;;  %v13153_v15 = vmax.f32 %v13057_v52, %v9569_v39 }
 0x248   : > { %v2256_v53 = vsel %vm2239_vm7, %v13141_v62, %v13140_v26  ;;  %v3176_v62 = vrot.slane %v13081_v45, 6  ;;  %v10048_v26 = vpop.permute.xlu2 %3303  ;;  %v10055_v59 = vsel %vm3202_vm12, %v13145_v6, %v3197_v47  ;;  %13148 = vst [vmem:[#allocation119_spill] sm:$0xff] %v10063_v25  ;;  %v3293_v45 = vsel %vm3261_vm4, 1, %v12625_v24  ;;  %3393 = vperm.xlu2 %5545, %v3298_v37  }
 0x249   : > { %v2478_v55 = vsel %vm12558_vm13, %v2256_v53, -3.4028235e+38  ;;  %13144 = vst [vmem:[#allocation79_spill] sm:$0xff] %v10048_v26  ;;  %v10059_v53 = vsel %vm3202_vm12, %v3198_v57, %v3199_v34  ;;  %vm12489_vm14 = vcmp.eq.s32.totalorder %v10048_v26, 1  ;;  %v13150_v34 = vld [vmem:[#allocation88_spill] sm:$0xff]  ;;  %v13151_v57 = vrot.slane %v9106_v61, 1  ;;  %3378 = vperm.xlu1 %5544, %v3293_v45   ;;  %3063 = vperm.xlu0 %5543, %v2974_v33  }
 0x24a   : > { %v2510_v36 = vmax.f32 %v8874_v41, %v2478_v55  ;;  %13146 = vst [vmem:[#allocation62_spill] sm:$0xff] %v10055_v59  ;;  %v13149_v55 = vld [vmem:[#allocation30_spill] sm:$0xff]  ;;  %v10072_v6 = vsel %vm3202_vm12, %v3175_v2, %v3176_v62  ;;  %v13152_v47 = vrot.slane %v9221_v3, 1  ;;  %v10091_v59 = vpop.permute.xlu1 %3000  ;;  %v10093_v58 = vpop.permute.xlu0 %3039  ;;  %vm12494_vm4 = vcmp.eq.s32.totalorder %v13157_v46, 1 }
 0x24b   : > { %13147 = vst [vmem:[#allocation118_spill] sm:$0xff] %v10059_v53  ;;  %v3428_v53 = vsel %vm12489_vm14, %v13150_v34, -3.4028235e+38  ;;  %v13156_v34 = vrot.slane %v13149_v55, 2  ;;  %vm12492_vm1 = vcmp.eq.s32.totalorder %v10091_v59, 1  ;;  %vm12493_vm14 = vcmp.eq.s32.totalorder %v10093_v58, 1 }
 0x24c   : > { %v2253_v38 = vsel %vm2239_vm7, %v13152_v47, %v13151_v57  ;;  %v10084_v25 = vmax.f32 %v2510_v36, %v2799_v21  ;;  %v10089_v2 = vmax.f32 %v13153_v15, %v3428_v53  ;;  %13154 = vst [vmem:[#allocation30_spill] sm:$0xff] %v10091_v59  ;;  %v13158_v21 = vrot.slane %v8287_v23, 2  ;;  %v13162_v47 = vld [vmem:[#allocation80_spill] sm:$0xff] }
 0x24d   : > { %13155 = vst [vmem:[#allocation88_spill] sm:$0xff] %v10093_v58  ;;  %v2887_v26 = vsel %vm2881_vm9, %v13156_v34, %v2875_v13  ;;  %v10113_v13 = vsel %vm12493_vm14, %v9885_v56, -3.4028235e+38  ;;  %v2481_v23 = vsel %vm12494_vm4, %v2253_v38, -3.4028235e+38  ;;  %vm3263_vm6 = vcmp.ge.s32.totalorder %v5827_v29, 2 }
 0x24e   : > { %v2905_v39 = vsel %vm2881_vm9, %v2856_v8, %v13158_v21  ;;  %v13159_v8 = vld [vmem:[#allocation78_spill] sm:$0xff]  ;;  %v2866_v36 = vrot.slane %v9221_v3, 2  ;;  %v2513_v56 = vmax.f32 %v9221_v3, %v2481_v23  ;;  %v3297_v45 = vsel %vm3265_vm5, 1, %v12625_v24 }
 0x24f   : > { %v10108_v52 = vsel %vm12492_vm1, %v2905_v39, -3.4028235e+38  ;;  %vm2944_vm1 = vcmp.lt.s32.totalorder %v9771_v60, 14  ;;  %v3295_v15 = vsel %vm3263_vm6, 1, %v12625_v24  ;;  %v13161_v29 = vrot.slane %v13048_v10, 6 }
 0x250   : > { %v10124_v53 = vpop.permute.xlu2 %3312  ;;  %vm12499_vm4 = vcmp.eq.s32.totalorder %v13162_v47, 1  ;;  %v2976_v60 = vsel %vm2944_vm1, 1, %v12625_v24  ;;  %v13163_v34 = vmax.f32 %v13062_v14, %v9611_v17  ;;  %3390 = vperm.xlu2 %5545, %v3297_v45   ;;  %v13167_v17 = vrot.slane %v9078_v19, 2  ;;  %v13168_v45 = vld [vmem:[#allocation99_spill] sm:$0xff] }
 0x251   : > { %13160 = vst [vmem:[#allocation78_spill] sm:$0xff] %v10124_v53  ;;  %vm12495_vm14 = vcmp.eq.s32.totalorder %v10124_v53, 1  ;;  %v10134_v57 = vsel %vm3202_vm12, %v3176_v62, %v13161_v29  ;;  %v2802_v10 = vsel %vm12499_vm4, %v9997_v27, -3.4028235e+38  ;;  %v13165_v62 = vrot.slane %v9106_v61, 2  ;;  %3384 = vperm.xlu1 %5544, %v3295_v15   ;;  %3069 = vperm.xlu0 %5543, %v2976_v60  }
 0x252   : > { %v3431_v38 = vsel %vm12495_vm14, %v9824_v4, -3.4028235e+38  ;;  %v10146_v39 = vpop.permute.xlu1 %3030  ;;  %v10155_v23 = vpop.permute.xlu0 %3027  ;;  %v10157_v4 = vmax.f32 %v2513_v56, %v2802_v10  ;;  %v2896_v14 = vsel %vm2881_vm9, %v13167_v17, %v2866_v36  ;;  %v12501_v29 = vrot.slane %v9013_v35, 6 }
 0x253   : > { %v10144_v21 = vmax.f32 %v13163_v34, %v3431_v38  ;;  %13164 = vst [vmem:[#allocation120_spill] sm:$0xff] %v10146_v39  ;;  %v2895_v24 = vsel %vm2881_vm9, %v2866_v36, %v13165_v62  ;;  %vm12496_vm5 = vcmp.eq.s32.totalorder %v10146_v39, 1  ;;  %vm12497_vm6 = vcmp.eq.s32.totalorder %v10155_v23, 1 }
 0x254   : > { %13166 = vst [vmem:[#allocation121_spill] sm:$0xff] %v10155_v23  ;;  %v10167_v61 = vsel %vm12496_vm5, %v2895_v24, -3.4028235e+38  ;;  %v3122_v27 = vsel %vm12497_vm6, %v2896_v14, -3.4028235e+38  ;;  %v12500_v38 = vrot.slane %v9078_v19, 6  ;;  %v13171_v17 = vmax.f32 %v9122_v28, %v9677_v0 }
 0x255   : > { %v3154_v15 = vmax.f32 %v13168_v45, %v3122_v27  ;;  %v12498_v60 = vrot.slane %v8813_v30, 6  ;;  %v13170_v10 = vrot.slane %v8674_v22, 6  ;;  %v13174_v0 = vld [vmem:[#allocation58_spill] sm:$0xff]  ;;  %v12507_v59 = vrot.slane %v9248_v54, 6 }
 0x256   : > { %v3218_v36 = vsel %vm3202_vm12, %v12501_v29, %v12500_v38  ;;  %v13182_v38 = vld [vmem:[#allocation40_spill] sm:$0xff] }
 0x257   : > { %v3221_v62 = vsel %vm3202_vm12, %v13170_v10, %v12498_v60  ;;  %v13183_v37 = vmax.f32 %v13120_v5, %v13182_v38  ;;  %v13185_v5 = vld [vmem:[#allocation37_spill] sm:$0xff] }
 0x259   : > { %v10183_v34 = vpop.permute.xlu2 %3339 }
 0x25a   : > { %13169 = vst [vmem:[#allocation99_spill] sm:$0xff] %v10183_v34  ;;  %vm3408_vm1 = vcmp.eq.s32.totalorder %v10183_v34, 1  ;;  %v10199_v27 = vpop.permute.xlu1 %3300 }
 0x25b   : > { %v3440_v24 = vsel %vm3408_vm1, %v3221_v62, -3.4028235e+38  ;;  %13172 = vst [vmem:[#allocation122_spill] sm:$0xff] %v10199_v27  ;;  %v3055_v45 = vpop.permute.xlu0 %3054  ;;  %vm12542_vm14 = vcmp.eq.s32.totalorder %v10199_v27, 1  ;;  %v13173_v62 = vmax.f32 %v13091_v32, %v9799_v1 }
 0x25c   : > { %v10197_v14 = vmax.f32 %v13171_v17, %v3440_v24  ;;  %vm3099_vm5 = vcmp.eq.s32.totalorder %v3055_v45, 1  ;;  %v3427_v22 = vsel %vm12542_vm14, %v9862_v50, -3.4028235e+38 }
 0x25d   : > { %v3131_v10 = vsel %vm3099_vm5, %v2887_v26, -3.4028235e+38  ;;  %v3459_v28 = vmax.f32 %v13173_v62, %v3427_v22  ;;  %v13177_v26 = vld [vmem:[#allocation91_spill] sm:$0xff] }
 0x25e   : > { %5417 = vmatmul.msk.f32.gmra.mxu1 %vm3493_vm10, %v10197_v14  ;;  %v3163_v24 = vmax.f32 %v13174_v0, %v3131_v10  ;;  %v2871_v56 = vrot.slane %v13177_v26, 2  ;;  %v13180_v10 = vrot.slane %v9248_v54, 2  ;;  %v13181_v0 = vmax.f32 %v13119_v31, %v9904_v16 }
 0x260   : > { %v2891_v62 = vsel %vm2881_vm9, %v13180_v10, %v2871_v56 }
 0x262   : > { %v10211_v17 = vpop.permute.xlu2 %3021  ;;  %v10221_v50 = vpop.permute.xlu1 %3309 }
 0x263   : > { %13175 = vst [vmem:[#allocation58_spill] sm:$0xff] %v10211_v17  ;;  %vm3088_vm6 = vcmp.eq.s32.totalorder %v10211_v17, 1  ;;  %vm12504_vm5 = vcmp.eq.s32.totalorder %v10221_v50, 1  ;;  %v10225_v1 = vpop.permute.xlu0 %3306 }
 0x264   : > { %v10217_v45 = vsel %vm3088_vm6, %v10045_v44, -3.4028235e+38  ;;  %13176 = vst [vmem:[#allocation123_spill] sm:$0xff] %v10221_v50  ;;  %v3430_v32 = vsel %vm12504_vm5, %v9897_v9, -3.4028235e+38  ;;  %vm12505_vm4 = vcmp.eq.s32.totalorder %v10225_v1, 1 }
 0x265   : > { %13178 = vst [vmem:[#allocation91_spill] sm:$0xff] %v10225_v1  ;;  %v13179_v44 = vrot.slane %v9263_v18, 2  ;;  %v10242_v60 = vmax.f32 %v13181_v0, %v3430_v32  ;;  %v3429_v9 = vsel %vm12505_vm4, %v9915_v12, -3.4028235e+38  ;;  %v13184_v32 = vld [vmem:[#allocation2_spill] sm:$0xff] }
 0x266   : > { %v3461_v29 = vmax.f32 %v13183_v37, %v3429_v9 }
 0x267   : > { %v2890_v22 = vsel %vm2881_vm9, %v2871_v56, %v13179_v44  ;;  %v3728_v44 = vmax.f32 %v10089_v2, %v10242_v60  ;;  %v12510_v56 = vrot.slane %v13177_v26, 6 }
 0x268   : > { %v3727_v16 = vmax.f32 %v3459_v28, %v3461_v29  ;;  %v3729_v31 = vmax.f32 %v3461_v29, %v10144_v21 }
 0x269   : > { %v3212_v12 = vsel %vm3202_vm12, %v12507_v59, %v12510_v56  ;;  %v13194_v56 = vld [vmem:[#allocation86_spill] sm:$0xff] }
 0x26a   : > { %v3061_v33 = vpop.permute.xlu2 %3060  ;;  %v10267_v37 = vmax.f32 %v3727_v16, %v10144_v21  ;;  %v13189_v16 = vmax.f32 %v13138_v51, %v10015_v42 }
 0x26b   : > { %vm3101_vm5 = vcmp.eq.s32.totalorder %v3061_v33, 1 }
 0x26c   : > { %v10256_v10 = vsel %vm3101_vm5, %v13184_v32, -3.4028235e+38 }
 0x272   : > { %v10269_v33 = vpop.permute.xlu2 %3348  ;;  %v10271_v38 = vpop.permute.xlu1 %3318 }
 0x273   : > { %13186 = vst [vmem:[#allocation40_spill] sm:$0xff] %v10269_v33  ;;  %vm12513_vm5 = vcmp.eq.s32.totalorder %v10269_v33, 1  ;;  %vm12508_vm4 = vcmp.eq.s32.totalorder %v10271_v38, 1  ;;  %v10275_v29 = vpop.permute.xlu0 %3315  ;;  %v13273_v33 = vld [vmem:[#allocation82_spill] sm:$0xff] }
 0x274   : > { %13187 = vst [vmem:[#allocation2_spill] sm:$0xff] %v10271_v38  ;;  %v3443_v28 = vsel %vm12513_vm5, %v3218_v36, -3.4028235e+38  ;;  %v3433_v0 = vsel %vm12508_vm4, %v10072_v6, -3.4028235e+38  ;;  %vm12509_vm3 = vcmp.eq.s32.totalorder %v10275_v29, 1  ;;  %v13190_v36 = vmax.f32 %v13139_v11, %v10020_v20 }
 0x275   : > { %13188 = vst [vmem:[#allocation37_spill] sm:$0xff] %v10275_v29  ;;  %v10283_v9 = vmax.f32 %v3154_v15, %v3443_v28  ;;  %v10288_v32 = vmax.f32 %v13189_v16, %v3433_v0  ;;  %v3432_v2 = vsel %vm12509_vm3, %v9953_v63, -3.4028235e+38  ;;  %v12520_v63 = vrot.slane %v13149_v55, 6  ;;  %v13195_v6 = vld [vmem:[#allocation22_spill] sm:$0xff]  ;;  %v13197_v29 = vld [vmem:[#allocation63_spill] sm:$0xff] }
 0x276   : > { %v10296_v59 = vmax.f32 %v13190_v36, %v3432_v2  ;;  %v13191_v2 = vld [vmem:[#allocation90_spill] sm:$0xff]  ;;  %v13196_v38 = vrot.slane %v13195_v6, 6  ;;  %v13198_v50 = vmax.f32 %v13105_v49, %v13197_v29  ;;  %v13199_v6 = vmax.f32 %v9877_v43, %v10113_v13  ;;  %v13202_v29 = vld [vmem:[#allocation87_spill] sm:$0xff] }
 0x277   : > { %v10301_v15 = vmax.f32 %v3729_v31, %v10288_v32  ;;  %v12521_v0 = vrot.slane %v13191_v2, 6  ;;  %v13193_v31 = vld [vmem:[#allocation93_spill] sm:$0xff] }
 0x278   : > { %v3730_v51 = vmax.f32 %v10242_v60, %v10296_v59  ;;  %v10308_v28 = vmax.f32 %v3728_v44, %v10296_v59  ;;  %v12522_v36 = vrot.slane %v13193_v31, 6 }
 0x279   : > { %v3209_v60 = vsel %vm3202_vm12, %v12521_v0, %v12520_v63  ;;  %v13208_v0 = vld [vmem:[#allocation66_spill] sm:$0xff] }
 0x27a   : > { %v3376_v20 = vpop.permute.xlu2 %3375  ;;  %v2746_v11 = vpop.permute.xlu1 %2745 }
 0x27b   : > { %v10312_v16 = vpop.permute.xlu0 %3360  ;;  %vm3420_vm4 = vcmp.eq.s32.totalorder %v3376_v20, 1  ;;  %vm2782_vm3 = vcmp.eq.s32.totalorder %v2746_v11, 1  ;;  %v3214_v20 = vsel %vm3202_vm12, %v13196_v38, %v12522_v36 }
 0x27c   : > { %13192 = vst [vmem:[#allocation90_spill] sm:$0xff] %v10312_v16  ;;  %v3452_v44 = vsel %vm3420_vm4, %v3209_v60, -3.4028235e+38  ;;  %v2814_v42 = vsel %vm2782_vm3, %v13194_v56, -3.4028235e+38  ;;  %vm12519_vm5 = vcmp.eq.s32.totalorder %v10312_v16, 1 }
 0x27d   : > { %v10329_v11 = vmax.f32 %v3163_v24, %v3452_v44  ;;  %v10334_v58 = vmax.f32 %v13198_v50, %v2814_v42  ;;  %v3447_v60 = vsel %vm12519_vm5, %v3214_v20, -3.4028235e+38  ;;  %v5463_v56 = vld [vmem:[%s12130_s7 + $0xc] sm:$0xf]  ;;  %v13203_v44 = vld [vmem:[#allocation74_spill] sm:$0xff] }
 0x27e   : > { %v10344_v38 = vmax.f32 %v13199_v6, %v3447_v60  ;;  %5464 = vmatpush.msk.msrb.mxu1 %vm3542_vm8, %v5463_v56  ;;  %v13204_v56 = vld [vmem:[#allocation16_spill] sm:$0xff] }
 0x280   : > { %5424 = vmatmul.msk.f32.gmra.mxu3 %vm3493_vm10, %v10344_v38 }
 0x282   : > { %v3067_v49 = vpop.permute.xlu2 %3066  ;;  %v10349_v24 = vpop.permute.xlu1 %3045 }
 0x283   : > { %13200 = vst [vmem:[#allocation93_spill] sm:$0xff] %v10349_v24  ;;  %vm3103_vm3 = vcmp.eq.s32.totalorder %v3067_v49, 1  ;;  %vm12523_vm4 = vcmp.eq.s32.totalorder %v10349_v24, 1  ;;  %v10352_v50 = vpop.permute.xlu0 %3042  ;;  %v12527_v49 = vrot.slane %v8874_v41, 6 }
 0x284   : > { %13201 = vst [vmem:[#allocation86_spill] sm:$0xff] %v10352_v50  ;;  %v10355_v42 = vsel %vm3103_vm3, %v13202_v29, -3.4028235e+38  ;;  %v3128_v43 = vsel %vm12523_vm4, %v2890_v22, -3.4028235e+38  ;;  %vm12525_vm5 = vcmp.eq.s32.totalorder %v10352_v50, 1 }
 0x285   : > { %v3160_v20 = vmax.f32 %v13203_v44, %v3128_v43  ;;  %v10365_v60 = vsel %vm12525_vm5, %v2891_v62, -3.4028235e+38  ;;  %v13207_v22 = vld [vmem:[#allocation107_spill] sm:$0xff]  ;;  %v13209_v43 = vrot.slane %v9013_v35, 6 }
 0x286   : > { %v3736_v36 = vmax.f32 %v13208_v0, %v13207_v22  ;;  %v3738_v13 = vmax.f32 %v13207_v22, %v10197_v14 }
 0x287   : > { %v3219_v62 = vsel %vm3202_vm12, %v12527_v49, %v13209_v43  ;;  %v13211_v43 = vld [vmem:[#allocation28_spill] sm:$0xff]  ;;  %v13212_v49 = vld [vmem:[#allocation95_spill] sm:$0xff] }
 0x288   : > { %v3760_v35 = vmax.f32 %v3736_v36, %v10197_v14  ;;  %v13213_v16 = vmax.f32 %v13211_v43, %v13212_v49 }
 0x28a   : > { %v10370_v29 = vpop.permute.xlu2 %3366  ;;  %v10372_v63 = vpop.permute.xlu1 %3345 }
 0x28b   : > { %13205 = vst [vmem:[#allocation22_spill] sm:$0xff] %v10370_v29  ;;  %vm12538_vm3 = vcmp.eq.s32.totalorder %v10370_v29, 1  ;;  %vm12543_vm4 = vcmp.eq.s32.totalorder %v10372_v63, 1  ;;  %v10384_v44 = vpop.permute.xlu0 %3321 }
 0x28c   : > { %13206 = vst [vmem:[#allocation63_spill] sm:$0xff] %v10372_v63  ;;  %v3449_v6 = vsel %vm12538_vm3, %v3212_v12, -3.4028235e+38  ;;  %v3442_v24 = vsel %vm12543_vm4, %v3219_v62, -3.4028235e+38  ;;  %vm12534_vm5 = vcmp.eq.s32.totalorder %v10384_v44, 1  ;;  %v13214_v12 = vmax.f32 %v13159_v8, %v10108_v52 }
 0x28d   : > { %13210 = vst [vmem:[#allocation87_spill] sm:$0xff] %v10384_v44  ;;  %v10394_v50 = vmax.f32 %v3160_v20, %v3449_v6  ;;  %v10399_v53 = vmax.f32 %v13213_v16, %v3442_v24  ;;  %v3434_v1 = vsel %vm12534_vm5, %v10134_v57, -3.4028235e+38  ;;  %v13215_v57 = vld [vmem:[#allocation5_spill] sm:$0xff] }
 0x28e   : > { %v3466_v29 = vmax.f32 %v13214_v12, %v3434_v1  ;;  %v3733_v43 = vmax.f32 %v10288_v32, %v13215_v57  ;;  %v3777_v44 = vmax.f32 %v10301_v15, %v13215_v57 }
 0x28f   : > { %v3740_v62 = vmax.f32 %v10197_v14, %v10399_v53  ;;  %v10410_v36 = vmax.f32 %v3738_v13, %v10399_v53  ;;  %v3784_v20 = vmax.f32 %v3760_v35, %v10399_v53  ;;  %v13220_v13 = vmax.f32 %v10267_v37, %v10288_v32 }
 0x290   : > { %v3732_v6 = vmax.f32 %v10296_v59, %v3466_v29  ;;  %v3734_v16 = vmax.f32 %v3466_v29, %v13208_v0  ;;  %v3754_v24 = vmax.f32 %v3730_v51, %v3466_v29  ;;  %v3776_v49 = vmax.f32 %v10308_v28, %v3466_v29 }
 0x291   : > { %v13218_v28 = vmax.f32 %v10144_v21, %v10288_v32  ;;  %v13223_v21 = vrot.slane %v9263_v18, 6  ;;  %v13225_v37 = vrot.slane %v9221_v3, 6  ;;  %v13226_v32 = vrot.slane %v9078_v19, 6 }
 0x292   : > { %v3756_v52 = vmax.f32 %v3732_v6, %v13208_v0  ;;  %v3758_v8 = vmax.f32 %v3734_v16, %v13207_v22  ;;  %v3073_v1 = vpop.permute.xlu2 %3072  ;;  %v10420_v12 = vpop.permute.xlu1 %3369  ;;  %v13219_v6 = vld [vmem:[#allocation104_spill] sm:$0xff]  ;;  %v3778_v19 = vmax.f32 %v3754_v24, %v13208_v0 }
 0x293   : > { %13216 = vst [vmem:[#allocation74_spill] sm:$0xff] %v10420_v12  ;;  %v10423_v35 = vpop.permute.xlu0 %3351  ;;  %vm12540_vm5 = vcmp.eq.s32.totalorder %v10420_v12, 1  ;;  %v3755_v29 = vmax.f32 %v13218_v28, %v13215_v57  ;;  %v10433_v16 = vmax.f32 %v3733_v43, %v13219_v6  ;;  %v13224_v43 = vrot.slane %v13177_v26, 6  ;;  %v13228_v26 = vld [vmem:[#allocation84_spill] sm:$0xff] }
 0x294   : > { %13217 = vst [vmem:[#allocation16_spill] sm:$0xff] %v10423_v35  ;;  %v3780_v59 = vmax.f32 %v3756_v52, %v13207_v22  ;;  %v3782_v51 = vmax.f32 %v3758_v8, %v10197_v14  ;;  %v10441_v52 = vmax.f32 %v13220_v13, %v13215_v57  ;;  %vm12541_vm3 = vcmp.eq.s32.totalorder %v10423_v35, 1 }
 0x295   : > { %v3211_v28 = vsel %vm3202_vm12, %v13224_v43, %v13223_v21  ;;  %v3735_v13 = vmax.f32 %v13215_v57, %v13219_v6  ;;  %v3779_v3 = vmax.f32 %v3755_v29, %v13219_v6  ;;  %v13230_v43 = vld [vmem:[#allocation112_spill] sm:$0xff]  ;;  %v13233_v29 = vrot.slane %v13149_v55, 2 }
 0x296   : > { %v10444_v8 = vmax.f32 %v3780_v59, %v10197_v14  ;;  %v10447_v39 = vmax.f32 %v3782_v51, %v10399_v53  ;;  %v3450_v15 = vsel %vm12540_vm5, %v3211_v28, -3.4028235e+38  ;;  %v3217_v14 = vsel %vm3202_vm12, %v13226_v32, %v13225_v37  ;;  %v13227_v59 = vld [vmem:[#allocation71_spill] sm:$0xff]  ;;  %v13241_v32 = vld [vmem:[#allocation13_spill] sm:$0xff] }
 0x297   : > { %v13229_v51 = vmax.f32 %v13227_v59, %v13228_v26  ;;  %v3444_v21 = vsel %vm12541_vm3, %v3217_v14, -3.4028235e+38  ;;  %v10477_v28 = vmax.f32 %v3777_v44, %v13219_v6  ;;  %v13232_v37 = vmax.f32 %v10157_v4, %v10167_v61 }
 0x298   : > { %13221 = vst [vmem:[#allocation107_spill] sm:$0xff] %v10444_v8  ;;  %vm3105_vm4 = vcmp.eq.s32.totalorder %v3073_v1, 1  ;;  %v13245_v1 = vrot.slane %v13193_v31, 6  ;;  %v13266_v8 = vld [vmem:[#allocation6_spill] sm:$0xff] }
 0x299   : > { %13222 = vst [vmem:[#allocation66_spill] sm:$0xff] %v10447_v39  ;;  %v10469_v39 = vmax.f32 %v13229_v51, %v3450_v15  ;;  %v10482_v57 = vmax.f32 %v13232_v37, %v3444_v21  ;;  %v13234_v51 = vrot.slane %v13191_v2, 2  ;;  %v10503_v15 = vmax.f32 %v3776_v49, %v13208_v0  ;;  %v13236_v0 = vld [vmem:[#allocation38_spill] sm:$0xff]  ;;  %v13237_v49 = vld [vmem:[#allocation17_spill] sm:$0xff] }
 0x29a   : > { %13231 = vst [vmem:[#allocation28_spill] sm:$0xff] %v10477_v28  ;;  %v2749_v14 = vpop.permute.xlu2 %2748  ;;  %v3052_v26 = vpop.permute.xlu1 %3051 }
 0x29b   : > { %v2888_v44 = vsel %vm2881_vm9, %v13234_v51, %v13233_v29  ;;  %v3742_v4 = vmax.f32 %v10399_v53, %v10482_v57  ;;  %v3764_v61 = vmax.f32 %v3740_v62, %v10482_v57  ;;  %v3786_v21 = vmax.f32 %v10410_v36, %v10482_v57  ;;  %v2752_v37 = vpop.permute.xlu0 %2751 }
 0x29c   : > { %v10500_v59 = vmax.f32 %v3784_v20, %v10482_v57  ;;  %vm2783_vm5 = vcmp.eq.s32.totalorder %v2749_v14, 1  ;;  %vm3098_vm3 = vcmp.eq.s32.totalorder %v3052_v26, 1  ;;  %vm2784_vm14 = vcmp.eq.s32.totalorder %v2752_v37, 1 }
 0x29d   : > { %v2815_v24 = vsel %vm2783_vm5, %v9957_v7, -3.4028235e+38  ;;  %v10506_v29 = vsel %vm3098_vm3, %v2888_v44, -3.4028235e+38  ;;  %v2816_v51 = vsel %vm2784_vm14, %v9963_v40, -3.4028235e+38  ;;  %v10510_v62 = vmax.f32 %v3779_v3, %v13230_v43 }
 0x29e   : > { %v13238_v37 = vmax.f32 %v13236_v0, %v13237_v49  ;;  %v13240_v44 = vld [vmem:[#allocation76_spill] sm:$0xff]  ;;  %v13242_v3 = vld [vmem:[#allocation19_spill] sm:$0xff]  ;;  %v13244_v36 = vrot.slane %v9248_v54, 6  ;;  %v13246_v26 = vrot.slane %v8874_v41, 6  ;;  %v13247_v0 = vrot.slane %v8813_v30, 6  ;;  %v13249_v41 = vld [vmem:[#allocation50_spill] sm:$0xff] }
 0x29f   : > { %13235 = vst [vmem:[#allocation95_spill] sm:$0xff] %v10510_v62  ;;  %v13243_v12 = vmax.f32 %v13241_v32, %v13242_v3  ;;  %v3737_v49 = vmax.f32 %v13219_v6, %v13230_v43  ;;  %v10541_v32 = vmax.f32 %v3778_v19, %v13207_v22  ;;  %v3744_v30 = vmax.f32 %v10482_v57, %v13249_v41 }
 0x2a0   : > { %v10519_v7 = vmax.f32 %v13238_v37, %v2815_v24  ;;  %v3213_v14 = vsel %vm3202_vm12, %v13245_v1, %v13244_v36  ;;  %v3220_v24 = vsel %vm3202_vm12, %v13247_v0, %v13246_v26  ;;  %v10550_v37 = vmax.f32 %v3786_v21, %v13249_v41  ;;  %v13252_v1 = vld [vmem:[#allocation59_spill] sm:$0xff] }
 0x2a1   : > { %v2848_v46 = vmax.f32 %v13243_v12, %v2816_v51  ;;  %v13248_v12 = vld [vmem:[#allocation25_spill] sm:$0xff]  ;;  %v3759_v51 = vmax.f32 %v3735_v13, %v13230_v43  ;;  %v12553_v22 = vrot.slane %v10500_v59, 1  ;;  %v12547_v19 = vrot.slane %v10500_v59, 7 }
 0x2a2   : > { %13239 = vst [vmem:[#allocation5_spill] sm:$0xff] %v10519_v7  ;;  %v3137_v31 = vsel %vm3105_vm4, %v13248_v12, -3.4028235e+38  ;;  %v3394_v26 = vpop.permute.xlu2 %3393  ;;  %v10552_v6 = vpop.permute.xlu1 %3363  ;;  %v3766_v21 = vmax.f32 %v3742_v4, %v13249_v41 }
 0x2a3   : > { %v3169_v3 = vmax.f32 %v2848_v46, %v3137_v31  ;;  %13250 = vst [vmem:[#allocation104_spill] sm:$0xff] %v10552_v6  ;;  %vm3426_vm14 = vcmp.eq.s32.totalorder %v3394_v26, 1  ;;  %vm3416_vm5 = vcmp.eq.s32.totalorder %v10552_v6, 1  ;;  %v10557_v13 = vpop.permute.xlu0 %3342  ;;  %v13253_v31 = vmax.f32 %v13204_v56, %v10365_v60 }
 0x2a4   : > { %13251 = vst [vmem:[#allocation71_spill] sm:$0xff] %v10557_v13  ;;  %v3458_v0 = vsel %vm3426_vm14, %v13252_v1, -3.4028235e+38  ;;  %v3448_v12 = vsel %vm3416_vm5, %v3213_v14, -3.4028235e+38  ;;  %vm3409_vm4 = vcmp.eq.s32.totalorder %v10557_v13, 1  ;;  %v3788_v26 = vmax.f32 %v3764_v61, %v13249_v41 }
 0x2a5   : > { %v10564_v46 = vmax.f32 %v3169_v3, %v3458_v0  ;;  %v10569_v36 = vmax.f32 %v13253_v31, %v3448_v12  ;;  %v3441_v20 = vsel %vm3409_vm4, %v3220_v24, -3.4028235e+38  ;;  %v3834_v1 = vrot.slane %v10550_v37, 1 }
 0x2a6   : > { %v13254_v3 = vmax.f32 %v10084_v25, %v10217_v45 }
 0x2a7   : > { %v3768_v60 = vmax.f32 %v3744_v30, %v10569_v36  ;;  %v3790_v56 = vmax.f32 %v3766_v21, %v10569_v36  ;;  %v10584_v61 = vmax.f32 %v3788_v26, %v10569_v36  ;;  %5425 = vmatmul.msk.f32.gmra.mxu3 %vm3493_vm10, %v10569_v36  ;;  %v3930_v21 = vrot.slane %v10550_v37, 7 }
 0x2a8   : > { %v3473_v0 = vmax.f32 %v13254_v3, %v3441_v20  ;;  %v13255_v20 = vmax.f32 %v10433_v16, %v13230_v43  ;;  %v13257_v3 = vld [vmem:[#allocation108_spill] sm:$0xff] }
 0x2a9   : > { %v3792_v25 = vmax.f32 %v3768_v60, %v10469_v39  ;;  %v10593_v45 = vmax.f32 %v3790_v56, %v10469_v39  ;;  %v3836_v56 = vrot.slane %v10584_v61, 1 }
 0x2aa   : > { %v3739_v24 = vmax.f32 %v13230_v43, %v3473_v0  ;;  %v3741_v12 = vmax.f32 %v3473_v0, %v10283_v9  ;;  %v3761_v31 = vmax.f32 %v3737_v49, %v3473_v0  ;;  %v3783_v54 = vmax.f32 %v3759_v51, %v3473_v0  ;;  %5418 = vmatmul.msk.f32.gmra.mxu1 %vm3493_vm10, %v3473_v0  ;;  %v3058_v27 = vpop.permute.xlu1 %3057 }
 0x2ab   : > { %v10598_v30 = vmax.f32 %v13255_v20, %v3473_v0  ;;  %v10608_v60 = vmax.f32 %v3792_v25, %v10329_v11  ;;  %v3932_v25 = vrot.slane %v10584_v61, 7  ;;  %v13261_v35 = vrot.slane %v10593_v45, 1 }
 0x2ac   : > { %v3763_v26 = vmax.f32 %v3739_v24, %v10283_v9  ;;  %v3765_v4 = vmax.f32 %v3741_v12, %v13257_v3  ;;  %v3785_v49 = vmax.f32 %v3761_v31, %v10283_v9  ;;  %v10605_v51 = vmax.f32 %v3783_v54, %v10283_v9  ;;  %v5445_v54 = vld [vmem:[%s12130_s7 + $0x8] sm:$0xf] }
 0x2ad   : > { %13256 = vst [vmem:[#allocation84_spill] sm:$0xff] %v10598_v30  ;;  %5446 = vmatpush.msk.msra.mxu3 %vm3542_vm8, %v5445_v54 }
 0x2ae   : > { %v3787_v0 = vmax.f32 %v3763_v26, %v13257_v3  ;;  %v3789_v24 = vmax.f32 %v3765_v4, %v10344_v38  ;;  %v10616_v12 = vmax.f32 %v3785_v49, %v13257_v3  ;;  %v12546_v31 = vrot.slane %v10605_v51, 7 }
 0x2af   : > { %5426 = vmatmul.msk.f32.gmra.mxu3 %vm3493_vm10, %v10394_v50 }
 0x2b0   : > { %v10628_v4 = vmax.f32 %v3787_v0, %v10344_v38  ;;  %v10631_v26 = vmax.f32 %v3789_v24, %v10394_v50  ;;  %v3833_v49 = vrot.slane %v10616_v12, 1  ;;  %v3929_v16 = vrot.slane %v10616_v12, 7 }
 0x2b1   : > { %v3957_v14 = vsel %vm2560_vm11, %v12546_v31, %v12547_v19  ;;  %v4025_v54 = vrot.slane %v10616_v12, 2  ;;  %v13259_v19 = vld [vmem:[#allocation35_spill] sm:$0xff] }
 0x2b2   : > { %v3835_v24 = vrot.slane %v10628_v4, 1  ;;  %v3837_v40 = vrot.slane %v10631_v26, 1  ;;  %v3859_v43 = vsel %vm2239_vm7, %v3833_v49, %v3834_v1  ;;  %v3860_v20 = vsel %vm2239_vm7, %v12553_v22, %v3833_v49  ;;  %5419 = vmatmul.msk.f32.gmra.mxu1 %vm3493_vm10, %v10399_v53  ;;  %v13262_v22 = vld [vmem:[#allocation46_spill] sm:$0xff] }
 0x2b3   : > { %v3880_v0 = vsel %vm2441_vm15, %v3860_v20, -3.4028235e+38  ;;  %vm13260_vm8 = vcmp.eq.s32.totalorder %v13259_v19, 1  ;;  %v3931_v30 = vrot.slane %v10628_v4, 7  ;;  %v3933_v7 = vrot.slane %v10631_v26, 7  ;;  %v13264_v19 = vld [vmem:[#allocation45_spill] sm:$0xff] }
 0x2b4   : > { %v3881_v6 = vsel %vm13260_vm8, %v3859_v43, -3.4028235e+38  ;;  %v3855_v28 = vsel %vm2239_vm7, %v3837_v40, %v13261_v35  ;;  %v3856_v49 = vsel %vm2239_vm7, %v3836_v56, %v3837_v40  ;;  %v3857_v53 = vsel %vm2239_vm7, %v3835_v24, %v3836_v56 }
 0x2b5   : > { %v3858_v20 = vsel %vm2239_vm7, %v3834_v1, %v3835_v24  ;;  %vm13263_vm3 = vcmp.eq.s32.totalorder %v13262_v22, 1  ;;  %vm13265_vm14 = vcmp.eq.s32.totalorder %v13264_v19, 1  ;;  %vm13267_vm8 = vcmp.eq.s32.totalorder %v13266_v8, 1 }
 0x2b6   : > { %v3882_v43 = vsel %vm13263_vm3, %v3858_v20, -3.4028235e+38  ;;  %v3883_v31 = vsel %vm13265_vm14, %v3857_v53, -3.4028235e+38  ;;  %v3884_v62 = vsel %vm13267_vm8, %v3856_v49, -3.4028235e+38  ;;  %v3904_v35 = vmax.f32 %v10500_v59, %v3880_v0 }
 0x2b7   : > { %v3885_v40 = vsel %vm12558_vm13, %v3855_v28, -3.4028235e+38  ;;  %v3905_v23 = vmax.f32 %v10616_v12, %v3881_v6  ;;  %v3906_v56 = vmax.f32 %v10550_v37, %v3882_v43  ;;  %v3907_v1 = vmax.f32 %v10628_v4, %v3883_v31  ;;  %5427 = vmatmul.msk.f32.gmra.mxu3 %vm3493_vm10, %v10469_v39 }
 0x2b8   : > { %v3908_v24 = vmax.f32 %v10584_v61, %v3884_v62  ;;  %v3909_v20 = vmax.f32 %v10631_v26, %v3885_v40  ;;  %v13269_v53 = vrot.slane %v10593_v45, 7  ;;  %v3952_v0 = vsel %vm2560_vm11, %v3932_v25, %v3933_v7  ;;  %v13271_v40 = vld [vmem:[#allocation83_spill] sm:$0xff] }
 0x2b9   : > { %v3953_v28 = vsel %vm2560_vm11, %v3931_v30, %v3932_v25  ;;  %v3954_v6 = vsel %vm2560_vm11, %v3930_v21, %v3931_v30  ;;  %v3955_v62 = vsel %vm2560_vm11, %v3929_v16, %v3930_v21  ;;  %v13270_v31 = vrot.slane %v10500_v59, 7  ;;  %v13276_v21 = vld [vmem:[#allocation8_spill] sm:$0xff] }
 0x2ba   : > { %v10690_v49 = vsel %vm2560_vm11, %v3933_v7, %v13269_v53  ;;  %vm13272_vm3 = vcmp.eq.s32.totalorder %v13271_v40, 1  ;;  %vm13274_vm14 = vcmp.eq.s32.totalorder %v13273_v33, 1  ;;  %v13275_v8 = vrot.slane %v10550_v37, 2  ;;  %5420 = vmatmul.msk.f32.gmra.mxu1 %vm3493_vm10, %v10283_v9 }
 0x2bb   : > { %v3956_v43 = vsel %vm2560_vm11, %v13270_v31, %v3929_v16  ;;  %v3976_v53 = vsel %vm13272_vm3, %v3957_v14, -3.4028235e+38  ;;  %v4121_v30 = vrot.slane %v10616_v12, 6  ;;  %vm13277_vm8 = vcmp.eq.s32.totalorder %v13276_v21, 1  ;;  %v13278_v16 = vld [vmem:[#allocation89_spill] sm:$0xff]  ;;  %v13280_v14 = vld [vmem:[#allocation27_spill] sm:$0xff] }
 0x2bc   : > { %v3977_v7 = vsel %vm13274_vm14, %v3956_v43, -3.4028235e+38  ;;  %v4051_v25 = vsel %vm2881_vm9, %v4025_v54, %v13275_v8  ;;  %v3978_v19 = vsel %vm13277_vm8, %v3955_v62, -3.4028235e+38  ;;  %vm13279_vm13 = vcmp.eq.s32.totalorder %v13278_v16, 1 }
 0x2bd   : > { %v3979_v31 = vsel %vm13279_vm13, %v3954_v6, -3.4028235e+38  ;;  %vm13281_vm3 = vcmp.eq.s32.totalorder %v13280_v14, 1  ;;  %v10721_v43 = vmax.f32 %v3904_v35, %v3976_v53  ;;  %v3981_v12 = vsel %vm2767_vm0, %v3952_v0, -3.4028235e+38 }
 0x2be   : > { %v3980_v33 = vsel %vm13281_vm3, %v3953_v28, -3.4028235e+38  ;;  %v4001_v22 = vmax.f32 %v3905_v23, %v3977_v7  ;;  %v4002_v40 = vmax.f32 %v3906_v56, %v3978_v19  ;;  %v4003_v47 = vmax.f32 %v3907_v1, %v3979_v31  ;;  %v13290_v7 = vld [vmem:[#allocation98_spill] sm:$0xff] }
 0x2bf   : > { %13282 = vst [vmem:[#allocation112_spill] sm:$0xff] %v10721_v43  ;;  %v4004_v21 = vmax.f32 %v3908_v24, %v3980_v33  ;;  %v4005_v62 = vmax.f32 %v3909_v20, %v3981_v12  ;;  %v4027_v16 = vrot.slane %v10628_v4, 2  ;;  %v4029_v6 = vrot.slane %v10631_v26, 2  ;;  %v13292_v31 = vld [vmem:[#allocation110_spill] sm:$0xff] }
 0x2c0   : > { %v13284_v28 = vrot.slane %v10500_v59, 2  ;;  %v4073_v8 = vsel %vm3084_vm2, %v4051_v25, -3.4028235e+38  ;;  %v4123_v23 = vrot.slane %v10628_v4, 6  ;;  %v4125_v19 = vrot.slane %v10631_v26, 6  ;;  %v3382_v26 = vpop.permute.xlu0 %3381 }
 0x2c1   : > { %v13286_v33 = vrot.slane %v10593_v45, 2  ;;  %v13287_v1 = vrot.slane %v10584_v61, 2  ;;  %v13289_v0 = vrot.slane %v10550_v37, 2  ;;  %vm13291_vm13 = vcmp.eq.s32.totalorder %v13290_v7, 1  ;;  %v13390_v7 = vld [vmem:[#allocation96_spill] sm:$0xff] }
 0x2c2   : > { %v10733_v35 = vsel %vm2881_vm9, %v13284_v28, %v4025_v54  ;;  %vm13293_vm14 = vcmp.eq.s32.totalorder %v13292_v31, 1  ;;  %v4097_v28 = vmax.f32 %v4001_v22, %v4073_v8  ;;  %5421 = vmatmul.msk.f32.gmra.mxu1 %vm3493_vm10, %v10482_v57  ;;  %v13307_v57 = vld [vmem:[#allocation100_spill] sm:$0xff] }
 0x2c3   : > { %v4047_v56 = vsel %vm2881_vm9, %v4029_v6, %v13286_v33  ;;  %v4048_v24 = vsel %vm2881_vm9, %v13287_v1, %v4029_v6  ;;  %v13288_v54 = vmov %v13287_v1  ;;  %v4050_v4 = vsel %vm2881_vm9, %v13289_v0, %v4027_v16  ;;  %v13294_v33 = vld [vmem:[#allocation106_spill] sm:$0xff]  ;;  %v13387_v31 = vld [vmem:[#allocation4_spill] sm:$0xff] }
 0x2c4   : > { %v4049_v20 = vsel %vm2881_vm9, %v4027_v16, %v13288_v54  ;;  %v4074_v25 = vsel %vm13291_vm13, %v4050_v4, -3.4028235e+38  ;;  %v12562_v6 = vrot.slane %v10593_v45, 6  ;;  %vm13295_vm8 = vcmp.eq.s32.totalorder %v13294_v33, 1 }
 0x2c5   : > { %v4075_v12 = vsel %vm13293_vm14, %v4049_v20, -3.4028235e+38  ;;  %v4076_v1 = vsel %vm13295_vm8, %v4048_v24, -3.4028235e+38  ;;  %v4077_v54 = vsel %vm3088_vm6, %v4047_v56, -3.4028235e+38  ;;  %v4098_v14 = vmax.f32 %v4002_v40, %v4074_v25 }
 0x2c6   : > { %v4099_v53 = vmax.f32 %v4003_v47, %v4075_v12  ;;  %v4100_v43 = vmax.f32 %v4004_v21, %v4076_v1  ;;  %v4101_v16 = vmax.f32 %v4005_v62, %v4077_v54  ;;  %v4143_v0 = vsel %vm3202_vm12, %v4125_v19, %v12562_v6 }
 0x2c7   : > { %v13296_v20 = vrot.slane %v10584_v61, 6  ;;  %v13298_v40 = vrot.slane %v10550_v37, 6  ;;  %v13300_v56 = vrot.slane %v10500_v59, 6  ;;  %v13302_v25 = vrot.slane %v10605_v51, 6  ;;  %v3391_v61 = vpop.permute.xlu2 %3390 }
 0x2c8   : > { %v3746_v1 = vmax.f32 %v13249_v41, %v10569_v36  ;;  %vm13308_vm14 = vcmp.eq.s32.totalorder %v13307_v57, 1  ;;  %v3388_v41 = vpop.permute.xlu1 %3387  ;;  %vm3100_vm8 = vcmp.eq.s32.totalorder %v3058_v27, 1  ;;  %v3373_v27 = vpop.permute.xlu0 %3372  ;;  %v13338_v6 = vrot.slane %v10441_v52, 2 }
 0x2c9   : > { %v4144_v22 = vsel %vm3202_vm12, %v13296_v20, %v4125_v19  ;;  %v13297_v8 = vmov %v13296_v20  ;;  %v4146_v47 = vsel %vm3202_vm12, %v13298_v40, %v4123_v23  ;;  %v13299_v21 = vmov %v13298_v40 }
 0x2ca   : > { %v4145_v24 = vsel %vm3202_vm12, %v4123_v23, %v13297_v8  ;;  %v4147_v62 = vsel %vm3202_vm12, %v4121_v30, %v13299_v21  ;;  %v4148_v19 = vsel %vm3202_vm12, %v13300_v56, %v4121_v30  ;;  %v13301_v4 = vmov %v13300_v56  ;;  %v13303_v23 = vld [vmem:[#allocation23_spill] sm:$0xff]  ;;  %v13305_v30 = vld [vmem:[#allocation70_spill] sm:$0xff] }
 0x2cb   : > { %v10797_v37 = vsel %vm3202_vm12, %v13302_v25, %v13301_v4  ;;  %vm13304_vm3 = vcmp.eq.s32.totalorder %v13303_v23, 1  ;;  %vm13306_vm13 = vcmp.eq.s32.totalorder %v13305_v30, 1  ;;  %v4171_v20 = vsel %vm13308_vm14, %v4146_v47, -3.4028235e+38 }
 0x2cc   : > { %v4169_v12 = vsel %vm13304_vm3, %v4148_v19, -3.4028235e+38  ;;  %v4170_v54 = vsel %vm13306_vm13, %v4147_v62, -3.4028235e+38  ;;  %v4172_v8 = vsel %vm3408_vm1, %v4145_v24, -3.4028235e+38  ;;  %v10815_v19 = vmax.f32 %v4099_v53, %v4171_v20 }
 0x2cd   : > { %v10809_v40 = vmax.f32 %v4097_v28, %v4169_v12  ;;  %v4173_v21 = vsel %vm3409_vm4, %v4144_v22, -3.4028235e+38  ;;  %v10813_v56 = vmax.f32 %v4098_v14, %v4170_v54  ;;  %v10817_v4 = vmax.f32 %v4100_v43, %v4172_v8  ;;  %v13311_v14 = vld [vmem:[#allocation24_spill] sm:$0xff]  ;;  %v13312_v53 = vld [vmem:[#allocation21_spill] sm:$0xff]  ;;  %v13313_v54 = vld [vmem:[#allocation62_spill] sm:$0xff] }
 0x2ce   : > { %v10821_v47 = vmax.f32 %v4101_v16, %v4173_v21  ;;  %v10827_v24 = vsel %vm3100_vm8, %v13311_v14, -3.4028235e+38  ;;  %vm3422_vm3 = vcmp.eq.s32.totalorder %v3382_v26, 1  ;;  %v3770_v20 = vmax.f32 %v3746_v1, %v10469_v39  ;;  %v13316_v43 = vld [vmem:[#allocation118_spill] sm:$0xff] }
 0x2cf   : > { %13309 = vst [vmem:[#allocation38_spill] sm:$0xff] %v10817_v4  ;;  %v4351_v22 = vmax.f32 %v10809_v40, %v10815_v19  ;;  %v3164_v12 = vmax.f32 %v13312_v53, %v10827_v24  ;;  %v3454_v16 = vsel %vm3422_vm3, %v13313_v54, -3.4028235e+38  ;;  %vm3425_vm13 = vcmp.eq.s32.totalorder %v3391_v61, 1  ;;  %v13336_v61 = vld [vmem:[#allocation65_spill] sm:$0xff] }
 0x2d0   : > { %13310 = vst [vmem:[#allocation17_spill] sm:$0xff] %v10821_v47  ;;  %v13315_v21 = vmax.f32 %v13185_v5, %v10256_v10  ;;  %vm3424_vm14 = vcmp.eq.s32.totalorder %v3388_v41, 1  ;;  %v3794_v26 = vmax.f32 %v3770_v20, %v10329_v11  ;;  %v3748_v28 = vmax.f32 %v10569_v36, %v10469_v39  ;;  %v13320_v20 = vld [vmem:[#allocation92_spill] sm:$0xff]  ;;  %v13456_v4 = vld [vmem:[#allocation33_spill] sm:$0xff] }
 0x2d1   : > { %v10836_v8 = vmax.f32 %v4351_v22, %v10821_v47  ;;  %v3456_v25 = vsel %vm3424_vm14, %v13316_v43, -3.4028235e+38  ;;  %v3750_v1 = vmax.f32 %v10469_v39, %v10329_v11  ;;  %v13317_v22 = vmax.f32 %v10334_v58, %v10355_v42  ;;  %v13322_v42 = vld [vmem:[#allocation101_spill] sm:$0xff] }
 0x2d2   : > { %v3486_v14 = vmax.f32 %v13315_v21, %v3454_v16  ;;  %v3823_v62 = vrot.slane %v10441_v52, 1  ;;  %v13318_v10 = vrot.slane %v13191_v2, 6  ;;  %v13319_v5 = vrot.slane %v9263_v18, 6 }
 0x2d3   : > { %13314 = vst [vmem:[#allocation76_spill] sm:$0xff] %v10836_v8  ;;  %v3488_v54 = vmax.f32 %v13317_v22, %v3456_v25  ;;  %vm3419_vm8 = vcmp.eq.s32.totalorder %v3373_v27, 1  ;;  %v3772_v36 = vmax.f32 %v3748_v28, %v10329_v11  ;;  %vm13321_vm3 = vcmp.eq.s32.totalorder %v13320_v20, 1  ;;  %v13326_v27 = vld [vmem:[#allocation113_spill] sm:$0xff] }
 0x2d4   : > { %v3210_v41 = vsel %vm3202_vm12, %v13319_v5, %v13318_v10  ;;  %v10857_v43 = vmax.f32 %v3794_v26, %v3486_v14  ;;  %v3774_v16 = vmax.f32 %v3750_v1, %v3486_v14  ;;  %v10863_v58 = vsel %vm13321_vm3, %v10690_v49, -3.4028235e+38  ;;  %v13328_v10 = vld [vmem:[#allocation36_spill] sm:$0xff] }
 0x2d5   : > { %v3451_v39 = vsel %vm3419_vm8, %v3210_v41, -3.4028235e+38  ;;  %vm13323_vm14 = vcmp.eq.s32.totalorder %v13322_v42, 1  ;;  %v13324_v18 = vrot.slane %v10503_v15, 1  ;;  %v3743_v11 = vmax.f32 %v10283_v9, %v13257_v3 }
 0x2d6   : > { %v10868_v2 = vsel %vm13323_vm14, %v10733_v35, -3.4028235e+38  ;;  %vm13325_vm8 = vcmp.eq.s32.totalorder %v10372_v63, 1  ;;  %v10882_v49 = vsel %vm3425_vm13, %v13326_v27, -3.4028235e+38  ;;  %v13327_v35 = vmax.f32 %v13240_v44, %v10506_v29  ;;  %v13334_v44 = vld [vmem:[#allocation60_spill] sm:$0xff] }
 0x2d7   : > { %v3869_v25 = vsel %vm2239_vm7, %v3823_v62, %v13324_v18  ;;  %v10878_v28 = vsel %vm13325_vm8, %v4143_v0, -3.4028235e+38  ;;  %v12567_v26 = vrot.slane %v10608_v60, 1  ;;  %v3796_v1 = vmax.f32 %v3772_v36, %v3486_v14  ;;  %v3379_v0 = vpop.permute.xlu1 %3378  ;;  %v13352_v63 = vld [vmem:[#allocation26_spill] sm:$0xff] }
 0x2d8   : > { %v10887_v21 = vmax.f32 %v13327_v35, %v3451_v39  ;;  %v3798_v22 = vmax.f32 %v3774_v16, %v3488_v54  ;;  %vm13329_vm3 = vcmp.eq.s32.totalorder %v13328_v10, 1  ;;  %v3767_v5 = vmax.f32 %v3743_v11, %v10344_v38  ;;  %v13330_v11 = vld [vmem:[#allocation18_spill] sm:$0xff]  ;;  %v13342_v16 = vld [vmem:[#allocation47_spill] sm:$0xff] }
 0x2d9   : > { %v3871_v9 = vsel %vm13329_vm3, %v3869_v25, -3.4028235e+38  ;;  %v10898_v39 = vmax.f32 %v3796_v1, %v3488_v54  ;;  %v13331_v27 = vrot.slane %v13330_v11, 6  ;;  %v13332_v35 = vrot.slane %v13149_v55, 6  ;;  %v3064_v25 = vpop.permute.xlu0 %3063 }
 0x2da   : > { %v3895_v29 = vmax.f32 %v10441_v52, %v3871_v9  ;;  %v10901_v14 = vmax.f32 %v3798_v22, %v10564_v46  ;;  %v3791_v36 = vmax.f32 %v3767_v5, %v10394_v50  ;;  %vm3421_vm13 = vcmp.eq.s32.totalorder %v3379_v0, 1 }
 0x2db   : > { %v3208_v9 = vsel %vm3202_vm12, %v13332_v35, %v13331_v27  ;;  %v3745_v22 = vmax.f32 %v13257_v3, %v10344_v38  ;;  %v13333_v27 = vrot.slane %v10441_v52, 7  ;;  %vm13335_vm14 = vcmp.eq.s32.totalorder %v13334_v44, 1 }
 0x2dc   : > { %v12563_v54 = vrot.slane %v10901_v14, 1  ;;  %v12565_v1 = vrot.slane %v10901_v14, 7  ;;  %v12564_v11 = vrot.slane %v10901_v14, 2  ;;  %v12566_v55 = vrot.slane %v10901_v14, 6 }
 0x2dd   : > { %v3815_v35 = vmax.f32 %v3791_v36, %v10887_v21  ;;  %v3453_v5 = vsel %vm3421_vm13, %v3208_v9, -3.4028235e+38  ;;  %vm13337_vm8 = vcmp.eq.s32.totalorder %v13336_v61, 1  ;;  %vm13343_vm13 = vcmp.eq.s32.totalorder %v13342_v16, 1 }
 0x2de   : > { %v3870_v0 = vsel %vm2239_vm7, %v12563_v54, %v3823_v62  ;;  %v3966_v3 = vsel %vm2560_vm11, %v12565_v1, %v13333_v27  ;;  %v4062_v62 = vsel %vm2881_vm9, %v12564_v11, %v13338_v6  ;;  %v13339_v54 = vrot.slane %v10441_v52, 6  ;;  %v13340_v27 = vld [vmem:[#allocation122_spill] sm:$0xff] }
 0x2df   : > { %v10934_v18 = vsel %vm13335_vm14, %v3870_v0, -3.4028235e+38  ;;  %v3967_v41 = vsel %vm13337_vm8, %v3966_v3, -3.4028235e+38  ;;  %vm13341_vm3 = vcmp.eq.s32.totalorder %v13340_v27, 1  ;;  %v3839_v11 = vrot.slane %v3815_v35, 1 }
 0x2e0   : > { %v4158_v36 = vsel %vm3202_vm12, %v12566_v55, %v13339_v54  ;;  %v10952_v9 = vmax.f32 %v3895_v29, %v3967_v41  ;;  %v3935_v1 = vrot.slane %v3815_v35, 7  ;;  %v4031_v46 = vrot.slane %v3815_v35, 2 }
 0x2e1   : > { %v10957_v3 = vsel %vm13341_vm3, %v4158_v36, -3.4028235e+38  ;;  %v10962_v54 = vsel %vm13343_vm13, %v4062_v62, -3.4028235e+38  ;;  %v4127_v55 = vrot.slane %v3815_v35, 6  ;;  %v10967_v41 = vmax.f32 %v3164_v12, %v3453_v5  ;;  %v13347_v12 = vld [vmem:[#allocation48_spill] sm:$0xff] }
 0x2e2   : > { %v3769_v29 = vmax.f32 %v3745_v22, %v10394_v50  ;;  %v3853_v36 = vsel %vm2239_vm7, %v3839_v11, %v12567_v26  ;;  %v13344_v44 = vrot.slane %v10593_v45, 1  ;;  %v13345_v62 = vrot.slane %v10608_v60, 7  ;;  %v13349_v5 = vld [vmem:[#allocation39_spill] sm:$0xff] }
 0x2e3   : > { %v13346_v24 = vrot.slane %v10593_v45, 7  ;;  %vm13348_vm14 = vcmp.eq.s32.totalorder %v13347_v12, 1  ;;  %vm13350_vm8 = vcmp.eq.s32.totalorder %v13349_v5, 1  ;;  %v13351_v26 = vrot.slane %v10608_v60, 2  ;;  %v13357_v5 = vld [vmem:[#allocation111_spill] sm:$0xff] }
 0x2e4   : > { %v3854_v16 = vsel %vm2239_vm7, %v13344_v44, %v3839_v11  ;;  %v3949_v6 = vsel %vm2560_vm11, %v3935_v1, %v13345_v62  ;;  %v3887_v0 = vsel %vm13350_vm8, %v3853_v36, -3.4028235e+38  ;;  %vm3102_vm3 = vcmp.eq.s32.totalorder %v3064_v25, 1 }
 0x2e5   : > { %v3950_v53 = vsel %vm2560_vm11, %v13346_v24, %v3935_v1  ;;  %v3886_v22 = vsel %vm13348_vm14, %v3854_v16, -3.4028235e+38  ;;  %v4045_v11 = vsel %vm2881_vm9, %v4031_v46, %v13351_v26  ;;  %v3911_v62 = vmax.f32 %v3815_v35, %v3887_v0  ;;  %v13355_v24 = vld [vmem:[#allocation80_spill] sm:$0xff] }
 0x2e6   : > { %v3910_v44 = vmax.f32 %v10593_v45, %v3886_v22  ;;  %vm13353_vm13 = vcmp.eq.s32.totalorder %v13352_v63, 1  ;;  %v13354_v1 = vrot.slane %v10593_v45, 2  ;;  %vm13356_vm14 = vcmp.eq.s32.totalorder %v13355_v24, 1  ;;  %v13365_v24 = vld [vmem:[#allocation114_spill] sm:$0xff] }
 0x2e7   : > { %v3983_v20 = vsel %vm13353_vm13, %v3950_v53, -3.4028235e+38  ;;  %v3984_v36 = vsel %vm13356_vm14, %v3949_v6, -3.4028235e+38  ;;  %vm13358_vm8 = vcmp.eq.s32.totalorder %v13357_v5, 1  ;;  %v13359_v26 = vrot.slane %v10608_v60, 6 }
 0x2e8   : > { %v4046_v16 = vsel %vm2881_vm9, %v13354_v1, %v4031_v46  ;;  %v13360_v35 = vrot.slane %v10593_v45, 6  ;;  %v4006_v0 = vmax.f32 %v3910_v44, %v10863_v58  ;;  %v4007_v53 = vmax.f32 %v3911_v62, %v3983_v20  ;;  %v13361_v46 = vld [vmem:[#allocation121_spill] sm:$0xff]  ;;  %v13363_v6 = vld [vmem:[#allocation40_spill] sm:$0xff]  ;;  %v13367_v45 = vld [vmem:[#allocation107_spill] sm:$0xff] }
 0x2e9   : > { %v4078_v12 = vsel %vm13358_vm8, %v4046_v16, -3.4028235e+38  ;;  %v4141_v25 = vsel %vm3202_vm12, %v4127_v55, %v13359_v26  ;;  %vm13362_vm13 = vcmp.eq.s32.totalorder %v13361_v46, 1  ;;  %vm13364_vm14 = vcmp.eq.s32.totalorder %v13363_v6, 1  ;;  %v13366_v26 = vld [vmem:[#allocation95_spill] sm:$0xff]  ;;  %v13368_v58 = vld [vmem:[#allocation52_spill] sm:$0xff] }
 0x2ea   : > { %v4142_v63 = vsel %vm3202_vm12, %v13360_v35, %v4127_v55  ;;  %v4079_v22 = vsel %vm13362_vm13, %v4045_v11, -3.4028235e+38  ;;  %v3793_v16 = vmax.f32 %v3769_v29, %v10887_v21  ;;  %v11020_v5 = vsel %vm3102_vm3, %v13365_v24, -3.4028235e+38  ;;  %v13370_v11 = vld [vmem:[#allocation28_spill] sm:$0xff]  ;;  %v13377_v24 = vld [vmem:[#allocation31_spill] sm:$0xff] }
 0x2eb   : > { %v4175_v1 = vsel %vm13364_vm14, %v4142_v63, -3.4028235e+38  ;;  %v12573_v13 = vrot.slane %v13366_v26, 1  ;;  %v12572_v17 = vrot.slane %v13367_v45, 1  ;;  %v4102_v34 = vmax.f32 %v4006_v0, %v4078_v12  ;;  %v13372_v29 = vld [vmem:[#allocation16_spill] sm:$0xff]  ;;  %v13374_v0 = vld [vmem:[#allocation10_spill] sm:$0xff] }
 0x2ec   : > { %v4103_v55 = vmax.f32 %v4007_v53, %v4079_v22  ;;  %v13369_v44 = vrot.slane %v10541_v32, 1  ;;  %v13371_v62 = vrot.slane %v13370_v11, 1  ;;  %vm13373_vm8 = vcmp.eq.s32.totalorder %v13372_v29, 1 }
 0x2ed   : > { %v4176_v63 = vsel %vm13373_vm8, %v4141_v25, -3.4028235e+38  ;;  %v3817_v46 = vmax.f32 %v3793_v16, %v10967_v41  ;;  %v3865_v12 = vsel %vm2239_vm7, %v12573_v13, %v12572_v17  ;;  %vm13375_vm3 = vcmp.eq.s32.totalorder %v13374_v0, 1 }
 0x2ee   : > { %v3867_v35 = vsel %vm2239_vm7, %v13371_v62, %v13369_v44  ;;  %v11044_v22 = vmax.f32 %v4102_v34, %v10878_v28  ;;  %v11046_v6 = vmax.f32 %v4103_v55, %v4175_v1  ;;  %vm13378_vm13 = vcmp.eq.s32.totalorder %v13377_v24, 1 }
 0x2ef   : > { %v3873_v53 = vsel %vm13375_vm3, %v3867_v35, -3.4028235e+38  ;;  %v3875_v25 = vsel %vm13378_vm13, %v3865_v12, -3.4028235e+38  ;;  %v3841_v44 = vrot.slane %v3817_v46, 1  ;;  %v3937_v62 = vrot.slane %v3817_v46, 7 }
 0x2f0   : > { %13376 = vst [vmem:[#allocation13_spill] sm:$0xff] %v11046_v6  ;;  %v3897_v16 = vmax.f32 %v13370_v11, %v3873_v53  ;;  %v4033_v29 = vrot.slane %v3817_v46, 2  ;;  %v4129_v33 = vrot.slane %v3817_v46, 6  ;;  %v3899_v17 = vmax.f32 %v13366_v26, %v3875_v25 }
 0x2f1   : > { %v13379_v34 = vrot.slane %v13370_v11, 7  ;;  %v13380_v28 = vrot.slane %v10503_v15, 7  ;;  %v13381_v55 = vrot.slane %v10857_v43, 1  ;;  %v13382_v53 = vrot.slane %v10608_v60, 1 }
 0x2f2   : > { %v13383_v25 = vrot.slane %v10857_v43, 7  ;;  %v13384_v35 = vrot.slane %v10608_v60, 7  ;;  %vm13388_vm8 = vcmp.eq.s32.totalorder %v13387_v31, 1  ;;  %v13389_v30 = vrot.slane %v10857_v43, 2  ;;  %v13393_v31 = vld [vmem:[#allocation67_spill] sm:$0xff] }
 0x2f3   : > { %v3964_v1 = vsel %vm2560_vm11, %v13380_v28, %v13379_v34  ;;  %v3851_v12 = vsel %vm2239_vm7, %v3841_v44, %v13381_v55  ;;  %v3852_v13 = vsel %vm2239_vm7, %v13382_v53, %v3841_v44  ;;  %v13385_v28 = vld [vmem:[#allocation51_spill] sm:$0xff]  ;;  %vm13391_vm3 = vcmp.eq.s32.totalorder %v13390_v7, 1  ;;  %v13405_v53 = vld [vmem:[#allocation57_spill] sm:$0xff] }
 0x2f4   : > { %v3947_v20 = vsel %vm2560_vm11, %v3937_v62, %v13383_v25  ;;  %v3948_v34 = vsel %vm2560_vm11, %v13384_v35, %v3937_v62  ;;  %vm13386_vm14 = vcmp.eq.s32.totalorder %v13385_v28, 1  ;;  %v3889_v55 = vsel %vm13388_vm8, %v3851_v12, -3.4028235e+38  ;;  %v13395_v12 = vld [vmem:[#allocation120_spill] sm:$0xff] }
 0x2f5   : > { %v3888_v57 = vsel %vm13386_vm14, %v3852_v13, -3.4028235e+38  ;;  %v4043_v44 = vsel %vm2881_vm9, %v4033_v29, %v13389_v30  ;;  %v3913_v23 = vmax.f32 %v3817_v46, %v3889_v55  ;;  %v3985_v42 = vsel %vm13391_vm3, %v3948_v34, -3.4028235e+38 }
 0x2f6   : > { %v3912_v25 = vmax.f32 %v10608_v60, %v3888_v57  ;;  %v13392_v62 = vrot.slane %v10608_v60, 2  ;;  %vm13394_vm13 = vcmp.eq.s32.totalorder %v13393_v31, 1  ;;  %vm13396_vm14 = vcmp.eq.s32.totalorder %v13395_v12, 1 }
 0x2f7   : > { %v11094_v35 = vsel %vm13394_vm13, %v3947_v20, -3.4028235e+38  ;;  %v13397_v28 = vrot.slane %v10857_v43, 6  ;;  %v13398_v7 = vrot.slane %v10608_v60, 6  ;;  %v4009_v55 = vmax.f32 %v3913_v23, %v3985_v42  ;;  %v13401_v20 = vld [vmem:[#allocation73_spill] sm:$0xff] }
 0x2f8   : > { %v4044_v13 = vsel %vm2881_vm9, %v13392_v62, %v4033_v29  ;;  %v4008_v34 = vmax.f32 %v3912_v25, %v3984_v36  ;;  %v13399_v29 = vld [vmem:[#allocation105_spill] sm:$0xff]  ;;  %vm13402_vm3 = vcmp.eq.s32.totalorder %v13401_v20, 1  ;;  %v13404_v12 = vrot.slane %v10541_v32, 7 }
 0x2f9   : > { %v4080_v30 = vsel %vm13396_vm14, %v4044_v13, -3.4028235e+38  ;;  %v4139_v57 = vsel %vm3202_vm12, %v4129_v33, %v13397_v28  ;;  %v4140_v46 = vsel %vm3202_vm12, %v13398_v7, %v4129_v33  ;;  %vm13400_vm8 = vcmp.eq.s32.totalorder %v13399_v29, 1  ;;  %v13409_v7 = vld [vmem:[#allocation68_spill] sm:$0xff] }
 0x2fa   : > { %v4081_v62 = vsel %vm13400_vm8, %v4043_v44, -3.4028235e+38  ;;  %v4177_v31 = vsel %vm13402_vm3, %v4140_v46, -3.4028235e+38  ;;  %v13403_v13 = vrot.slane %v13366_v26, 7  ;;  %vm13406_vm13 = vcmp.eq.s32.totalorder %v13405_v53, 1 }
 0x2fb   : > { %v3969_v60 = vsel %vm13406_vm13, %v3964_v1, -3.4028235e+38  ;;  %v12574_v33 = vrot.slane %v13367_v45, 2  ;;  %v13407_v23 = vrot.slane %v10541_v32, 2  ;;  %v13408_v42 = vrot.slane %v13370_v11, 2 }
 0x2fc   : > { %v3962_v28 = vsel %vm2560_vm11, %v13404_v12, %v13403_v13  ;;  %v4104_v44 = vmax.f32 %v4008_v34, %v4080_v30  ;;  %v4105_v25 = vmax.f32 %v4009_v55, %v4081_v62  ;;  %vm13410_vm14 = vcmp.eq.s32.totalorder %v13409_v7, 1  ;;  %v13414_v34 = vld [vmem:[#allocation34_spill] sm:$0xff]  ;;  %v3385_v62 = vpop.permute.xlu1 %3384 }
 0x2fd   : > { %v4059_v36 = vsel %vm2881_vm9, %v13408_v42, %v13407_v23  ;;  %v3971_v46 = vsel %vm13410_vm14, %v3962_v28, -3.4028235e+38  ;;  %v3993_v29 = vmax.f32 %v3897_v16, %v3969_v60  ;;  %v13411_v1 = vrot.slane %v13366_v26, 2  ;;  %v13417_v28 = vld [vmem:[#allocation53_spill] sm:$0xff] }
 0x2fe   : > { %v3995_v20 = vmax.f32 %v3899_v17, %v3971_v46  ;;  %v13412_v12 = vrot.slane %v10503_v15, 2  ;;  %v13413_v8 = vrot.slane %v10441_v52, 2  ;;  %vm13415_vm8 = vcmp.eq.s32.totalorder %v13414_v34, 1  ;;  %v13419_v23 = vld [vmem:[#allocation81_spill] sm:$0xff] }
 0x2ff   : > { %v4057_v13 = vsel %vm2881_vm9, %v13411_v1, %v12574_v33  ;;  %v4065_v55 = vsel %vm13415_vm8, %v4059_v36, -3.4028235e+38  ;;  %v11141_v16 = vmax.f32 %v4104_v44, %v4176_v63  ;;  %v11143_v17 = vmax.f32 %v4105_v25, %v4177_v31  ;;  %v13423_v25 = vld [vmem:[#allocation91_spill] sm:$0xff] }
 0x300   : > { %v4061_v30 = vsel %vm2881_vm9, %v13413_v8, %v13412_v12  ;;  %vm13418_vm3 = vcmp.eq.s32.totalorder %v13417_v28, 1  ;;  %vm13420_vm13 = vcmp.eq.s32.totalorder %v13419_v23, 1  ;;  %v4089_v1 = vmax.f32 %v3993_v29, %v4065_v55  ;;  %v3070_v55 = vpop.permute.xlu0 %3069  ;;  %v13451_v23 = vld [vmem:[#allocation55_spill] sm:$0xff] }
 0x301   : > { %13416 = vst [vmem:[#allocation19_spill] sm:$0xff] %v11143_v17  ;;  %v4063_v60 = vsel %vm13418_vm3, %v4061_v30, -3.4028235e+38  ;;  %v4067_v42 = vsel %vm13420_vm13, %v4057_v13, -3.4028235e+38  ;;  %v12576_v8 = vrot.slane %v10541_v32, 6  ;;  %v3747_v44 = vmax.f32 %v10344_v38, %v10394_v50 }
 0x302   : > { %v4087_v46 = vmax.f32 %v10952_v9, %v4063_v60  ;;  %v4091_v33 = vmax.f32 %v3995_v20, %v4067_v42  ;;  %v12575_v12 = vrot.slane %v13366_v26, 6  ;;  %v13421_v36 = vrot.slane %v13370_v11, 6  ;;  %v13425_v20 = vld [vmem:[#allocation119_spill] sm:$0xff] }
 0x303   : > { %v13422_v63 = vrot.slane %v10503_v15, 6  ;;  %vm3423_vm14 = vcmp.eq.s32.totalorder %v3385_v62, 1  ;;  %vm13424_vm8 = vcmp.eq.s32.totalorder %v13423_v25, 1  ;;  %v3749_v30 = vmax.f32 %v10394_v50, %v10887_v21 }
 0x304   : > { %v4183_v29 = vmax.f32 %v4087_v46, %v10957_v3  ;;  %v3455_v13 = vsel %vm3423_vm14, %v13425_v20, -3.4028235e+38  ;;  %v4154_v62 = vsel %vm3202_vm12, %v12576_v8, %v12575_v12  ;;  %v13426_v38 = vmax.f32 %v13368_v58, %v11020_v5  ;;  %v13427_v46 = vld [vmem:[#allocation78_spill] sm:$0xff]  ;;  %v13443_v8 = vld [vmem:[#allocation9_spill] sm:$0xff] }
 0x305   : > { %v4156_v31 = vsel %vm3202_vm12, %v13422_v63, %v13421_v36  ;;  %v3771_v3 = vmax.f32 %v3747_v44, %v10887_v21  ;;  %vm13428_vm3 = vcmp.eq.s32.totalorder %v13427_v46, 1  ;;  %v3773_v50 = vmax.f32 %v3749_v30, %v10967_v41 }
 0x306   : > { %v4161_v9 = vsel %vm13424_vm8, %v4156_v31, -3.4028235e+38  ;;  %v3487_v42 = vmax.f32 %v13426_v38, %v3455_v13  ;;  %v4163_v36 = vsel %vm13428_vm3, %v4154_v62, -3.4028235e+38  ;;  %v4355_v63 = vmax.f32 %v10821_v47, %v11046_v6  ;;  %v13431_v13 = vld [vmem:[#allocation117_spill] sm:$0xff] }
 0x307   : > { %v11172_v60 = vmax.f32 %v4089_v1, %v4161_v9  ;;  %v13429_v31 = vmax.f32 %v10815_v19, %v10821_v47  ;;  %v11189_v9 = vmax.f32 %v4091_v33, %v4163_v36  ;;  %v3795_v21 = vmax.f32 %v3771_v3, %v10967_v41  ;;  %v13433_v38 = vld [vmem:[#allocation49_spill] sm:$0xff]  ;;  %v13435_v36 = vld [vmem:[#allocation84_spill] sm:$0xff] }
 0x308   : > { %vm3104_vm13 = vcmp.eq.s32.totalorder %v3070_v55, 1  ;;  %v3797_v58 = vmax.f32 %v3773_v50, %v3487_v42  ;;  %v11194_v44 = vmax.f32 %v4355_v63, %v11143_v17  ;;  %v13432_v55 = vld [vmem:[#allocation5_spill] sm:$0xff]  ;;  %vm13434_vm14 = vcmp.eq.s32.totalorder %v13433_v38, 1  ;;  %v13453_v47 = vld [vmem:[#allocation12_spill] sm:$0xff] }
 0x309   : > { %v11187_v1 = vmax.f32 %v13429_v31, %v11046_v6  ;;  %v4341_v5 = vmax.f32 %v4183_v29, %v11172_v60  ;;  %v3136_v30 = vsel %vm3104_vm13, %v13431_v13, -3.4028235e+38  ;;  %5447 = vmatmul.msk.f32.vlgmr.msra.gmra.mxu3 %vm3493_vm10, %v11189_v9  ;;  %v3819_v41 = vmax.f32 %v3795_v21, %v3487_v42  ;;  %v13449_v6 = vld [vmem:[#allocation3_spill] sm:$0xff] }
 0x30a   : > { %13430 = vst [vmem:[#allocation25_spill] sm:$0xff] %v11194_v44  ;;  %v3168_v62 = vmax.f32 %v13432_v55, %v3136_v30  ;;  %v4178_v3 = vsel %vm13434_vm14, %v4139_v57, -3.4028235e+38  ;;  %v12579_v50 = vrot.slane %v13435_v36, 1  ;;  %v13436_v63 = vrot.slane %v13366_v26, 1 }
 0x30b   : > { %v4385_v20 = vmax.f32 %v11187_v1, %v11143_v17  ;;  %v11204_v29 = vmax.f32 %v4341_v5, %v11189_v9  ;;  %v13437_v31 = vrot.slane %v10541_v32, 1  ;;  %v13438_v13 = vrot.slane %v13370_v11, 1 }
 0x30c   : > { %v13439_v5 = vrot.slane %v10503_v15, 1  ;;  %v3843_v21 = vrot.slane %v3819_v41, 1  ;;  %v3939_v30 = vrot.slane %v3819_v41, 7  ;;  %v4035_v55 = vrot.slane %v3819_v41, 2 }
 0x30d   : > { %v3866_v1 = vsel %vm2239_vm7, %v13437_v31, %v13436_v63  ;;  %v4131_v57 = vrot.slane %v3819_v41, 6  ;;  %v3489_v38 = vmax.f32 %v3168_v62, %v10882_v49  ;;  %v13440_v33 = vrot.slane %v13367_v45, 1  ;;  %v13441_v31 = vld [vmem:[#allocation29_spill] sm:$0xff] }
 0x30e   : > { %v3868_v42 = vsel %vm2239_vm7, %v13439_v5, %v13438_v13  ;;  %vm13442_vm8 = vcmp.eq.s32.totalorder %v13441_v31, 1  ;;  %vm13444_vm3 = vcmp.eq.s32.totalorder %v13443_v8, 1  ;;  %v13445_v5 = vrot.slane %v10898_v39, 1  ;;  %v13485_v8 = vld [vmem:[#allocation85_spill] sm:$0xff] }
 0x30f   : > { %v3864_v63 = vsel %vm2239_vm7, %v13440_v33, %v12579_v50  ;;  %v11231_v12 = vsel %vm13442_vm8, %v3868_v42, -3.4028235e+38  ;;  %v11235_v13 = vsel %vm13444_vm3, %v3866_v1, -3.4028235e+38  ;;  %v13446_v62 = vrot.slane %v10857_v43, 1 }
 0x310   : > { %v3849_v49 = vsel %vm2239_vm7, %v3843_v21, %v13445_v5  ;;  %v13447_v33 = vrot.slane %v10898_v39, 7  ;;  %v13448_v50 = vrot.slane %v10857_v43, 7  ;;  %vm13450_vm13 = vcmp.eq.s32.totalorder %v13449_v6, 1 }
 0x311   : > { %v3850_v17 = vsel %vm2239_vm7, %v13446_v62, %v3843_v21  ;;  %vm13452_vm14 = vcmp.eq.s32.totalorder %v13451_v23, 1  ;;  %vm13454_vm8 = vcmp.eq.s32.totalorder %v13453_v47, 1  ;;  %v13455_v21 = vrot.slane %v10898_v39, 2  ;;  %v13459_v23 = vld [vmem:[#allocation109_spill] sm:$0xff] }
 0x312   : > { %v3945_v42 = vsel %vm2560_vm11, %v3939_v30, %v13447_v33  ;;  %v3946_v1 = vsel %vm2560_vm11, %v13448_v50, %v3939_v30  ;;  %v3890_v46 = vsel %vm13450_vm13, %v3850_v17, -3.4028235e+38  ;;  %v3891_v5 = vsel %vm13452_vm14, %v3849_v49, -3.4028235e+38  ;;  %v13461_v30 = vld [vmem:[#allocation88_spill] sm:$0xff] }
 0x313   : > { %v3987_v7 = vsel %vm13454_vm8, %v3946_v1, -3.4028235e+38  ;;  %v4041_v62 = vsel %vm2881_vm9, %v4035_v55, %v13455_v21  ;;  %v3914_v33 = vmax.f32 %v10857_v43, %v3890_v46  ;;  %v3915_v24 = vmax.f32 %v3819_v41, %v3891_v5 }
 0x314   : > { %vm13457_vm3 = vcmp.eq.s32.totalorder %v13456_v4, 1  ;;  %v13458_v6 = vrot.slane %v10857_v43, 2  ;;  %vm13460_vm13 = vcmp.eq.s32.totalorder %v13459_v23, 1  ;;  %vm13462_vm14 = vcmp.eq.s32.totalorder %v13461_v30, 1  ;;  %v13468_v23 = vld [vmem:[#allocation42_spill] sm:$0xff] }
 0x315   : > { %v3988_v50 = vsel %vm13457_vm3, %v3945_v42, -3.4028235e+38  ;;  %v4083_v49 = vsel %vm13462_vm14, %v4041_v62, -3.4028235e+38  ;;  %v13463_v1 = vrot.slane %v10898_v39, 6  ;;  %v13464_v41 = vrot.slane %v10857_v43, 6 }
 0x316   : > { %v4042_v17 = vsel %vm2881_vm9, %v13458_v6, %v4035_v55  ;;  %v4010_v42 = vmax.f32 %v3914_v33, %v11094_v35  ;;  %v4011_v5 = vmax.f32 %v3915_v24, %v3987_v7  ;;  %v13465_v55 = vld [vmem:[#allocation90_spill] sm:$0xff]  ;;  %v3821_v62 = vmax.f32 %v3797_v58, %v3489_v38 }
 0x317   : > { %v4082_v47 = vsel %vm13460_vm13, %v4042_v17, -3.4028235e+38  ;;  %v4137_v46 = vsel %vm3202_vm12, %v4131_v57, %v13463_v1  ;;  %v4138_v4 = vsel %vm3202_vm12, %v13464_v41, %v4131_v57  ;;  %vm13466_vm8 = vcmp.eq.s32.totalorder %v13465_v55, 1 }
 0x318   : > { %v4179_v21 = vsel %vm13466_vm8, %v4138_v4, -3.4028235e+38  ;;  %v4180_v17 = vsel %vm3416_vm5, %v4137_v46, -3.4028235e+38  ;;  %vm13469_vm3 = vcmp.eq.s32.totalorder %v13468_v23, 1  ;;  %v3896_v1 = vmax.f32 %v10503_v15, %v11231_v12 }
 0x319   : > { %v3876_v30 = vsel %vm13469_vm3, %v3864_v63, -3.4028235e+38  ;;  %v3898_v43 = vmax.f32 %v10541_v32, %v11235_v13  ;;  %v4106_v57 = vmax.f32 %v4010_v42, %v4082_v47  ;;  %v4107_v41 = vmax.f32 %v4011_v5, %v4083_v49 }
 0x31a   : > { %v3900_v24 = vmax.f32 %v13367_v45, %v3876_v30  ;;  %v12585_v35 = vrot.slane %v13367_v45, 7  ;;  %v3845_v7 = vrot.slane %v3821_v62, 1  ;;  %v3941_v33 = vrot.slane %v3821_v62, 7 }
 0x31b   : > { %v4037_v4 = vrot.slane %v3821_v62, 2  ;;  %v4133_v46 = vrot.slane %v3821_v62, 6  ;;  %v11295_v58 = vmax.f32 %v4106_v57, %v4178_v3  ;;  %v11297_v38 = vmax.f32 %v4107_v41, %v4179_v21 }
 0x31c   : > { %v13471_v12 = vrot.slane %v13366_v26, 7  ;;  %v13472_v13 = vrot.slane %v10541_v32, 7  ;;  %v13473_v47 = vrot.slane %v13370_v11, 7  ;;  %v13474_v42 = vrot.slane %v10901_v14, 1 }
 0x31d   : > { %13470 = vst [vmem:[#allocation50_spill] sm:$0xff] %v11297_v38  ;;  %v13475_v5 = vrot.slane %v10898_v39, 1  ;;  %v13476_v21 = vrot.slane %v10901_v14, 7  ;;  %v13477_v30 = vrot.slane %v10898_v39, 7  ;;  %vm13486_vm8 = vcmp.eq.s32.totalorder %v13485_v8, 1 }
 0x31e   : > { %v3961_v63 = vsel %vm2560_vm11, %v13471_v12, %v12585_v35  ;;  %v3963_v49 = vsel %vm2560_vm11, %v13473_v47, %v13472_v13  ;;  %v3847_v3 = vsel %vm2239_vm7, %v3845_v7, %v13474_v42  ;;  %v11330_v12 = vmax.f32 %v4385_v20, %v11297_v38  ;;  %v13479_v13 = vld [vmem:[#allocation54_spill] sm:$0xff]  ;;  %v13483_v35 = vld [vmem:[#allocation20_spill] sm:$0xff] }
 0x31f   : > { %v3848_v55 = vsel %vm2239_vm7, %v13475_v5, %v3845_v7  ;;  %v3943_v6 = vsel %vm2560_vm11, %v3941_v33, %v13476_v21  ;;  %v3944_v57 = vsel %vm2560_vm11, %v13477_v30, %v3941_v33  ;;  %vm13480_vm5 = vcmp.eq.s32.totalorder %v13479_v13, 1  ;;  %v13481_v7 = vld [vmem:[#allocation44_spill] sm:$0xff]  ;;  %v13491_v13 = vld [vmem:[#allocation86_spill] sm:$0xff] }
 0x320   : > { %13478 = vst [vmem:[#allocation59_spill] sm:$0xff] %v11330_v12  ;;  %v3892_v47 = vsel %vm13480_vm5, %v3848_v55, -3.4028235e+38  ;;  %vm13482_vm13 = vcmp.eq.s32.totalorder %v13481_v7, 1  ;;  %vm13484_vm14 = vcmp.eq.s32.totalorder %v13483_v35, 1  ;;  %v13487_v30 = vmax.f32 %v10901_v14, %v10934_v18 }
 0x321   : > { %v3893_v42 = vsel %vm13482_vm13, %v3847_v3, -3.4028235e+38  ;;  %v3916_v5 = vmax.f32 %v10898_v39, %v3892_v47  ;;  %v3989_v23 = vsel %vm13484_vm14, %v3944_v57, -3.4028235e+38  ;;  %v3990_v33 = vsel %vm13486_vm8, %v3943_v6, -3.4028235e+38 }
 0x322   : > { %v3917_v21 = vmax.f32 %v3821_v62, %v3893_v42  ;;  %v4014_v20 = vmax.f32 %v13487_v30, %v3990_v33  ;;  %v13488_v41 = vrot.slane %v10901_v14, 2  ;;  %v13489_v3 = vrot.slane %v10898_v39, 2  ;;  %v13493_v47 = vld [vmem:[#allocation93_spill] sm:$0xff]  ;;  %v13496_v33 = vld [vmem:[#allocation74_spill] sm:$0xff] }
 0x323   : > { %v13490_v35 = vrot.slane %v10901_v14, 6  ;;  %v4012_v6 = vmax.f32 %v3916_v5, %v3988_v50  ;;  %vm13492_vm3 = vcmp.eq.s32.totalorder %v13491_v13, 1  ;;  %vm13494_vm5 = vcmp.eq.s32.totalorder %v13493_v47, 1 }
 0x324   : > { %v4039_v55 = vsel %vm2881_vm9, %v4037_v4, %v13488_v41  ;;  %v4040_v62 = vsel %vm2881_vm9, %v13489_v3, %v4037_v4  ;;  %v4013_v57 = vmax.f32 %v3917_v21, %v3989_v23  ;;  %v4110_v41 = vmax.f32 %v4014_v20, %v10962_v54  ;;  %v13502_v20 = vld [vmem:[#allocation64_spill] sm:$0xff] }
 0x325   : > { %v4135_v8 = vsel %vm3202_vm12, %v4133_v46, %v13490_v35  ;;  %v4084_v18 = vsel %vm13492_vm3, %v4040_v62, -3.4028235e+38  ;;  %v4085_v7 = vsel %vm13494_vm5, %v4039_v55, -3.4028235e+38  ;;  %v13495_v42 = vrot.slane %v10898_v39, 6  ;;  %v13500_v55 = vld [vmem:[#allocation22_spill] sm:$0xff] }
 0x326   : > { %vm13497_vm13 = vcmp.eq.s32.totalorder %v13496_v33, 1  ;;  %v13498_v30 = vrot.slane %v10503_v15, 7  ;;  %v13499_v50 = vrot.slane %v10441_v52, 7  ;;  %v4108_v5 = vmax.f32 %v4012_v6, %v4084_v18  ;;  %v13506_v35 = vld [vmem:[#allocation61_spill] sm:$0xff]  ;;  %v13516_v33 = vld [vmem:[#allocation7_spill] sm:$0xff] }
 0x327   : > { %v4136_v4 = vsel %vm3202_vm12, %v13495_v42, %v4133_v46  ;;  %v4182_v14 = vsel %vm13497_vm13, %v4135_v8, -3.4028235e+38  ;;  %v4109_v21 = vmax.f32 %v4013_v57, %v4085_v7  ;;  %vm13501_vm14 = vcmp.eq.s32.totalorder %v13500_v55, 1  ;;  %v13504_v46 = vld [vmem:[#allocation69_spill] sm:$0xff] }
 0x328   : > { %v3965_v23 = vsel %vm2560_vm11, %v13499_v50, %v13498_v30  ;;  %v4181_v54 = vsel %vm13501_vm14, %v4136_v4, -3.4028235e+38  ;;  %vm13503_vm8 = vcmp.eq.s32.totalorder %v13502_v20, 1  ;;  %v11377_v3 = vmax.f32 %v4110_v41, %v4182_v14 }
 0x329   : > { %v3968_v39 = vsel %vm13503_vm8, %v3965_v23, -3.4028235e+38  ;;  %vm13505_vm3 = vcmp.eq.s32.totalorder %v13504_v46, 1  ;;  %vm13507_vm5 = vcmp.eq.s32.totalorder %v13506_v35, 1  ;;  %v11383_v47 = vmax.f32 %v4108_v5, %v4180_v17 }
 0x32a   : > { %v3970_v62 = vsel %vm13505_vm3, %v3963_v49, -3.4028235e+38  ;;  %v3972_v8 = vsel %vm13507_vm5, %v3961_v63, -3.4028235e+38  ;;  %v3992_v13 = vmax.f32 %v3896_v1, %v3968_v39  ;;  %v11385_v42 = vmax.f32 %v4109_v21, %v4181_v54 }
 0x32b   : > { %13508 = vst [vmem:[#allocation108_spill] sm:$0xff] %v11383_v47  ;;  %v3994_v6 = vmax.f32 %v3898_v43, %v3970_v62  ;;  %v3996_v57 = vmax.f32 %v3900_v24, %v3972_v8  ;;  %v4021_v18 = vrot.slane %v13435_v36, 2  ;;  %v13510_v7 = vrot.slane %v13366_v26, 2  ;;  %v13514_v43 = vld [vmem:[#allocation103_spill] sm:$0xff] }
 0x32c   : > { %13509 = vst [vmem:[#allocation24_spill] sm:$0xff] %v11385_v42  ;;  %v13511_v41 = vrot.slane %v10541_v32, 2  ;;  %v13512_v49 = vrot.slane %v13370_v11, 2  ;;  %v13513_v63 = vrot.slane %v10503_v15, 2  ;;  %v4116_v1 = vrot.slane %v13367_v45, 6  ;;  %v13546_v42 = vld [vmem:[#allocation72_spill] sm:$0xff] }
 0x32d   : > { %vm13515_vm13 = vcmp.eq.s32.totalorder %v13514_v43, 1  ;;  %vm13517_vm14 = vcmp.eq.s32.totalorder %v13516_v33, 1  ;;  %v13518_v30 = vrot.slane %v10541_v32, 6  ;;  %v13519_v50 = vrot.slane %v13370_v11, 6 }
 0x32e   : > { %v4058_v4 = vsel %vm2881_vm9, %v13511_v41, %v13510_v7  ;;  %v4060_v17 = vsel %vm2881_vm9, %v13513_v63, %v13512_v49  ;;  %v13520_v5 = vrot.slane %v10503_v15, 6  ;;  %v13521_v21 = vrot.slane %v10441_v52, 6  ;;  %v13524_v7 = vld [vmem:[#allocation116_spill] sm:$0xff]  ;;  %v13526_v41 = vld [vmem:[#allocation79_spill] sm:$0xff] }
 0x32f   : > { %v4064_v24 = vsel %vm13515_vm13, %v4060_v17, -3.4028235e+38  ;;  %v4066_v14 = vsel %vm13517_vm14, %v4058_v4, -3.4028235e+38  ;;  %v4155_v23 = vsel %vm3202_vm12, %v13519_v50, %v13518_v30  ;;  %v13522_v54 = vrot.slane %v13367_v45, 2  ;;  %v13528_v4 = vld [vmem:[#allocation123_spill] sm:$0xff] }
 0x330   : > { %v4157_v55 = vsel %vm3202_vm12, %v13521_v21, %v13520_v5  ;;  %v4088_v62 = vmax.f32 %v3992_v13, %v4064_v24  ;;  %v4090_v8 = vmax.f32 %v3994_v6, %v4066_v14  ;;  %v13523_v32 = vrot.slane %v13366_v26, 6  ;;  %v13530_v63 = vld [vmem:[#allocation112_spill] sm:$0xff]  ;;  %v13531_v13 = vld [vmem:[#allocation37_spill] sm:$0xff]  ;;  %v13533_v14 = vld [vmem:[#allocation66_spill] sm:$0xff] }
 0x331   : > { %v4056_v39 = vsel %vm2881_vm9, %v13522_v54, %v4021_v18  ;;  %vm13525_vm8 = vcmp.eq.s32.totalorder %v13524_v7, 1  ;;  %vm13527_vm3 = vcmp.eq.s32.totalorder %v13526_v41, 1  ;;  %vm13529_vm5 = vcmp.eq.s32.totalorder %v13528_v4, 1 }
 0x332   : > { %v4153_v11 = vsel %vm3202_vm12, %v13523_v32, %v4116_v1  ;;  %v4068_v15 = vsel %vm13525_vm8, %v4056_v39, -3.4028235e+38  ;;  %v4160_v52 = vsel %vm13527_vm3, %v4157_v55, -3.4028235e+38  ;;  %v4162_v49 = vsel %vm13529_vm5, %v4155_v23, -3.4028235e+38 }
 0x333   : > { %v4096_v17 = vmax.f32 %v13530_v63, %v10868_v2  ;;  %v4092_v30 = vmax.f32 %v3996_v57, %v4068_v15  ;;  %vm13532_vm13 = vcmp.eq.s32.totalorder %v13531_v13, 1  ;;  %v4184_v26 = vmax.f32 %v4088_v62, %v4160_v52 }
 0x334   : > { %v4164_v6 = vsel %vm13532_vm13, %v4153_v11, -3.4028235e+38  ;;  %v4186_v24 = vmax.f32 %v4090_v8, %v4162_v49  ;;  %v3830_v50 = vrot.slane %v13533_v14, 1  ;;  %v3925_v5 = vrot.slane %v13435_v36, 7  ;;  %v13536_v49 = vld [vmem:[#allocation15_spill] sm:$0xff] }
 0x335   : > { %v4022_v21 = vrot.slane %v13533_v14, 2  ;;  %v4117_v55 = vrot.slane %v13435_v36, 6  ;;  %v4188_v54 = vmax.f32 %v4092_v30, %v4164_v6  ;;  %v3831_v23 = vrot.slane %v10605_v51, 1 }
 0x336   : > { %v4342_v39 = vmax.f32 %v4184_v26, %v4186_v24  ;;  %v13534_v2 = vrot.slane %v13435_v36, 1  ;;  %v13535_v62 = vrot.slane %v13367_v45, 7  ;;  %vm13537_vm14 = vcmp.eq.s32.totalorder %v13536_v49, 1  ;;  %v13538_v45 = vld [vmem:[#allocation97_spill] sm:$0xff] }
 0x337   : > { %v4055_v32 = vsel %vm2881_vm9, %v4021_v18, %v4022_v21  ;;  %v4152_v11 = vsel %vm3202_vm12, %v4116_v1, %v4117_v55  ;;  %5448 = vmatmul.msk.f32.gmra.mxu3 %vm3493_vm10, %v4188_v54  ;;  %v4344_v15 = vmax.f32 %v4186_v24, %v4188_v54  ;;  %v3926_v30 = vrot.slane %v13533_v14, 7 }
 0x338   : > { %v3863_v57 = vsel %vm2239_vm7, %v13534_v2, %v3830_v50  ;;  %v3960_v8 = vsel %vm2560_vm11, %v13535_v62, %v3925_v5  ;;  %v4358_v52 = vmax.f32 %v4342_v39, %v4188_v54  ;;  %vm13539_vm8 = vcmp.eq.s32.totalorder %v13538_v45, 1  ;;  %v13540_v2 = vld [vmem:[#allocation75_spill] sm:$0xff]  ;;  %v13542_v62 = vld [vmem:[#allocation32_spill] sm:$0xff] }
 0x339   : > { %v3877_v63 = vsel %vm13537_vm14, %v3863_v57, -3.4028235e+38  ;;  %v4168_v6 = vsel %vm13539_vm8, %v10797_v37, -3.4028235e+38  ;;  %vm13541_vm3 = vcmp.eq.s32.totalorder %v13540_v2, 1  ;;  %v3862_v1 = vsel %vm2239_vm7, %v3830_v50, %v3831_v23  ;;  %v13544_v37 = vld [vmem:[#allocation115_spill] sm:$0xff] }
 0x33a   : > { %v3901_v26 = vmax.f32 %v13435_v36, %v3877_v63  ;;  %v3973_v18 = vsel %vm13541_vm3, %v3960_v8, -3.4028235e+38  ;;  %vm13543_vm5 = vcmp.eq.s32.totalorder %v13542_v62, 1  ;;  %v3959_v39 = vsel %vm2560_vm11, %v3925_v5, %v3926_v30 }
 0x33b   : > { %v3878_v24 = vsel %vm13543_vm5, %v3862_v1, -3.4028235e+38  ;;  %v4023_v57 = vrot.slane %v10605_v51, 2  ;;  %v4118_v38 = vrot.slane %v13533_v14, 6  ;;  %vm13545_vm13 = vcmp.eq.s32.totalorder %v13544_v37, 1 }
 0x33c   : > { %v3997_v44 = vmax.f32 %v3901_v26, %v3973_v18  ;;  %v4069_v36 = vsel %vm13545_vm13, %v4055_v32, -3.4028235e+38  ;;  %v3902_v63 = vmax.f32 %v13533_v14, %v3878_v24  ;;  %v11473_v8 = vmax.f32 %v4096_v17, %v4168_v6  ;;  %v13549_v32 = vld [vmem:[#allocation2_spill] sm:$0xff] }
 0x33d   : > { %vm13547_vm14 = vcmp.eq.s32.totalorder %v13546_v42, 1  ;;  %v4054_v1 = vsel %vm2881_vm9, %v4022_v21, %v4023_v57  ;;  %v4151_v5 = vsel %vm3202_vm12, %v4117_v55, %v4118_v38  ;;  %v13548_v12 = vrot.slane %v10500_v59, 1  ;;  %v13551_v6 = vld [vmem:[#allocation30_spill] sm:$0xff] }
 0x33e   : > { %v3974_v50 = vsel %vm13547_vm14, %v3959_v39, -3.4028235e+38  ;;  %v4093_v18 = vmax.f32 %v3997_v44, %v4069_v36  ;;  %vm13550_vm8 = vcmp.eq.s32.totalorder %v13549_v32, 1  ;;  %vm13552_vm3 = vcmp.eq.s32.totalorder %v13551_v6, 1  ;;  %v13553_v39 = vld [vmem:[#allocation11_spill] sm:$0xff] }
 0x33f   : > { %v3861_v26 = vsel %vm2239_vm7, %v3831_v23, %v13548_v12  ;;  %v4165_v14 = vsel %vm13550_vm8, %v4152_v11, -3.4028235e+38  ;;  %v3998_v17 = vmax.f32 %v3902_v63, %v3974_v50  ;;  %v4070_v24 = vsel %vm13552_vm3, %v4054_v1, -3.4028235e+38  ;;  %v13558_v50 = vld [vmem:[#allocation87_spill] sm:$0xff] }
 0x340   : > { %vm13554_vm5 = vcmp.eq.s32.totalorder %v13553_v39, 1  ;;  %v13555_v21 = vrot.slane %v10605_v51, 7  ;;  %v13556_v42 = vrot.slane %v10500_v59, 2  ;;  %v13557_v12 = vrot.slane %v10605_v51, 6  ;;  %v13565_v39 = vld [vmem:[#allocation102_spill] sm:$0xff] }
 0x341   : > { %v3879_v45 = vsel %vm13554_vm5, %v3861_v26, -3.4028235e+38  ;;  %v11503_v11 = vmax.f32 %v4093_v18, %v4165_v14  ;;  %v4094_v36 = vmax.f32 %v3998_v17, %v4070_v24  ;;  %vm13559_vm13 = vcmp.eq.s32.totalorder %v13558_v50, 1  ;;  %v13560_v26 = vld [vmem:[#allocation41_spill] sm:$0xff]  ;;  %v13563_v18 = vld [vmem:[#allocation94_spill] sm:$0xff] }
 0x342   : > { %v3958_v55 = vsel %vm2560_vm11, %v3926_v30, %v13555_v21  ;;  %v4053_v44 = vsel %vm2881_vm9, %v4023_v57, %v13556_v42  ;;  %v4150_v23 = vsel %vm3202_vm12, %v4118_v38, %v13557_v12  ;;  %v3903_v63 = vmax.f32 %v10605_v51, %v3879_v45 }
 0x343   : > { %v4166_v1 = vsel %vm13559_vm13, %v4151_v5, -3.4028235e+38  ;;  %vm13561_vm14 = vcmp.eq.s32.totalorder %v13560_v26, 1  ;;  %v4356_v59 = vmax.f32 %v11044_v22, %v11141_v16  ;;  %5449 = vmatmul.msk.f32.gmra.mxu3 %vm3493_vm10, %v11503_v11  ;;  %v4345_v38 = vmax.f32 %v11189_v9, %v11503_v11 }
 0x344   : > { %v3975_v30 = vsel %vm13561_vm14, %v3958_v55, -3.4028235e+38  ;;  %v13562_v42 = vmax.f32 %v11172_v60, %v11189_v9  ;;  %v4373_v45 = vmax.f32 %v11204_v29, %v11503_v11  ;;  %v4190_v57 = vmax.f32 %v4094_v36, %v4166_v1 }
 0x345   : > { %v3999_v5 = vmax.f32 %v3903_v63, %v3975_v30  ;;  %vm13564_vm8 = vcmp.eq.s32.totalorder %v13563_v18, 1  ;;  %v4372_v17 = vmax.f32 %v4356_v59, %v11295_v58  ;;  %vm13566_vm3 = vcmp.eq.s32.totalorder %v13565_v39, 1 }
 0x346   : > { %v4359_v51 = vmax.f32 %v13562_v42, %v11503_v11  ;;  %v4071_v14 = vsel %vm13564_vm8, %v4053_v44, -3.4028235e+38  ;;  %v4346_v24 = vmax.f32 %v4188_v54, %v4190_v57  ;;  %v4348_v21 = vmax.f32 %v4190_v57, %v11473_v8 }
 0x347   : > { %v4360_v55 = vmax.f32 %v4344_v15, %v4190_v57  ;;  %v4374_v12 = vmax.f32 %v4358_v52, %v4190_v57  ;;  %v4095_v26 = vmax.f32 %v3999_v5, %v4071_v14  ;;  %v4167_v60 = vsel %vm13566_vm3, %v4150_v23, -3.4028235e+38 }
 0x348   : > { %v4388_v9 = vmax.f32 %v4372_v17, %v11383_v47  ;;  %v11530_v29 = vmax.f32 %v4346_v24, %v11473_v8  ;;  %v11533_v36 = vmax.f32 %v4348_v21, %v10813_v56  ;;  %vm13568_vm5 = vcmp.eq.s32.totalorder %v13328_v10, 1 }
 0x349   : > { %v4376_v44 = vmax.f32 %v4360_v55, %v11473_v8  ;;  %v4390_v54 = vmax.f32 %v4374_v12, %v11473_v8  ;;  %v11537_v63 = vmax.f32 %v4095_v26, %v4167_v60  ;;  %vm13569_vm13 = vcmp.eq.s32.totalorder %v13336_v61, 1 }
 0x34a   : > { %v11540_v15 = vmax.f32 %v4388_v9, %v11377_v3  ;;  %vm13570_vm14 = vcmp.eq.s32.totalorder %v13417_v28, 1  ;;  %vm13571_vm8 = vcmp.eq.s32.totalorder %v13340_v27, 1  ;;  %vm13572_vm3 = vcmp.eq.s32.totalorder %v13502_v20, 1 }
 0x34b   : > { %v4406_v52 = vrot.slane %v4390_v54, 1  ;;  %v4534_v1 = vrot.slane %v4390_v54, 2  ;;  %v11543_v23 = vmax.f32 %v4373_v45, %v11537_v63  ;;  %v4375_v42 = vmax.f32 %v4359_v51, %v11537_v63  ;;  %5450 = vmatmul.msk.f32.gmra.mxu3 %vm3493_vm10, %v4190_v57 }
 0x34c   : > { %13567 = vst [vmem:[#allocation21_spill] sm:$0xff] %v11540_v15  ;;  %v12590_v30 = vrot.slane %v11540_v15, 7  ;;  %v12595_v59 = vrot.slane %v11540_v15, 6  ;;  %v4470_v5 = vrot.slane %v4390_v54, 7  ;;  %v4598_v14 = vrot.slane %v4390_v54, 6 }
 0x34d   : > { %v11550_v26 = vmax.f32 %v4376_v44, %v10813_v56  ;;  %v4361_v3 = vmax.f32 %v4345_v38, %v11537_v63  ;;  %v12589_v17 = vrot.slane %v11543_v23, 1  ;;  %v4469_v45 = vrot.slane %v11543_v23, 7 }
 0x34e   : > { %v12592_v24 = vrot.slane %v11543_v23, 2  ;;  %v4597_v21 = vrot.slane %v11543_v23, 6  ;;  %v4391_v55 = vmax.f32 %v4375_v42, %v10809_v40 }
 0x34f   : > { %v4408_v51 = vrot.slane %v11550_v26, 1  ;;  %v4536_v57 = vrot.slane %v11550_v26, 2  ;;  %v4377_v12 = vmax.f32 %v4361_v3, %v10809_v40  ;;  %v4435_v38 = vsel %vm2239_vm7, %v12589_v17, %v4406_v52 }
 0x350   : > { %v4500_v60 = vsel %vm2560_vm11, %v12590_v30, %v4469_v45  ;;  %v4563_v9 = vsel %vm2881_vm9, %v12592_v24, %v4534_v1  ;;  %v4628_v44 = vsel %vm3202_vm12, %v12595_v59, %v4597_v21  ;;  %v4437_v42 = vsel %vm13568_vm5, %v4435_v38, -3.4028235e+38 }
 0x351   : > { %v4501_v3 = vsel %vm13569_vm13, %v4500_v60, -3.4028235e+38  ;;  %v4565_v17 = vsel %vm13570_vm14, %v4563_v9, -3.4028235e+38  ;;  %v4499_v30 = vsel %vm2560_vm11, %v4469_v45, %v4470_v5  ;;  %v4453_v47 = vmax.f32 %v11543_v23, %v4437_v42 }
 0x352   : > { %v4629_v24 = vsel %vm13571_vm8, %v4628_v44, -3.4028235e+38  ;;  %v4407_v15 = vrot.slane %v4391_v55, 1  ;;  %v4502_v59 = vsel %vm13572_vm3, %v4499_v30, -3.4028235e+38  ;;  %v4535_v10 = vrot.slane %v4391_v55, 2 }
 0x353   : > { %v4627_v61 = vsel %vm3202_vm12, %v4597_v21, %v4598_v14  ;;  %v4471_v38 = vrot.slane %v4391_v55, 7  ;;  %v4599_v60 = vrot.slane %v4391_v55, 6  ;;  %v4517_v28 = vmax.f32 %v4453_v47, %v4501_v3  ;;  %5451 = vmatmul.msk.f32.gmra.mxu3 %vm3493_vm10, %v11537_v63 }
 0x354   : > { %v4434_v9 = vsel %vm2239_vm7, %v4406_v52, %v4407_v15  ;;  %vm13573_vm5 = vcmp.eq.s32.totalorder %v13526_v41, 1  ;;  %v4433_v27 = vsel %vm2239_vm7, %v4407_v15, %v4408_v51  ;;  %vm13574_vm13 = vcmp.eq.s32.totalorder %v13441_v31, 1 }
 0x355   : > { %v4630_v45 = vsel %vm13573_vm5, %v4627_v61, -3.4028235e+38  ;;  %v4438_v20 = vsel %vm13574_vm13, %v4434_v9, -3.4028235e+38  ;;  %v4562_v30 = vsel %vm2881_vm9, %v4534_v1, %v4535_v10  ;;  %vm13575_vm14 = vcmp.eq.s32.totalorder %v13374_v0, 1 }
 0x356   : > { %v4439_v47 = vsel %vm13575_vm14, %v4433_v27, -3.4028235e+38  ;;  %v4498_v52 = vsel %vm2560_vm11, %v4470_v5, %v4471_v38  ;;  %v4581_v41 = vmax.f32 %v4517_v28, %v4565_v17  ;;  %v4454_v21 = vmax.f32 %v4390_v54, %v4438_v20  ;;  %v13580_v27 = vld [vmem:[#allocation9_spill] sm:$0xff] }
 0x357   : > { %vm13576_vm8 = vcmp.eq.s32.totalorder %v13514_v43, 1  ;;  %v4455_v44 = vmax.f32 %v4391_v55, %v4439_v47  ;;  %vm13577_vm3 = vcmp.eq.s32.totalorder %v13405_v53, 1  ;;  %v4561_v31 = vsel %vm2881_vm9, %v4535_v10, %v4536_v57 }
 0x358   : > { %v4566_v15 = vsel %vm13576_vm8, %v4562_v30, -3.4028235e+38  ;;  %v4503_v42 = vsel %vm13577_vm3, %v4498_v52, -3.4028235e+38  ;;  %v4626_v1 = vsel %vm3202_vm12, %v4598_v14, %v4599_v60  ;;  %v4393_v0 = vmax.f32 %v4377_v12, %v10815_v19 }
 0x359   : > { %v4645_v3 = vmax.f32 %v4581_v41, %v4629_v24  ;;  %v4518_v61 = vmax.f32 %v4454_v21, %v4502_v59  ;;  %v4519_v5 = vmax.f32 %v4455_v44, %v4503_v42  ;;  %vm13578_vm5 = vcmp.eq.s32.totalorder %v13414_v34, 1 }
 0x35a   : > { %v4567_v54 = vsel %vm13578_vm5, %v4561_v31, -3.4028235e+38  ;;  %vm13579_vm13 = vcmp.eq.s32.totalorder %v13423_v25, 1  ;;  %v4409_v17 = vrot.slane %v4393_v0, 1  ;;  %v4472_v53 = vrot.slane %v11550_v26, 7 }
 0x35b   : > { %v4631_v43 = vsel %vm13579_vm13, %v4626_v1, -3.4028235e+38  ;;  %v4537_v55 = vrot.slane %v4393_v0, 2  ;;  %5465 = vmatmul.msk.f32.vlgmr.msrb.gmra.mxu1 %vm3493_vm10, %v4645_v3  ;;  %v4582_v10 = vmax.f32 %v4518_v61, %v4566_v15  ;;  %v4583_v28 = vmax.f32 %v4519_v5, %v4567_v54  ;;  %5452 = vmatmul.msk.f32.gmra.mxu3 %vm3493_vm10, %v11473_v8  ;;  %v13586_v61 = vld [vmem:[#allocation31_spill] sm:$0xff] }
 0x35c   : > { %v4600_v14 = vrot.slane %v11550_v26, 6  ;;  %v4432_v59 = vsel %vm2239_vm7, %v4408_v51, %v4409_v17  ;;  %v4497_v34 = vsel %vm2560_vm11, %v4471_v38, %v4472_v53  ;;  %v4378_v24 = vmax.f32 %v11530_v29, %v10813_v56 }
 0x35d   : > { %v4560_v25 = vsel %vm2881_vm9, %v4536_v57, %v4537_v55  ;;  %v4646_v12 = vmax.f32 %v4582_v10, %v4630_v45  ;;  %v4647_v9 = vmax.f32 %v4583_v28, %v4631_v43  ;;  %vm13581_vm14 = vcmp.eq.s32.totalorder %v13580_v27, 1  ;;  %v13583_v57 = vld [vmem:[#allocation38_spill] sm:$0xff]  ;;  %v13588_v28 = vld [vmem:[#allocation68_spill] sm:$0xff] }
 0x35e   : > { %v4440_v20 = vsel %vm13581_vm14, %v4432_v59, -3.4028235e+38  ;;  %vm13582_vm8 = vcmp.eq.s32.totalorder %v13504_v46, 1  ;;  %v4625_v38 = vsel %vm3202_vm12, %v4599_v60, %v4600_v14  ;;  %v4394_v47 = vmax.f32 %v4378_v24, %v13583_v57 }
 0x35f   : > { %v4456_v30 = vmax.f32 %v11550_v26, %v4440_v20  ;;  %v4504_v51 = vsel %vm13582_vm8, %v4497_v34, -3.4028235e+38  ;;  %vm13584_vm3 = vcmp.eq.s32.totalorder %v13516_v33, 1  ;;  %v4473_v45 = vrot.slane %v4393_v0, 7  ;;  %v13591_v34 = vld [vmem:[#allocation81_spill] sm:$0xff] }
 0x360   : > { %v4568_v29 = vsel %vm13584_vm3, %v4560_v25, -3.4028235e+38  ;;  %v4601_v52 = vrot.slane %v4393_v0, 6  ;;  %v4347_v41 = vmax.f32 %v11503_v11, %v11537_v63  ;;  %v4410_v15 = vrot.slane %v4394_v47, 1 }
 0x361   : > { %v4520_v21 = vmax.f32 %v4456_v30, %v4504_v51  ;;  %v4538_v44 = vrot.slane %v4394_v47, 2  ;;  %v4474_v26 = vrot.slane %v4394_v47, 7  ;;  %v4496_v46 = vsel %vm2560_vm11, %v4472_v53, %v4473_v45  ;;  %v13593_v51 = vld [vmem:[#allocation78_spill] sm:$0xff] }
 0x362   : > { %v4624_v60 = vsel %vm3202_vm12, %v4600_v14, %v4601_v52  ;;  %v4363_v42 = vmax.f32 %v4347_v41, %v10809_v40  ;;  %v4602_v31 = vrot.slane %v4394_v47, 6  ;;  %v4431_v1 = vsel %vm2239_vm7, %v4409_v17, %v4410_v15  ;;  %v13590_v14 = vld [vmem:[#allocation17_spill] sm:$0xff] }
 0x363   : > { %v4584_v33 = vmax.f32 %v4520_v21, %v4568_v29  ;;  %v4559_v11 = vsel %vm2881_vm9, %v4537_v55, %v4538_v44  ;;  %5466 = vmatmul.msk.f32.gmra.mxu1 %vm3493_vm10, %v4646_v12  ;;  %vm13585_vm5 = vcmp.eq.s32.totalorder %v13528_v4, 1  ;;  %vm13587_vm13 = vcmp.eq.s32.totalorder %v13586_v61, 1  ;;  %5453 = vmatmul.msk.f32.gmra.mxu3 %vm3493_vm10, %v10809_v40 }
 0x364   : > { %v4632_v3 = vsel %vm13585_vm5, %v4625_v38, -3.4028235e+38  ;;  %v4441_v5 = vsel %vm13587_vm13, %v4431_v1, -3.4028235e+38  ;;  %v4379_v54 = vmax.f32 %v4363_v42, %v10815_v19  ;;  %v4495_v10 = vsel %vm2560_vm11, %v4473_v45, %v4474_v26 }
 0x365   : > { %v4648_v43 = vmax.f32 %v4584_v33, %v4632_v3  ;;  %v4457_v53 = vmax.f32 %v4393_v0, %v4441_v5  ;;  %v4623_v17 = vsel %vm3202_vm12, %v4601_v52, %v4602_v31  ;;  %vm13589_vm14 = vcmp.eq.s32.totalorder %v13588_v28, 1 }
 0x366   : > { %v4505_v55 = vsel %vm13589_vm14, %v4496_v46, -3.4028235e+38  ;;  %v4395_v59 = vmax.f32 %v4379_v54, %v13590_v14  ;;  %vm13592_vm8 = vcmp.eq.s32.totalorder %v13591_v34, 1  ;;  %v4380_v0 = vmax.f32 %v11533_v36, %v13583_v57  ;;  %v13595_v46 = vld [vmem:[#allocation42_spill] sm:$0xff] }
 0x367   : > { %v4521_v4 = vmax.f32 %v4457_v53, %v4505_v55  ;;  %v4569_v25 = vsel %vm13592_vm8, %v4559_v11, -3.4028235e+38  ;;  %vm13594_vm3 = vcmp.eq.s32.totalorder %v13593_v51, 1  ;;  %vm13596_vm5 = vcmp.eq.s32.totalorder %v13595_v46, 1 }
 0x368   : > { %v4411_v24 = vrot.slane %v4395_v59, 1  ;;  %v4539_v12 = vrot.slane %v4395_v59, 2  ;;  %v4475_v27 = vrot.slane %v4395_v59, 7  ;;  %v4603_v20 = vrot.slane %v4395_v59, 6 }
 0x369   : > { %v4585_v30 = vmax.f32 %v4521_v4, %v4569_v25  ;;  %v4633_v38 = vsel %vm13594_vm3, %v4624_v60, -3.4028235e+38  ;;  %v4396_v29 = vmax.f32 %v4380_v0, %v11044_v22  ;;  %vm13597_vm13 = vcmp.eq.s32.totalorder %v13506_v35, 1 }
 0x36a   : > { %v4430_v45 = vsel %vm2239_vm7, %v4410_v15, %v4411_v24  ;;  %v4558_v52 = vsel %vm2881_vm9, %v4538_v44, %v4539_v12  ;;  %v4494_v41 = vsel %vm2560_vm11, %v4474_v26, %v4475_v27  ;;  %v4622_v36 = vsel %vm3202_vm12, %v4602_v31, %v4603_v20 }
 0x36b   : > { %v4649_v21 = vmax.f32 %v4585_v30, %v4633_v38  ;;  %v4442_v42 = vsel %vm13596_vm5, %v4430_v45, -3.4028235e+38  ;;  %v4412_v33 = vrot.slane %v4396_v29, 1  ;;  %5467 = vmatmul.msk.f32.gmra.mxu1 %vm3493_vm10, %v4647_v9  ;;  %v4540_v1 = vrot.slane %v4396_v29, 2  ;;  %5454 = vmatmul.msk.f32.gmra.mxu3 %vm3493_vm10, %v10813_v56  ;;  %v13606_v38 = vld [vmem:[#allocation72_spill] sm:$0xff] }
 0x36c   : > { %v4458_v60 = vmax.f32 %v4394_v47, %v4442_v42  ;;  %v4506_v15 = vsel %vm13597_vm13, %v4495_v10, -3.4028235e+38  ;;  %vm13598_vm14 = vcmp.eq.s32.totalorder %v13536_v49, 1  ;;  %vm13599_vm8 = vcmp.eq.s32.totalorder %v13524_v7, 1 }
 0x36d   : > { %v4429_v44 = vsel %vm2239_vm7, %v4411_v24, %v4412_v33  ;;  %v4557_v31 = vsel %vm2881_vm9, %v4539_v12, %v4540_v1  ;;  %v4570_v9 = vsel %vm13599_vm8, %v4558_v52, -3.4028235e+38  ;;  %v4349_v35 = vmax.f32 %v11537_v63, %v10809_v40 }
 0x36e   : > { %v4522_v11 = vmax.f32 %v4458_v60, %v4506_v15  ;;  %v4443_v26 = vsel %vm13598_vm14, %v4429_v44, -3.4028235e+38  ;;  %v4476_v3 = vrot.slane %v4396_v29, 7  ;;  %vm13600_vm3 = vcmp.eq.s32.totalorder %v13540_v2, 1  ;;  %v11750_v15 = vpop.f32.mrf.mxu3 }
 0x36f   : > { %v4459_v47 = vmax.f32 %v4395_v59, %v4443_v26  ;;  %v4507_v5 = vsel %vm13600_vm3, %v4494_v41, -3.4028235e+38  ;;  %v4604_v49 = vrot.slane %v4396_v29, 6  ;;  %vm13601_vm5 = vcmp.eq.s32.totalorder %v13531_v13, 1  ;;  %v13604_v59 = vld [vmem:[#allocation13_spill] sm:$0xff]  ;;  %v13611_v26 = vld [vmem:[#allocation19_spill] sm:$0xff] }
 0x370   : > { %v4586_v61 = vmax.f32 %v4522_v11, %v4570_v9  ;;  %v4634_v54 = vsel %vm13601_vm5, %v4623_v17, -3.4028235e+38  ;;  %v4365_v10 = vmax.f32 %v4349_v35, %v10815_v19  ;;  %v4493_v7 = vsel %vm2560_vm11, %v4475_v27, %v4476_v3  ;;  %v13612_v9 = vld [vmem:[#allocation11_spill] sm:$0xff] }
 0x371   : > { %v4523_v53 = vmax.f32 %v4459_v47, %v4507_v5  ;;  %vm13602_vm13 = vcmp.eq.s32.totalorder %v13544_v37, 1  ;;  %v4621_v40 = vsel %vm3202_vm12, %v4603_v20, %v4604_v49  ;;  %vm13603_vm14 = vcmp.eq.s32.totalorder %v13549_v32, 1 }
 0x372   : > { %v4650_v28 = vmax.f32 %v4586_v61, %v4634_v54  ;;  %v4571_v55 = vsel %vm13602_vm13, %v4557_v31, -3.4028235e+38  ;;  %v4381_v2 = vmax.f32 %v4365_v10, %v13590_v14  ;;  %v4635_v13 = vsel %vm13603_vm14, %v4622_v36, -3.4028235e+38 }
 0x373   : > { %v4587_v63 = vmax.f32 %v4523_v53, %v4571_v55  ;;  %5468 = vmatmul.msk.f32.gmra.mxu1 %vm3493_vm10, %v4648_v43  ;;  %5455 = vmatmul.msk.f32.gmra.mxu3 %vm3493_vm10, %v10815_v19  ;;  %v4350_v25 = vmax.f32 %v11473_v8, %v10813_v56  ;;  %vm13605_vm8 = vcmp.eq.s32.totalorder %v13542_v62, 1  ;;  %v11735_v8 = vpop.f32.mrf.mxu1  ;;  %vm13607_vm3 = vcmp.eq.s32.totalorder %v13606_v38, 1 }
 0x374   : > { %v4397_v4 = vmax.f32 %v4381_v2, %v13604_v59  ;;  %v4508_v45 = vsel %vm13607_vm3, %v4493_v7, -3.4028235e+38  ;;  %vm13608_vm5 = vcmp.eq.s32.totalorder %v13551_v6, 1  ;;  %vm13610_vm13 = vcmp.eq.s32.totalorder %v13558_v50, 1 }
 0x375   : > { %v11717_v17 = vmax.f32 %v4587_v63, %v4635_v13  ;;  %v4366_v12 = vmax.f32 %v4350_v25, %v13583_v57  ;;  %vm13613_vm14 = vcmp.eq.s32.totalorder %v13612_v9, 1  ;;  %vm13616_vm3 = vcmp.eq.s32.totalorder %v13563_v18, 1  ;;  %v13619_v25 = vld [vmem:[#allocation83_spill] sm:$0xff] }
 0x376   : > { %v4413_v37 = vrot.slane %v4397_v4, 1  ;;  %v4541_v34 = vrot.slane %v4397_v4, 2  ;;  %v4477_v0 = vrot.slane %v4397_v4, 7  ;;  %v4605_v24 = vrot.slane %v4397_v4, 6 }
 0x377   : > { %v4382_v51 = vmax.f32 %v4366_v12, %v11044_v22 }
 0x378   : > { %v4428_v43 = vsel %vm2239_vm7, %v4412_v33, %v4413_v37  ;;  %v4556_v32 = vsel %vm2881_vm9, %v4540_v1, %v4541_v34  ;;  %v4492_v27 = vsel %vm2560_vm11, %v4476_v3, %v4477_v0  ;;  %v4620_v20 = vsel %vm3202_vm12, %v4604_v49, %v4605_v24  ;;  %v13614_v49 = vld [vmem:[#allocation41_spill] sm:$0xff] }
 0x379   : > { %v4444_v19 = vsel %vm13605_vm8, %v4428_v43, -3.4028235e+38  ;;  %v4398_v41 = vmax.f32 %v4382_v51, %v11141_v16  ;;  %v4572_v62 = vsel %vm13608_vm5, %v4556_v32, -3.4028235e+38  ;;  %vm13615_vm8 = vcmp.eq.s32.totalorder %v13614_v49, 1 }
 0x37a   : > { %v4460_v30 = vmax.f32 %v4396_v29, %v4444_v19  ;;  %v13609_v29 = vld [vmem:[#allocation76_spill] sm:$0xff]  ;;  %v4509_v54 = vsel %vm13615_vm8, %v4492_v27, -3.4028235e+38  ;;  %vm13618_vm5 = vcmp.eq.s32.totalorder %v13565_v39, 1  ;;  %v13621_v27 = vld [vmem:[#allocation101_spill] sm:$0xff] }
 0x37b   : > { %5469 = vmatmul.msk.f32.gmra.mxu1 %vm3493_vm10, %v4649_v21  ;;  %5456 = vmatmul.msk.f32.gmra.mxu3 %vm3493_vm10, %v13583_v57  ;;  %v4414_v46 = vrot.slane %v4398_v41, 1  ;;  %v4542_v42 = vrot.slane %v4398_v41, 2  ;;  %v4383_v33 = vmax.f32 %v13609_v29, %v13604_v59  ;;  %v4636_v21 = vsel %vm13610_vm13, %v4621_v40, -3.4028235e+38  ;;  %v11766_v53 = vpop.f32.mrf.mxu1 }
 0x37c   : > { %v4524_v52 = vmax.f32 %v4460_v30, %v4508_v45  ;;  %v4478_v60 = vrot.slane %v4398_v41, 7  ;;  %v4606_v1 = vrot.slane %v4398_v41, 6  ;;  %vm13620_vm13 = vcmp.eq.s32.totalorder %v13619_v25, 1  ;;  %v13623_v30 = vld [vmem:[#allocation97_spill] sm:$0xff] }
 0x37d   : > { %v4427_v6 = vsel %vm2239_vm7, %v4413_v37, %v4414_v46  ;;  %v4555_v11 = vsel %vm2881_vm9, %v4541_v34, %v4542_v42  ;;  %v4399_v31 = vmax.f32 %v4383_v33, %v13611_v26  ;;  %v4637_v34 = vsel %vm13618_vm5, %v4620_v20, -3.4028235e+38 }
 0x37e   : > { %v4588_v36 = vmax.f32 %v4524_v52, %v4572_v62  ;;  %v4445_v47 = vsel %vm13613_vm14, %v4427_v6, -3.4028235e+38  ;;  %v4491_v50 = vsel %vm2560_vm11, %v4477_v0, %v4478_v60  ;;  %v4619_v35 = vsel %vm3202_vm12, %v4605_v24, %v4606_v1  ;;  %v11784_v24 = vpop.f32.mrf.mxu3 }
 0x37f   : > { %v4461_v3 = vmax.f32 %v4397_v4, %v4445_v47  ;;  %v4415_v61 = vrot.slane %v4399_v31, 1  ;;  %v4543_v5 = vrot.slane %v4399_v31, 2  ;;  %v4573_v40 = vsel %vm13616_vm3, %v4555_v11, -3.4028235e+38  ;;  %v13626_v11 = vld [vmem:[#allocation35_spill] sm:$0xff]  ;;  %v13628_v47 = vld [vmem:[#allocation46_spill] sm:$0xff] }
 0x380   : > { %v4652_v44 = vmax.f32 %v4588_v36, %v4636_v21  ;;  %v4352_v4 = vmax.f32 %v10813_v56, %v13583_v57  ;;  %v4479_v37 = vrot.slane %v4399_v31, 7  ;;  %v4510_v0 = vsel %vm13620_vm13, %v4491_v50, -3.4028235e+38  ;;  %v13625_v36 = vld [vmem:[#allocation59_spill] sm:$0xff] }
 0x381   : > { %v4525_v10 = vmax.f32 %v4461_v3, %v4509_v54  ;;  %v4426_v7 = vsel %vm2239_vm7, %v4414_v46, %v4415_v61  ;;  %v4554_v55 = vsel %vm2881_vm9, %v4542_v42, %v4543_v5  ;;  %v4607_v18 = vrot.slane %v4399_v31, 6  ;;  %v13632_v54 = vld [vmem:[#allocation8_spill] sm:$0xff] }
 0x382   : > { %v4446_v2 = vsel %vm2441_vm15, %v4426_v7, -3.4028235e+38  ;;  %v4368_v12 = vmax.f32 %v4352_v4, %v11044_v22  ;;  %vm13622_vm15 = vcmp.eq.s32.totalorder %v13621_v27, 1  ;;  %vm13624_vm14 = vcmp.eq.s32.totalorder %v13623_v30, 1  ;;  %v13635_v4 = vld [vmem:[#allocation98_spill] sm:$0xff]  ;;  %v13641_v30 = vld [vmem:[#allocation108_spill] sm:$0xff] }
 0x383   : > { %5470 = vmatmul.msk.f32.gmra.mxu1 %vm3493_vm10, %v4650_v28  ;;  %5457 = vmatmul.msk.f32.gmra.mxu3 %vm3493_vm10, %v13590_v14  ;;  %v4589_v28 = vmax.f32 %v4525_v10, %v4573_v40  ;;  %v4462_v13 = vmax.f32 %v4398_v41, %v4446_v2  ;;  %v4490_v14 = vsel %vm2560_vm11, %v4478_v60, %v4479_v37  ;;  %v4574_v56 = vsel %vm13622_vm15, %v4554_v55, -3.4028235e+38  ;;  %v11799_v52 = vpop.f32.mrf.mxu1  ;;  %v13654_v2 = vld [vmem:[#allocation6_spill] sm:$0xff] }
 0x384   : > { %v4618_v39 = vsel %vm3202_vm12, %v4606_v1, %v4607_v18  ;;  %v4384_v20 = vmax.f32 %v4368_v12, %v11141_v16  ;;  %v4638_v51 = vsel %vm13624_vm14, %v4619_v35, -3.4028235e+38  ;;  %v4417_v46 = vrot.slane %v13625_v36, 1 }
 0x385   : > { %v4653_v43 = vmax.f32 %v4589_v28, %v4637_v34  ;;  %v4526_v32 = vmax.f32 %v4462_v13, %v4510_v0  ;;  %v4545_v29 = vrot.slane %v13625_v36, 2  ;;  %vm13627_vm8 = vcmp.eq.s32.totalorder %v13626_v11, 1  ;;  %v13637_v0 = vld [vmem:[#allocation23_spill] sm:$0xff]  ;;  %v13648_v11 = vld [vmem:[#allocation50_spill] sm:$0xff] }
 0x386   : > { %v4400_v45 = vmax.f32 %v4384_v20, %v11295_v58  ;;  %vm13629_vm3 = vcmp.eq.s32.totalorder %v13628_v47, 1  ;;  %vm13633_vm13 = vcmp.eq.s32.totalorder %v13632_v54, 1  ;;  %v4354_v55 = vmax.f32 %v13583_v57, %v11044_v22 }
 0x387   : > { %v4590_v19 = vmax.f32 %v4526_v32, %v4574_v56  ;;  %v4481_v40 = vrot.slane %v13625_v36, 7  ;;  %v4609_v63 = vrot.slane %v13625_v36, 6  ;;  %vm13636_vm15 = vcmp.eq.s32.totalorder %v13635_v4, 1  ;;  %v13639_v32 = vld [vmem:[#allocation70_spill] sm:$0xff] }
 0x388   : > { %v4416_v41 = vrot.slane %v4400_v45, 1  ;;  %v4544_v62 = vrot.slane %v4400_v45, 2  ;;  %v4480_v42 = vrot.slane %v4400_v45, 7  ;;  %v4608_v33 = vrot.slane %v4400_v45, 6 }
 0x389   : > { %v4654_v38 = vmax.f32 %v4590_v19, %v4638_v51  ;;  %vm13638_vm14 = vcmp.eq.s32.totalorder %v13637_v0, 1 }
 0x38a   : > { %v4425_v21 = vsel %vm2239_vm7, %v4415_v61, %v4416_v41  ;;  %v4553_v60 = vsel %vm2881_vm9, %v4543_v5, %v4544_v62  ;;  %v4424_v1 = vsel %vm2239_vm7, %v4416_v41, %v4417_v46  ;;  %v4489_v6 = vsel %vm2560_vm11, %v4479_v37, %v4480_v42  ;;  %v13630_v61 = vld [vmem:[#allocation82_spill] sm:$0xff] }
 0x38b   : > { %5471 = vmatmul.msk.f32.gmra.mxu1 %vm3493_vm10, %v11717_v17  ;;  %5458 = vmatmul.msk.f32.gmra.mxu3 %vm3493_vm10, %v11044_v22  ;;  %v11805_v17 = vpop.f32.mrf.mxu3  ;;  %v4447_v9 = vsel %vm13627_vm8, %v4425_v21, -3.4028235e+38  ;;  %v4448_v50 = vsel %vm13629_vm3, %v4424_v1, -3.4028235e+38  ;;  %v4552_v35 = vsel %vm2881_vm9, %v4544_v62, %v4545_v29  ;;  %vm13631_vm5 = vcmp.eq.s32.totalorder %v13630_v61, 1  ;;  %v11848_v27 = vpop.f32.mrf.mxu1  ;;  %v13642_v62 = vld [vmem:[#allocation45_spill] sm:$0xff] }
 0x38c   : > { %v4463_v3 = vmax.f32 %v4399_v31, %v4447_v9  ;;  %v4511_v49 = vsel %vm13631_vm5, %v4490_v14, -3.4028235e+38  ;;  %v4464_v5 = vmax.f32 %v4400_v45, %v4448_v50  ;;  %v4512_v10 = vsel %vm13633_vm13, %v4489_v6, -3.4028235e+38  ;;  %v13644_v21 = vld [vmem:[#allocation89_spill] sm:$0xff]  ;;  %v13646_v1 = vld [vmem:[#allocation24_spill] sm:$0xff] }
 0x38d   : > { %v4617_v7 = vsel %vm3202_vm12, %v4607_v18, %v4608_v33  ;;  %v4575_v28 = vsel %vm3084_vm2, %v4553_v60, -3.4028235e+38  ;;  %v4576_v37 = vsel %vm13636_vm15, %v4552_v35, -3.4028235e+38  ;;  %v4488_v34 = vsel %vm2560_vm11, %v4480_v42, %v4481_v40  ;;  %v13647_v6 = vld [vmem:[#allocation25_spill] sm:$0xff]  ;;  %v13650_v35 = vld [vmem:[#allocation110_spill] sm:$0xff] }
 0x38e   : > { %v4527_v31 = vmax.f32 %v4463_v3, %v4511_v49  ;;  %v4528_v13 = vmax.f32 %v4464_v5, %v4512_v10  ;;  %v4616_v22 = vsel %vm3202_vm12, %v4608_v33, %v4609_v63  ;;  %v4639_v18 = vsel %vm13638_vm14, %v4618_v39, -3.4028235e+38  ;;  %v13652_v5 = vld [vmem:[#allocation100_spill] sm:$0xff] }
 0x38f   : > { %vm13640_vm2 = vcmp.eq.s32.totalorder %v13639_v32, 1  ;;  %vm13643_vm8 = vcmp.eq.s32.totalorder %v13642_v62, 1  ;;  %vm13645_vm3 = vcmp.eq.s32.totalorder %v13644_v21, 1  ;;  %v13649_v9 = vmax.f32 %v13647_v6, %v13648_v11  ;;  %v13659_v32 = vld [vmem:[#allocation106_spill] sm:$0xff] }
 0x390   : > { %v4591_v57 = vmax.f32 %v4527_v31, %v4575_v28  ;;  %v4592_v25 = vmax.f32 %v4528_v13, %v4576_v37  ;;  %v4640_v12 = vsel %vm13640_vm2, %v4617_v7, -3.4028235e+38  ;;  %v4513_v60 = vsel %vm13645_vm3, %v4488_v34, -3.4028235e+38  ;;  %v13656_v37 = vld [vmem:[#allocation21_spill] sm:$0xff]  ;;  %v13657_v34 = vld [vmem:[#allocation27_spill] sm:$0xff] }
 0x391   : > { %vm13651_vm5 = vcmp.eq.s32.totalorder %v13650_v35, 1  ;;  %vm13653_vm13 = vcmp.eq.s32.totalorder %v13652_v5, 1  ;;  %vm13655_vm15 = vcmp.eq.s32.totalorder %v13654_v2, 1  ;;  %vm13658_vm14 = vcmp.eq.s32.totalorder %v13657_v34, 1 }
 0x392   : > { %v4655_v19 = vmax.f32 %v4591_v57, %v4639_v18  ;;  %v4656_v20 = vmax.f32 %v4592_v25, %v4640_v12  ;;  %v4641_v54 = vsel %vm13653_vm13, %v4616_v22, -3.4028235e+38  ;;  %v4548_v57 = vrot.slane %v13656_v37, 2 }
 0x393   : > { %5472 = vmatmul.msk.f32.gmra.mxu1 %vm3493_vm10, %v4652_v44  ;;  %v4370_v44 = vmax.f32 %v4354_v55, %v11141_v16  ;;  %5459 = vmatmul.msk.f32.gmra.mxu3 %vm3493_vm10, %v13604_v59  ;;  %v11850_v56 = vpop.f32.mrf.mxu3  ;;  %v11871_v50 = vpop.f32.mrf.mxu1  ;;  %vm13660_vm2 = vcmp.eq.s32.totalorder %v13659_v32, 1 }
 0x395   : > { %v4386_v14 = vmax.f32 %v4370_v44, %v11295_v58 }
 0x397   : > { %v4402_v51 = vmax.f32 %v4386_v14, %v13641_v30  ;;  %v13661_v14 = vld [vmem:[#allocation14_spill] sm:$0xff] }
 0x399   : > { %v4418_v59 = vrot.slane %v4402_v51, 1  ;;  %v4546_v45 = vrot.slane %v4402_v51, 2  ;;  %v4482_v47 = vrot.slane %v4402_v51, 7 }
 0x39b   : > { %5473 = vmatmul.msk.f32.gmra.mxu1 %vm3493_vm10, %v4653_v43  ;;  %v4423_v39 = vsel %vm2239_vm7, %v4417_v46, %v4418_v59  ;;  %v4551_v41 = vsel %vm2881_vm9, %v4545_v29, %v4546_v45  ;;  %5460 = vmatmul.msk.f32.gmra.mxu3 %vm3493_vm10, %v11141_v16  ;;  %v11869_v46 = vmax.f32 %v13649_v9, %v13646_v1  ;;  %v4610_v29 = vrot.slane %v4402_v51, 6  ;;  %v11873_v16 = vpop.f32.mrf.mxu3  ;;  %v11906_v18 = vpop.f32.mrf.mxu1 }
 0x39c   : > { %v4449_v42 = vsel %vm13643_vm8, %v4423_v39, -3.4028235e+38  ;;  %v4577_v3 = vsel %vm13651_vm5, %v4551_v41, -3.4028235e+38  ;;  %v4487_v49 = vsel %vm2560_vm11, %v4481_v40, %v4482_v47  ;;  %vm13662_vm8 = vcmp.eq.s32.totalorder %v13661_v14, 1 }
 0x39d   : > { %v4465_v33 = vmax.f32 %v13625_v36, %v4449_v42  ;;  %v4419_v61 = vrot.slane %v11869_v46, 1  ;;  %v4547_v10 = vrot.slane %v11869_v46, 2  ;;  %v4615_v7 = vsel %vm3202_vm12, %v4609_v63, %v4610_v29 }
 0x39e   : > { %v4611_v13 = vrot.slane %v11869_v46, 6  ;;  %v4420_v63 = vrot.slane %v13656_v37, 1  ;;  %v4514_v22 = vsel %vm13658_vm14, %v4487_v49, -3.4028235e+38  ;;  %v4642_v62 = vsel %vm3408_vm1, %v4615_v7, -3.4028235e+38 }
 0x39f   : > { %v4529_v43 = vmax.f32 %v4465_v33, %v4513_v60  ;;  %v4422_v31 = vsel %vm2239_vm7, %v4418_v59, %v4419_v61  ;;  %v4550_v28 = vsel %vm2881_vm9, %v4546_v45, %v4547_v10  ;;  %v4549_v45 = vsel %vm2881_vm9, %v4547_v10, %v4548_v57  ;;  %v13668_v49 = vld [vmem:[#allocation48_spill] sm:$0xff] }
 0x3a0   : > { %v4450_v40 = vsel %vm13655_vm15, %v4422_v31, -3.4028235e+38  ;;  %v4421_v0 = vsel %vm2239_vm7, %v4419_v61, %v4420_v63  ;;  %v4578_v12 = vsel %vm13660_vm2, %v4550_v28, -3.4028235e+38 }
 0x3a1   : > { %v4593_v36 = vmax.f32 %v4529_v43, %v4577_v3  ;;  %v4466_v4 = vmax.f32 %v4402_v51, %v4450_v40  ;;  %v4451_v30 = vsel %vm13662_vm8, %v4421_v0, -3.4028235e+38  ;;  %v4579_v43 = vsel %vm3088_vm6, %v4549_v45, -3.4028235e+38  ;;  %v13677_v0 = vld [vmem:[#allocation63_spill] sm:$0xff] }
 0x3a2   : > { %v4467_v59 = vmax.f32 %v11869_v46, %v4451_v30 }
 0x3a3   : > { %5474 = vmatmul.msk.f32.gmra.mxu1 %vm3493_vm10, %v4654_v38  ;;  %v4657_v55 = vmax.f32 %v4593_v36, %v4641_v54  ;;  %v4483_v38 = vrot.slane %v11869_v46, 7  ;;  %5461 = vmatmul.msk.f32.gmra.mxu3 %vm3493_vm10, %v13611_v26  ;;  %v4614_v26 = vsel %vm3202_vm12, %v4610_v29, %v4611_v13  ;;  %v4530_v25 = vmax.f32 %v4466_v4, %v4514_v22  ;;  %v11916_v39 = vpop.f32.mrf.mxu3  ;;  %v11928_v46 = vpop.f32.mrf.mxu1 }
 0x3a4   : > { %v4643_v11 = vsel %vm3409_vm4, %v4614_v26, -3.4028235e+38  ;;  %v13670_v54 = vrot.slane %v13656_v37, 7  ;;  %v13673_v4 = vrot.slane %v11543_v23, 2  ;;  %vm13679_vm4 = vcmask 64512  }
 0x3a5   : > { %v4486_v44 = vsel %vm2560_vm11, %v4482_v47, %v4483_v38  ;;  %v4594_v51 = vmax.f32 %v4530_v25, %v4578_v12  ;;  %v3679_v47 = vpop.f32.mrf.mxu2  ;;  %vm13680_vm14 = vmmov %vm13679_vm4 }
 0x3a6   : > { %v4515_v33 = vsel %vm2767_vm0, %v4486_v44, -3.4028235e+38  ;;  %vm13669_vm0 = vcmp.eq.s32.totalorder %v13668_v49, 1  ;;  %v4485_v10 = vsel %vm2560_vm11, %v4483_v38, %v13670_v54  ;;  %v13674_v44 = vld [vmem:[#allocation111_spill] sm:$0xff]  ;;  %v13676_v38 = vrot.slane %v13656_v37, 6 }
 0x3a7   : > { %v4658_v21 = vmax.f32 %v4594_v51, %v4642_v62  ;;  %v4531_v60 = vmax.f32 %v4467_v59, %v4515_v33  ;;  %vm13678_vm11 = vcmp.eq.s32.totalorder %v13677_v0, 1 }
 0x3a8   : > { %v4613_v26 = vsel %vm3202_vm12, %v4611_v13, %v13676_v38 }
 0x3a9   : > { %v4595_v1 = vmax.f32 %v4531_v60, %v4579_v43  ;;  %v4644_v32 = vsel %vm13678_vm11, %v4613_v26, -3.4028235e+38 }
 0x3ab   : > { %5475 = vmatmul.msk.f32.gmra.mxu1 %vm3493_vm10, %v4655_v19  ;;  %5462 = vmatmul.msk.f32.gmra.mxu3 %vm3493_vm10, %v11295_v58  ;;  %v4659_v9 = vmax.f32 %v4595_v1, %v4643_v11  ;;  %v4277_v29 = vpop.f32.mrf.mxu3  ;;  %v11932_v35 = vpop.f32.mrf.mxu1  ;;  %v13667_v58 = vrot.slane %v11543_v23, 1 }
 0x3ad   : > { %v3682_v3 = vpop.f32.mrf.mxu2  ;;  %v4436_v36 = vsel %vm2239_vm7, %v4420_v63, %v13667_v58  ;;  %v4564_v63 = vsel %vm2881_vm9, %v4548_v57, %v13673_v4  ;;  %vm13675_vm7 = vcmp.eq.s32.totalorder %v13674_v44, 1  ;;  %v3680_v57 = vadd.f32 %v3679_v47, %v11735_v8 }
 0x3ae   : > { %v4452_v5 = vsel %vm13669_vm0, %v4436_v36, -3.4028235e+38  ;;  %v4580_v34 = vsel %vm13675_vm7, %v4564_v63, -3.4028235e+38  ;;  %v3683_v45 = vadd.f32 %v3682_v3, %v11766_v53  ;;  %vm13681_vm7 = vmmov %vm13679_vm4 }
 0x3af   : > { %v4325_v30 = vadd.f32 %v4277_v29, %v3680_v57 }
 0x3b3   : > { %5476 = vmatmul.msk.f32.gmra.mxu1 %vm3493_vm10, %v4656_v20  ;;  %v4468_v20 = vmax.f32 %v13656_v37, %v4452_v5  ;;  %v11946_v7 = vpop.f32.mrf.mxu1  ;;  %v11970_v37 = vld [vmem:[%s12131_s8] ss:$0 sm:$0xff] }
 0x3b5   : > { %v3685_v2 = vpop.f32.mrf.mxu2 }
 0x3b6   : > { %v3686_v19 = vadd.f32 %v3685_v2, %v11799_v52 }
 0x3ba   : > { %v4280_v61 = vpop.f32.mrf.mxu3 }
 0x3bb   : > { %5477 = vmatmul.msk.f32.gmra.mxu1 %vm3493_vm10, %v4657_v55  ;;  %v13671_v55 = vld [vmem:[#allocation92_spill] sm:$0xff]  ;;  %v11961_v25 = vpop.f32.mrf.mxu1  ;;  %v4326_v42 = vadd.f32 %v4280_v61, %v3683_v45 }
 0x3bc   : > { %vm13672_vm6 = vcmp.eq.s32.totalorder %v13671_v55, 1 }
 0x3bd   : > { %v4516_v31 = vsel %vm13672_vm6, %v4485_v10, -3.4028235e+38  ;;  %v3688_v12 = vpop.f32.mrf.mxu2 }
 0x3be   : > { %v4532_v28 = vmax.f32 %v4468_v20, %v4516_v31  ;;  %v3689_v58 = vadd.f32 %v3688_v12, %v11848_v27 }
 0x3c0   : > { %v4596_v22 = vmax.f32 %v4532_v28, %v4580_v34 }
 0x3c2   : > { %v4660_v23 = vmax.f32 %v4596_v22, %v4644_v32 }
 0x3c3   : > { %5478 = vmatmul.msk.f32.gmra.mxu1 %vm3493_vm10, %v4658_v21 }
 0x3c5   : > { %v3691_v59 = vpop.f32.mrf.mxu2 }
 0x3c6   : > { %v4283_v40 = vpop.f32.mrf.mxu3  ;;  %v3692_v4 = vadd.f32 %v3691_v59, %v11871_v50 }
 0x3c7   : > { %v4327_v11 = vadd.f32 %v4283_v40, %v3686_v19 }
 0x3cb   : > { %5479 = vmatmul.msk.f32.gmra.mxu1 %vm3493_vm10, %v4659_v9 }
 0x3cd   : > { %v3694_v6 = vpop.f32.mrf.mxu2 }
 0x3ce   : > { %v4286_v14 = vpop.f32.mrf.mxu3 }
 0x3cf   : > { %v4328_v49 = vadd.f32 %v4286_v14, %v3689_v58 }
 0x3d3   : > { %5480 = vmatmul.msk.f32.gmra.mxu1 %vm3493_vm10, %v4660_v23 }
 0x3d5   : > { %v11984_v54 = vpop.f32.mrf.mxu2 }
 0x3d6   : > { %v4289_v41 = vpop.f32.mrf.mxu3 }
 0x3d7   : > { %v4329_v38 = vadd.f32 %v4289_v41, %v3692_v4 }
 0x3d8   : > { %v4731_v48 = vpop.f32.mrf.mxu1 }
 0x3d9   : > { %v4779_v13 = vadd.f32 %v4731_v48, %v4325_v30 }
 0x3db   : > { %v4799_v51 = vadd.f32 %v11970_v37, %v4779_v13 }
 0x3dd   : > { %v5481_v62 = vmul.f32 -1.442695, %v4799_v51  ;;  %v3700_v13 = vpop.f32.mrf.mxu2 }
 0x3de   : > { %v4292_v9 = vpop.f32.mrf.mxu3 }
 0x3df   : > { %5708 = vpow2.f32 %v5481_v62 }
 0x3e0   : > { %v4734_v33 = vpop.f32.mrf.mxu1 }
 0x3e1   : > { %v4780_v21 = vadd.f32 %v4734_v33, %v4326_v42  ;;  %v3695_v42 = vadd.f32 %v3694_v6, %v11906_v18 }
 0x3e3   : > { %v11975_v8 = vadd.f32 %v11970_v37, %v4780_v21  ;;  %v4330_v19 = vadd.f32 %v4292_v9, %v3695_v42 }
 0x3e5   : > { %v5709_v60 = vpop.eup %5708  ;;  %v5482_v43 = vmul.f32 -1.442695, %v11975_v8 }
 0x3e6   : > { %v4863_v1 = vadd.f32 1.0, %v5709_v60  ;;  %v11986_v55 = vpop.f32.mrf.mxu3 }
 0x3e7   : > { %5710 = vpow2.f32 %v5482_v43 }
 0x3e8   : > { %5712 = vrcp.f32 %v4863_v1  ;;  %v4737_v53 = vpop.f32.mrf.mxu1  ;;  %v4890_v2 = vand.u32 2147483648, %v4863_v1  ;;  %v4888_v28 = vand.u32 2147483647, %v4863_v1  ;;  %vm4884_vm12 = vweird.f32 %v4863_v1 }
 0x3e9   : > { %v4781_v47 = vadd.f32 %v4737_v53, %v4327_v11 }
 0x3ea   : > { %v4891_v26 = vor.u32 1.1754944e-38, %v4890_v2  ;;  %vm4889_vm1 = vcmp.eq.f32.partialorder %v4888_v28, 8.507059e+37 }
 0x3eb   : > { %v11980_v29 = vadd.f32 %v11970_v37, %v4781_v47 }
 0x3ed   : > { %v5711_v3 = vpop.eup %5710  ;;  %v5483_v36 = vmul.f32 -1.442695, %v11980_v29 }
 0x3ee   : > { %v5713_v61 = vpop.eup %5712  ;;  %v4864_v52 = vadd.f32 1.0, %v5711_v3  ;;  %v4298_v41 = vpop.f32.mrf.mxu3 }
 0x3ef   : > { %v4880_v5 = vmul.f32 %v5713_v61, %v4863_v1  ;;  %5714 = vpow2.f32 %v5483_v36  ;;  %vm4885_vm10 = vweird.f32 %v5713_v61 }
 0x3f0   : > { %5716 = vrcp.f32 %v4864_v52  ;;  %v4740_v20 = vpop.f32.mrf.mxu1  ;;  %vm4886_vm9 = vmor %vm4884_vm12, %vm4885_vm10  ;;  %v4905_v48 = vand.u32 2147483648, %v4864_v52  ;;  %v4903_v45 = vand.u32 2147483647, %v4864_v52  ;;  %vm4899_vm5 = vweird.f32 %v4864_v52 }
 0x3f1   : > { %v4881_v10 = vsub.f32 1.0, %v4880_v5  ;;  %v4782_v31 = vadd.f32 %v4740_v20, %v4328_v49  ;;  %v3698_v49 = vadd.f32 %v11984_v54, %v11928_v46  ;;  %v3703_v20 = vpop.f32.mrf.mxu2 }
 0x3f2   : > { %v4906_v43 = vor.u32 1.1754944e-38, %v4905_v48  ;;  %vm4904_vm15 = vcmp.eq.f32.partialorder %v4903_v45, 8.507059e+37 }
 0x3f3   : > { %v4882_v40 = vmul.f32 %v5713_v61, %v4881_v10  ;;  %v11989_v27 = vadd.f32 %v11970_v37, %v4782_v31 }
 0x3f5   : > { %v5715_v63 = vpop.eup %5714  ;;  %v4883_v44 = vadd.f32 %v5713_v61, %v4882_v40  ;;  %v5484_v34 = vmul.f32 -1.442695, %v11989_v27  ;;  %v4331_v40 = vadd.f32 %v11986_v55, %v3698_v49 }
 0x3f6   : > { %v5717_v22 = vpop.eup %5716  ;;  %v4865_v0 = vadd.f32 1.0, %v5715_v63  ;;  %v4301_v31 = vpop.f32.mrf.mxu3 }
 0x3f7   : > { %v4887_v32 = vsel %vm4886_vm9, %v5713_v61, %v4883_v44  ;;  %v4895_v23 = vmul.f32 %v5717_v22, %v4864_v52  ;;  %5718 = vpow2.f32 %v5484_v34  ;;  %vm4900_vm3 = vweird.f32 %v5717_v22 }
 0x3f8   : > { %v4892_v50 = vsel %vm4889_vm1, %v4891_v26, %v4887_v32  ;;  %5720 = vrcp.f32 %v4865_v0  ;;  %v4743_v12 = vpop.f32.mrf.mxu1  ;;  %vm4901_vm13 = vmor %vm4899_vm5, %vm4900_vm3  ;;  %v4920_v36 = vand.u32 2147483648, %v4865_v0  ;;  %v4918_v9 = vand.u32 2147483647, %v4865_v0 }
 0x3f9   : > { %v5119_v14 = vmul.f32 %v4892_v50, %v4799_v51  ;;  %v4896_v57 = vsub.f32 1.0, %v4895_v23  ;;  %v4783_v30 = vadd.f32 %v4743_v12, %v4329_v38  ;;  %vm4914_vm8 = vweird.f32 %v4865_v0  ;;  %vm13682_vm1 = vmmov %vm13679_vm4 }
 0x3fa   : > { %v4921_v28 = vor.u32 1.1754944e-38, %v4920_v36  ;;  %vm4919_vm6 = vcmp.eq.f32.partialorder %v4918_v9, 8.507059e+37  ;;  %v3701_v23 = vadd.f32 %v3700_v13, %v11932_v35 }
 0x3fb   : > { %5135 = vst.msk [vmem:[%s11998_s26] sm:$0xff] %vm13679_vm4, %v5119_v14  ;;  %v4897_v59 = vmul.f32 %v5717_v22, %v4896_v57  ;;  %v12003_v62 = vadd.f32 %v11970_v37, %v4783_v30 }
 0x3fd   : > { %v5719_v33 = vpop.eup %5718  ;;  %v4898_v21 = vadd.f32 %v5717_v22, %v4897_v59  ;;  %v5485_v51 = vmul.f32 -1.442695, %v12003_v62  ;;  %v3706_v59 = vpop.f32.mrf.mxu2 }
 0x3fe   : > { %v5721_v60 = vpop.eup %5720  ;;  %v4866_v1 = vadd.f32 1.0, %v5719_v33  ;;  %v4304_v33 = vpop.f32.mrf.mxu3 }
 0x3ff   : > { %v4902_v11 = vsel %vm4901_vm13, %v5717_v22, %v4898_v21  ;;  %v4910_v53 = vmul.f32 %v5721_v60, %v4865_v0  ;;  %5722 = vpow2.f32 %v5485_v51  ;;  %vm4915_vm2 = vweird.f32 %v5721_v60 }
 0x400   : > { %v4907_v47 = vsel %vm4904_vm15, %v4906_v43, %v4902_v11  ;;  %5724 = vrcp.f32 %v4866_v1  ;;  %v4746_v3 = vpop.f32.mrf.mxu1  ;;  %vm4916_vm0 = vmor %vm4914_vm8, %vm4915_vm2  ;;  %v4935_v26 = vand.u32 2147483648, %v4866_v1  ;;  %v4933_v55 = vand.u32 2147483647, %v4866_v1 }
 0x401   : > { %v5120_v18 = vmul.f32 %v4907_v47, %v11975_v8  ;;  %v4911_v6 = vsub.f32 1.0, %v4910_v53  ;;  %v4784_v58 = vadd.f32 %v4746_v3, %v4330_v19  ;;  %vm4929_vm10 = vweird.f32 %v4866_v1  ;;  %vm13683_vm15 = vmmov %vm13682_vm1 }
 0x402   : > { %v4936_v30 = vor.u32 1.1754944e-38, %v4935_v26  ;;  %vm4934_vm9 = vcmp.eq.f32.partialorder %v4933_v55, 8.507059e+37  ;;  %v3704_v11 = vadd.f32 %v3703_v20, %v11946_v7 }
 0x403   : > { %5136 = vst.msk [vmem:[%s11998_s26 + $0x8] sm:$0xff] %vm13680_vm14, %v5120_v18  ;;  %v4912_v61 = vmul.f32 %v5721_v60, %v4911_v6  ;;  %v12011_v52 = vadd.f32 %v11970_v37, %v4784_v58 }
 0x405   : > { %v5723_v5 = vpop.eup %5722  ;;  %v4913_v10 = vadd.f32 %v5721_v60, %v4912_v61  ;;  %v5486_v8 = vmul.f32 -1.442695, %v12011_v52 }
 0x406   : > { %v5725_v2 = vpop.eup %5724  ;;  %v4867_v4 = vadd.f32 1.0, %v5723_v5  ;;  %v3709_v5 = vpop.f32.mrf.mxu2 }
 0x407   : > { %v4917_v63 = vsel %vm4916_vm0, %v5721_v60, %v4913_v10  ;;  %v4925_v44 = vmul.f32 %v5725_v2, %v4866_v1  ;;  %5726 = vpow2.f32 %v5486_v8  ;;  %vm4930_vm11 = vweird.f32 %v5725_v2  ;;  %v4307_v10 = vpop.f32.mrf.mxu3 }
 0x408   : > { %v4922_v34 = vsel %vm4919_vm6, %v4921_v28, %v4917_v63  ;;  %5728 = vrcp.f32 %v4867_v4  ;;  %v4749_v46 = vpop.f32.mrf.mxu1  ;;  %vm4931_vm12 = vmor %vm4929_vm10, %vm4930_vm11  ;;  %v4950_v19 = vand.u32 2147483648, %v4867_v4  ;;  %v4948_v43 = vand.u32 2147483647, %v4867_v4 }
 0x409   : > { %v5121_v54 = vmul.f32 %v4922_v34, %v11980_v29  ;;  %v4926_v22 = vsub.f32 1.0, %v4925_v44  ;;  %v4785_v38 = vadd.f32 %v4749_v46, %v4331_v40  ;;  %v4332_v29 = vadd.f32 %v4298_v41, %v3701_v23  ;;  %vm13684_vm6 = vmmov %vm13682_vm1 }
 0x40a   : > { %vm4944_vm3 = vweird.f32 %v4867_v4  ;;  %v4951_v6 = vor.u32 1.1754944e-38, %v4950_v19  ;;  %vm4949_vm13 = vcmp.eq.f32.partialorder %v4948_v43, 8.507059e+37 }
 0x40b   : > { %5137 = vst.msk [vmem:[%s11998_s26 + $0x10] sm:$0xff] %vm13681_vm7, %v5121_v54  ;;  %v4927_v0 = vmul.f32 %v5725_v2, %v4926_v22  ;;  %v12021_v32 = vadd.f32 %v11970_v37, %v4785_v38 }
 0x40d   : > { %v5727_v50 = vpop.eup %5726  ;;  %v4928_v12 = vadd.f32 %v5725_v2, %v4927_v0  ;;  %v5487_v14 = vmul.f32 -1.442695, %v12021_v32 }
 0x40e   : > { %v5729_v57 = vpop.eup %5728  ;;  %v4868_v48 = vadd.f32 1.0, %v5727_v50 }
 0x40f   : > { %v4932_v45 = vsel %vm4931_vm12, %v5725_v2, %v4928_v12  ;;  %v4940_v42 = vmul.f32 %v5729_v57, %v4867_v4  ;;  %5730 = vpow2.f32 %v5487_v14  ;;  %vm4945_vm4 = vweird.f32 %v5729_v57  ;;  %v3712_v14 = vpop.f32.mrf.mxu2 }
 0x410   : > { %v4937_v21 = vsel %vm4934_vm9, %v4936_v30, %v4932_v45  ;;  %5732 = vrcp.f32 %v4868_v48  ;;  %v4752_v35 = vpop.f32.mrf.mxu1  ;;  %vm4946_vm5 = vmor %vm4944_vm3, %vm4945_vm4  ;;  %v4965_v2 = vand.u32 2147483648, %v4868_v48  ;;  %v4963_v40 = vand.u32 2147483647, %v4868_v48  ;;  %v4310_v30 = vpop.f32.mrf.mxu3 }
 0x411   : > { %v5122_v13 = vmul.f32 %v4937_v21, %v11989_v27  ;;  %v4941_v51 = vsub.f32 1.0, %v4940_v42  ;;  %v4786_v60 = vadd.f32 %v4752_v35, %v4332_v29  ;;  %v4333_v27 = vadd.f32 %v4301_v31, %v3704_v11  ;;  %vm13685_vm9 = vmmov %vm13682_vm1 }
 0x412   : > { %v3707_v4 = vadd.f32 %v3706_v59, %v11961_v25  ;;  %vm4959_vm2 = vweird.f32 %v4868_v48  ;;  %v4966_v54 = vor.u32 1.1754944e-38, %v4965_v2  ;;  %vm4964_vm0 = vcmp.eq.f32.partialorder %v4963_v40, 8.507059e+37 }
 0x413   : > { %5138 = vst.msk [vmem:[%s11998_s26 + $0x18] sm:$0xff] %vm13682_vm1, %v5122_v13  ;;  %v4942_v41 = vmul.f32 %v5729_v57, %v4941_v51  ;;  %v12029_v1 = vadd.f32 %v11970_v37, %v4786_v60  ;;  %v3710_v59 = vadd.f32 %v3709_v5, %v11750_v15 }
 0x414   : > { %v4334_v46 = vadd.f32 %v4304_v33, %v3707_v4 }
 0x415   : > { %v5731_v53 = vpop.eup %5730  ;;  %v4943_v47 = vadd.f32 %v5729_v57, %v4942_v41  ;;  %v5488_v3 = vmul.f32 -1.442695, %v12029_v1  ;;  %v4335_v21 = vadd.f32 %v4307_v10, %v3710_v59 }
 0x416   : > { %v5733_v18 = vpop.eup %5732  ;;  %v4869_v58 = vadd.f32 1.0, %v5731_v53 }
 0x417   : > { %v4947_v36 = vsel %vm4946_vm5, %v5729_v57, %v4943_v47  ;;  %v4955_v61 = vmul.f32 %v5733_v18, %v4868_v48  ;;  %5734 = vpow2.f32 %v5488_v3  ;;  %vm4960_vm14 = vweird.f32 %v5733_v18 }
 0x418   : > { %v4952_v9 = vsel %vm4949_vm13, %v4951_v6, %v4947_v36  ;;  %5736 = vrcp.f32 %v4869_v58  ;;  %v4755_v49 = vpop.f32.mrf.mxu1  ;;  %vm4961_vm8 = vmor %vm4959_vm2, %vm4960_vm14  ;;  %v4980_v12 = vand.u32 2147483648, %v4869_v58  ;;  %v4978_v29 = vand.u32 2147483647, %v4869_v58 }
 0x419   : > { %v5123_v7 = vmul.f32 %v4952_v9, %v12003_v62  ;;  %v4956_v20 = vsub.f32 1.0, %v4955_v61  ;;  %v4787_v8 = vadd.f32 %v4755_v49, %v4333_v27  ;;  %vm4974_vm11 = vweird.f32 %v4869_v58  ;;  %v4313_v61 = vpop.f32.mrf.mxu3  ;;  %vm13686_vm13 = vmmov %vm13684_vm6 }
 0x41a   : > { %v4981_v35 = vor.u32 1.1754944e-38, %v4980_v12  ;;  %vm4979_vm12 = vcmp.eq.f32.partialorder %v4978_v29, 8.507059e+37  ;;  %v3713_v27 = vadd.f32 %v3712_v14, %v11784_v24 }
 0x41b   : > { %5139 = vst.msk [vmem:[%s11998_s26 + $0x20] sm:$0xff] %vm13683_vm15, %v5123_v7  ;;  %v4957_v31 = vmul.f32 %v5733_v18, %v4956_v20  ;;  %v12037_v28 = vadd.f32 %v11970_v37, %v4787_v8 }
 0x41c   : > { %v4336_v49 = vadd.f32 %v4310_v30, %v3713_v27 }
 0x41d   : > { %v5735_v63 = vpop.eup %5734  ;;  %v4958_v44 = vadd.f32 %v5733_v18, %v4957_v31  ;;  %v5489_v34 = vmul.f32 -1.442695, %v12037_v28 }
 0x41e   : > { %v5737_v62 = vpop.eup %5736  ;;  %v4870_v22 = vadd.f32 1.0, %v5735_v63 }
 0x41f   : > { %v4962_v38 = vsel %vm4961_vm8, %v5733_v18, %v4958_v44  ;;  %v4970_v26 = vmul.f32 %v5737_v62, %v4869_v58  ;;  %5738 = vpow2.f32 %v5489_v34  ;;  %vm4975_vm7 = vweird.f32 %v5737_v62  ;;  %v3715_v58 = vpop.f32.mrf.mxu2 }
 0x420   : > { %v4967_v0 = vsel %vm4964_vm0, %v4966_v54, %v4962_v38  ;;  %5740 = vrcp.f32 %v4870_v22  ;;  %v4758_v55 = vpop.f32.mrf.mxu1  ;;  %vm4976_vm10 = vmor %vm4974_vm11, %vm4975_vm7  ;;  %v4995_v53 = vand.u32 2147483648, %v4870_v22  ;;  %v4993_v3 = vand.u32 2147483647, %v4870_v22 }
 0x421   : > { %v5124_v25 = vmul.f32 %v4967_v0, %v12011_v52  ;;  %v4971_v23 = vsub.f32 1.0, %v4970_v26  ;;  %v4788_v50 = vadd.f32 %v4758_v55, %v4334_v46  ;;  %vm4989_vm4 = vweird.f32 %v4870_v22  ;;  %vm13687_vm0 = vmmov %vm13684_vm6 }
 0x422   : > { %v4996_v5 = vor.u32 1.1754944e-38, %v4995_v53  ;;  %vm4994_vm5 = vcmp.eq.f32.partialorder %v4993_v3, 8.507059e+37 }
 0x423   : > { %5140 = vst.msk [vmem:[%s11998_s26 + $0x28] sm:$0xff] %vm13684_vm6, %v5124_v25  ;;  %v4972_v57 = vmul.f32 %v5737_v62, %v4971_v23  ;;  %v12045_v48 = vadd.f32 %v11970_v37, %v4788_v50  ;;  %v4316_v23 = vpop.f32.mrf.mxu3 }
 0x425   : > { %v5739_v45 = vpop.eup %5738  ;;  %v4973_v42 = vadd.f32 %v5737_v62, %v4972_v57  ;;  %v5490_v52 = vmul.f32 -1.442695, %v12045_v48 }
 0x426   : > { %v5741_v33 = vpop.eup %5740  ;;  %v4871_v13 = vadd.f32 1.0, %v5739_v45 }
 0x427   : > { %v4977_v51 = vsel %vm4976_vm10, %v5737_v62, %v4973_v42  ;;  %v4985_v60 = vmul.f32 %v5741_v33, %v4870_v22  ;;  %5742 = vpow2.f32 %v5490_v52  ;;  %vm4990_vm1 = vweird.f32 %v5741_v33  ;;  %v3718_v55 = vpop.f32.mrf.mxu2 }
 0x428   : > { %v4982_v19 = vsel %vm4979_vm12, %v4981_v35, %v4977_v51  ;;  %5744 = vrcp.f32 %v4871_v13  ;;  %v4761_v41 = vpop.f32.mrf.mxu1  ;;  %vm4991_vm3 = vmor %vm4989_vm4, %vm4990_vm1  ;;  %v5010_v4 = vand.u32 2147483648, %v4871_v13  ;;  %v5008_v44 = vand.u32 2147483647, %v4871_v13 }
 0x429   : > { %v5125_v15 = vmul.f32 %v4982_v19, %v12021_v32  ;;  %v4986_v43 = vsub.f32 1.0, %v4985_v60  ;;  %v4789_v11 = vadd.f32 %v4761_v41, %v4335_v21  ;;  %v3716_v62 = vadd.f32 %v3715_v58, %v11805_v17  ;;  %vm13688_vm12 = vmmov %vm13687_vm0 }
 0x42a   : > { %vm5004_vm14 = vweird.f32 %v4871_v13  ;;  %v5011_v26 = vor.u32 1.1754944e-38, %v5010_v4  ;;  %vm5009_vm8 = vcmp.eq.f32.partialorder %v5008_v44, 8.507059e+37  ;;  %v3719_v52 = vadd.f32 %v3718_v55, %v11850_v56 }
 0x42b   : > { %5141 = vst.msk [vmem:[%s11998_s26 + $0x30] sm:$0xff] %vm13685_vm9, %v5125_v15  ;;  %v4987_v47 = vmul.f32 %v5741_v33, %v4986_v43  ;;  %v12053_v18 = vadd.f32 %v11970_v37, %v4789_v11  ;;  %v4319_v53 = vpop.f32.mrf.mxu3 }
 0x42d   : > { %v5743_v6 = vpop.eup %5742  ;;  %v4988_v36 = vadd.f32 %v5741_v33, %v4987_v47  ;;  %v5491_v32 = vmul.f32 -1.442695, %v12053_v18 }
 0x42e   : > { %v5745_v9 = vpop.eup %5744  ;;  %v4872_v7 = vadd.f32 1.0, %v5743_v6 }
 0x42f   : > { %v4992_v20 = vsel %vm4991_vm3, %v5741_v33, %v4988_v36  ;;  %v5000_v10 = vmul.f32 %v5745_v9, %v4871_v13  ;;  %5746 = vpow2.f32 %v5491_v32  ;;  %vm5005_vm15 = vweird.f32 %v5745_v9  ;;  %v3721_v11 = vpop.f32.mrf.mxu2 }
 0x430   : > { %v4997_v8 = vsel %vm4994_vm5, %v4996_v5, %v4992_v20  ;;  %5748 = vrcp.f32 %v4872_v7  ;;  %v4764_v24 = vpop.f32.mrf.mxu1  ;;  %vm5006_vm2 = vmor %vm5004_vm14, %vm5005_vm15  ;;  %v5025_v30 = vand.u32 2147483648, %v4872_v7  ;;  %v5023_v45 = vand.u32 2147483647, %v4872_v7 }
 0x431   : > { %v5126_v2 = vmul.f32 %v4997_v8, %v12029_v1  ;;  %v5001_v31 = vsub.f32 1.0, %v5000_v10  ;;  %v4790_v40 = vadd.f32 %v4764_v24, %v4336_v49  ;;  %v4337_v1 = vadd.f32 %v4313_v61, %v3716_v62  ;;  %vm13689_vm5 = vmmov %vm13687_vm0 }
 0x432   : > { %vm5019_vm7 = vweird.f32 %v4872_v7  ;;  %v5026_v51 = vor.u32 1.1754944e-38, %v5025_v30  ;;  %vm5024_vm10 = vcmp.eq.f32.partialorder %v5023_v45, 8.507059e+37  ;;  %v3722_v61 = vadd.f32 %v3721_v11, %v11873_v16 }
 0x433   : > { %5142 = vst.msk [vmem:[%s11998_s26 + $0x38] sm:$0xff] %vm13686_vm13, %v5126_v2  ;;  %v5002_v63 = vmul.f32 %v5745_v9, %v5001_v31  ;;  %v12061_v34 = vadd.f32 %v11970_v37, %v4790_v40  ;;  %v4322_v44 = vpop.f32.mrf.mxu3 }
 0x434   : > { %v4339_v5 = vadd.f32 %v4319_v53, %v3722_v61 }
 0x435   : > { %v5747_v46 = vpop.eup %5746  ;;  %v5003_v54 = vadd.f32 %v5745_v9, %v5002_v63  ;;  %v5492_v22 = vmul.f32 -1.442695, %v12061_v34 }
 0x436   : > { %v5749_v38 = vpop.eup %5748  ;;  %v4873_v0 = vadd.f32 1.0, %v5747_v46 }
 0x437   : > { %v5007_v25 = vsel %vm5006_vm2, %v5745_v9, %v5003_v54  ;;  %v5015_v50 = vmul.f32 %v5749_v38, %v4872_v7  ;;  %5750 = vpow2.f32 %v5492_v22  ;;  %vm5020_vm6 = vweird.f32 %v5749_v38  ;;  %v3724_v63 = vpop.f32.mrf.mxu2 }
 0x438   : > { %v5012_v12 = vsel %vm5009_vm8, %v5011_v26, %v5007_v25  ;;  %5752 = vrcp.f32 %v4873_v0  ;;  %v4767_v17 = vpop.f32.mrf.mxu1  ;;  %vm5021_vm11 = vmor %vm5019_vm7, %vm5020_vm6  ;;  %v5040_v27 = vand.u32 2147483648, %v4873_v0  ;;  %v5038_v58 = vand.u32 2147483647, %v4873_v0 }
 0x439   : > { %v5127_v14 = vmul.f32 %v5012_v12, %v12037_v28  ;;  %v5016_v57 = vsub.f32 1.0, %v5015_v50  ;;  %v4791_v29 = vadd.f32 %v4767_v17, %v4337_v1  ;;  %v4338_v28 = vadd.f32 %v4316_v23, %v3719_v52  ;;  %vm13690_vm8 = vmmov %vm13687_vm0 }
 0x43a   : > { %vm5034_vm1 = vweird.f32 %v4873_v0  ;;  %v5041_v7 = vor.u32 1.1754944e-38, %v5040_v27  ;;  %vm5039_vm3 = vcmp.eq.f32.partialorder %v5038_v58, 8.507059e+37  ;;  %v3725_v22 = vadd.f32 %v3724_v63, %v11916_v39 }
 0x43b   : > { %5143 = vst.msk [vmem:[%s11998_s26 + $0x40] sm:$0xff] %vm13687_vm0, %v5127_v14  ;;  %v5017_v59 = vmul.f32 %v5749_v38, %v5016_v57  ;;  %v12069_v42 = vadd.f32 %v11970_v37, %v4791_v29 }
 0x43d   : > { %v5751_v33 = vpop.eup %5750  ;;  %v5018_v21 = vadd.f32 %v5749_v38, %v5017_v59  ;;  %v5493_v35 = vmul.f32 -1.442695, %v12069_v42 }
 0x43e   : > { %v5753_v13 = vpop.eup %5752  ;;  %v4874_v60 = vadd.f32 1.0, %v5751_v33 }
 0x43f   : > { %v5022_v19 = vsel %vm5021_vm11, %v5749_v38, %v5018_v21  ;;  %v5030_v41 = vmul.f32 %v5753_v13, %v4873_v0  ;;  %5754 = vpow2.f32 %v5493_v35  ;;  %vm5035_vm9 = vweird.f32 %v5753_v13 }
 0x440   : > { %v5027_v15 = vsel %vm5024_vm10, %v5026_v51, %v5022_v19  ;;  %5756 = vrcp.f32 %v4874_v60  ;;  %v4770_v43 = vpop.f32.mrf.mxu1  ;;  %vm5036_vm4 = vmor %vm5034_vm1, %vm5035_vm9  ;;  %v5055_v4 = vand.u32 2147483648, %v4874_v60  ;;  %v5053_v46 = vand.u32 2147483647, %v4874_v60 }
 0x441   : > { %v5128_v56 = vmul.f32 %v5027_v15, %v12045_v48  ;;  %v5031_v47 = vsub.f32 1.0, %v5030_v41  ;;  %v4792_v3 = vadd.f32 %v4770_v43, %v4338_v28  ;;  %vm5049_vm15 = vweird.f32 %v4874_v60  ;;  %vm13691_vm10 = vmmov %vm13689_vm5 }
 0x442   : > { %v4340_v0 = vadd.f32 %v4322_v44, %v3725_v22  ;;  %v5056_v55 = vor.u32 1.1754944e-38, %v5055_v4  ;;  %vm5054_vm2 = vcmp.eq.f32.partialorder %v5053_v46, 8.507059e+37 }
 0x443   : > { %5144 = vst.msk [vmem:[%s11998_s26 + $0x48] sm:$0xff] %vm13688_vm12, %v5128_v56  ;;  %v5032_v6 = vmul.f32 %v5753_v13, %v5031_v47  ;;  %v12077_v36 = vadd.f32 %v11970_v37, %v4792_v3 }
 0x445   : > { %v5755_v32 = vpop.eup %5754  ;;  %v5033_v9 = vadd.f32 %v5753_v13, %v5032_v6  ;;  %v5494_v49 = vmul.f32 -1.442695, %v12077_v36 }
 0x446   : > { %v5757_v48 = vpop.eup %5756  ;;  %v4875_v20 = vadd.f32 1.0, %v5755_v32 }
 0x447   : > { %v5037_v10 = vsel %vm5036_vm4, %v5753_v13, %v5033_v9  ;;  %v5045_v8 = vmul.f32 %v5757_v48, %v4874_v60  ;;  %5758 = vpow2.f32 %v5494_v49  ;;  %vm5050_vm13 = vweird.f32 %v5757_v48 }
 0x448   : > { %v5042_v24 = vsel %vm5039_vm3, %v5041_v7, %v5037_v10  ;;  %5760 = vrcp.f32 %v4875_v20  ;;  %v4773_v2 = vpop.f32.mrf.mxu1  ;;  %vm5051_vm14 = vmor %vm5049_vm15, %vm5050_vm13  ;;  %v5070_v29 = vand.u32 2147483648, %v4875_v20  ;;  %v5068_v59 = vand.u32 2147483647, %v4875_v20 }
 0x449   : > { %v5129_v16 = vmul.f32 %v5042_v24, %v12053_v18  ;;  %v5046_v31 = vsub.f32 1.0, %v5045_v8  ;;  %v4793_v40 = vadd.f32 %v4773_v2, %v4339_v5  ;;  %vm5064_vm6 = vweird.f32 %v4875_v20  ;;  %vm13692_vm3 = vmmov %vm13689_vm5 }
 0x44a   : > { %vm5069_vm11 = vcmp.eq.f32.partialorder %v5068_v59, 8.507059e+37 }
 0x44b   : > { %5145 = vst.msk [vmem:[%s11998_s26 + $0x50] sm:$0xff] %vm13689_vm5, %v5129_v16  ;;  %v5047_v62 = vmul.f32 %v5757_v48, %v5046_v31  ;;  %v12085_v54 = vadd.f32 %v11970_v37, %v4793_v40 }
 0x44d   : > { %v5759_v38 = vpop.eup %5758  ;;  %v5048_v1 = vadd.f32 %v5757_v48, %v5047_v62  ;;  %v5495_v18 = vmul.f32 -1.442695, %v12085_v54 }
 0x44e   : > { %v5761_v26 = vpop.eup %5760  ;;  %v4876_v25 = vadd.f32 1.0, %v5759_v38 }
 0x44f   : > { %v5052_v23 = vsel %vm5051_vm14, %v5757_v48, %v5048_v1  ;;  %v5060_v50 = vmul.f32 %v5761_v26, %v4875_v20  ;;  %5762 = vpow2.f32 %v5495_v18  ;;  %vm5065_vm0 = vweird.f32 %v5761_v26 }
 0x450   : > { %v5057_v12 = vsel %vm5054_vm2, %v5056_v55, %v5052_v23  ;;  %5764 = vrcp.f32 %v4876_v25  ;;  %v4776_v17 = vpop.f32.mrf.mxu1  ;;  %vm5066_vm7 = vmor %vm5064_vm6, %vm5065_vm0  ;;  %v5085_v41 = vand.u32 2147483648, %v4876_v25  ;;  %v5083_v43 = vand.u32 2147483647, %v4876_v25 }
 0x451   : > { %v5130_v39 = vmul.f32 %v5057_v12, %v12061_v34  ;;  %v5061_v14 = vsub.f32 1.0, %v5060_v50  ;;  %v4794_v57 = vadd.f32 %v4776_v17, %v4340_v0  ;;  %v5071_v34 = vor.u32 1.1754944e-38, %v5070_v29  ;;  %vm13693_vm2 = vmmov %vm13692_vm3 }
 0x452   : > { %vm5079_vm9 = vweird.f32 %v4876_v25  ;;  %v5086_v47 = vor.u32 1.1754944e-38, %v5085_v41  ;;  %vm5084_vm4 = vcmp.eq.f32.partialorder %v5083_v43, 8.507059e+37 }
 0x453   : > { %5146 = vst.msk [vmem:[%s11998_s26 + $0x58] sm:$0xff] %vm13690_vm8, %v5130_v39  ;;  %v5062_v30 = vmul.f32 %v5761_v26, %v5061_v14  ;;  %v12093_v45 = vadd.f32 %v11970_v37, %v4794_v57 }
 0x455   : > { %v5763_v52 = vpop.eup %5762  ;;  %v5063_v33 = vadd.f32 %v5761_v26, %v5062_v30  ;;  %v5496_v21 = vmul.f32 -1.442695, %v12093_v45 }
 0x456   : > { %v5765_v35 = vpop.eup %5764  ;;  %v4877_v13 = vadd.f32 1.0, %v5763_v52 }
 0x457   : > { %v5067_v28 = vsel %vm5066_vm7, %v5761_v26, %v5063_v33  ;;  %v5075_v51 = vmul.f32 %v5765_v35, %v4876_v25  ;;  %5766 = vpow2.f32 %v5496_v21  ;;  %vm5080_vm12 = vweird.f32 %v5765_v35 }
 0x458   : > { %v5072_v60 = vsel %vm5069_vm11, %v5071_v34, %v5067_v28  ;;  %5768 = vrcp.f32 %v4877_v13  ;;  %vm5081_vm1 = vmor %vm5079_vm9, %vm5080_vm12  ;;  %v5100_v32 = vand.u32 2147483648, %v4877_v13  ;;  %v5098_v49 = vand.u32 2147483647, %v4877_v13 }
 0x459   : > { %v5131_v19 = vmul.f32 %v5072_v60, %v12069_v42  ;;  %v5076_v37 = vsub.f32 1.0, %v5075_v51  ;;  %vm5094_vm13 = vweird.f32 %v4877_v13  ;;  %vm13694_vm11 = vmmov %vm13693_vm2 }
 0x45a   : > { %v5101_v7 = vor.u32 1.1754944e-38, %v5100_v32  ;;  %vm5099_vm14 = vcmp.eq.f32.partialorder %v5098_v49, 8.507059e+37 }
 0x45b   : > { %5147 = vst.msk [vmem:[%s11998_s26 + $0x60] sm:$0xff] %vm13691_vm10, %v5131_v19  ;;  %v5077_v15 = vmul.f32 %v5765_v35, %v5076_v37 }
 0x45d   : > { %v5767_v11 = vpop.eup %5766  ;;  %v5078_v56 = vadd.f32 %v5765_v35, %v5077_v15 }
 0x45e   : > { %v5769_v53 = vpop.eup %5768  ;;  %v4878_v3 = vadd.f32 1.0, %v5767_v11 }
 0x45f   : > { %v5082_v27 = vsel %vm5081_vm1, %v5765_v35, %v5078_v56  ;;  %v5090_v6 = vmul.f32 %v5769_v53, %v4877_v13  ;;  %vm5095_vm5 = vweird.f32 %v5769_v53 }
 0x460   : > { %v5087_v58 = vsel %vm5084_vm4, %v5086_v47, %v5082_v27  ;;  %5770 = vrcp.f32 %v4878_v3  ;;  %vm5096_vm15 = vmor %vm5094_vm13, %vm5095_vm5  ;;  %v5115_v2 = vand.u32 2147483648, %v4878_v3  ;;  %v5113_v31 = vand.u32 2147483647, %v4878_v3 }
 0x461   : > { %v5132_v42 = vmul.f32 %v5087_v58, %v12077_v36  ;;  %v5091_v61 = vsub.f32 1.0, %v5090_v6  ;;  %vm5109_vm0 = vweird.f32 %v4878_v3 }
 0x462   : > { %v5116_v4 = vor.u32 1.1754944e-38, %v5115_v2  ;;  %vm5114_vm7 = vcmp.eq.f32.partialorder %v5113_v31, 8.507059e+37 }
 0x463   : > { %5148 = vst.msk [vmem:[%s11998_s26 + $0x68] sm:$0xff] %vm13692_vm3, %v5132_v42  ;;  %v5092_v9 = vmul.f32 %v5769_v53, %v5091_v61 }
 0x465   : > { %v5093_v48 = vadd.f32 %v5769_v53, %v5092_v9 }
 0x466   : > { %v5771_v5 = vpop.eup %5770 }
 0x467   : > { %v5097_v20 = vsel %vm5096_vm15, %v5769_v53, %v5093_v48  ;;  %v5105_v10 = vmul.f32 %v5771_v5, %v4878_v3  ;;  %vm5110_vm8 = vweird.f32 %v5771_v5 }
 0x468   : > { %v5102_v8 = vsel %vm5099_vm14, %v5101_v7, %v5097_v20  ;;  %vm5111_vm6 = vmor %vm5109_vm0, %vm5110_vm8 }
 0x469   : > { %v5133_v36 = vmul.f32 %v5102_v8, %v12085_v54  ;;  %v5106_v24 = vsub.f32 1.0, %v5105_v10 }
 0x46b   : > { %5149 = vst.msk [vmem:[%s11998_s26 + $0x70] sm:$0xff] %vm13693_vm2, %v5133_v36  ;;  %v5107_v16 = vmul.f32 %v5771_v5, %v5106_v24 }
 0x46d   : > { %v5108_v40 = vadd.f32 %v5771_v5, %v5107_v16 }
 0x46f   : > { %v5112_v63 = vsel %vm5111_vm6, %v5771_v5, %v5108_v40 }
 0x470   : > { %v5117_v44 = vsel %vm5114_vm7, %v5116_v4, %v5112_v63 }
 0x471   : > { %v5134_v62 = vmul.f32 %v5117_v44, %v12093_v45 }
 0x473   : > { %5150 = vst.msk [vmem:[%s11998_s26 + $0x78] sm:$0xff] %vm13694_vm11, %v5134_v62 }
 0x474 PF: > { %s19_s13 = sadd.s32 1, %s5866_s13   ;;  %s13695_s30 = smov %s5858_s11 }
 0x475   : > { %p16_p11 = scmp.ge.s32.totalorder %s19_s13, 6   ;;  %s13696_s10 = smov %s5862_s12 }
 0x476   : > { %s13697_s11 = smov %s13700_s14  ;;  %s13698_s12 = smov %s13704_s15 }
 0x477   :  { %18 = sbr.rel (!%p16_p11) target bundleno = 3 (0x3), region = 96 }

</bundles_post_ra>
